<compile_context>
chip_gen: v7x
topology: tpu7x:2x2x1
jax: 0.10.0
libtpu: 0.0.40
codegen_flags: <defaults>
</compile_context>

<pallas_src>
import numpy as np
import jax
import jax.numpy as jnp
from jax.experimental import pallas as pl
from jax.experimental.pallas import tpu as pltpu

NUM_CLASSES = 10


def _round_up(x, m):
    return ((x + m - 1) // m) * m


# --------------------------- Pallas kernels ---------------------------------

def _conv_stack_kernel(xd_ref, t1_ref, b1_ref, t2_ref, b2_ref, o_ref, a1_ref):
    """conv1+relu+pool1+conv2+relu+pool2 for one 28x28x1 image.

    xd_ref : (4, 8, 30) bf16   'same'-padded 30x30 image, rows deinterleaved
                               mod 4: xd[m, t, :] == x_pad[4*t + m, :].
    t1_ref : (2, 3, 30, 448) bf16  conv1 Toeplitz weight, [pw, di, col, wp*32+c].
    b1_ref : (1, 448) f32          conv1 bias tiled over wp.
    t2_ref : (2, 3, 448, 448) bf16 conv2 Toeplitz weight,
                                   [pw, di, w1*32+c1, u*64+c2].
    b2_ref : (1, 448) f32          conv2 bias tiled over u.
    o_ref  : (7, 448) bf16         pooled conv2 output, row g, lane u*64+c2
                                   (== NHWC (7,7,64) with (u,c2) on lanes).
    a1_ref : (2, 8, 448) bf16 scratch: pool1 output split by row parity,
             a1[0, q] = pool1 row 2q   (q<7, row 7 kept zero),
             a1[1, 1+q] = pool1 row 2q+1 (row 0 kept zero).
    """
    a1_ref[...] = jnp.zeros_like(a1_ref)
    b1 = b1_ref[...]

    # ---- conv1 + bias + relu + 2x2 maxpool, split by output-row parity s ----
    # pool plane (ph, pw), pooled row hp = 2q + s  ->  x_pad row 4q + d,
    # d = 2s + ph + di; the W-shift/channel mixing lives in the Toeplitz RHS.
    for s in (0, 1):
        m = None
        for ph in (0, 1):
            for pw in (0, 1):
                acc = jnp.zeros((7, 448), jnp.float32)
                for di in range(3):
                    d = 2 * s + ph + di
                    lhs = xd_ref[d % 4, pl.ds(d // 4, 7), :]          # (7, 30)
                    acc = acc + jnp.dot(lhs, t1_ref[pw, di],
                                        preferred_element_type=jnp.float32)
                m = acc if m is None else jnp.maximum(m, acc)
        # maxpool(relu(conv + b)) == relu(max(conv) + b)
        pooled = jnp.maximum(m + b1, 0.0).astype(a1_ref.dtype)        # (7, 448)
        a1_ref[s, pl.ds(s, 7), :] = pooled

    # ---- conv2 + bias + relu + 2x2 maxpool ----
    # pool plane (ph, pw), output row g -> pool1 row 2g + e, e = ph + di - 1,
    # fetched as a contiguous 7-row slice of the parity map of e.
    b2 = b2_ref[...]
    m2 = None
    for ph in (0, 1):
        for pw in (0, 1):
            acc = jnp.zeros((7, 448), jnp.float32)
            for di in range(3):
                e = ph + di - 1
                p = e % 2                    # python mod: (-1) % 2 == 1
                start = (e + p) // 2
                lhs = a1_ref[p, pl.ds(start, 7), :]                   # (7, 448)
                acc = acc + jnp.dot(lhs, t2_ref[pw, di],
                                    preferred_element_type=jnp.float32)
            m2 = acc if m2 is None else jnp.maximum(m2, acc)
    o_ref[...] = jnp.maximum(m2 + b2, 0.0).astype(o_ref.dtype)


def conv_stack(xd, t1, b1row, t2, b2row):
    """xd: (B, 4, 8, 30) bf16 -> (B, 7, 448) bf16 pooled conv2 activations."""
    batch = xd.shape[0]
    flops = int(batch * (24 * 2 * 7 * 30 * 448 + 12 * 2 * 7 * 448 * 448))
    bytes_accessed = int(xd.size * 2 + t1.size * 2 + t2.size * 2
                         + b1row.size * 4 + b2row.size * 4
                         + batch * 7 * 448 * 2)
    return pl.pallas_call(
        _conv_stack_kernel,
        out_shape=jax.ShapeDtypeStruct((batch, 7, 448), jnp.bfloat16),
        grid_spec=pltpu.PrefetchScalarGridSpec(
            num_scalar_prefetch=0,
            grid=(batch,),
            in_specs=[
                pl.BlockSpec((None, 4, 8, 30), lambda b: (b, 0, 0, 0)),
                pl.BlockSpec((2, 3, 30, 448), lambda b: (0, 0, 0, 0)),    # resident
                pl.BlockSpec((1, 448), lambda b: (0, 0)),                 # resident
                pl.BlockSpec((2, 3, 448, 448), lambda b: (0, 0, 0, 0)),   # resident
                pl.BlockSpec((1, 448), lambda b: (0, 0)),                 # resident
            ],
            out_specs=pl.BlockSpec((None, 7, 448), lambda b: (b, 0, 0)),
            scratch_shapes=[pltpu.VMEM((2, 8, 448), jnp.bfloat16)],
        ),
        compiler_params=pltpu.CompilerParams(
            dimension_semantics=("parallel",)),
        cost_estimate=pl.CostEstimate(
            flops=flops, transcendentals=0, bytes_accessed=bytes_accessed),
    )(xd, t1, b1row, t2, b2row)


def _mlp_head_kernel(x_ref, w1_ref, b1_ref, w2_ref, b2_ref, o_ref):
    # fused fc1 -> relu -> fc2 (bf16 MXU operands, f32 accumulation/epilogue)
    h = jnp.dot(x_ref[...], w1_ref[...], preferred_element_type=jnp.float32)
    h = jnp.maximum(h + b1_ref[...], 0.0)
    y = jnp.dot(h.astype(w2_ref.dtype), w2_ref[...],
                preferred_element_type=jnp.float32)
    o_ref[...] = (y + b2_ref[...]).astype(o_ref.dtype)


def mlp_head(x, w1, b1, w2p, b2p, *, num_classes=NUM_CLASSES, max_tile_rows=512):
    """x: (B, D) -> (B, num_classes) f32 logits. w2p/b2p are 128-lane padded."""
    batch, d = x.shape
    hdim = w1.shape[1]
    c_pad = w2p.shape[1]
    if batch <= max_tile_rows:          # single tile, no row padding needed
        tile_b, b_pad = batch, batch
    else:                               # large batch: 512-row tiles
        tile_b = max_tile_rows
        b_pad = _round_up(batch, tile_b)
    xb = x.astype(jnp.bfloat16)
    if b_pad != batch:
        xb = jnp.pad(xb, ((0, b_pad - batch), (0, 0)))

    flops = int(2 * b_pad * (d * hdim + hdim * c_pad))
    bytes_accessed = int(xb.size * 2 + w1.size * 2 + b1.size * 4
                         + w2p.size * 2 + b2p.size * 4 + b_pad * c_pad * 4)
    out = pl.pallas_call(
        _mlp_head_kernel,
        out_shape=jax.ShapeDtypeStruct((b_pad, c_pad), jnp.float32),
        grid_spec=pltpu.PrefetchScalarGridSpec(
            num_scalar_prefetch=0,
            grid=(b_pad // tile_b,),
            in_specs=[
                pl.BlockSpec((tile_b, d), lambda i: (i, 0)),
                pl.BlockSpec((d, hdim), lambda i: (0, 0)),
                pl.BlockSpec((1, hdim), lambda i: (0, 0)),
                pl.BlockSpec((hdim, c_pad), lambda i: (0, 0)),
                pl.BlockSpec((1, c_pad), lambda i: (0, 0)),
            ],
            out_specs=pl.BlockSpec((tile_b, c_pad), lambda i: (i, 0)),
        ),
        compiler_params=pltpu.CompilerParams(
            dimension_semantics=("parallel",)),
        cost_estimate=pl.CostEstimate(
            flops=flops, transcendentals=0, bytes_accessed=bytes_accessed),
    )(xb, w1, b1, w2p, b2p)
    return out[:batch, :num_classes]


# ------------------------------- Wrapper -------------------------------------

def spoken_digit_forward(x_nchw, prep):
    """Matches SpokenDigitRecognizerr.forward for x of shape (B, 1, 28, 28)."""
    batch = x_nchw.shape[0]
    x = x_nchw.reshape(batch, 28, 28)
    # 'same' pad to 30x30 (+2 dummy rows so H is a multiple of 4), then
    # deinterleave rows mod 4 so every in-kernel plane slice is contiguous:
    # xd[b, m, t, :] == x_pad[b, 4*t + m, :].
    xp = jnp.pad(x, ((0, 0), (1, 3), (1, 1)))                   # (B, 32, 30)
    xd = xp.reshape(batch, 8, 4, 30).transpose(0, 2, 1, 3)      # (B, 4, 8, 30)
    xd = xd.astype(jnp.bfloat16)

    # conv1+relu+pool1+conv2+relu+pool2 fused (Pallas) -> (B, 7, 448)
    y = conv_stack(xd, prep["t1"], prep["b1row"], prep["t2"], prep["b2row"])

    # (B, 7, 448) is already the NHWC flatten (g, u, c) order fc1 expects.
    flat = y.reshape(batch, 7 * 448)

    # fc1 + relu + fc2 fused (Pallas); f32 logits.
    return mlp_head(flat, prep["fc1_w"], prep["fc1_b"],
                    prep["fc2_w"], prep["fc2_b"])


def init_params(key):
    ks = jax.random.split(key, 8)

    def u(k, shape, fan_in):
        bound = 1.0 / jnp.sqrt(jnp.float32(fan_in))
        return jax.random.uniform(k, shape, jnp.float32, -bound, bound)

    # Conv weights stored as (kh, kw, Cin, Cout); fc1 rows in NHWC-flatten
    # order.  To load real PyTorch weights: conv (Cout, Cin, kh, kw) ->
    # transpose(2, 3, 1, 0); fc1 (128, 64*7*7) -> reshape(128, 64, 7, 7) ->
    # transpose(2, 3, 1, 0) -> reshape(3136, 128); fc2 (10, 128) -> transpose.
    return {
        "conv1_w": u(ks[0], (3, 3, 1, 32), 9 * 1),
        "conv1_b": u(ks[1], (32,), 9 * 1),
        "conv2_w": u(ks[2], (3, 3, 32, 64), 9 * 32),
        "conv2_b": u(ks[3], (64,), 9 * 32),
        "fc1_w": u(ks[4], (64 * 7 * 7, 128), 64 * 7 * 7),
        "fc1_b": u(ks[5], (128,), 64 * 7 * 7),
        "fc2_w": u(ks[6], (128, NUM_CLASSES), 128),
        "fc2_b": u(ks[7], (NUM_CLASSES,), 128),
    }


def prepare_params(params):
    """One-time (outside jit) build of kernel-ready weights: Toeplitz conv
    weights, lane-tiled biases, bf16 casts, 128-lane padded fc2."""
    w1 = np.asarray(params["conv1_w"], np.float32).reshape(3, 3, 32)
    w2 = np.asarray(params["conv2_w"], np.float32)          # (3, 3, 32, 64)

    # conv1: T1[pw, di, j, wp*32 + c] = W1[di, j - (2*wp + pw), c]
    t1 = np.zeros((2, 3, 30, 14 * 32), np.float32)
    for pw in range(2):
        for di in range(3):
            for wp in range(14):
                for dj in range(3):
                    j = 2 * wp + pw + dj
                    t1[pw, di, j, wp * 32:(wp + 1) * 32] = w1[di, dj]

    # conv2: T2[pw, di, w1*32 + c1, u*64 + c2] = W2[di, w1 - (2u + pw - 1), c1, c2]
    t2 = np.zeros((2, 3, 14 * 32, 7 * 64), np.float32)
    for pw in range(2):
        for di in range(3):
            for u in range(7):
                for dj in range(3):
                    wcol = 2 * u + pw + dj - 1
                    if 0 <= wcol < 14:
                        t2[pw, di, wcol * 32:(wcol + 1) * 32,
                           u * 64:(u + 1) * 64] = w2[di, dj]

    b1 = np.asarray(params["conv1_b"], np.float32)
    b2 = np.asarray(params["conv2_b"], np.float32)
    c = params["fc2_w"].shape[1]
    c_pad = _round_up(c, 128)
    fc2w = np.pad(np.asarray(params["fc2_w"], np.float32), ((0, 0), (0, c_pad - c)))
    fc2b = np.pad(np.asarray(params["fc2_b"], np.float32), (0, c_pad - c))

    return {
        "t1": jnp.asarray(t1, jnp.bfloat16),
        "b1row": jnp.asarray(np.tile(b1, 14).reshape(1, 448), jnp.float32),
        "t2": jnp.asarray(t2, jnp.bfloat16),
        "b2row": jnp.asarray(np.tile(b2, 7).reshape(1, 448), jnp.float32),
        "fc1_w": jnp.asarray(params["fc1_w"], jnp.bfloat16),
        "fc1_b": jnp.asarray(params["fc1_b"], jnp.float32).reshape(1, 128),
        "fc2_w": jnp.asarray(fc2w, jnp.bfloat16),
        "fc2_b": jnp.asarray(fc2b.reshape(1, c_pad), jnp.float32),
    }


def _ref_forward(x_nchw, params):
    """Pure-JAX f32 reference with the same weight-layout conventions."""
    x = jnp.transpose(x_nchw, (0, 2, 3, 1)).astype(jnp.float32)

    def conv3x3_same(a, w, b):
        bsz, hh, ww, _ = a.shape
        ap = jnp.pad(a, ((0, 0), (1, 1), (1, 1), (0, 0)))
        out = jnp.zeros((bsz, hh, ww, w.shape[3]), jnp.float32)
        for di in range(3):
            for dj in range(3):
                out = out + jnp.einsum("bhwc,cd->bhwd",
                                       ap[:, di:di + hh, dj:dj + ww, :], w[di, dj])
        return jax.nn.relu(out + b)

    def pool2x2(a):
        bsz, hh, ww, cc = a.shape
        return a.reshape(bsz, hh // 2, 2, ww // 2, 2, cc).max(axis=(2, 4))

    y = pool2x2(conv3x3_same(x, params["conv1_w"], params["conv1_b"]))
    y = pool2x2(conv3x3_same(y, params["conv2_w"], params["conv2_b"]))
    f = y.reshape(y.shape[0], -1)
    hidden = jax.nn.relu(f @ params["fc1_w"] + params["fc1_b"])
    return hidden @ params["fc2_w"] + params["fc2_b"]


if __name__ == "__main__":
    key = jax.random.PRNGKey(0)
    kx, kp = jax.random.split(key)
    # The conv/fc path requires 28x28 single-channel input (64*7*7 flatten).
    x = jax.random.normal(kx, (2, 1, 28, 28), jnp.float32)
    params = init_params(kp)
    prep = prepare_params(params)

    out = jax.jit(spoken_digit_forward)(x, prep)
    out = jax.block_until_ready(out)
    assert out.shape == (2, NUM_CLASSES) and out.dtype == jnp.float32

    ref = jax.block_until_ready(jax.jit(_ref_forward)(x, params))
    err = float(jnp.max(jnp.abs(out - ref)))
    assert err < 0.1, f"Pallas vs f32 reference mismatch: max abs err = {err}"
    print("KERNEL_OK")
</pallas_src>

<mosaic_0001>
module attributes {stable_mosaic.version = 11 : i64} {
  func.func @_mlp_head_kernel(%arg0: i32, %arg1: memref<2x3136xbf16, #tpu.memory_space<vmem>>, %arg2: memref<3136x128xbf16, #tpu.memory_space<vmem>>, %arg3: memref<1x128xf32, #tpu.memory_space<vmem>>, %arg4: memref<128x128xbf16, #tpu.memory_space<vmem>>, %arg5: memref<1x128xf32, #tpu.memory_space<vmem>>, %arg6: memref<2x128xf32, #tpu.memory_space<vmem>>) attributes {dimension_semantics = [#tpu.dimension_semantics<parallel>], iteration_bounds = array<i64: 1>, scalar_prefetch = 0 : i64, scratch_operands = 0 : i64, tpu.core_type = #tpu.core_type<tc>, window_params = [{transform_indices = @transform_0, window_bounds = array<i64: 2, 3136>}, {pipeline_mode = #tpu.pipeline_mode<synchronous>, transform_indices = @transform_1, window_bounds = array<i64: 3136, 128>}, {pipeline_mode = #tpu.pipeline_mode<synchronous>, transform_indices = @transform_2, window_bounds = array<i64: 1, 128>}, {pipeline_mode = #tpu.pipeline_mode<synchronous>, transform_indices = @transform_3, window_bounds = array<i64: 128, 128>}, {pipeline_mode = #tpu.pipeline_mode<synchronous>, transform_indices = @transform_4, window_bounds = array<i64: 1, 128>}, {transform_indices = @transform_5, window_bounds = array<i64: 2, 128>}]} {
    %c0 = arith.constant 0 : index
    %c0_0 = arith.constant 0 : index
    %0 = vector.load %arg1[%c0, %c0_0] : memref<2x3136xbf16, #tpu.memory_space<vmem>>, vector<2x3136xbf16>
    %c0_1 = arith.constant 0 : index
    %c0_2 = arith.constant 0 : index
    %1 = vector.load %arg2[%c0_1, %c0_2] : memref<3136x128xbf16, #tpu.memory_space<vmem>>, vector<3136x128xbf16>
    %cst = arith.constant dense<0.000000e+00> : vector<2x128xf32>
    %2 = tpu.matmul %0, %1, %cst {dimension_numbers = #tpu.dot_dimension_numbers<[1], [0], [0], [1], [0, 0, 1, 1], [], []>} : vector<2x3136xbf16>, vector<3136x128xbf16>, vector<2x128xf32> -> vector<2x128xf32>
    %c0_3 = arith.constant 0 : index
    %c0_4 = arith.constant 0 : index
    %3 = vector.load %arg3[%c0_3, %c0_4] : memref<1x128xf32, #tpu.memory_space<vmem>>, vector<1x128xf32>
    %4 = vector.broadcast %3 : vector<1x128xf32> to vector<2x128xf32>
    %5 = arith.addf %2, %4 : vector<2x128xf32>
    %cst_5 = arith.constant 0.000000e+00 : f32
    %6 = vector.broadcast %cst_5 : f32 to vector<2x128xf32>
    %7 = arith.maximumf %5, %6 : vector<2x128xf32>
    %8 = arith.truncf %7 : vector<2x128xf32> to vector<2x128xbf16>
    %c0_6 = arith.constant 0 : index
    %c0_7 = arith.constant 0 : index
    %9 = vector.load %arg4[%c0_6, %c0_7] : memref<128x128xbf16, #tpu.memory_space<vmem>>, vector<128x128xbf16>
    %cst_8 = arith.constant dense<0.000000e+00> : vector<2x128xf32>
    %10 = tpu.matmul %8, %9, %cst_8 {dimension_numbers = #tpu.dot_dimension_numbers<[1], [0], [0], [1], [0, 0, 1, 1], [], []>} : vector<2x128xbf16>, vector<128x128xbf16>, vector<2x128xf32> -> vector<2x128xf32>
    %c0_9 = arith.constant 0 : index
    %c0_10 = arith.constant 0 : index
    %11 = vector.load %arg5[%c0_9, %c0_10] : memref<1x128xf32, #tpu.memory_space<vmem>>, vector<1x128xf32>
    %12 = vector.broadcast %11 : vector<1x128xf32> to vector<2x128xf32>
    %13 = arith.addf %10, %12 : vector<2x128xf32>
    %c0_11 = arith.constant 0 : index
    %c0_12 = arith.constant 0 : index
    %14 = vector.load %arg6[%c0_11, %c0_12] : memref<2x128xf32, #tpu.memory_space<vmem>>, vector<2x128xf32>
    tpu.vector_store %arg6[%c0_11, %c0_12], %13 {strides = array<i32>} : memref<2x128xf32, #tpu.memory_space<vmem>>, vector<2x128xf32>,
    return
  }
  func.func @transform_0(%arg0: i32) -> (i32, i32) {
    %c0_i32 = arith.constant 0 : i32
    %c0_i32_0 = arith.constant 0 : i32
    return %arg0, %c0_i32 : i32, i32
  }
  func.func @transform_1(%arg0: i32) -> (i32, i32) {
    %c0_i32 = arith.constant 0 : i32
    %c0_i32_0 = arith.constant 0 : i32
    %c0_i32_1 = arith.constant 0 : i32
    return %c0_i32, %c0_i32_0 : i32, i32
  }
  func.func @transform_2(%arg0: i32) -> (i32, i32) {
    %c0_i32 = arith.constant 0 : i32
    %c0_i32_0 = arith.constant 0 : i32
    %c0_i32_1 = arith.constant 0 : i32
    return %c0_i32, %c0_i32_0 : i32, i32
  }
  func.func @transform_3(%arg0: i32) -> (i32, i32) {
    %c0_i32 = arith.constant 0 : i32
    %c0_i32_0 = arith.constant 0 : i32
    %c0_i32_1 = arith.constant 0 : i32
    return %c0_i32, %c0_i32_0 : i32, i32
  }
  func.func @transform_4(%arg0: i32) -> (i32, i32) {
    %c0_i32 = arith.constant 0 : i32
    %c0_i32_0 = arith.constant 0 : i32
    %c0_i32_1 = arith.constant 0 : i32
    return %c0_i32, %c0_i32_0 : i32, i32
  }
  func.func @transform_5(%arg0: i32) -> (i32, i32) {
    %c0_i32 = arith.constant 0 : i32
    %c0_i32_0 = arith.constant 0 : i32
    return %arg0, %c0_i32 : i32, i32
  }
}

module attributes {stable_mosaic.version = 11 : i64} {
  func.func @_conv_stack_kernel(%arg0: i32, %arg1: memref<1x4x8x30xbf16, #tpu.memory_space<vmem>>, %arg2: memref<2x3x30x448xbf16, #tpu.memory_space<vmem>>, %arg3: memref<1x448xf32, #tpu.memory_space<vmem>>, %arg4: memref<2x3x448x448xbf16, #tpu.memory_space<vmem>>, %arg5: memref<1x448xf32, #tpu.memory_space<vmem>>, %arg6: memref<1x7x448xbf16, #tpu.memory_space<vmem>>, %arg7: memref<2x8x448xbf16, #tpu.memory_space<vmem>>) attributes {dimension_semantics = [#tpu.dimension_semantics<parallel>], iteration_bounds = array<i64: 2>, scalar_prefetch = 0 : i64, scratch_operands = 1 : i64, tpu.core_type = #tpu.core_type<tc>, window_params = [{transform_indices = @transform_0, window_bounds = array<i64: 1, 4, 8, 30>}, {pipeline_mode = #tpu.pipeline_mode<synchronous>, transform_indices = @transform_1, window_bounds = array<i64: 2, 3, 30, 448>}, {pipeline_mode = #tpu.pipeline_mode<synchronous>, transform_indices = @transform_2, window_bounds = array<i64: 1, 448>}, {pipeline_mode = #tpu.pipeline_mode<synchronous>, transform_indices = @transform_3, window_bounds = array<i64: 2, 3, 448, 448>}, {pipeline_mode = #tpu.pipeline_mode<synchronous>, transform_indices = @transform_4, window_bounds = array<i64: 1, 448>}, {transform_indices = @transform_5, window_bounds = array<i64: 1, 7, 448>}]} {
    %cst = arith.constant 0.000000e+00 : bf16
    %0 = vector.broadcast %cst : bf16 to vector<2x8x448xbf16>
    %c0 = arith.constant 0 : index
    %c0_0 = arith.constant 0 : index
    %c0_1 = arith.constant 0 : index
    %1 = vector.load %arg7[%c0, %c0_0, %c0_1] : memref<2x8x448xbf16, #tpu.memory_space<vmem>>, vector<2x8x448xbf16>
    tpu.vector_store %arg7[%c0, %c0_0, %c0_1], %0 {strides = array<i32>} : memref<2x8x448xbf16, #tpu.memory_space<vmem>>, vector<2x8x448xbf16>,
    %c0_2 = arith.constant 0 : index
    %c0_3 = arith.constant 0 : index
    %2 = vector.load %arg3[%c0_2, %c0_3] : memref<1x448xf32, #tpu.memory_space<vmem>>, vector<1x448xf32>
    %cst_4 = arith.constant 0.000000e+00 : f32
    %3 = vector.broadcast %cst_4 : f32 to vector<7x448xf32>
    %c0_5 = arith.constant 0 : index
    %c0_6 = arith.constant 0 : index
    %c0_7 = arith.constant 0 : index
    %c0_8 = arith.constant 0 : index
    %4 = vector.load %arg1[%c0_5, %c0_6, %c0_7, %c0_8] : memref<1x4x8x30xbf16, #tpu.memory_space<vmem>>, vector<1x1x7x30xbf16>
    %5 = vector.shape_cast %4 : vector<1x1x7x30xbf16> to vector<7x30xbf16>
    %c0_9 = arith.constant 0 : index
    %c0_10 = arith.constant 0 : index
    %c0_11 = arith.constant 0 : index
    %c0_12 = arith.constant 0 : index
    %6 = vector.load %arg2[%c0_9, %c0_10, %c0_11, %c0_12] : memref<2x3x30x448xbf16, #tpu.memory_space<vmem>>, vector<1x1x30x448xbf16>
    %7 = vector.shape_cast %6 : vector<1x1x30x448xbf16> to vector<30x448xbf16>
    %cst_13 = arith.constant dense<0.000000e+00> : vector<7x448xf32>
    %8 = tpu.matmul %5, %7, %cst_13 {dimension_numbers = #tpu.dot_dimension_numbers<[1], [0], [0], [1], [0, 0, 1, 1], [], []>} : vector<7x30xbf16>, vector<30x448xbf16>, vector<7x448xf32> -> vector<7x448xf32>
    %9 = arith.addf %3, %8 : vector<7x448xf32>
    %c0_14 = arith.constant 0 : index
    %c1 = arith.constant 1 : index
    %c0_15 = arith.constant 0 : index
    %c0_16 = arith.constant 0 : index
    %10 = vector.load %arg1[%c0_14, %c1, %c0_15, %c0_16] : memref<1x4x8x30xbf16, #tpu.memory_space<vmem>>, vector<1x1x7x30xbf16>
    %11 = vector.shape_cast %10 : vector<1x1x7x30xbf16> to vector<7x30xbf16>
    %c0_17 = arith.constant 0 : index
    %c1_18 = arith.constant 1 : index
    %c0_19 = arith.constant 0 : index
    %c0_20 = arith.constant 0 : index
    %12 = vector.load %arg2[%c0_17, %c1_18, %c0_19, %c0_20] : memref<2x3x30x448xbf16, #tpu.memory_space<vmem>>, vector<1x1x30x448xbf16>
    %13 = vector.shape_cast %12 : vector<1x1x30x448xbf16> to vector<30x448xbf16>
    %cst_21 = arith.constant dense<0.000000e+00> : vector<7x448xf32>
    %14 = tpu.matmul %11, %13, %cst_21 {dimension_numbers = #tpu.dot_dimension_numbers<[1], [0], [0], [1], [0, 0, 1, 1], [], []>} : vector<7x30xbf16>, vector<30x448xbf16>, vector<7x448xf32> -> vector<7x448xf32>
    %15 = arith.addf %9, %14 : vector<7x448xf32>
    %c0_22 = arith.constant 0 : index
    %c2 = arith.constant 2 : index
    %c0_23 = arith.constant 0 : index
    %c0_24 = arith.constant 0 : index
    %16 = vector.load %arg1[%c0_22, %c2, %c0_23, %c0_24] : memref<1x4x8x30xbf16, #tpu.memory_space<vmem>>, vector<1x1x7x30xbf16>
    %17 = vector.shape_cast %16 : vector<1x1x7x30xbf16> to vector<7x30xbf16>
    %c0_25 = arith.constant 0 : index
    %c2_26 = arith.constant 2 : index
    %c0_27 = arith.constant 0 : index
    %c0_28 = arith.constant 0 : index
    %18 = vector.load %arg2[%c0_25, %c2_26, %c0_27, %c0_28] : memref<2x3x30x448xbf16, #tpu.memory_space<vmem>>, vector<1x1x30x448xbf16>
    %19 = vector.shape_cast %18 : vector<1x1x30x448xbf16> to vector<30x448xbf16>
    %cst_29 = arith.constant dense<0.000000e+00> : vector<7x448xf32>
    %20 = tpu.matmul %17, %19, %cst_29 {dimension_numbers = #tpu.dot_dimension_numbers<[1], [0], [0], [1], [0, 0, 1, 1], [], []>} : vector<7x30xbf16>, vector<30x448xbf16>, vector<7x448xf32> -> vector<7x448xf32>
    %21 = arith.addf %15, %20 : vector<7x448xf32>
    %cst_30 = arith.constant 0.000000e+00 : f32
    %22 = vector.broadcast %cst_30 : f32 to vector<7x448xf32>
    %c0_31 = arith.constant 0 : index
    %c0_32 = arith.constant 0 : index
    %c0_33 = arith.constant 0 : index
    %c0_34 = arith.constant 0 : index
    %23 = vector.load %arg1[%c0_31, %c0_32, %c0_33, %c0_34] : memref<1x4x8x30xbf16, #tpu.memory_space<vmem>>, vector<1x1x7x30xbf16>
    %24 = vector.shape_cast %23 : vector<1x1x7x30xbf16> to vector<7x30xbf16>
    %c1_35 = arith.constant 1 : index
    %c0_36 = arith.constant 0 : index
    %c0_37 = arith.constant 0 : index
    %c0_38 = arith.constant 0 : index
    %25 = vector.load %arg2[%c1_35, %c0_36, %c0_37, %c0_38] : memref<2x3x30x448xbf16, #tpu.memory_space<vmem>>, vector<1x1x30x448xbf16>
    %26 = vector.shape_cast %25 : vector<1x1x30x448xbf16> to vector<30x448xbf16>
    %cst_39 = arith.constant dense<0.000000e+00> : vector<7x448xf32>
    %27 = tpu.matmul %24, %26, %cst_39 {dimension_numbers = #tpu.dot_dimension_numbers<[1], [0], [0], [1], [0, 0, 1, 1], [], []>} : vector<7x30xbf16>, vector<30x448xbf16>, vector<7x448xf32> -> vector<7x448xf32>
    %28 = arith.addf %22, %27 : vector<7x448xf32>
    %c0_40 = arith.constant 0 : index
    %c1_41 = arith.constant 1 : index
    %c0_42 = arith.constant 0 : index
    %c0_43 = arith.constant 0 : index
    %29 = vector.load %arg1[%c0_40, %c1_41, %c0_42, %c0_43] : memref<1x4x8x30xbf16, #tpu.memory_space<vmem>>, vector<1x1x7x30xbf16>
    %30 = vector.shape_cast %29 : vector<1x1x7x30xbf16> to vector<7x30xbf16>
    %c1_44 = arith.constant 1 : index
    %c1_45 = arith.constant 1 : index
    %c0_46 = arith.constant 0 : index
    %c0_47 = arith.constant 0 : index
    %31 = vector.load %arg2[%c1_44, %c1_45, %c0_46, %c0_47] : memref<2x3x30x448xbf16, #tpu.memory_space<vmem>>, vector<1x1x30x448xbf16>
    %32 = vector.shape_cast %31 : vector<1x1x30x448xbf16> to vector<30x448xbf16>
    %cst_48 = arith.constant dense<0.000000e+00> : vector<7x448xf32>
    %33 = tpu.matmul %30, %32, %cst_48 {dimension_numbers = #tpu.dot_dimension_numbers<[1], [0], [0], [1], [0, 0, 1, 1], [], []>} : vector<7x30xbf16>, vector<30x448xbf16>, vector<7x448xf32> -> vector<7x448xf32>
    %34 = arith.addf %28, %33 : vector<7x448xf32>
    %c0_49 = arith.constant 0 : index
    %c2_50 = arith.constant 2 : index
    %c0_51 = arith.constant 0 : index
    %c0_52 = arith.constant 0 : index
    %35 = vector.load %arg1[%c0_49, %c2_50, %c0_51, %c0_52] : memref<1x4x8x30xbf16, #tpu.memory_space<vmem>>, vector<1x1x7x30xbf16>
    %36 = vector.shape_cast %35 : vector<1x1x7x30xbf16> to vector<7x30xbf16>
    %c1_53 = arith.constant 1 : index
    %c2_54 = arith.constant 2 : index
    %c0_55 = arith.constant 0 : index
    %c0_56 = arith.constant 0 : index
    %37 = vector.load %arg2[%c1_53, %c2_54, %c0_55, %c0_56] : memref<2x3x30x448xbf16, #tpu.memory_space<vmem>>, vector<1x1x30x448xbf16>
    %38 = vector.shape_cast %37 : vector<1x1x30x448xbf16> to vector<30x448xbf16>
    %cst_57 = arith.constant dense<0.000000e+00> : vector<7x448xf32>
    %39 = tpu.matmul %36, %38, %cst_57 {dimension_numbers = #tpu.dot_dimension_numbers<[1], [0], [0], [1], [0, 0, 1, 1], [], []>} : vector<7x30xbf16>, vector<30x448xbf16>, vector<7x448xf32> -> vector<7x448xf32>
    %40 = arith.addf %34, %39 : vector<7x448xf32>
    %41 = arith.maximumf %21, %40 : vector<7x448xf32>
    %cst_58 = arith.constant 0.000000e+00 : f32
    %42 = vector.broadcast %cst_58 : f32 to vector<7x448xf32>
    %c0_59 = arith.constant 0 : index
    %c1_60 = arith.constant 1 : index
    %c0_61 = arith.constant 0 : index
    %c0_62 = arith.constant 0 : index
    %43 = vector.load %arg1[%c0_59, %c1_60, %c0_61, %c0_62] : memref<1x4x8x30xbf16, #tpu.memory_space<vmem>>, vector<1x1x7x30xbf16>
    %44 = vector.shape_cast %43 : vector<1x1x7x30xbf16> to vector<7x30xbf16>
    %c0_63 = arith.constant 0 : index
    %c0_64 = arith.constant 0 : index
    %c0_65 = arith.constant 0 : index
    %c0_66 = arith.constant 0 : index
    %45 = vector.load %arg2[%c0_63, %c0_64, %c0_65, %c0_66] : memref<2x3x30x448xbf16, #tpu.memory_space<vmem>>, vector<1x1x30x448xbf16>
    %46 = vector.shape_cast %45 : vector<1x1x30x448xbf16> to vector<30x448xbf16>
    %cst_67 = arith.constant dense<0.000000e+00> : vector<7x448xf32>
    %47 = tpu.matmul %44, %46, %cst_67 {dimension_numbers = #tpu.dot_dimension_numbers<[1], [0], [0], [1], [0, 0, 1, 1], [], []>} : vector<7x30xbf16>, vector<30x448xbf16>, vector<7x448xf32> -> vector<7x448xf32>
    %48 = arith.addf %42, %47 : vector<7x448xf32>
    %c0_68 = arith.constant 0 : index
    %c2_69 = arith.constant 2 : index
    %c0_70 = arith.constant 0 : index
    %c0_71 = arith.constant 0 : index
    %49 = vector.load %arg1[%c0_68, %c2_69, %c0_70, %c0_71] : memref<1x4x8x30xbf16, #tpu.memory_space<vmem>>, vector<1x1x7x30xbf16>
    %50 = vector.shape_cast %49 : vector<1x1x7x30xbf16> to vector<7x30xbf16>
    %c0_72 = arith.constant 0 : index
    %c1_73 = arith.constant 1 : index
    %c0_74 = arith.constant 0 : index
    %c0_75 = arith.constant 0 : index
    %51 = vector.load %arg2[%c0_72, %c1_73, %c0_74, %c0_75] : memref<2x3x30x448xbf16, #tpu.memory_space<vmem>>, vector<1x1x30x448xbf16>
    %52 = vector.shape_cast %51 : vector<1x1x30x448xbf16> to vector<30x448xbf16>
    %cst_76 = arith.constant dense<0.000000e+00> : vector<7x448xf32>
    %53 = tpu.matmul %50, %52, %cst_76 {dimension_numbers = #tpu.dot_dimension_numbers<[1], [0], [0], [1], [0, 0, 1, 1], [], []>} : vector<7x30xbf16>, vector<30x448xbf16>, vector<7x448xf32> -> vector<7x448xf32>
    %54 = arith.addf %48, %53 : vector<7x448xf32>
    %c0_77 = arith.constant 0 : index
    %c3 = arith.constant 3 : index
    %c0_78 = arith.constant 0 : index
    %c0_79 = arith.constant 0 : index
    %55 = vector.load %arg1[%c0_77, %c3, %c0_78, %c0_79] : memref<1x4x8x30xbf16, #tpu.memory_space<vmem>>, vector<1x1x7x30xbf16>
    %56 = vector.shape_cast %55 : vector<1x1x7x30xbf16> to vector<7x30xbf16>
    %c0_80 = arith.constant 0 : index
    %c2_81 = arith.constant 2 : index
    %c0_82 = arith.constant 0 : index
    %c0_83 = arith.constant 0 : index
    %57 = vector.load %arg2[%c0_80, %c2_81, %c0_82, %c0_83] : memref<2x3x30x448xbf16, #tpu.memory_space<vmem>>, vector<1x1x30x448xbf16>
    %58 = vector.shape_cast %57 : vector<1x1x30x448xbf16> to vector<30x448xbf16>
    %cst_84 = arith.constant dense<0.000000e+00> : vector<7x448xf32>
    %59 = tpu.matmul %56, %58, %cst_84 {dimension_numbers = #tpu.dot_dimension_numbers<[1], [0], [0], [1], [0, 0, 1, 1], [], []>} : vector<7x30xbf16>, vector<30x448xbf16>, vector<7x448xf32> -> vector<7x448xf32>
    %60 = arith.addf %54, %59 : vector<7x448xf32>
    %61 = arith.maximumf %41, %60 : vector<7x448xf32>
    %cst_85 = arith.constant 0.000000e+00 : f32
    %62 = vector.broadcast %cst_85 : f32 to vector<7x448xf32>
    %c0_86 = arith.constant 0 : index
    %c1_87 = arith.constant 1 : index
    %c0_88 = arith.constant 0 : index
    %c0_89 = arith.constant 0 : index
    %63 = vector.load %arg1[%c0_86, %c1_87, %c0_88, %c0_89] : memref<1x4x8x30xbf16, #tpu.memory_space<vmem>>, vector<1x1x7x30xbf16>
    %64 = vector.shape_cast %63 : vector<1x1x7x30xbf16> to vector<7x30xbf16>
    %c1_90 = arith.constant 1 : index
    %c0_91 = arith.constant 0 : index
    %c0_92 = arith.constant 0 : index
    %c0_93 = arith.constant 0 : index
    %65 = vector.load %arg2[%c1_90, %c0_91, %c0_92, %c0_93] : memref<2x3x30x448xbf16, #tpu.memory_space<vmem>>, vector<1x1x30x448xbf16>
    %66 = vector.shape_cast %65 : vector<1x1x30x448xbf16> to vector<30x448xbf16>
    %cst_94 = arith.constant dense<0.000000e+00> : vector<7x448xf32>
    %67 = tpu.matmul %64, %66, %cst_94 {dimension_numbers = #tpu.dot_dimension_numbers<[1], [0], [0], [1], [0, 0, 1, 1], [], []>} : vector<7x30xbf16>, vector<30x448xbf16>, vector<7x448xf32> -> vector<7x448xf32>
    %68 = arith.addf %62, %67 : vector<7x448xf32>
    %c0_95 = arith.constant 0 : index
    %c2_96 = arith.constant 2 : index
    %c0_97 = arith.constant 0 : index
    %c0_98 = arith.constant 0 : index
    %69 = vector.load %arg1[%c0_95, %c2_96, %c0_97, %c0_98] : memref<1x4x8x30xbf16, #tpu.memory_space<vmem>>, vector<1x1x7x30xbf16>
    %70 = vector.shape_cast %69 : vector<1x1x7x30xbf16> to vector<7x30xbf16>
    %c1_99 = arith.constant 1 : index
    %c1_100 = arith.constant 1 : index
    %c0_101 = arith.constant 0 : index
    %c0_102 = arith.constant 0 : index
    %71 = vector.load %arg2[%c1_99, %c1_100, %c0_101, %c0_102] : memref<2x3x30x448xbf16, #tpu.memory_space<vmem>>, vector<1x1x30x448xbf16>
    %72 = vector.shape_cast %71 : vector<1x1x30x448xbf16> to vector<30x448xbf16>
    %cst_103 = arith.constant dense<0.000000e+00> : vector<7x448xf32>
    %73 = tpu.matmul %70, %72, %cst_103 {dimension_numbers = #tpu.dot_dimension_numbers<[1], [0], [0], [1], [0, 0, 1, 1], [], []>} : vector<7x30xbf16>, vector<30x448xbf16>, vector<7x448xf32> -> vector<7x448xf32>
    %74 = arith.addf %68, %73 : vector<7x448xf32>
    %c0_104 = arith.constant 0 : index
    %c3_105 = arith.constant 3 : index
    %c0_106 = arith.constant 0 : index
    %c0_107 = arith.constant 0 : index
    %75 = vector.load %arg1[%c0_104, %c3_105, %c0_106, %c0_107] : memref<1x4x8x30xbf16, #tpu.memory_space<vmem>>, vector<1x1x7x30xbf16>
    %76 = vector.shape_cast %75 : vector<1x1x7x30xbf16> to vector<7x30xbf16>
    %c1_108 = arith.constant 1 : index
    %c2_109 = arith.constant 2 : index
    %c0_110 = arith.constant 0 : index
    %c0_111 = arith.constant 0 : index
    %77 = vector.load %arg2[%c1_108, %c2_109, %c0_110, %c0_111] : memref<2x3x30x448xbf16, #tpu.memory_space<vmem>>, vector<1x1x30x448xbf16>
    %78 = vector.shape_cast %77 : vector<1x1x30x448xbf16> to vector<30x448xbf16>
    %cst_112 = arith.constant dense<0.000000e+00> : vector<7x448xf32>
    %79 = tpu.matmul %76, %78, %cst_112 {dimension_numbers = #tpu.dot_dimension_numbers<[1], [0], [0], [1], [0, 0, 1, 1], [], []>} : vector<7x30xbf16>, vector<30x448xbf16>, vector<7x448xf32> -> vector<7x448xf32>
    %80 = arith.addf %74, %79 : vector<7x448xf32>
    %81 = arith.maximumf %61, %80 : vector<7x448xf32>
    %82 = vector.broadcast %2 : vector<1x448xf32> to vector<7x448xf32>
    %83 = arith.addf %81, %82 : vector<7x448xf32>
    %cst_113 = arith.constant 0.000000e+00 : f32
    %84 = vector.broadcast %cst_113 : f32 to vector<7x448xf32>
    %85 = arith.maximumf %83, %84 : vector<7x448xf32>
    %86 = arith.truncf %85 : vector<7x448xf32> to vector<7x448xbf16>
    %c0_114 = arith.constant 0 : index
    %c0_115 = arith.constant 0 : index
    %c0_116 = arith.constant 0 : index
    %87 = vector.load %arg7[%c0_114, %c0_115, %c0_116] : memref<2x8x448xbf16, #tpu.memory_space<vmem>>, vector<1x7x448xbf16>
    %88 = vector.shape_cast %87 : vector<1x7x448xbf16> to vector<7x448xbf16>
    %89 = vector.shape_cast %86 : vector<7x448xbf16> to vector<1x7x448xbf16>
    tpu.vector_store %arg7[%c0_114, %c0_115, %c0_116], %89 {strides = array<i32>} : memref<2x8x448xbf16, #tpu.memory_space<vmem>>, vector<1x7x448xbf16>,
    %cst_117 = arith.constant 0.000000e+00 : f32
    %90 = vector.broadcast %cst_117 : f32 to vector<7x448xf32>
    %c0_118 = arith.constant 0 : index
    %c2_119 = arith.constant 2 : index
    %c0_120 = arith.constant 0 : index
    %c0_121 = arith.constant 0 : index
    %91 = vector.load %arg1[%c0_118, %c2_119, %c0_120, %c0_121] : memref<1x4x8x30xbf16, #tpu.memory_space<vmem>>, vector<1x1x7x30xbf16>
    %92 = vector.shape_cast %91 : vector<1x1x7x30xbf16> to vector<7x30xbf16>
    %c0_122 = arith.constant 0 : index
    %c0_123 = arith.constant 0 : index
    %c0_124 = arith.constant 0 : index
    %c0_125 = arith.constant 0 : index
    %93 = vector.load %arg2[%c0_122, %c0_123, %c0_124, %c0_125] : memref<2x3x30x448xbf16, #tpu.memory_space<vmem>>, vector<1x1x30x448xbf16>
    %94 = vector.shape_cast %93 : vector<1x1x30x448xbf16> to vector<30x448xbf16>
    %cst_126 = arith.constant dense<0.000000e+00> : vector<7x448xf32>
    %95 = tpu.matmul %92, %94, %cst_126 {dimension_numbers = #tpu.dot_dimension_numbers<[1], [0], [0], [1], [0, 0, 1, 1], [], []>} : vector<7x30xbf16>, vector<30x448xbf16>, vector<7x448xf32> -> vector<7x448xf32>
    %96 = arith.addf %90, %95 : vector<7x448xf32>
    %c0_127 = arith.constant 0 : index
    %c3_128 = arith.constant 3 : index
    %c0_129 = arith.constant 0 : index
    %c0_130 = arith.constant 0 : index
    %97 = vector.load %arg1[%c0_127, %c3_128, %c0_129, %c0_130] : memref<1x4x8x30xbf16, #tpu.memory_space<vmem>>, vector<1x1x7x30xbf16>
    %98 = vector.shape_cast %97 : vector<1x1x7x30xbf16> to vector<7x30xbf16>
    %c0_131 = arith.constant 0 : index
    %c1_132 = arith.constant 1 : index
    %c0_133 = arith.constant 0 : index
    %c0_134 = arith.constant 0 : index
    %99 = vector.load %arg2[%c0_131, %c1_132, %c0_133, %c0_134] : memref<2x3x30x448xbf16, #tpu.memory_space<vmem>>, vector<1x1x30x448xbf16>
    %100 = vector.shape_cast %99 : vector<1x1x30x448xbf16> to vector<30x448xbf16>
    %cst_135 = arith.constant dense<0.000000e+00> : vector<7x448xf32>
    %101 = tpu.matmul %98, %100, %cst_135 {dimension_numbers = #tpu.dot_dimension_numbers<[1], [0], [0], [1], [0, 0, 1, 1], [], []>} : vector<7x30xbf16>, vector<30x448xbf16>, vector<7x448xf32> -> vector<7x448xf32>
    %102 = arith.addf %96, %101 : vector<7x448xf32>
    %c0_136 = arith.constant 0 : index
    %c0_137 = arith.constant 0 : index
    %c1_138 = arith.constant 1 : index
    %c0_139 = arith.constant 0 : index
    %103 = vector.load %arg1[%c0_136, %c0_137, %c1_138, %c0_139] : memref<1x4x8x30xbf16, #tpu.memory_space<vmem>>, vector<1x1x7x30xbf16>
    %104 = vector.shape_cast %103 : vector<1x1x7x30xbf16> to vector<7x30xbf16>
    %c0_140 = arith.constant 0 : index
    %c2_141 = arith.constant 2 : index
    %c0_142 = arith.constant 0 : index
    %c0_143 = arith.constant 0 : index
    %105 = vector.load %arg2[%c0_140, %c2_141, %c0_142, %c0_143] : memref<2x3x30x448xbf16, #tpu.memory_space<vmem>>, vector<1x1x30x448xbf16>
    %106 = vector.shape_cast %105 : vector<1x1x30x448xbf16> to vector<30x448xbf16>
    %cst_144 = arith.constant dense<0.000000e+00> : vector<7x448xf32>
    %107 = tpu.matmul %104, %106, %cst_144 {dimension_numbers = #tpu.dot_dimension_numbers<[1], [0], [0], [1], [0, 0, 1, 1], [], []>} : vector<7x30xbf16>, vector<30x448xbf16>, vector<7x448xf32> -> vector<7x448xf32>
    %108 = arith.addf %102, %107 : vector<7x448xf32>
    %cst_145 = arith.constant 0.000000e+00 : f32
    %109 = vector.broadcast %cst_145 : f32 to vector<7x448xf32>
    %c0_146 = arith.constant 0 : index
    %c2_147 = arith.constant 2 : index
    %c0_148 = arith.constant 0 : index
    %c0_149 = arith.constant 0 : index
    %110 = vector.load %arg1[%c0_146, %c2_147, %c0_148, %c0_149] : memref<1x4x8x30xbf16, #tpu.memory_space<vmem>>, vector<1x1x7x30xbf16>
    %111 = vector.shape_cast %110 : vector<1x1x7x30xbf16> to vector<7x30xbf16>
    %c1_150 = arith.constant 1 : index
    %c0_151 = arith.constant 0 : index
    %c0_152 = arith.constant 0 : index
    %c0_153 = arith.constant 0 : index
    %112 = vector.load %arg2[%c1_150, %c0_151, %c0_152, %c0_153] : memref<2x3x30x448xbf16, #tpu.memory_space<vmem>>, vector<1x1x30x448xbf16>
    %113 = vector.shape_cast %112 : vector<1x1x30x448xbf16> to vector<30x448xbf16>
    %cst_154 = arith.constant dense<0.000000e+00> : vector<7x448xf32>
    %114 = tpu.matmul %111, %113, %cst_154 {dimension_numbers = #tpu.dot_dimension_numbers<[1], [0], [0], [1], [0, 0, 1, 1], [], []>} : vector<7x30xbf16>, vector<30x448xbf16>, vector<7x448xf32> -> vector<7x448xf32>
    %115 = arith.addf %109, %114 : vector<7x448xf32>
    %c0_155 = arith.constant 0 : index
    %c3_156 = arith.constant 3 : index
    %c0_157 = arith.constant 0 : index
    %c0_158 = arith.constant 0 : index
    %116 = vector.load %arg1[%c0_155, %c3_156, %c0_157, %c0_158] : memref<1x4x8x30xbf16, #tpu.memory_space<vmem>>, vector<1x1x7x30xbf16>
    %117 = vector.shape_cast %116 : vector<1x1x7x30xbf16> to vector<7x30xbf16>
    %c1_159 = arith.constant 1 : index
    %c1_160 = arith.constant 1 : index
    %c0_161 = arith.constant 0 : index
    %c0_162 = arith.constant 0 : index
    %118 = vector.load %arg2[%c1_159, %c1_160, %c0_161, %c0_162] : memref<2x3x30x448xbf16, #tpu.memory_space<vmem>>, vector<1x1x30x448xbf16>
    %119 = vector.shape_cast %118 : vector<1x1x30x448xbf16> to vector<30x448xbf16>
    %cst_163 = arith.constant dense<0.000000e+00> : vector<7x448xf32>
    %120 = tpu.matmul %117, %119, %cst_163 {dimension_numbers = #tpu.dot_dimension_numbers<[1], [0], [0], [1], [0, 0, 1, 1], [], []>} : vector<7x30xbf16>, vector<30x448xbf16>, vector<7x448xf32> -> vector<7x448xf32>
    %121 = arith.addf %115, %120 : vector<7x448xf32>
    %c0_164 = arith.constant 0 : index
    %c0_165 = arith.constant 0 : index
    %c1_166 = arith.constant 1 : index
    %c0_167 = arith.constant 0 : index
    %122 = vector.load %arg1[%c0_164, %c0_165, %c1_166, %c0_167] : memref<1x4x8x30xbf16, #tpu.memory_space<vmem>>, vector<1x1x7x30xbf16>
    %123 = vector.shape_cast %122 : vector<1x1x7x30xbf16> to vector<7x30xbf16>
    %c1_168 = arith.constant 1 : index
    %c2_169 = arith.constant 2 : index
    %c0_170 = arith.constant 0 : index
    %c0_171 = arith.constant 0 : index
    %124 = vector.load %arg2[%c1_168, %c2_169, %c0_170, %c0_171] : memref<2x3x30x448xbf16, #tpu.memory_space<vmem>>, vector<1x1x30x448xbf16>
    %125 = vector.shape_cast %124 : vector<1x1x30x448xbf16> to vector<30x448xbf16>
    %cst_172 = arith.constant dense<0.000000e+00> : vector<7x448xf32>
    %126 = tpu.matmul %123, %125, %cst_172 {dimension_numbers = #tpu.dot_dimension_numbers<[1], [0], [0], [1], [0, 0, 1, 1], [], []>} : vector<7x30xbf16>, vector<30x448xbf16>, vector<7x448xf32> -> vector<7x448xf32>
    %127 = arith.addf %121, %126 : vector<7x448xf32>
    %128 = arith.maximumf %108, %127 : vector<7x448xf32>
    %cst_173 = arith.constant 0.000000e+00 : f32
    %129 = vector.broadcast %cst_173 : f32 to vector<7x448xf32>
    %c0_174 = arith.constant 0 : index
    %c3_175 = arith.constant 3 : index
    %c0_176 = arith.constant 0 : index
    %c0_177 = arith.constant 0 : index
    %130 = vector.load %arg1[%c0_174, %c3_175, %c0_176, %c0_177] : memref<1x4x8x30xbf16, #tpu.memory_space<vmem>>, vector<1x1x7x30xbf16>
    %131 = vector.shape_cast %130 : vector<1x1x7x30xbf16> to vector<7x30xbf16>
    %c0_178 = arith.constant 0 : index
    %c0_179 = arith.constant 0 : index
    %c0_180 = arith.constant 0 : index
    %c0_181 = arith.constant 0 : index
    %132 = vector.load %arg2[%c0_178, %c0_179, %c0_180, %c0_181] : memref<2x3x30x448xbf16, #tpu.memory_space<vmem>>, vector<1x1x30x448xbf16>
    %133 = vector.shape_cast %132 : vector<1x1x30x448xbf16> to vector<30x448xbf16>
    %cst_182 = arith.constant dense<0.000000e+00> : vector<7x448xf32>
    %134 = tpu.matmul %131, %133, %cst_182 {dimension_numbers = #tpu.dot_dimension_numbers<[1], [0], [0], [1], [0, 0, 1, 1], [], []>} : vector<7x30xbf16>, vector<30x448xbf16>, vector<7x448xf32> -> vector<7x448xf32>
    %135 = arith.addf %129, %134 : vector<7x448xf32>
    %c0_183 = arith.constant 0 : index
    %c0_184 = arith.constant 0 : index
    %c1_185 = arith.constant 1 : index
    %c0_186 = arith.constant 0 : index
    %136 = vector.load %arg1[%c0_183, %c0_184, %c1_185, %c0_186] : memref<1x4x8x30xbf16, #tpu.memory_space<vmem>>, vector<1x1x7x30xbf16>
    %137 = vector.shape_cast %136 : vector<1x1x7x30xbf16> to vector<7x30xbf16>
    %c0_187 = arith.constant 0 : index
    %c1_188 = arith.constant 1 : index
    %c0_189 = arith.constant 0 : index
    %c0_190 = arith.constant 0 : index
    %138 = vector.load %arg2[%c0_187, %c1_188, %c0_189, %c0_190] : memref<2x3x30x448xbf16, #tpu.memory_space<vmem>>, vector<1x1x30x448xbf16>
    %139 = vector.shape_cast %138 : vector<1x1x30x448xbf16> to vector<30x448xbf16>
    %cst_191 = arith.constant dense<0.000000e+00> : vector<7x448xf32>
    %140 = tpu.matmul %137, %139, %cst_191 {dimension_numbers = #tpu.dot_dimension_numbers<[1], [0], [0], [1], [0, 0, 1, 1], [], []>} : vector<7x30xbf16>, vector<30x448xbf16>, vector<7x448xf32> -> vector<7x448xf32>
    %141 = arith.addf %135, %140 : vector<7x448xf32>
    %c0_192 = arith.constant 0 : index
    %c1_193 = arith.constant 1 : index
    %c1_194 = arith.constant 1 : index
    %c0_195 = arith.constant 0 : index
    %142 = vector.load %arg1[%c0_192, %c1_193, %c1_194, %c0_195] : memref<1x4x8x30xbf16, #tpu.memory_space<vmem>>, vector<1x1x7x30xbf16>
    %143 = vector.shape_cast %142 : vector<1x1x7x30xbf16> to vector<7x30xbf16>
    %c0_196 = arith.constant 0 : index
    %c2_197 = arith.constant 2 : index
    %c0_198 = arith.constant 0 : index
    %c0_199 = arith.constant 0 : index
    %144 = vector.load %arg2[%c0_196, %c2_197, %c0_198, %c0_199] : memref<2x3x30x448xbf16, #tpu.memory_space<vmem>>, vector<1x1x30x448xbf16>
    %145 = vector.shape_cast %144 : vector<1x1x30x448xbf16> to vector<30x448xbf16>
    %cst_200 = arith.constant dense<0.000000e+00> : vector<7x448xf32>
    %146 = tpu.matmul %143, %145, %cst_200 {dimension_numbers = #tpu.dot_dimension_numbers<[1], [0], [0], [1], [0, 0, 1, 1], [], []>} : vector<7x30xbf16>, vector<30x448xbf16>, vector<7x448xf32> -> vector<7x448xf32>
    %147 = arith.addf %141, %146 : vector<7x448xf32>
    %148 = arith.maximumf %128, %147 : vector<7x448xf32>
    %cst_201 = arith.constant 0.000000e+00 : f32
    %149 = vector.broadcast %cst_201 : f32 to vector<7x448xf32>
    %c0_202 = arith.constant 0 : index
    %c3_203 = arith.constant 3 : index
    %c0_204 = arith.constant 0 : index
    %c0_205 = arith.constant 0 : index
    %150 = vector.load %arg1[%c0_202, %c3_203, %c0_204, %c0_205] : memref<1x4x8x30xbf16, #tpu.memory_space<vmem>>, vector<1x1x7x30xbf16>
    %151 = vector.shape_cast %150 : vector<1x1x7x30xbf16> to vector<7x30xbf16>
    %c1_206 = arith.constant 1 : index
    %c0_207 = arith.constant 0 : index
    %c0_208 = arith.constant 0 : index
    %c0_209 = arith.constant 0 : index
    %152 = vector.load %arg2[%c1_206, %c0_207, %c0_208, %c0_209] : memref<2x3x30x448xbf16, #tpu.memory_space<vmem>>, vector<1x1x30x448xbf16>
    %153 = vector.shape_cast %152 : vector<1x1x30x448xbf16> to vector<30x448xbf16>
    %cst_210 = arith.constant dense<0.000000e+00> : vector<7x448xf32>
    %154 = tpu.matmul %151, %153, %cst_210 {dimension_numbers = #tpu.dot_dimension_numbers<[1], [0], [0], [1], [0, 0, 1, 1], [], []>} : vector<7x30xbf16>, vector<30x448xbf16>, vector<7x448xf32> -> vector<7x448xf32>
    %155 = arith.addf %149, %154 : vector<7x448xf32>
    %c0_211 = arith.constant 0 : index
    %c0_212 = arith.constant 0 : index
    %c1_213 = arith.constant 1 : index
    %c0_214 = arith.constant 0 : index
    %156 = vector.load %arg1[%c0_211, %c0_212, %c1_213, %c0_214] : memref<1x4x8x30xbf16, #tpu.memory_space<vmem>>, vector<1x1x7x30xbf16>
    %157 = vector.shape_cast %156 : vector<1x1x7x30xbf16> to vector<7x30xbf16>
    %c1_215 = arith.constant 1 : index
    %c1_216 = arith.constant 1 : index
    %c0_217 = arith.constant 0 : index
    %c0_218 = arith.constant 0 : index
    %158 = vector.load %arg2[%c1_215, %c1_216, %c0_217, %c0_218] : memref<2x3x30x448xbf16, #tpu.memory_space<vmem>>, vector<1x1x30x448xbf16>
    %159 = vector.shape_cast %158 : vector<1x1x30x448xbf16> to vector<30x448xbf16>
    %cst_219 = arith.constant dense<0.000000e+00> : vector<7x448xf32>
    %160 = tpu.matmul %157, %159, %cst_219 {dimension_numbers = #tpu.dot_dimension_numbers<[1], [0], [0], [1], [0, 0, 1, 1], [], []>} : vector<7x30xbf16>, vector<30x448xbf16>, vector<7x448xf32> -> vector<7x448xf32>
    %161 = arith.addf %155, %160 : vector<7x448xf32>
    %c0_220 = arith.constant 0 : index
    %c1_221 = arith.constant 1 : index
    %c1_222 = arith.constant 1 : index
    %c0_223 = arith.constant 0 : index
    %162 = vector.load %arg1[%c0_220, %c1_221, %c1_222, %c0_223] : memref<1x4x8x30xbf16, #tpu.memory_space<vmem>>, vector<1x1x7x30xbf16>
    %163 = vector.shape_cast %162 : vector<1x1x7x30xbf16> to vector<7x30xbf16>
    %c1_224 = arith.constant 1 : index
    %c2_225 = arith.constant 2 : index
    %c0_226 = arith.constant 0 : index
    %c0_227 = arith.constant 0 : index
    %164 = vector.load %arg2[%c1_224, %c2_225, %c0_226, %c0_227] : memref<2x3x30x448xbf16, #tpu.memory_space<vmem>>, vector<1x1x30x448xbf16>
    %165 = vector.shape_cast %164 : vector<1x1x30x448xbf16> to vector<30x448xbf16>
    %cst_228 = arith.constant dense<0.000000e+00> : vector<7x448xf32>
    %166 = tpu.matmul %163, %165, %cst_228 {dimension_numbers = #tpu.dot_dimension_numbers<[1], [0], [0], [1], [0, 0, 1, 1], [], []>} : vector<7x30xbf16>, vector<30x448xbf16>, vector<7x448xf32> -> vector<7x448xf32>
    %167 = arith.addf %161, %166 : vector<7x448xf32>
    %168 = arith.maximumf %148, %167 : vector<7x448xf32>
    %169 = vector.broadcast %2 : vector<1x448xf32> to vector<7x448xf32>
    %170 = arith.addf %168, %169 : vector<7x448xf32>
    %cst_229 = arith.constant 0.000000e+00 : f32
    %171 = vector.broadcast %cst_229 : f32 to vector<7x448xf32>
    %172 = arith.maximumf %170, %171 : vector<7x448xf32>
    %173 = arith.truncf %172 : vector<7x448xf32> to vector<7x448xbf16>
    %c1_230 = arith.constant 1 : index
    %c1_231 = arith.constant 1 : index
    %c0_232 = arith.constant 0 : index
    %174 = vector.load %arg7[%c1_230, %c1_231, %c0_232] : memref<2x8x448xbf16, #tpu.memory_space<vmem>>, vector<1x7x448xbf16>
    %175 = vector.shape_cast %174 : vector<1x7x448xbf16> to vector<7x448xbf16>
    %176 = vector.shape_cast %173 : vector<7x448xbf16> to vector<1x7x448xbf16>
    tpu.vector_store %arg7[%c1_230, %c1_231, %c0_232], %176 {strides = array<i32>} : memref<2x8x448xbf16, #tpu.memory_space<vmem>>, vector<1x7x448xbf16>,
    %c0_233 = arith.constant 0 : index
    %c0_234 = arith.constant 0 : index
    %177 = vector.load %arg5[%c0_233, %c0_234] : memref<1x448xf32, #tpu.memory_space<vmem>>, vector<1x448xf32>
    %cst_235 = arith.constant 0.000000e+00 : f32
    %178 = vector.broadcast %cst_235 : f32 to vector<7x448xf32>
    %c1_236 = arith.constant 1 : index
    %c0_237 = arith.constant 0 : index
    %c0_238 = arith.constant 0 : index
    %179 = vector.load %arg7[%c1_236, %c0_237, %c0_238] : memref<2x8x448xbf16, #tpu.memory_space<vmem>>, vector<1x7x448xbf16>
    %180 = vector.shape_cast %179 : vector<1x7x448xbf16> to vector<7x448xbf16>
    %c0_239 = arith.constant 0 : index
    %c0_240 = arith.constant 0 : index
    %c0_241 = arith.constant 0 : index
    %c0_242 = arith.constant 0 : index
    %181 = vector.load %arg4[%c0_239, %c0_240, %c0_241, %c0_242] : memref<2x3x448x448xbf16, #tpu.memory_space<vmem>>, vector<1x1x448x448xbf16>
    %182 = vector.shape_cast %181 : vector<1x1x448x448xbf16> to vector<448x448xbf16>
    %cst_243 = arith.constant dense<0.000000e+00> : vector<7x448xf32>
    %183 = tpu.matmul %180, %182, %cst_243 {dimension_numbers = #tpu.dot_dimension_numbers<[1], [0], [0], [1], [0, 0, 1, 1], [], []>} : vector<7x448xbf16>, vector<448x448xbf16>, vector<7x448xf32> -> vector<7x448xf32>
    %184 = arith.addf %178, %183 : vector<7x448xf32>
    %c0_244 = arith.constant 0 : index
    %c0_245 = arith.constant 0 : index
    %c0_246 = arith.constant 0 : index
    %185 = vector.load %arg7[%c0_244, %c0_245, %c0_246] : memref<2x8x448xbf16, #tpu.memory_space<vmem>>, vector<1x7x448xbf16>
    %186 = vector.shape_cast %185 : vector<1x7x448xbf16> to vector<7x448xbf16>
    %c0_247 = arith.constant 0 : index
    %c1_248 = arith.constant 1 : index
    %c0_249 = arith.constant 0 : index
    %c0_250 = arith.constant 0 : index
    %187 = vector.load %arg4[%c0_247, %c1_248, %c0_249, %c0_250] : memref<2x3x448x448xbf16, #tpu.memory_space<vmem>>, vector<1x1x448x448xbf16>
    %188 = vector.shape_cast %187 : vector<1x1x448x448xbf16> to vector<448x448xbf16>
    %cst_251 = arith.constant dense<0.000000e+00> : vector<7x448xf32>
    %189 = tpu.matmul %186, %188, %cst_251 {dimension_numbers = #tpu.dot_dimension_numbers<[1], [0], [0], [1], [0, 0, 1, 1], [], []>} : vector<7x448xbf16>, vector<448x448xbf16>, vector<7x448xf32> -> vector<7x448xf32>
    %190 = arith.addf %184, %189 : vector<7x448xf32>
    %c1_252 = arith.constant 1 : index
    %c1_253 = arith.constant 1 : index
    %c0_254 = arith.constant 0 : index
    %191 = vector.load %arg7[%c1_252, %c1_253, %c0_254] : memref<2x8x448xbf16, #tpu.memory_space<vmem>>, vector<1x7x448xbf16>
    %192 = vector.shape_cast %191 : vector<1x7x448xbf16> to vector<7x448xbf16>
    %c0_255 = arith.constant 0 : index
    %c2_256 = arith.constant 2 : index
    %c0_257 = arith.constant 0 : index
    %c0_258 = arith.constant 0 : index
    %193 = vector.load %arg4[%c0_255, %c2_256, %c0_257, %c0_258] : memref<2x3x448x448xbf16, #tpu.memory_space<vmem>>, vector<1x1x448x448xbf16>
    %194 = vector.shape_cast %193 : vector<1x1x448x448xbf16> to vector<448x448xbf16>
    %cst_259 = arith.constant dense<0.000000e+00> : vector<7x448xf32>
    %195 = tpu.matmul %192, %194, %cst_259 {dimension_numbers = #tpu.dot_dimension_numbers<[1], [0], [0], [1], [0, 0, 1, 1], [], []>} : vector<7x448xbf16>, vector<448x448xbf16>, vector<7x448xf32> -> vector<7x448xf32>
    %196 = arith.addf %190, %195 : vector<7x448xf32>
    %cst_260 = arith.constant 0.000000e+00 : f32
    %197 = vector.broadcast %cst_260 : f32 to vector<7x448xf32>
    %c1_261 = arith.constant 1 : index
    %c0_262 = arith.constant 0 : index
    %c0_263 = arith.constant 0 : index
    %198 = vector.load %arg7[%c1_261, %c0_262, %c0_263] : memref<2x8x448xbf16, #tpu.memory_space<vmem>>, vector<1x7x448xbf16>
    %199 = vector.shape_cast %198 : vector<1x7x448xbf16> to vector<7x448xbf16>
    %c1_264 = arith.constant 1 : index
    %c0_265 = arith.constant 0 : index
    %c0_266 = arith.constant 0 : index
    %c0_267 = arith.constant 0 : index
    %200 = vector.load %arg4[%c1_264, %c0_265, %c0_266, %c0_267] : memref<2x3x448x448xbf16, #tpu.memory_space<vmem>>, vector<1x1x448x448xbf16>
    %201 = vector.shape_cast %200 : vector<1x1x448x448xbf16> to vector<448x448xbf16>
    %cst_268 = arith.constant dense<0.000000e+00> : vector<7x448xf32>
    %202 = tpu.matmul %199, %201, %cst_268 {dimension_numbers = #tpu.dot_dimension_numbers<[1], [0], [0], [1], [0, 0, 1, 1], [], []>} : vector<7x448xbf16>, vector<448x448xbf16>, vector<7x448xf32> -> vector<7x448xf32>
    %203 = arith.addf %197, %202 : vector<7x448xf32>
    %c0_269 = arith.constant 0 : index
    %c0_270 = arith.constant 0 : index
    %c0_271 = arith.constant 0 : index
    %204 = vector.load %arg7[%c0_269, %c0_270, %c0_271] : memref<2x8x448xbf16, #tpu.memory_space<vmem>>, vector<1x7x448xbf16>
    %205 = vector.shape_cast %204 : vector<1x7x448xbf16> to vector<7x448xbf16>
    %c1_272 = arith.constant 1 : index
    %c1_273 = arith.constant 1 : index
    %c0_274 = arith.constant 0 : index
    %c0_275 = arith.constant 0 : index
    %206 = vector.load %arg4[%c1_272, %c1_273, %c0_274, %c0_275] : memref<2x3x448x448xbf16, #tpu.memory_space<vmem>>, vector<1x1x448x448xbf16>
    %207 = vector.shape_cast %206 : vector<1x1x448x448xbf16> to vector<448x448xbf16>
    %cst_276 = arith.constant dense<0.000000e+00> : vector<7x448xf32>
    %208 = tpu.matmul %205, %207, %cst_276 {dimension_numbers = #tpu.dot_dimension_numbers<[1], [0], [0], [1], [0, 0, 1, 1], [], []>} : vector<7x448xbf16>, vector<448x448xbf16>, vector<7x448xf32> -> vector<7x448xf32>
    %209 = arith.addf %203, %208 : vector<7x448xf32>
    %c1_277 = arith.constant 1 : index
    %c1_278 = arith.constant 1 : index
    %c0_279 = arith.constant 0 : index
    %210 = vector.load %arg7[%c1_277, %c1_278, %c0_279] : memref<2x8x448xbf16, #tpu.memory_space<vmem>>, vector<1x7x448xbf16>
    %211 = vector.shape_cast %210 : vector<1x7x448xbf16> to vector<7x448xbf16>
    %c1_280 = arith.constant 1 : index
    %c2_281 = arith.constant 2 : index
    %c0_282 = arith.constant 0 : index
    %c0_283 = arith.constant 0 : index
    %212 = vector.load %arg4[%c1_280, %c2_281, %c0_282, %c0_283] : memref<2x3x448x448xbf16, #tpu.memory_space<vmem>>, vector<1x1x448x448xbf16>
    %213 = vector.shape_cast %212 : vector<1x1x448x448xbf16> to vector<448x448xbf16>
    %cst_284 = arith.constant dense<0.000000e+00> : vector<7x448xf32>
    %214 = tpu.matmul %211, %213, %cst_284 {dimension_numbers = #tpu.dot_dimension_numbers<[1], [0], [0], [1], [0, 0, 1, 1], [], []>} : vector<7x448xbf16>, vector<448x448xbf16>, vector<7x448xf32> -> vector<7x448xf32>
    %215 = arith.addf %209, %214 : vector<7x448xf32>
    %216 = arith.maximumf %196, %215 : vector<7x448xf32>
    %cst_285 = arith.constant 0.000000e+00 : f32
    %217 = vector.broadcast %cst_285 : f32 to vector<7x448xf32>
    %c0_286 = arith.constant 0 : index
    %c0_287 = arith.constant 0 : index
    %c0_288 = arith.constant 0 : index
    %218 = vector.load %arg7[%c0_286, %c0_287, %c0_288] : memref<2x8x448xbf16, #tpu.memory_space<vmem>>, vector<1x7x448xbf16>
    %219 = vector.shape_cast %218 : vector<1x7x448xbf16> to vector<7x448xbf16>
    %c0_289 = arith.constant 0 : index
    %c0_290 = arith.constant 0 : index
    %c0_291 = arith.constant 0 : index
    %c0_292 = arith.constant 0 : index
    %220 = vector.load %arg4[%c0_289, %c0_290, %c0_291, %c0_292] : memref<2x3x448x448xbf16, #tpu.memory_space<vmem>>, vector<1x1x448x448xbf16>
    %221 = vector.shape_cast %220 : vector<1x1x448x448xbf16> to vector<448x448xbf16>
    %cst_293 = arith.constant dense<0.000000e+00> : vector<7x448xf32>
    %222 = tpu.matmul %219, %221, %cst_293 {dimension_numbers = #tpu.dot_dimension_numbers<[1], [0], [0], [1], [0, 0, 1, 1], [], []>} : vector<7x448xbf16>, vector<448x448xbf16>, vector<7x448xf32> -> vector<7x448xf32>
    %223 = arith.addf %217, %222 : vector<7x448xf32>
    %c1_294 = arith.constant 1 : index
    %c1_295 = arith.constant 1 : index
    %c0_296 = arith.constant 0 : index
    %224 = vector.load %arg7[%c1_294, %c1_295, %c0_296] : memref<2x8x448xbf16, #tpu.memory_space<vmem>>, vector<1x7x448xbf16>
    %225 = vector.shape_cast %224 : vector<1x7x448xbf16> to vector<7x448xbf16>
    %c0_297 = arith.constant 0 : index
    %c1_298 = arith.constant 1 : index
    %c0_299 = arith.constant 0 : index
    %c0_300 = arith.constant 0 : index
    %226 = vector.load %arg4[%c0_297, %c1_298, %c0_299, %c0_300] : memref<2x3x448x448xbf16, #tpu.memory_space<vmem>>, vector<1x1x448x448xbf16>
    %227 = vector.shape_cast %226 : vector<1x1x448x448xbf16> to vector<448x448xbf16>
    %cst_301 = arith.constant dense<0.000000e+00> : vector<7x448xf32>
    %228 = tpu.matmul %225, %227, %cst_301 {dimension_numbers = #tpu.dot_dimension_numbers<[1], [0], [0], [1], [0, 0, 1, 1], [], []>} : vector<7x448xbf16>, vector<448x448xbf16>, vector<7x448xf32> -> vector<7x448xf32>
    %229 = arith.addf %223, %228 : vector<7x448xf32>
    %c0_302 = arith.constant 0 : index
    %c1_303 = arith.constant 1 : index
    %c0_304 = arith.constant 0 : index
    %230 = vector.load %arg7[%c0_302, %c1_303, %c0_304] : memref<2x8x448xbf16, #tpu.memory_space<vmem>>, vector<1x7x448xbf16>
    %231 = vector.shape_cast %230 : vector<1x7x448xbf16> to vector<7x448xbf16>
    %c0_305 = arith.constant 0 : index
    %c2_306 = arith.constant 2 : index
    %c0_307 = arith.constant 0 : index
    %c0_308 = arith.constant 0 : index
    %232 = vector.load %arg4[%c0_305, %c2_306, %c0_307, %c0_308] : memref<2x3x448x448xbf16, #tpu.memory_space<vmem>>, vector<1x1x448x448xbf16>
    %233 = vector.shape_cast %232 : vector<1x1x448x448xbf16> to vector<448x448xbf16>
    %cst_309 = arith.constant dense<0.000000e+00> : vector<7x448xf32>
    %234 = tpu.matmul %231, %233, %cst_309 {dimension_numbers = #tpu.dot_dimension_numbers<[1], [0], [0], [1], [0, 0, 1, 1], [], []>} : vector<7x448xbf16>, vector<448x448xbf16>, vector<7x448xf32> -> vector<7x448xf32>
    %235 = arith.addf %229, %234 : vector<7x448xf32>
    %236 = arith.maximumf %216, %235 : vector<7x448xf32>
    %cst_310 = arith.constant 0.000000e+00 : f32
    %237 = vector.broadcast %cst_310 : f32 to vector<7x448xf32>
    %c0_311 = arith.constant 0 : index
    %c0_312 = arith.constant 0 : index
    %c0_313 = arith.constant 0 : index
    %238 = vector.load %arg7[%c0_311, %c0_312, %c0_313] : memref<2x8x448xbf16, #tpu.memory_space<vmem>>, vector<1x7x448xbf16>
    %239 = vector.shape_cast %238 : vector<1x7x448xbf16> to vector<7x448xbf16>
    %c1_314 = arith.constant 1 : index
    %c0_315 = arith.constant 0 : index
    %c0_316 = arith.constant 0 : index
    %c0_317 = arith.constant 0 : index
    %240 = vector.load %arg4[%c1_314, %c0_315, %c0_316, %c0_317] : memref<2x3x448x448xbf16, #tpu.memory_space<vmem>>, vector<1x1x448x448xbf16>
    %241 = vector.shape_cast %240 : vector<1x1x448x448xbf16> to vector<448x448xbf16>
    %cst_318 = arith.constant dense<0.000000e+00> : vector<7x448xf32>
    %242 = tpu.matmul %239, %241, %cst_318 {dimension_numbers = #tpu.dot_dimension_numbers<[1], [0], [0], [1], [0, 0, 1, 1], [], []>} : vector<7x448xbf16>, vector<448x448xbf16>, vector<7x448xf32> -> vector<7x448xf32>
    %243 = arith.addf %237, %242 : vector<7x448xf32>
    %c1_319 = arith.constant 1 : index
    %c1_320 = arith.constant 1 : index
    %c0_321 = arith.constant 0 : index
    %244 = vector.load %arg7[%c1_319, %c1_320, %c0_321] : memref<2x8x448xbf16, #tpu.memory_space<vmem>>, vector<1x7x448xbf16>
    %245 = vector.shape_cast %244 : vector<1x7x448xbf16> to vector<7x448xbf16>
    %c1_322 = arith.constant 1 : index
    %c1_323 = arith.constant 1 : index
    %c0_324 = arith.constant 0 : index
    %c0_325 = arith.constant 0 : index
    %246 = vector.load %arg4[%c1_322, %c1_323, %c0_324, %c0_325] : memref<2x3x448x448xbf16, #tpu.memory_space<vmem>>, vector<1x1x448x448xbf16>
    %247 = vector.shape_cast %246 : vector<1x1x448x448xbf16> to vector<448x448xbf16>
    %cst_326 = arith.constant dense<0.000000e+00> : vector<7x448xf32>
    %248 = tpu.matmul %245, %247, %cst_326 {dimension_numbers = #tpu.dot_dimension_numbers<[1], [0], [0], [1], [0, 0, 1, 1], [], []>} : vector<7x448xbf16>, vector<448x448xbf16>, vector<7x448xf32> -> vector<7x448xf32>
    %249 = arith.addf %243, %248 : vector<7x448xf32>
    %c0_327 = arith.constant 0 : index
    %c1_328 = arith.constant 1 : index
    %c0_329 = arith.constant 0 : index
    %250 = vector.load %arg7[%c0_327, %c1_328, %c0_329] : memref<2x8x448xbf16, #tpu.memory_space<vmem>>, vector<1x7x448xbf16>
    %251 = vector.shape_cast %250 : vector<1x7x448xbf16> to vector<7x448xbf16>
    %c1_330 = arith.constant 1 : index
    %c2_331 = arith.constant 2 : index
    %c0_332 = arith.constant 0 : index
    %c0_333 = arith.constant 0 : index
    %252 = vector.load %arg4[%c1_330, %c2_331, %c0_332, %c0_333] : memref<2x3x448x448xbf16, #tpu.memory_space<vmem>>, vector<1x1x448x448xbf16>
    %253 = vector.shape_cast %252 : vector<1x1x448x448xbf16> to vector<448x448xbf16>
    %cst_334 = arith.constant dense<0.000000e+00> : vector<7x448xf32>
    %254 = tpu.matmul %251, %253, %cst_334 {dimension_numbers = #tpu.dot_dimension_numbers<[1], [0], [0], [1], [0, 0, 1, 1], [], []>} : vector<7x448xbf16>, vector<448x448xbf16>, vector<7x448xf32> -> vector<7x448xf32>
    %255 = arith.addf %249, %254 : vector<7x448xf32>
    %256 = arith.maximumf %236, %255 : vector<7x448xf32>
    %257 = vector.broadcast %177 : vector<1x448xf32> to vector<7x448xf32>
    %258 = arith.addf %256, %257 : vector<7x448xf32>
    %cst_335 = arith.constant 0.000000e+00 : f32
    %259 = vector.broadcast %cst_335 : f32 to vector<7x448xf32>
    %260 = arith.maximumf %258, %259 : vector<7x448xf32>
    %261 = arith.truncf %260 : vector<7x448xf32> to vector<7x448xbf16>
    %c0_336 = arith.constant 0 : index
    %c0_337 = arith.constant 0 : index
    %c0_338 = arith.constant 0 : index
    %262 = vector.load %arg6[%c0_336, %c0_337, %c0_338] : memref<1x7x448xbf16, #tpu.memory_space<vmem>>, vector<1x7x448xbf16>
    %263 = vector.shape_cast %262 : vector<1x7x448xbf16> to vector<7x448xbf16>
    %264 = vector.shape_cast %261 : vector<7x448xbf16> to vector<1x7x448xbf16>
    tpu.vector_store %arg6[%c0_336, %c0_337, %c0_338], %264 {strides = array<i32>} : memref<1x7x448xbf16, #tpu.memory_space<vmem>>, vector<1x7x448xbf16>,
    return
  }
  func.func @transform_0(%arg0: i32) -> (i32, i32, i32, i32) {
    %c0_i32 = arith.constant 0 : i32
    %c0_i32_0 = arith.constant 0 : i32
    %c0_i32_1 = arith.constant 0 : i32
    %c0_i32_2 = arith.constant 0 : i32
    return %arg0, %c0_i32, %c0_i32_0, %c0_i32_1 : i32, i32, i32, i32
  }
  func.func @transform_1(%arg0: i32) -> (i32, i32, i32, i32) {
    %c0_i32 = arith.constant 0 : i32
    %c0_i32_0 = arith.constant 0 : i32
    %c0_i32_1 = arith.constant 0 : i32
    %c0_i32_2 = arith.constant 0 : i32
    %c0_i32_3 = arith.constant 0 : i32
    return %c0_i32, %c0_i32_0, %c0_i32_1, %c0_i32_2 : i32, i32, i32, i32
  }
  func.func @transform_2(%arg0: i32) -> (i32, i32) {
    %c0_i32 = arith.constant 0 : i32
    %c0_i32_0 = arith.constant 0 : i32
    %c0_i32_1 = arith.constant 0 : i32
    return %c0_i32, %c0_i32_0 : i32, i32
  }
  func.func @transform_3(%arg0: i32) -> (i32, i32, i32, i32) {
    %c0_i32 = arith.constant 0 : i32
    %c0_i32_0 = arith.constant 0 : i32
    %c0_i32_1 = arith.constant 0 : i32
    %c0_i32_2 = arith.constant 0 : i32
    %c0_i32_3 = arith.constant 0 : i32
    return %c0_i32, %c0_i32_0, %c0_i32_1, %c0_i32_2 : i32, i32, i32, i32
  }
  func.func @transform_4(%arg0: i32) -> (i32, i32) {
    %c0_i32 = arith.constant 0 : i32
    %c0_i32_0 = arith.constant 0 : i32
    %c0_i32_1 = arith.constant 0 : i32
    return %c0_i32, %c0_i32_0 : i32, i32
  }
  func.func @transform_5(%arg0: i32) -> (i32, i32, i32) {
    %c0_i32 = arith.constant 0 : i32
    %c0_i32_0 = arith.constant 0 : i32
    %c0_i32_1 = arith.constant 0 : i32
    return %arg0, %c0_i32, %c0_i32_0 : i32, i32, i32
  }
}

</mosaic_0001>

<bundles_post_ra>
// kernel: spoken_digit_forward.3
= control target key start
LH: loop header
LB: loop body
LE: loop exit
PB: predicated region body
PF: predicated region fallthrough
CT: control target
= control target key end

     0   :  { %v433_v27 = vlaneseq  ;;  %v3195_v35 = vmov 1966171168   ;;  %s3921_s0 = inlined_call_operand.vmem [shape: bf16[2,3136], index: 0, kind: input, shape index: {}]   ;;  %s3922_s1 = inlined_call_operand.vmem [shape: bf16[3136,128], index: 1, kind: input, shape index: {}]   ;;  %s3923_s2 = inlined_call_operand.vmem [shape: f32[1,128], index: 2, kind: input, shape index: {}]   ;;  %s3924_s3 = inlined_call_operand.vmem [shape: bf16[128,128], index: 3, kind: input, shape index: {}]   ;;  %s3925_s4 = inlined_call_operand.vmem [shape: f32[1,128], index: 4, kind: input, shape index: {}]   ;;  %s3926_s5 = inlined_call_operand.hbm [shape: f32[2,128], index: 5, kind: output, shape index: {}]  }
   0x1   :  { %v2964_v0 = vld [vmem:[%s3922_s1 + $0x40] sm:$0xff]   ;;  %v2968_v4 = vld [vmem:[%s3922_s1 + $0x48] sm:$0xff]   ;;  %v2972_v8 = vld [vmem:[%s3922_s1 + $0x50] sm:$0xff]   ;;  %v431_v36 = vunpack.c.l.s4 %v3195_v35 }
   0x2   :  { %v2965_v1 = vld [vmem:[%s3922_s1] sm:$0xff]   ;;  %2650 = vmatprep.subr.bf16.mxu0 %v2964_v0  ;;  %v2969_v5 = vld [vmem:[%s3922_s1 + $0x8] sm:$0xff]   ;;  %v2973_v9 = vld [vmem:[%s3922_s1 + $0x10] sm:$0xff]   ;;  %v434_v32 = vshrl.u32 %v433_v27, 7 }
   0x3   :  { %v2966_v2 = vld [vmem:[%s3922_s1 + $0xc0] sm:$0xff]   ;;  %2651 = vmatpush3.bf16.msra.mxu0 %v2965_v1  ;;  %v2970_v6 = vld [vmem:[%s3922_s1 + $0xc8] sm:$0xff]   ;;  %v2974_v10 = vld [vmem:[%s3922_s1 + $0xd0] sm:$0xff]   ;;  %v432_v39 = vunpack.c.0.s8 %v431_v36 }
   0x4   :  { %v2967_v3 = vld [vmem:[%s3922_s1 + $0x80] sm:$0xff]   ;;  %2672 = vmatprep.subr.bf16.mxu1 %v2966_v2  ;;  %2652 = vmatprep.subr.bf16.mxu0 %v2968_v4  ;;  %v2971_v7 = vld [vmem:[%s3922_s1 + $0x88] sm:$0xff]   ;;  %v2975_v11 = vld [vmem:[%s3922_s1 + $0x90] sm:$0xff]  }
   0x5   :  { %2673 = vmatpush3.bf16.msra.mxu1 %v2967_v3  ;;  %v2976_v12 = vld [vmem:[%s3922_s1 + $0x58] sm:$0xff]   ;;  %v2980_v16 = vld [vmem:[%s3922_s1 + $0x60] sm:$0xff]   ;;  %v2984_v20 = vld [vmem:[%s3922_s1 + $0x68] sm:$0xff]   ;;  %v3334_v41 = vsub.s32 %v432_v39, %v434_v32 }
   0x6   :  { %2674 = vmatprep.subr.bf16.mxu1 %v2970_v6  ;;  %v2977_v13 = vld [vmem:[%s3922_s1 + $0x18] sm:$0xff]   ;;  %v2981_v17 = vld [vmem:[%s3922_s1 + $0x20] sm:$0xff]   ;;  %v2985_v21 = vld [vmem:[%s3922_s1 + $0x28] sm:$0xff]  }
   0x7   :  { %2653 = vmatpush3.bf16.msra.mxu0 %v2969_v5  ;;  %v2978_v14 = vld [vmem:[%s3922_s1 + $0xd8] sm:$0xff]   ;;  %v2982_v18 = vld [vmem:[%s3922_s1 + $0xe0] sm:$0xff]   ;;  %v2986_v22 = vld [vmem:[%s3922_s1 + $0xe8] sm:$0xff]  }
   0x8   :  { %2654 = vmatprep.subr.bf16.mxu0 %v2972_v8  ;;  %v2979_v15 = vld [vmem:[%s3922_s1 + $0x98] sm:$0xff]   ;;  %v2983_v19 = vld [vmem:[%s3922_s1 + $0xa0] sm:$0xff]   ;;  %v2987_v23 = vld [vmem:[%s3922_s1 + $0xa8] sm:$0xff]  }
   0x9   :  { %2675 = vmatpush3.bf16.msra.mxu1 %v2971_v7  ;;  %v2988_v24 = vld [vmem:[%s3922_s1 + $0x70] sm:$0xff]   ;;  %v2992_v29 = vld [vmem:[%s3922_s1 + $0x78] sm:$0xff]   ;;  %v22_v33 = vld [vmem:[%s3921_s0] sm:$0xff] }
   0xa   :  { %2676 = vmatprep.subr.bf16.mxu1 %v2974_v10  ;;  %v2989_v25 = vld [vmem:[%s3922_s1 + $0x30] sm:$0xff]   ;;  %v2993_v30 = vld [vmem:[%s3922_s1 + $0x38] sm:$0xff]   ;;  %v2997_v37 = vld [vmem:[%s3922_s1 + $0x140] sm:$0xff]   ;;  %v429_v38 = vcombine.high %v22_v33, %v22_v33  ;;  %v436_v42 = vrot.slane %v22_v33, %v3334_v41 }
   0xb   :  { %2655 = vmatpush3.bf16.msra.mxu0 %v2973_v9  ;;  %v2990_v26 = vld [vmem:[%s3922_s1 + $0xf0] sm:$0xff]   ;;  %v2994_v31 = vld [vmem:[%s3922_s1 + $0xf8] sm:$0xff]   ;;  %v2999_v40 = vld [vmem:[%s3922_s1 + $0x1c0] sm:$0xff]  }
   0xc   :  { %2656 = vmatprep.subr.bf16.mxu0 %v2976_v12  ;;  %v2991_v28 = vld [vmem:[%s3922_s1 + $0xb0] sm:$0xff]   ;;  %v2996_v34 = vld [vmem:[%s3922_s1 + $0xb8] sm:$0xff]   ;;  %v3338_v43 = vrot.slane %v429_v38, %v3334_v41  ;;  %v444_v44 = vcombine.high %v436_v42, %v436_v42  ;;  %v452_v45 = vrot.slane %v436_v42, %v3334_v41  ;;  %v2998_v48 = vld [vmem:[%s3922_s1 + $0x100] sm:$0xff]  }
   0xd   :  { %2677 = vmatpush3.bf16.msra.mxu1 %v2975_v11  ;;  %v3001_v51 = vld [vmem:[%s3922_s1 + $0x148] sm:$0xff]   ;;  %v3000_v53 = vld [vmem:[%s3922_s1 + $0x180] sm:$0xff]   ;;  %v3005_v57 = vld [vmem:[%s3922_s1 + $0x150] sm:$0xff]  }
   0xe   :  { %2678 = vmatprep.subr.bf16.mxu1 %v2978_v14  ;;  %v445_v46 = vcombine.high %v3338_v43, %v3338_v43  ;;  %v466_v47 = vrot.slane %v444_v44, %v3334_v41  ;;  %v474_v50 = vcombine.high %v452_v45, %v452_v45  ;;  %v3003_v54 = vld [vmem:[%s3922_s1 + $0x1c8] sm:$0xff]   ;;  %v3007_v59 = vld [vmem:[%s3922_s1 + $0x1d0] sm:$0xff]   ;;  %v3009_v61 = vld [vmem:[%s3922_s1 + $0x158] sm:$0xff]  }
   0xf   :  { %2657 = vmatpush3.bf16.msra.mxu0 %v2977_v13  ;;  %v3002_v56 = vld [vmem:[%s3922_s1 + $0x108] sm:$0xff]   ;;  %v3006_v60 = vld [vmem:[%s3922_s1 + $0x110] sm:$0xff]   ;;  %v3011_v63 = vld [vmem:[%s3922_s1 + $0x1d8] sm:$0xff]  }
  0x10   :  { %2658 = vmatprep.subr.bf16.mxu0 %v2980_v16  ;;  %v473_v49 = vrot.slane %v445_v46, %v3334_v41  ;;  %1826 = vmatprep.mubr.bf16.mxu0 %v466_v47  ;;  %v476_v52 = vcombine.high %v466_v47, %v466_v47  ;;  %v3004_v58 = vld [vmem:[%s3922_s1 + $0x188] sm:$0xff]   ;;  %v3008_v62 = vld [vmem:[%s3922_s1 + $0x190] sm:$0xff]   ;;  %v3010_v0 = vld [vmem:[%s3922_s1 + $0x118] sm:$0xff]  }
  0x11   :  { %2679 = vmatpush3.bf16.msra.mxu1 %v2979_v15  ;;  %v3013_v1 = vld [vmem:[%s3922_s1 + $0x160] sm:$0xff]   ;;  %v3012_v2 = vld [vmem:[%s3922_s1 + $0x198] sm:$0xff]   ;;  %v3017_v5 = vld [vmem:[%s3922_s1 + $0x168] sm:$0xff]  }
  0x12   :  { %2680 = vmatprep.subr.bf16.mxu1 %v2982_v18  ;;  %v477_v55 = vcombine.high %v473_v49, %v473_v49  ;;  %1866 = vmatprep.mubr.bf16.mxu1 %v476_v52  ;;  %v3015_v3 = vld [vmem:[%s3922_s1 + $0x1e0] sm:$0xff]   ;;  %v3019_v7 = vld [vmem:[%s3922_s1 + $0x1e8] sm:$0xff]   ;;  %v3021_v9 = vld [vmem:[%s3922_s1 + $0x170] sm:$0xff]  }
  0x13   :  { %2659 = vmatpush3.bf16.msra.mxu0 %v2981_v17  ;;  %v3014_v4 = vld [vmem:[%s3922_s1 + $0x120] sm:$0xff]   ;;  %v3018_v8 = vld [vmem:[%s3922_s1 + $0x128] sm:$0xff]   ;;  %v3023_v11 = vld [vmem:[%s3922_s1 + $0x1f0] sm:$0xff]   ;;  %v459_v17 = vrot.slane %v3338_v43, %v3334_v41 }
  0x14   :  { %2660 = vmatprep.subr.bf16.mxu0 %v2984_v20  ;;  %v3016_v6 = vld [vmem:[%s3922_s1 + $0x1a0] sm:$0xff]   ;;  %v3020_v10 = vld [vmem:[%s3922_s1 + $0x1a8] sm:$0xff]   ;;  %v3022_v12 = vld [vmem:[%s3922_s1 + $0x130] sm:$0xff]  }
  0x15   :  { %2681 = vmatpush3.bf16.msra.mxu1 %v2983_v19  ;;  %v3025_v13 = vld [vmem:[%s3922_s1 + $0x178] sm:$0xff]   ;;  %v3024_v14 = vld [vmem:[%s3922_s1 + $0x1b0] sm:$0xff]   ;;  %v3029_v18 = vld [vmem:[%s3922_s1 + $0x240] sm:$0xff]  }
  0x16   :  { %2682 = vmatprep.subr.bf16.mxu1 %v2986_v22  ;;  %v3027_v15 = vld [vmem:[%s3922_s1 + $0x1f8] sm:$0xff]   ;;  %v3031_v20 = vld [vmem:[%s3922_s1 + $0x2c0] sm:$0xff]   ;;  %v475_v22 = vcombine.high %v459_v17, %v459_v17  ;;  %v3037_v27 = vld [vmem:[%s3922_s1 + $0x250] sm:$0xff]  }
  0x17   :  { %2661 = vmatpush3.bf16.msra.mxu0 %v2985_v21  ;;  %v3026_v16 = vld [vmem:[%s3922_s1 + $0x138] sm:$0xff]   ;;  %v3030_v21 = vld [vmem:[%s3922_s1 + $0x200] sm:$0xff]   ;;  %v3040_v32 = vld [vmem:[%s3922_s1 + $0x290] sm:$0xff]  }
  0x18   :  { %2662 = vmatprep.subr.bf16.mxu0 %v2988_v24  ;;  %v3028_v19 = vld [vmem:[%s3922_s1 + $0x1b8] sm:$0xff]   ;;  %v3032_v24 = vld [vmem:[%s3922_s1 + $0x280] sm:$0xff]   ;;  %v3049_v39 = vld [vmem:[%s3922_s1 + $0x268] sm:$0xff]  }
  0x19   :  { %2683 = vmatpush3.bf16.msra.mxu1 %v2987_v23  ;;  %v3033_v23 = vld [vmem:[%s3922_s1 + $0x248] sm:$0xff]   ;;  %v3043_v33 = vld [vmem:[%s3922_s1 + $0x2d8] sm:$0xff]   ;;  %v3045_v35 = vld [vmem:[%s3922_s1 + $0x260] sm:$0xff]  }
  0x1a   :  { %2684 = vmatprep.subr.bf16.mxu1 %v2990_v26  ;;  %v3034_v26 = vld [vmem:[%s3922_s1 + $0x208] sm:$0xff]   ;;  %v3044_v36 = vld [vmem:[%s3922_s1 + $0x298] sm:$0xff]   ;;  %v3046_v38 = vld [vmem:[%s3922_s1 + $0x220] sm:$0xff]  }
  0x1b   :  { %2663 = vmatpush3.bf16.msra.mxu0 %v2989_v25  ;;  %v3035_v25 = vld [vmem:[%s3922_s1 + $0x2c8] sm:$0xff]   ;;  %v3053_v44 = vld [vmem:[%s3922_s1 + $0x270] sm:$0xff]  }
  0x1c   :  { %2664 = vmatprep.subr.bf16.mxu0 %v2992_v29  ;;  %v3039_v29 = vld [vmem:[%s3922_s1 + $0x2d0] sm:$0xff]   ;;  %v3051_v42 = vld [vmem:[%s3922_s1 + $0x2e8] sm:$0xff]  }
  0x1d   :  { %2685 = vmatpush3.bf16.msra.mxu1 %v2991_v28  ;;  %v3036_v28 = vld [vmem:[%s3922_s1 + $0x288] sm:$0xff]  }
  0x1e   :  { %2686 = vmatprep.subr.bf16.mxu1 %v2994_v31  ;;  %v3041_v31 = vld [vmem:[%s3922_s1 + $0x258] sm:$0xff]   ;;  %v3050_v43 = vld [vmem:[%s3922_s1 + $0x228] sm:$0xff]  }
  0x1f   :  { %2665 = vmatpush3.bf16.msra.mxu0 %v2993_v30  ;;  %v3038_v30 = vld [vmem:[%s3922_s1 + $0x210] sm:$0xff]   ;;  %v3052_v46 = vld [vmem:[%s3922_s1 + $0x2a8] sm:$0xff]  }
  0x20   :  { %2694 = vmatprep.subr.bf16.mxu0 %v2997_v37  ;;  %v3047_v37 = vld [vmem:[%s3922_s1 + $0x2e0] sm:$0xff]  }
  0x21   :  { %2687 = vmatpush3.bf16.msra.mxu1 %v2996_v34  ;;  %v3042_v34 = vld [vmem:[%s3922_s1 + $0x218] sm:$0xff]  }
  0x22   :  { %2716 = vmatprep.subr.bf16.mxu1 %v2999_v40  ;;  %1827 = vmatmul.mubr.bf16.vlgmr.msra.gmra.mrb[0].mxu0 %v452_v45  ;;  %v3048_v40 = vld [vmem:[%s3922_s1 + $0x2a0] sm:$0xff]   ;;  %v23_v45 = vld [vmem:[%s3921_s0 + $0x8] sm:$0xff] }
  0x23   :  { %2695 = vmatpush3.bf16.msra.mxu0 %v2998_v48  ;;  %1906 = vmatprep.mubr.bf16.mxu0 %v473_v49  ;;  %v485_v47 = vrot.slane %v23_v45, %v3334_v41  ;;  %v478_v48 = vcombine.high %v23_v45, %v23_v45  ;;  %v3055_v49 = vld [vmem:[%s3922_s1 + $0x2f0] sm:$0xff]  }
  0x24   :  { %1867 = vmatmul.mubr.bf16.vlgmr.msra.gmra.mrb[0].mxu1 %v474_v50  ;;  %2696 = vmatprep.subr.bf16.mxu0 %v3001_v51  ;;  %v3054_v50 = vld [vmem:[%s3922_s1 + $0x230] sm:$0xff]  }
  0x25   :  { %2717 = vmatpush3.bf16.msra.mxu1 %v3000_v53  ;;  %1946 = vmatprep.mubr.bf16.mxu1 %v477_v55  ;;  %v493_v51 = vcombine.high %v485_v47, %v485_v47  ;;  %v3523_v52 = vrot.slane %v478_v48, %v3334_v41  ;;  %v3057_v53 = vld [vmem:[%s3922_s1 + $0x278] sm:$0xff]   ;;  %v3104_v45 = vld [vmem:[%s3922_s1 + $0x4d0] sm:$0xff]  }
  0x26   :  { %2718 = vmatprep.subr.bf16.mxu1 %v3003_v54  ;;  %v3056_v54 = vld [vmem:[%s3922_s1 + $0x2b0] sm:$0xff]  }
  0x27   :  { %2697 = vmatpush3.bf16.msra.mxu0 %v3002_v56  ;;  %v515_v55 = vrot.slane %v493_v51, %v3334_v41  ;;  %v494_v56 = vcombine.high %v3523_v52, %v3523_v52  ;;  %v3105_v48 = vld [vmem:[%s3922_s1 + $0x490] sm:$0xff]   ;;  %v3110_v51 = vld [vmem:[%s3922_s1 + $0x460] sm:$0xff]  }
  0x28   :  { %2698 = vmatprep.subr.bf16.mxu0 %v3005_v57  ;;  %v3059_v57 = vld [vmem:[%s3922_s1 + $0x2f8] sm:$0xff]  }
  0x29   :  { %2719 = vmatpush3.bf16.msra.mxu1 %v3004_v58  ;;  %v3058_v58 = vld [vmem:[%s3922_s1 + $0x238] sm:$0xff]  }
  0x2a   :  { %2720 = vmatprep.subr.bf16.mxu1 %v3007_v59  ;;  %v525_v59 = vcombine.high %v515_v55, %v515_v55 }
  0x2b   :  { %2699 = vmatpush3.bf16.msra.mxu0 %v3006_v60  ;;  %v501_v60 = vrot.slane %v485_v47, %v3334_v41  ;;  %v3106_v47 = vld [vmem:[%s3922_s1 + $0x458] sm:$0xff]  }
  0x2c   :  { %2700 = vmatprep.subr.bf16.mxu0 %v3009_v61  ;;  %v3061_v61 = vld [vmem:[%s3922_s1 + $0x340] sm:$0xff]  }
  0x2d   :  { %2721 = vmatpush3.bf16.msra.mxu1 %v3008_v62  ;;  %v3060_v62 = vld [vmem:[%s3922_s1 + $0x2b8] sm:$0xff]  }
  0x2e   :  { %2722 = vmatprep.subr.bf16.mxu1 %v3011_v63  ;;  %v522_v63 = vrot.slane %v494_v56, %v3334_v41  ;;  %v3113_v56 = vld [vmem:[%s3922_s1 + $0x4a0] sm:$0xff]  }
  0x2f   :  { %2701 = vmatpush3.bf16.msra.mxu0 %v3010_v0  ;;  %v3063_v0 = vld [vmem:[%s3922_s1 + $0x3c0] sm:$0xff]  }
  0x30   :  { %2702 = vmatprep.subr.bf16.mxu0 %v3013_v1  ;;  %v3062_v1 = vld [vmem:[%s3922_s1 + $0x300] sm:$0xff]  }
  0x31   :  { %2723 = vmatpush3.bf16.msra.mxu1 %v3012_v2  ;;  %v523_v2 = vcombine.high %v501_v60, %v501_v60 }
  0x32   :  { %2724 = vmatprep.subr.bf16.mxu1 %v3015_v3  ;;  %v3065_v3 = vld [vmem:[%s3922_s1 + $0x348] sm:$0xff]  }
  0x33   :  { %2703 = vmatpush3.bf16.msra.mxu0 %v3014_v4  ;;  %v3064_v4 = vld [vmem:[%s3922_s1 + $0x380] sm:$0xff]  }
  0x34   :  { %2704 = vmatprep.subr.bf16.mxu0 %v3017_v5  ;;  %v526_v5 = vcombine.high %v522_v63, %v522_v63 }
  0x35   :  { %2725 = vmatpush3.bf16.msra.mxu1 %v3016_v6  ;;  %v3067_v6 = vld [vmem:[%s3922_s1 + $0x3c8] sm:$0xff]  }
  0x36   :  { %2726 = vmatprep.subr.bf16.mxu1 %v3019_v7  ;;  %v3066_v7 = vld [vmem:[%s3922_s1 + $0x308] sm:$0xff]  }
  0x37   :  { %2705 = vmatpush3.bf16.msra.mxu0 %v3018_v8  ;;  %v3069_v8 = vld [vmem:[%s3922_s1 + $0x350] sm:$0xff]  }
  0x38   :  { %2706 = vmatprep.subr.bf16.mxu0 %v3021_v9  ;;  %v3068_v9 = vld [vmem:[%s3922_s1 + $0x388] sm:$0xff]  }
  0x39   :  { %2727 = vmatpush3.bf16.msra.mxu1 %v3020_v10  ;;  %v3071_v10 = vld [vmem:[%s3922_s1 + $0x3d0] sm:$0xff]  }
  0x3a   :  { %2728 = vmatprep.subr.bf16.mxu1 %v3023_v11  ;;  %v3070_v11 = vld [vmem:[%s3922_s1 + $0x310] sm:$0xff]  }
  0x3b   :  { %2707 = vmatpush3.bf16.msra.mxu0 %v3022_v12  ;;  %v3073_v12 = vld [vmem:[%s3922_s1 + $0x358] sm:$0xff]  }
  0x3c   :  { %2708 = vmatprep.subr.bf16.mxu0 %v3025_v13  ;;  %v3072_v13 = vld [vmem:[%s3922_s1 + $0x390] sm:$0xff]  }
  0x3d   :  { %2729 = vmatpush3.bf16.msra.mxu1 %v3024_v14  ;;  %v3075_v14 = vld [vmem:[%s3922_s1 + $0x3d8] sm:$0xff]  }
  0x3e   :  { %2730 = vmatprep.subr.bf16.mxu1 %v3027_v15  ;;  %v3074_v15 = vld [vmem:[%s3922_s1 + $0x318] sm:$0xff]  }
  0x3f   :  { %2709 = vmatpush3.bf16.msra.mxu0 %v3026_v16  ;;  %v3077_v16 = vld [vmem:[%s3922_s1 + $0x360] sm:$0xff]  }
  0x40   :  { %2738 = vmatprep.subr.bf16.mxu0 %v3029_v18  ;;  %v3079_v18 = vld [vmem:[%s3922_s1 + $0x3e0] sm:$0xff]  }
  0x41   :  { %2731 = vmatpush3.bf16.msra.mxu1 %v3028_v19  ;;  %v3078_v19 = vld [vmem:[%s3922_s1 + $0x320] sm:$0xff]  }
  0x42   :  { %1907 = vmatmul.mubr.bf16.vlgmr.msra.gmra.mrb[4].mxu0 %v459_v17  ;;  %2760 = vmatprep.subr.bf16.mxu1 %v3031_v20  ;;  %v3076_v17 = vld [vmem:[%s3922_s1 + $0x398] sm:$0xff]   ;;  %v3081_v20 = vld [vmem:[%s3922_s1 + $0x368] sm:$0xff]  }
  0x43   :  { %2739 = vmatpush3.bf16.msra.mxu0 %v3030_v21  ;;  %1986 = vmatprep.mubr.bf16.mxu0 %v515_v55  ;;  %v3080_v21 = vld [vmem:[%s3922_s1 + $0x3a0] sm:$0xff]   ;;  %v3114_v55 = vld [vmem:[%s3922_s1 + $0x468] sm:$0xff]  }
  0x44   :  { %1947 = vmatmul.mubr.bf16.vlgmr.msra.gmra.mrb[4].mxu1 %v475_v22  ;;  %2740 = vmatprep.subr.bf16.mxu0 %v3033_v23  ;;  %v3083_v22 = vld [vmem:[%s3922_s1 + $0x3e8] sm:$0xff]  }
  0x45   :  { %2761 = vmatpush3.bf16.msra.mxu1 %v3032_v24  ;;  %2026 = vmatprep.mubr.bf16.mxu1 %v525_v59  ;;  %v3082_v23 = vld [vmem:[%s3922_s1 + $0x328] sm:$0xff]   ;;  %v3085_v24 = vld [vmem:[%s3922_s1 + $0x370] sm:$0xff]  }
  0x46   :  { %2762 = vmatprep.subr.bf16.mxu1 %v3035_v25  ;;  %v3084_v25 = vld [vmem:[%s3922_s1 + $0x3a8] sm:$0xff]   ;;  %v3118_v59 = vld [vmem:[%s3922_s1 + $0x470] sm:$0xff]  }
  0x47   :  { %2741 = vmatpush3.bf16.msra.mxu0 %v3034_v26  ;;  %v3087_v26 = vld [vmem:[%s3922_s1 + $0x3f0] sm:$0xff]  }
  0x48   :  { %2742 = vmatprep.subr.bf16.mxu0 %v3037_v27  ;;  %v3086_v27 = vld [vmem:[%s3922_s1 + $0x330] sm:$0xff]  }
  0x49   :  { %2763 = vmatpush3.bf16.msra.mxu1 %v3036_v28  ;;  %v3089_v28 = vld [vmem:[%s3922_s1 + $0x378] sm:$0xff]  }
  0x4a   :  { %2764 = vmatprep.subr.bf16.mxu1 %v3039_v29  ;;  %v3088_v29 = vld [vmem:[%s3922_s1 + $0x3b0] sm:$0xff]  }
  0x4b   :  { %2743 = vmatpush3.bf16.msra.mxu0 %v3038_v30  ;;  %v3091_v30 = vld [vmem:[%s3922_s1 + $0x3f8] sm:$0xff]  }
  0x4c   :  { %2744 = vmatprep.subr.bf16.mxu0 %v3041_v31  ;;  %v3090_v31 = vld [vmem:[%s3922_s1 + $0x338] sm:$0xff]  }
  0x4d   :  { %2765 = vmatpush3.bf16.msra.mxu1 %v3040_v32  ;;  %v508_v32 = vrot.slane %v3523_v52, %v3334_v41  ;;  %v3109_v52 = vld [vmem:[%s3922_s1 + $0x498] sm:$0xff]  }
  0x4e   :  { %2766 = vmatprep.subr.bf16.mxu1 %v3043_v33  ;;  %v3094_v33 = vld [vmem:[%s3922_s1 + $0x440] sm:$0xff]  }
  0x4f   :  { %2745 = vmatpush3.bf16.msra.mxu0 %v3042_v34  ;;  %v3093_v34 = vld [vmem:[%s3922_s1 + $0x3b8] sm:$0xff]  }
  0x50   :  { %2746 = vmatprep.subr.bf16.mxu0 %v3045_v35  ;;  %v3096_v35 = vld [vmem:[%s3922_s1 + $0x4c0] sm:$0xff]  }
  0x51   :  { %2767 = vmatpush3.bf16.msra.mxu1 %v3044_v36  ;;  %v3095_v36 = vld [vmem:[%s3922_s1 + $0x400] sm:$0xff]  }
  0x52   :  { %2768 = vmatprep.subr.bf16.mxu1 %v3047_v37  ;;  %v524_v37 = vcombine.high %v508_v32, %v508_v32 }
  0x53   :  { %2747 = vmatpush3.bf16.msra.mxu0 %v3046_v38  ;;  %v3098_v38 = vld [vmem:[%s3922_s1 + $0x448] sm:$0xff]  }
  0x54   :  { %2748 = vmatprep.subr.bf16.mxu0 %v3049_v39  ;;  %v3097_v39 = vld [vmem:[%s3922_s1 + $0x480] sm:$0xff]  }
  0x55   :  { %2769 = vmatpush3.bf16.msra.mxu1 %v3048_v40  ;;  %v3100_v40 = vld [vmem:[%s3922_s1 + $0x4c8] sm:$0xff]  }
  0x56   :  { %2770 = vmatprep.subr.bf16.mxu1 %v3051_v42  ;;  %v3099_v42 = vld [vmem:[%s3922_s1 + $0x408] sm:$0xff]  }
  0x57   :  { %2749 = vmatpush3.bf16.msra.mxu0 %v3050_v43  ;;  %v3102_v43 = vld [vmem:[%s3922_s1 + $0x450] sm:$0xff]  }
  0x58   :  { %2750 = vmatprep.subr.bf16.mxu0 %v3053_v44  ;;  %v3101_v44 = vld [vmem:[%s3922_s1 + $0x488] sm:$0xff]  }
  0x59   :  { %2771 = vmatpush3.bf16.msra.mxu1 %v3052_v46  ;;  %v3103_v46 = vld [vmem:[%s3922_s1 + $0x410] sm:$0xff]  }
  0x5a   :  { %2772 = vmatprep.subr.bf16.mxu1 %v3055_v49  ;;  %v3108_v49 = vld [vmem:[%s3922_s1 + $0x4d8] sm:$0xff]  }
  0x5b   :  { %2751 = vmatpush3.bf16.msra.mxu0 %v3054_v50  ;;  %v3107_v50 = vld [vmem:[%s3922_s1 + $0x418] sm:$0xff]  }
  0x5c   :  { %2752 = vmatprep.subr.bf16.mxu0 %v3057_v53  ;;  %v3112_v53 = vld [vmem:[%s3922_s1 + $0x4e0] sm:$0xff]  }
  0x5d   :  { %2773 = vmatpush3.bf16.msra.mxu1 %v3056_v54  ;;  %v3111_v54 = vld [vmem:[%s3922_s1 + $0x420] sm:$0xff]  }
  0x5e   :  { %2774 = vmatprep.subr.bf16.mxu1 %v3059_v57  ;;  %v3116_v57 = vld [vmem:[%s3922_s1 + $0x4e8] sm:$0xff]  }
  0x5f   :  { %2753 = vmatpush3.bf16.msra.mxu0 %v3058_v58  ;;  %v3115_v58 = vld [vmem:[%s3922_s1 + $0x428] sm:$0xff]  }
  0x60   :  { %2782 = vmatprep.subr.bf16.mxu0 %v3061_v61  ;;  %v3117_v61 = vld [vmem:[%s3922_s1 + $0x4a8] sm:$0xff]  }
  0x61   :  { %2775 = vmatpush3.bf16.msra.mxu1 %v3060_v62 }
  0x62   :  { %1987 = vmatmul.mubr.bf16.vlgmr.msra.gmra.mrb[8].mxu0 %v501_v60  ;;  %2804 = vmatprep.subr.bf16.mxu1 %v3063_v0  ;;  %v24_v60 = vld [vmem:[%s3921_s0 + $0x10] sm:$0xff] }
  0x63   :  { %2783 = vmatpush3.bf16.msra.mxu0 %v3062_v1  ;;  %2066 = vmatprep.mubr.bf16.mxu0 %v522_v63  ;;  %v534_v62 = vrot.slane %v24_v60, %v3334_v41  ;;  %v527_v63 = vcombine.high %v24_v60, %v24_v60  ;;  %v3120_v0 = vld [vmem:[%s3922_s1 + $0x4f0] sm:$0xff]  }
  0x64   :  { %2027 = vmatmul.mubr.bf16.vlgmr.msra.gmra.mrb[8].mxu1 %v523_v2  ;;  %2784 = vmatprep.subr.bf16.mxu0 %v3065_v3  ;;  %v3119_v1 = vld [vmem:[%s3922_s1 + $0x430] sm:$0xff]  }
  0x65   :  { %2805 = vmatpush3.bf16.msra.mxu1 %v3064_v4  ;;  %2106 = vmatprep.mubr.bf16.mxu1 %v526_v5  ;;  %v542_v2 = vcombine.high %v534_v62, %v534_v62  ;;  %v3729_v3 = vrot.slane %v527_v63, %v3334_v41  ;;  %v3122_v4 = vld [vmem:[%s3922_s1 + $0x478] sm:$0xff]   ;;  %v3121_v5 = vld [vmem:[%s3922_s1 + $0x4b0] sm:$0xff]  }
  0x66   :  { %2806 = vmatprep.subr.bf16.mxu1 %v3067_v6 }
  0x67   :  { %2785 = vmatpush3.bf16.msra.mxu0 %v3066_v7  ;;  %v564_v6 = vrot.slane %v542_v2, %v3334_v41  ;;  %v543_v7 = vcombine.high %v3729_v3, %v3729_v3 }
  0x68   :  { %2786 = vmatprep.subr.bf16.mxu0 %v3069_v8  ;;  %v3124_v8 = vld [vmem:[%s3922_s1 + $0x4f8] sm:$0xff]  }
  0x69   :  { %2807 = vmatpush3.bf16.msra.mxu1 %v3068_v9  ;;  %v3123_v9 = vld [vmem:[%s3922_s1 + $0x438] sm:$0xff]  }
  0x6a   :  { %2808 = vmatprep.subr.bf16.mxu1 %v3071_v10  ;;  %v574_v10 = vcombine.high %v564_v6, %v564_v6 }
  0x6b   :  { %2787 = vmatpush3.bf16.msra.mxu0 %v3070_v11  ;;  %v550_v11 = vrot.slane %v534_v62, %v3334_v41 }
  0x6c   :  { %2788 = vmatprep.subr.bf16.mxu0 %v3073_v12  ;;  %v3126_v12 = vld [vmem:[%s3922_s1 + $0x540] sm:$0xff]  }
  0x6d   :  { %2809 = vmatpush3.bf16.msra.mxu1 %v3072_v13  ;;  %v3125_v13 = vld [vmem:[%s3922_s1 + $0x4b8] sm:$0xff]  }
  0x6e   :  { %2810 = vmatprep.subr.bf16.mxu1 %v3075_v14  ;;  %v571_v14 = vrot.slane %v543_v7, %v3334_v41 }
  0x6f   :  { %2789 = vmatpush3.bf16.msra.mxu0 %v3074_v15  ;;  %v3128_v15 = vld [vmem:[%s3922_s1 + $0x5c0] sm:$0xff]  }
  0x70   :  { %2790 = vmatprep.subr.bf16.mxu0 %v3077_v16  ;;  %v3127_v16 = vld [vmem:[%s3922_s1 + $0x500] sm:$0xff]  }
  0x71   :  { %2811 = vmatpush3.bf16.msra.mxu1 %v3076_v17  ;;  %v572_v17 = vcombine.high %v550_v11, %v550_v11 }
  0x72   :  { %2812 = vmatprep.subr.bf16.mxu1 %v3079_v18  ;;  %v3130_v18 = vld [vmem:[%s3922_s1 + $0x548] sm:$0xff]  }
  0x73   :  { %2791 = vmatpush3.bf16.msra.mxu0 %v3078_v19  ;;  %v3129_v19 = vld [vmem:[%s3922_s1 + $0x580] sm:$0xff]  }
  0x74   :  { %2792 = vmatprep.subr.bf16.mxu0 %v3081_v20  ;;  %v575_v20 = vcombine.high %v571_v14, %v571_v14 }
  0x75   :  { %2813 = vmatpush3.bf16.msra.mxu1 %v3080_v21  ;;  %v3132_v21 = vld [vmem:[%s3922_s1 + $0x5c8] sm:$0xff]  }
  0x76   :  { %2814 = vmatprep.subr.bf16.mxu1 %v3083_v22  ;;  %v3131_v22 = vld [vmem:[%s3922_s1 + $0x508] sm:$0xff]  }
  0x77   :  { %2793 = vmatpush3.bf16.msra.mxu0 %v3082_v23  ;;  %v3134_v23 = vld [vmem:[%s3922_s1 + $0x550] sm:$0xff]  }
  0x78   :  { %2794 = vmatprep.subr.bf16.mxu0 %v3085_v24  ;;  %v3133_v24 = vld [vmem:[%s3922_s1 + $0x588] sm:$0xff]  }
  0x79   :  { %2815 = vmatpush3.bf16.msra.mxu1 %v3084_v25  ;;  %v3136_v25 = vld [vmem:[%s3922_s1 + $0x5d0] sm:$0xff]  }
  0x7a   :  { %2816 = vmatprep.subr.bf16.mxu1 %v3087_v26  ;;  %v3135_v26 = vld [vmem:[%s3922_s1 + $0x510] sm:$0xff]  }
  0x7b   :  { %2795 = vmatpush3.bf16.msra.mxu0 %v3086_v27  ;;  %v3138_v27 = vld [vmem:[%s3922_s1 + $0x558] sm:$0xff]  }
  0x7c   :  { %2796 = vmatprep.subr.bf16.mxu0 %v3089_v28  ;;  %v3137_v28 = vld [vmem:[%s3922_s1 + $0x590] sm:$0xff]  }
  0x7d   :  { %2817 = vmatpush3.bf16.msra.mxu1 %v3088_v29  ;;  %v3140_v29 = vld [vmem:[%s3922_s1 + $0x5d8] sm:$0xff]  }
  0x7e   :  { %2818 = vmatprep.subr.bf16.mxu1 %v3091_v30  ;;  %v3139_v30 = vld [vmem:[%s3922_s1 + $0x518] sm:$0xff]  }
  0x7f   :  { %2797 = vmatpush3.bf16.msra.mxu0 %v3090_v31  ;;  %v3142_v31 = vld [vmem:[%s3922_s1 + $0x560] sm:$0xff]  }
  0x80   :  { %2826 = vmatprep.subr.bf16.mxu0 %v3094_v33  ;;  %v3144_v33 = vld [vmem:[%s3922_s1 + $0x5e0] sm:$0xff]  }
  0x81   :  { %2819 = vmatpush3.bf16.msra.mxu1 %v3093_v34  ;;  %v3143_v34 = vld [vmem:[%s3922_s1 + $0x520] sm:$0xff]  }
  0x82   :  { %2067 = vmatmul.mubr.bf16.vlgmr.msra.gmra.mrb[12].mxu0 %v508_v32  ;;  %2848 = vmatprep.subr.bf16.mxu1 %v3096_v35  ;;  %v3141_v32 = vld [vmem:[%s3922_s1 + $0x598] sm:$0xff]   ;;  %v3146_v35 = vld [vmem:[%s3922_s1 + $0x568] sm:$0xff]  }
  0x83   :  { %2827 = vmatpush3.bf16.msra.mxu0 %v3095_v36  ;;  %2146 = vmatprep.mubr.bf16.mxu0 %v564_v6  ;;  %v3145_v36 = vld [vmem:[%s3922_s1 + $0x5a0] sm:$0xff]  }
  0x84   :  { %2107 = vmatmul.mubr.bf16.vlgmr.msra.gmra.mrb[12].mxu1 %v524_v37  ;;  %2828 = vmatprep.subr.bf16.mxu0 %v3098_v38  ;;  %v3148_v37 = vld [vmem:[%s3922_s1 + $0x5e8] sm:$0xff]  }
  0x85   :  { %2849 = vmatpush3.bf16.msra.mxu1 %v3097_v39  ;;  %2186 = vmatprep.mubr.bf16.mxu1 %v574_v10  ;;  %v3147_v38 = vld [vmem:[%s3922_s1 + $0x528] sm:$0xff]   ;;  %v3150_v39 = vld [vmem:[%s3922_s1 + $0x570] sm:$0xff]  }
  0x86   :  { %2850 = vmatprep.subr.bf16.mxu1 %v3100_v40  ;;  %v3149_v40 = vld [vmem:[%s3922_s1 + $0x5a8] sm:$0xff]  }
  0x87   :  { %2829 = vmatpush3.bf16.msra.mxu0 %v3099_v42  ;;  %v3152_v42 = vld [vmem:[%s3922_s1 + $0x5f0] sm:$0xff]  }
  0x88   :  { %2830 = vmatprep.subr.bf16.mxu0 %v3102_v43  ;;  %v3151_v43 = vld [vmem:[%s3922_s1 + $0x530] sm:$0xff]  }
  0x89   :  { %2851 = vmatpush3.bf16.msra.mxu1 %v3101_v44  ;;  %v3154_v44 = vld [vmem:[%s3922_s1 + $0x578] sm:$0xff]  }
  0x8a   :  { %2852 = vmatprep.subr.bf16.mxu1 %v3104_v45  ;;  %v3153_v45 = vld [vmem:[%s3922_s1 + $0x5b0] sm:$0xff]  }
  0x8b   :  { %2831 = vmatpush3.bf16.msra.mxu0 %v3103_v46  ;;  %v3155_v46 = vld [vmem:[%s3922_s1 + $0x538] sm:$0xff]  }
  0x8c   :  { %2832 = vmatprep.subr.bf16.mxu0 %v3106_v47  ;;  %v3156_v47 = vld [vmem:[%s3922_s1 + $0x5f8] sm:$0xff]  }
  0x8d   :  { %2853 = vmatpush3.bf16.msra.mxu1 %v3105_v48  ;;  %v3158_v48 = vld [vmem:[%s3922_s1 + $0x5b8] sm:$0xff]  }
  0x8e   :  { %2854 = vmatprep.subr.bf16.mxu1 %v3108_v49  ;;  %v557_v49 = vrot.slane %v3729_v3, %v3334_v41 }
  0x8f   :  { %2833 = vmatpush3.bf16.msra.mxu0 %v3107_v50  ;;  %v3159_v50 = vld [vmem:[%s3922_s1 + $0x600] sm:$0xff]  }
  0x90   :  { %2834 = vmatprep.subr.bf16.mxu0 %v3110_v51  ;;  %v3196_v51 = vmov 0.0  }
  0x91   :  { %2855 = vmatpush3.bf16.msra.mxu1 %v3109_v52  ;;  %v573_v52 = vcombine.high %v557_v49, %v557_v49 }
  0x92   :  { %2856 = vmatprep.subr.bf16.mxu1 %v3112_v53 }
  0x93   :  { %2835 = vmatpush3.bf16.msra.mxu0 %v3111_v54 }
  0x94   :  { %2836 = vmatprep.subr.bf16.mxu0 %v3114_v55 }
  0x95   :  { %2857 = vmatpush3.bf16.msra.mxu1 %v3113_v56 }
  0x96   :  { %2858 = vmatprep.subr.bf16.mxu1 %v3116_v57 }
  0x97   :  { %2837 = vmatpush3.bf16.msra.mxu0 %v3115_v58 }
  0x98   :  { %2838 = vmatprep.subr.bf16.mxu0 %v3118_v59 }
  0x99   :  { %2859 = vmatpush3.bf16.msra.mxu1 %v3117_v61 }
  0x9a   :  { %2860 = vmatprep.subr.bf16.mxu1 %v3120_v0 }
  0x9b   :  { %2839 = vmatpush3.bf16.msra.mxu0 %v3119_v1 }
  0x9c   :  { %2840 = vmatprep.subr.bf16.mxu0 %v3122_v4 }
  0x9d   :  { %2861 = vmatpush3.bf16.msra.mxu1 %v3121_v5 }
  0x9e   :  { %2862 = vmatprep.subr.bf16.mxu1 %v3124_v8 }
  0x9f   :  { %2841 = vmatpush3.bf16.msra.mxu0 %v3123_v9 }
  0xa0   :  { %2870 = vmatprep.subr.bf16.mxu0 %v3126_v12 }
  0xa1   :  { %2863 = vmatpush3.bf16.msra.mxu1 %v3125_v13 }
  0xa2   :  { %2147 = vmatmul.mubr.bf16.vlgmr.msra.gmra.mrb[16].mxu0 %v550_v11  ;;  %2892 = vmatprep.subr.bf16.mxu1 %v3128_v15 }
  0xa3   :  { %2871 = vmatpush3.bf16.msra.mxu0 %v3127_v16  ;;  %2226 = vmatprep.mubr.bf16.mxu0 %v571_v14 }
  0xa4   :  { %2187 = vmatmul.mubr.bf16.vlgmr.msra.gmra.mrb[16].mxu1 %v572_v17  ;;  %2872 = vmatprep.subr.bf16.mxu0 %v3130_v18 }
  0xa5   :  { %2893 = vmatpush3.bf16.msra.mxu1 %v3129_v19  ;;  %2266 = vmatprep.mubr.bf16.mxu1 %v575_v20 }
  0xa6   :  { %2894 = vmatprep.subr.bf16.mxu1 %v3132_v21 }
  0xa7   :  { %2873 = vmatpush3.bf16.msra.mxu0 %v3131_v22 }
  0xa8   :  { %2874 = vmatprep.subr.bf16.mxu0 %v3134_v23 }
  0xa9   :  { %2895 = vmatpush3.bf16.msra.mxu1 %v3133_v24 }
  0xaa   :  { %2896 = vmatprep.subr.bf16.mxu1 %v3136_v25 }
  0xab   :  { %2875 = vmatpush3.bf16.msra.mxu0 %v3135_v26 }
  0xac   :  { %2876 = vmatprep.subr.bf16.mxu0 %v3138_v27 }
  0xad   :  { %2897 = vmatpush3.bf16.msra.mxu1 %v3137_v28 }
  0xae   :  { %2898 = vmatprep.subr.bf16.mxu1 %v3140_v29 }
  0xaf   :  { %2877 = vmatpush3.bf16.msra.mxu0 %v3139_v30 }
  0xb0   :  { %2878 = vmatprep.subr.bf16.mxu0 %v3142_v31 }
  0xb1   :  { %2899 = vmatpush3.bf16.msra.mxu1 %v3141_v32 }
  0xb2   :  { %2900 = vmatprep.subr.bf16.mxu1 %v3144_v33 }
  0xb3   :  { %2879 = vmatpush3.bf16.msra.mxu0 %v3143_v34 }
  0xb4   :  { %2880 = vmatprep.subr.bf16.mxu0 %v3146_v35 }
  0xb5   :  { %2901 = vmatpush3.bf16.msra.mxu1 %v3145_v36 }
  0xb6   :  { %2902 = vmatprep.subr.bf16.mxu1 %v3148_v37 }
  0xb7   :  { %2881 = vmatpush3.bf16.msra.mxu0 %v3147_v38 }
  0xb8   :  { %2882 = vmatprep.subr.bf16.mxu0 %v3150_v39 }
  0xb9   :  { %2903 = vmatpush3.bf16.msra.mxu1 %v3149_v40 }
  0xba   :  { %2904 = vmatprep.subr.bf16.mxu1 %v3152_v42 }
  0xbb   :  { %2883 = vmatpush3.bf16.msra.mxu0 %v3151_v43 }
  0xbc   :  { %2884 = vmatprep.subr.bf16.mxu0 %v3154_v44 }
  0xbd   :  { %2905 = vmatpush3.bf16.msra.mxu1 %v3153_v45 }
  0xbe   :  { %2906 = vmatprep.subr.bf16.mxu1 %v3156_v47 }
  0xbf   :  { %2885 = vmatpush3.bf16.msra.mxu0 %v3155_v46 }
  0xc0   :  { %2928 = vmatprep.subr.bf16.mxu0 %v3196_v51 }
  0xc1   :  { %10 = vsyncpa [#allocation3], 0  ;;  %2907 = vmatpush3.bf16.msra.mxu1 %v3158_v48  ;;  %v3160_v53 = vld [vmem:[%s3922_s1 + $0x608] sm:$0xff]   ;;  %vm3197_vm0 = vmmov 0   ;;  %v3161_v54 = vld [vmem:[%s3922_s1 + $0x610] sm:$0xff]   ;;  %vm1790_vm1 = vcmask 523264  }
  0xc2   :  { %2227 = vmatmul.mubr.bf16.vlgmr.msra.gmra.mrb[20].mxu0 %v557_v49  ;;  %2940 = vmatprep.subr.bf16.mxu1 %v3196_v51  ;;  %v3162_v55 = vld [vmem:[%s3922_s1 + $0x618] sm:$0xff]   ;;  %v2442_v59 = vld [vmem:[%s3923_s2] ss:$0 sm:$0xff]  ;;  %v3164_v7 = vld [vmem:[%s3924_s3 + $0x8] sm:$0xff]   ;;  %s3198_s9 = smov [#allocation2]  }
  0xc3   :  { %2929 = vmatpush3.bf16.msra.mxu0 %v3159_v50  ;;  %2936 = vmatprep.mubr.msk.bf16.mxu0 %vm3197_vm0, %v3196_v51  ;;  %v2443_v56 = vld.sshfl [vmem:[%s3921_s0 + $0x18] sm:$0x1 pattern:$0x75316420]  ;;  %v3165_v8 = vld [vmem:[%s3924_s3 + $0x10] sm:$0xff]   ;;  %v3167_v20 = vld [vmem:[%s3924_s3 + $0x20] sm:$0xff]  }
  0xc4   :  { %2267 = vmatmul.mubr.bf16.vlgmr.msra.gmra.mrb[20].mxu1 %v573_v52  ;;  %2930 = vmatprep.subr.bf16.mxu0 %v3196_v51  ;;  %v589_v57 = vrot.slane %v2443_v56, %v3334_v41  ;;  %v3163_v41 = vld [vmem:[%s3924_s3] sm:$0xff]   ;;  %v3166_v14 = vld [vmem:[%s3924_s3 + $0x18] sm:$0xff]   ;;  %v3168_v23 = vld [vmem:[%s3924_s3 + $0x28] sm:$0xff]   ;;  %s2434_s10 = sshll.u32 %s3198_s9, 4  ;;  %s2435_s10 = int_to_ptr.vmem [resolvable:$true] %s2434_s10 }
  0xc5   :  { %2956 = vmatprep.mubr.msk.bf16.mxu1 %vm3197_vm0, %v3196_v51  ;;  %2941 = vmatpush3.bf16.msra.mxu1 %v3163_v41  ;;  %v3169_v24 = vld [vmem:[%s3924_s3 + $0x30] sm:$0xff]   ;;  %v3170_v25 = vld [vmem:[%s3924_s3 + $0x38] sm:$0xff]   ;;  %s3171_s11 = scalar_lea.vmem %s2435_s10, 32  ;;  %p3176_p1 = scmp.lt.s32.totalorder %s2435_s10, %s2435_s10 }
  0xc6   :  { %2942 = vmatprep.subr.bf16.mxu1 %v3196_v51  ;;  %p3172_p0 = scmp.ne.s32.totalorder %s2435_s10, %s3171_s11  ;;  %p3177_p2 = scmp.lt.s32.totalorder %s3171_s11, %s3171_s11 }
  0xc7   :  { %2931 = vmatpush3.bf16.msra.mxu0 %v3160_v53 }
  0xc8   :  { %2932 = vmatprep.subr.bf16.mxu0 %v3196_v51  ;;  %p3178_p3 = por %p3177_p2, %p3176_p1 }
  0xc9   :  { %2943 = vmatpush3.bf16.msra.mxu1 %v3164_v7 }
  0xca   :  { %2944 = vmatprep.subr.bf16.mxu1 %v3196_v51  ;;  %p3179_p4 = pnand %p3178_p3, %p3172_p0 }
  0xcb   :  { %2933 = vmatpush3.bf16.msra.mxu0 %v3161_v54 }
  0xcc   :  { %2934 = vmatprep.subr.bf16.mxu0 %v3196_v51 }
  0xcd   :  { %2945 = vmatpush3.bf16.msra.mxu1 %v3165_v8 }
  0xce   :  { %2946 = vmatprep.subr.bf16.mxu1 %v3196_v51 }
  0xcf   :  { %2935 = vmatpush3.bf16.msra.mxu0 %v3162_v55 }
  0xd1   :  { %2947 = vmatpush3.bf16.msra.mxu1 %v3166_v14 }
  0xd2   :  { %2937 = vmatmul.mubr.msk.bf16.vlgmr.msra.gmra.mrb[24].mxu0 %vm1790_vm1, %v589_v57  ;;  %2948 = vmatprep.subr.bf16.mxu1 %v3196_v51 }
  0xd5   :  { %2949 = vmatpush3.bf16.msra.mxu1 %v3167_v20 }
  0xd6   :  { %2950 = vmatprep.subr.bf16.mxu1 %v3196_v51 }
  0xd9   :  { %2951 = vmatpush3.bf16.msra.mxu1 %v3168_v23 }
  0xda   :  { %2952 = vmatprep.subr.bf16.mxu1 %v3196_v51 }
  0xdd   :  { %2953 = vmatpush3.bf16.msra.mxu1 %v3169_v24 }
  0xde   :  { %2954 = vmatprep.subr.bf16.mxu1 %v3196_v51 }
  0xe1   :  { %2955 = vmatpush3.bf16.msra.mxu1 %v3170_v25 }
  0xf5   :  { %v2666_v58 = vpop.f32.mrb[0].mxu0 }
  0xf6   :  { %v2667_v60 = vpop.f32.mrb[1].mxu0 }
  0xf7   :  { %v2668_v61 = vadd.f32 %v2667_v60, %v2666_v58  ;;  %v2669_v62 = vpop.f32.mrb[2].mxu0  ;;  %v2688_v63 = vpop.f32.mrb[0].mxu1 }
  0xf8   :  { %v2670_v0 = vpop.f32.mrb[3].mxu0  ;;  %v2689_v1 = vpop.f32.mrb[1].mxu1 }
  0xf9   :  { %v1829_v2 = vadd.f32 %v2668_v61, %v2442_v59  ;;  %v2690_v3 = vadd.f32 %v2689_v1, %v2688_v63  ;;  %v2691_v4 = vpop.f32.mrb[2].mxu1 }
  0xfa   :  { %v2692_v5 = vpop.f32.mrb[3].mxu1 }
  0xfb   :  { %v1869_v6 = vadd.f32 %v2690_v3, %v1829_v2 }
 0x115   :  { %v2710_v9 = vpop.f32.mrb[4].mxu0 }
 0x116   :  { %v2711_v10 = vpop.f32.mrb[5].mxu0 }
 0x117   :  { %v2712_v11 = vadd.f32 %v2711_v10, %v2710_v9  ;;  %v2713_v12 = vpop.f32.mrb[6].mxu0  ;;  %v2732_v13 = vpop.f32.mrb[4].mxu1 }
 0x118   :  { %v2714_v15 = vpop.f32.mrb[7].mxu0  ;;  %v2733_v16 = vpop.f32.mrb[5].mxu1 }
 0x119   :  { %v1909_v17 = vadd.f32 %v2712_v11, %v1869_v6  ;;  %v2734_v18 = vadd.f32 %v2733_v16, %v2732_v13  ;;  %v2735_v19 = vpop.f32.mrb[6].mxu1 }
 0x11a   :  { %v2736_v21 = vpop.f32.mrb[7].mxu1 }
 0x11b   :  { %v1949_v22 = vadd.f32 %v2734_v18, %v1909_v17  ;;  %v2641_v17 = vld [vmem:[%s3925_s4] ss:$0 sm:$0xff] }
 0x135   :  { %v2754_v26 = vpop.f32.mrb[8].mxu0 }
 0x136   :  { %v2755_v27 = vpop.f32.mrb[9].mxu0 }
 0x137   :  { %v2756_v28 = vadd.f32 %v2755_v27, %v2754_v26  ;;  %v2757_v29 = vpop.f32.mrb[10].mxu0  ;;  %v2776_v30 = vpop.f32.mrb[8].mxu1 }
 0x138   :  { %v2758_v31 = vpop.f32.mrb[11].mxu0  ;;  %v2777_v32 = vpop.f32.mrb[9].mxu1 }
 0x139   :  { %v1989_v33 = vadd.f32 %v2756_v28, %v1949_v22  ;;  %v2778_v34 = vadd.f32 %v2777_v32, %v2776_v30  ;;  %v2779_v35 = vpop.f32.mrb[10].mxu1 }
 0x13a   :  { %v2780_v36 = vpop.f32.mrb[11].mxu1 }
 0x13b   :  { %v2029_v37 = vadd.f32 %v2778_v34, %v1989_v33 }
 0x155   :  { %v2798_v38 = vpop.f32.mrb[12].mxu0 }
 0x156   :  { %v2799_v39 = vpop.f32.mrb[13].mxu0 }
 0x157   :  { %v2800_v40 = vadd.f32 %v2799_v39, %v2798_v38  ;;  %v2801_v42 = vpop.f32.mrb[14].mxu0  ;;  %v2820_v43 = vpop.f32.mrb[12].mxu1 }
 0x158   :  { %v2802_v44 = vpop.f32.mrb[15].mxu0  ;;  %v2821_v45 = vpop.f32.mrb[13].mxu1 }
 0x159   :  { %v2069_v46 = vadd.f32 %v2800_v40, %v2029_v37  ;;  %v2822_v47 = vadd.f32 %v2821_v45, %v2820_v43  ;;  %v2823_v48 = vpop.f32.mrb[14].mxu1 }
 0x15a   :  { %v2824_v49 = vpop.f32.mrb[15].mxu1 }
 0x15b   :  { %v2109_v50 = vadd.f32 %v2822_v47, %v2069_v46 }
 0x175   :  { %v2842_v51 = vpop.f32.mrb[16].mxu0 }
 0x176   :  { %v2843_v52 = vpop.f32.mrb[17].mxu0 }
 0x177   :  { %v2844_v53 = vadd.f32 %v2843_v52, %v2842_v51  ;;  %v2845_v54 = vpop.f32.mrb[18].mxu0  ;;  %v2864_v55 = vpop.f32.mrb[16].mxu1 }
 0x178   :  { %v2846_v56 = vpop.f32.mrb[19].mxu0  ;;  %v2865_v57 = vpop.f32.mrb[17].mxu1 }
 0x179   :  { %v2149_v58 = vadd.f32 %v2844_v53, %v2109_v50  ;;  %v2866_v59 = vadd.f32 %v2865_v57, %v2864_v55  ;;  %v2867_v60 = vpop.f32.mrb[18].mxu1 }
 0x17a   :  { %v2868_v61 = vpop.f32.mrb[19].mxu1 }
 0x17b   :  { %v2189_v62 = vadd.f32 %v2866_v59, %v2149_v58 }
 0x195   :  { %v2886_v63 = vpop.f32.mrb[20].mxu0 }
 0x196   :  { %v2887_v0 = vpop.f32.mrb[21].mxu0 }
 0x197   :  { %v2888_v1 = vadd.f32 %v2887_v0, %v2886_v63  ;;  %v2889_v2 = vpop.f32.mrb[22].mxu0  ;;  %v2908_v3 = vpop.f32.mrb[20].mxu1 }
 0x198   :  { %v2890_v4 = vpop.f32.mrb[23].mxu0  ;;  %v2909_v5 = vpop.f32.mrb[21].mxu1 }
 0x199   :  { %v2229_v6 = vadd.f32 %v2888_v1, %v2189_v62  ;;  %v2910_v41 = vadd.f32 %v2909_v5, %v2908_v3  ;;  %v2911_v7 = vpop.f32.mrb[22].mxu1 }
 0x19a   :  { %v2912_v8 = vpop.f32.mrb[23].mxu1 }
 0x19b   :  { %v2269_v9 = vadd.f32 %v2910_v41, %v2229_v6 }
 0x1a5   :  { %v2308_v10 = vpop.f32.mrb[24].mxu0 }
 0x1a6   :  { %v2309_v11 = vadd.f32 %v2308_v10, %v2269_v9  ;;  %v2938_v12 = vpop.f32.mrb[25].mxu0 }
 0x1a7   :  { %v2311_v13 = vpop.f32.mrb[26].mxu0 }
 0x1a8   :  { %v2314_v14 = vmax.f32 %v2309_v11, 0.0  ;;  %v2939_v15 = vpop.f32.mrb[27].mxu0 }
 0x1aa   :  { %v2315_v16 = vpack.c.bf16 %v2314_v14, %v2314_v14 }
 0x1ac   :  { %2957 = vmatmul.mubr.bf16.vlgmr.msra.gmra.mrb[24].mxu1 %v2315_v16 }
 0x27f   :  { %v2421_v18 = vpop.f32.mrb[24].mxu1 }
 0x280   :  { %v2422_v19 = vadd.f32 %v2641_v17, %v2421_v18  ;;  %v2958_v20 = vpop.f32.mrb[25].mxu1 }
 0x281   :  { %v2424_v21 = vpop.f32.mrb[26].mxu1 }
 0x282   :  { %2427 = vst [vmem:[#allocation2] sm:$0x3] %v2422_v19  ;;  %v2959_v22 = vpop.f32.mrb[27].mxu1 }
 0x283   :  { %3182 = shalt.err (!%p3179_p4)
}
 0x284   :  { %s3183_s4 = scalar_lea.hbm %s3926_s5, 32 }
 0x285   :  { %p3184_p5 = scmp.ne.s32.totalorder %s3926_s5, %s3183_s4  ;;  %p3187_p6 = scmp.lt.u32.totalorder %s3183_s4, %s3926_s5 }
 0x287   :  { %p3189_p7 = pnand %p3187_p6, %p3184_p5 }
 0x289   :  { %3192 = shalt.err (!%p3189_p7)
}
 0x28a   :  { %2437 = dma.vmem_to_hbm [thread:$0]  %s2435_s10, 32, %s3926_s5, [#allocation3]  }
 0x28b   :  { %3193 = dma.done.wait [#allocation3], 32  }
 0x28c   :  { %3194 = vsyncadd [#allocation3], 4294967264 }
 0x28d   :  { %2441 = vsyncpa [#allocation3], 1 }

// kernel: spoken_digit_forward.2
= control target key start
LH: loop header
LB: loop body
LE: loop exit
PB: predicated region body
PF: predicated region fallthrough
CT: control target
= control target key end

     0   :  { %10 = vsyncpa [#allocation4], 0  ;;  %s14146_s0 = inlined_call_operand.vmem [shape: bf16[2,4,8,30], index: 0, kind: input, shape index: {}]   ;;  %s14147_s1 = inlined_call_operand.vmem [shape: bf16[2,3,30,448], index: 1, kind: input, shape index: {}]   ;;  %s14148_s2 = inlined_call_operand.hbm [shape: f32[1,448], index: 2, kind: input, shape index: {}]   ;;  %s14149_s3 = inlined_call_operand.hbm [shape: bf16[2,3,448,448], index: 3, kind: input, shape index: {}]   ;;  %s14150_s4 = inlined_call_operand.hbm [shape: f32[1,448], index: 4, kind: input, shape index: {}]   ;;  %s14151_s5 = inlined_call_operand.vmem [shape: bf16[2,7,448], index: 5, kind: output, shape index: {}]  }
   0x1   :  { %11 = vsyncpa [#allocation6], 0  ;;  %s12702_s18 = smov 0  }
   0x2 LB: > { %s12666_s19 = smov [#allocation5]   ;;  %s12708_s21 = sadd.s32 4294967295, %s12664_s18   ;;  %s12664_s18 = sphi %s12702_s18, %s17_s18  }
   0x3   : > { %s184_s20 = sshll.u32 %s12666_s19, 4  ;;  %p9421_p0 = scmp.ge.s32.totalorder %s12664_s18, 1  ;;  %s12717_s20 = int_to_ptr.vmem [resolvable:$true] %s184_s20 }
   0x4   : > { %p158_p1 = scmp.lt.s32.totalorder %s12664_s18, 3  ;;  %p10744_p2 = scmp.eq.s32.totalorder %s12708_s21, 0 }
   0x5   : > { %s12667_s23 = smov [#allocation3]   ;;  %s12668_s26 = smov [#allocation7]  }
   0x6   : > { %p12713_p3 = pnand %p9421_p0, %p158_p1  ;;  %s174_s24 = sshll.u32 %s12667_s23, 4  ;;  %s12727_s24 = int_to_ptr.vmem [resolvable:$true] %s174_s24 }
   0x7   : > { %s198_s27 = sshll.u32 %s12668_s26, 4  ;;  %s12566_s30 = scalar_lea.hbm %s14149_s3, 86016  ;;  %s12729_s27 = int_to_ptr.vmem [resolvable:$true] %s198_s27 }
   0x8   : > { %p10734_p4 = pneg %p12713_p3  ;;  %p12567_p6 = scmp.ne.s32.totalorder %s14149_s3, %s12566_s30 }
   0x9   : > { %p12573_p10 = scmp.lt.u32.totalorder %s12566_s30, %s14149_s3 }
   0xa   : > { %p12723_p5 = pnand %p10744_p2, %p10734_p4 }
   0xc   : > { %p12739_p7 = pneg %p12723_p5 }
   0xe   : > { %p12569_p8 = pnand %p12739_p7, %p12567_p6 }
  0x10   : > { %p12570_p9 = pneg %p12569_p8 }
  0x12   : > { %p12575_p11 = pnand %p12573_p10, %p12570_p9 }
  0x14   : > { %12578 = shalt.err (!%p12575_p11)
}
  0x15   : > { %s12579_s11 = scalar_lea.vmem %s12717_s20, 86016  ;;  %p12587_p1 = scmp.lt.s32.totalorder %s12717_s20, %s12717_s20 }
  0x16   : > { %p12580_p12 = scmp.ne.s32.totalorder %s12717_s20, %s12579_s11  ;;  %p12588_p4 = scmp.lt.s32.totalorder %s12579_s11, %s12579_s11 }
  0x18   : > { %p12582_p13 = pnand %p12580_p12, %p12739_p7  ;;  %p12589_p6 = por %p12588_p4, %p12587_p1 }
  0x1a   : > { %p12583_p0 = pneg %p12582_p13 }
  0x1c   : > { %p12590_p8 = pnand %p12589_p6, %p12583_p0 }
  0x1e   : > { %12593 = shalt.err (!%p12590_p8)
}
  0x1f   : > { %s12669_s12 = smov 256   ;;  %s12670_s13 = smov 16  }
  0x20   : > { %10740 = dma.hbm_to_vmem [thread:$0]  (!%p12723_p5), %s14149_s3, 86016, %s12717_s20, [#allocation6], %s12669_s12, %s12669_s12, %s12670_s13  }
  0x21   : > { %s12594_s19 = scalar_lea.hbm %s14148_s2, 64 }
  0x22   : > { %p12595_p9 = scmp.ne.s32.totalorder %s14148_s2, %s12594_s19  ;;  %p12601_p12 = scmp.lt.u32.totalorder %s12594_s19, %s14148_s2 }
  0x24   : > { %p12597_p10 = pnand %p12595_p9, %p12739_p7 }
  0x26   : > { %p12598_p11 = pneg %p12597_p10 }
  0x28   : > { %p12603_p13 = pnand %p12601_p12, %p12598_p11 }
  0x2a   : > { %12606 = shalt.err (!%p12603_p13)
}
  0x2b   : > { %s12607_s20 = scalar_lea.vmem %s12727_s24, 64  ;;  %p12615_p6 = scmp.lt.s32.totalorder %s12727_s24, %s12727_s24 }
  0x2c   : > { %p12608_p0 = scmp.ne.s32.totalorder %s12727_s24, %s12607_s20  ;;  %p12616_p8 = scmp.lt.s32.totalorder %s12607_s20, %s12607_s20 }
  0x2e   : > { %p12610_p1 = pnand %p12608_p0, %p12739_p7  ;;  %p12617_p9 = por %p12616_p8, %p12615_p6 }
  0x30   : > { %p12611_p4 = pneg %p12610_p1 }
  0x32   : > { %p12618_p10 = pnand %p12617_p9, %p12611_p4 }
  0x34   : > { %12621 = shalt.err (!%p12618_p10)
}
  0x35   : > { %10737 = dma.hbm_to_vmem [thread:$0]  (!%p12723_p5), %s14148_s2, 64, %s12727_s24, [#allocation4]  }
  0x36   : > { %s12622_s10 = scalar_lea.hbm %s14150_s4, 64 }
  0x37   : > { %p12623_p11 = scmp.ne.s32.totalorder %s14150_s4, %s12622_s10  ;;  %p12629_p0 = scmp.lt.u32.totalorder %s12622_s10, %s14150_s4 }
  0x39   : > { %p12625_p12 = pnand %p12623_p11, %p12739_p7 }
  0x3b   : > { %p12626_p13 = pneg %p12625_p12 }
  0x3d   : > { %p12631_p1 = pnand %p12629_p0, %p12626_p13 }
  0x3f   : > { %12634 = shalt.err (!%p12631_p1)
}
  0x40   : > { %s12635_s24 = scalar_lea.vmem %s12729_s27, 64  ;;  %p12643_p9 = scmp.lt.s32.totalorder %s12729_s27, %s12729_s27 }
  0x41   : > { %p12636_p4 = scmp.ne.s32.totalorder %s12729_s27, %s12635_s24  ;;  %p12644_p10 = scmp.lt.s32.totalorder %s12635_s24, %s12635_s24 }
  0x43   : > { %p12638_p6 = pnand %p12636_p4, %p12739_p7  ;;  %p12645_p11 = por %p12644_p10, %p12643_p9 }
  0x45   : > { %p12639_p8 = pneg %p12638_p6 }
  0x47   : > { %p12646_p12 = pnand %p12645_p11, %p12639_p8 }
  0x49   : > { %12649 = shalt.err (!%p12646_p12)
}
  0x4a   : > { %10743 = dma.hbm_to_vmem [thread:$0]  (!%p12723_p5), %s14150_s4, 64, %s12729_s27, [#allocation6]  }
  0x4b   : > { %219 = sbr.rel (%p12713_p3) target bundleno = 1966 (0x7ae), region = 40 }
  0x52   : > { %12655 = dma.done.wait (%p10744_p2), [#allocation4], 64  }
  0x53   : > { %12657 = vsyncadd (%p10744_p2), [#allocation4], 4294967232 }
  0x54   : > { %12659 = dma.done.wait (%p10744_p2), [#allocation6], 86080  }
  0x55   : > { %12661 = vsyncadd (%p10744_p2), [#allocation6], 4294881216  ;;  %p255_p7 = scmp.lt.s32.totalorder %s12708_s21, 1  ;;  %v12671_v0 = vmov 0   ;;  %v12825_v1 = vld [vmem:[%s14147_s1 + $0x44] ss:$16 sps:$4 sm:$0xff]  }
  0x56   : > { %379 = vmatprep.mubr.bf16.mxu0 %v12671_v0  ;;  %420 = vmatprep.mubr.bf16.mxu1 %v12671_v0  ;;  %v12831_v2 = vld [vmem:[%s14147_s1 + $0x4c] ss:$16 sps:$4 sm:$0xff]   ;;  %v12837_v3 = vld [vmem:[%s14147_s1 + $0x40] ss:$16 sps:$4 sm:$0xff]   ;;  %v12842_v4 = vld [vmem:[%s14147_s1 + $0x48] ss:$16 sps:$4 sm:$0xff]  }
  0x57   : > { %s14164_s21 = smov (!%p255_p7, %s12708_s21), 1  ;;  %347 = vmatprep.subr.bf16.mxu0 %v12825_v1  ;;  %v9439_v5 = vld [vmem:[%s14147_s1 + $0x60] sm:$0xff]  ;;  %388 = vmatprep.subr.bf16.mxu1 %v12831_v2  ;;  %v9441_v6 = vld [vmem:[%s14147_s1 + $0x70] sm:$0x77]  ;;  %vm334_vm0 = vcmask 1046528   ;;  %v9440_v7 = vld [vmem:[%s14147_s1 + $0x68] sm:$0xff] }
  0x58   : > { %s10426_s27 = sshll.u32 %s14164_s21, 4  ;;  %v9442_v8 = vld [vmem:[%s14147_s1 + $0x78] sm:$0x77]  ;;  %348 = vmatpush1.bf16.msra.mxu0 %v12837_v3  ;;  %389 = vmatpush1.bf16.msra.mxu1 %v12842_v4  ;;  %v12866_v9 = vcombine.high %v9439_v5, %v9441_v6  ;;  %v9447_v11 = vcombine.low %v9439_v5, %v9441_v6  ;;  %v12873_v13 = vld [vmem:[%s14147_s1 + $0x4] ss:$16 sps:$4 sm:$0xff]   ;;  %v280_v21 = vld [vmem:[%s14147_s1 + $0x28] sm:$0xff] }
  0x59   : > { %s12862_s14 = scalar_lea.vmem %s14146_s0, %s10426_s27  ;;  %v12868_v10 = vcombine.high %v9440_v7, %v9442_v8  ;;  %v9449_v12 = vcombine.low %v9440_v7, %v9442_v8  ;;  %v12888_v16 = vld [vmem:[%s14147_s1] ss:$16 sps:$4 sm:$0xff]   ;;  %v12893_v17 = vld [vmem:[%s14147_s1 + $0xc] ss:$16 sps:$4 sm:$0xff]   ;;  %vm330_vm1 = vcmask 244736   ;;  %vm267_vm2 = vcmask 1043456   ;;  %s264_s26 = scalar_lea.vmem %s14151_s5, %s10426_s27 }
  0x5a   : > { %9451 = vmatprep.subr.msk.bf16.mxu0 %vm334_vm0, %v12866_v9  ;;  %v12880_v14 = vsel %vm334_vm0, %v9447_v11, 0  ;;  %v12883_v15 = vld [vmem:[%s12862_s14 + $0x4] sm:$0xf]  ;;  %v281_v20 = vld [vmem:[%s14147_s1 + $0x30] sm:$0x77]  ;;  %v9473_v34 = vld [vmem:[%s14147_s1 + $0xa8] sm:$0xff] }
  0x5b   : > { %9453 = vmatprep.subr.msk.bf16.mxu1 %vm334_vm0, %v12868_v10  ;;  %v12896_v18 = vsel %vm334_vm0, %v9449_v12, 0  ;;  %v279_v19 = vld [vmem:[%s14147_s1 + $0x20] sm:$0xff]  ;;  %v12912_v22 = vld [vmem:[%s14147_s1 + $0x8] ss:$16 sps:$4 sm:$0xff]   ;;  %v12947_v31 = vld [vmem:[%s14147_s1 + $0x8c] ss:$16 sps:$4 sm:$0xff]  }
  0x5c   : > { %350 = vmatpush1.bf16.msra.mxu0 %v12880_v14  ;;  %391 = vmatpush1.bf16.msra.mxu1 %v12896_v18  ;;  %v12914_v23 = vcombine.high %v279_v19, %v281_v20  ;;  %v282_v24 = vld [vmem:[%s14147_s1 + $0x38] sm:$0x77]  ;;  %v9459_v25 = vcombine.low %v279_v19, %v281_v20  ;;  %v12932_v28 = vld [vmem:[%s14147_s1 + $0x84] ss:$16 sps:$4 sm:$0xff]   ;;  %v12968_v36 = vld [vmem:[%s12862_s14] sm:$0xf] }
  0x5d   : > { %480 = vmatprep.subr.bf16.mxu0 %v12873_v13  ;;  %521 = vmatprep.subr.bf16.mxu1 %v12893_v17  ;;  %v12921_v26 = vcombine.high %v280_v21, %v282_v24  ;;  %v9461_v27 = vcombine.low %v280_v21, %v282_v24  ;;  %v9472_v32 = vld [vmem:[%s14147_s1 + $0xa0] sm:$0xff]  ;;  %v9474_v33 = vld [vmem:[%s14147_s1 + $0xb0] sm:$0x77]  ;;  %v9475_v35 = vld [vmem:[%s14147_s1 + $0xb8] sm:$0x77]  ;;  %vm268_vm3 = vcmask 523268  }
  0x5e   : > { %v12937_v29 = vsel %vm334_vm0, %v9459_v25, 0  ;;  %v12973_v37 = vld [vmem:[%s14147_s1 + $0x80] ss:$16 sps:$4 sm:$0xff]   ;;  %v12978_v38 = vld [vmem:[%s14147_s1 + $0x88] ss:$16 sps:$4 sm:$0xff]   ;;  %v12980_v39 = vcombine.high %v9472_v32, %v9474_v33  ;;  %v9480_v40 = vcombine.low %v9472_v32, %v9474_v33  ;;  %v12982_v41 = vcombine.high %v9473_v34, %v9475_v35  ;;  %vm269_vm4 = vmor %vm268_vm3, %vm267_vm2 }
  0x5f   : > { %9452 = vmatmul.mubr.msk.bf16.vlgmr.msra.gmra.mrb[0].mxu0 %vm330_vm1, %v12883_v15  ;;  %9454 = vmatmul.mubr.msk.bf16.vlgmr.msra.gmra.mrb[0].mxu1 %vm330_vm1, %v12883_v15  ;;  %v12942_v30 = vsel %vm334_vm0, %v9461_v27, 0  ;;  %v9482_v42 = vcombine.low %v9473_v34, %v9475_v35  ;;  %v13003_v45 = vld [vmem:[%s14147_s1 + $0x104] ss:$16 sps:$4 sm:$0xff]   ;;  %v13008_v46 = vld [vmem:[%s14147_s1 + $0x10c] ss:$16 sps:$4 sm:$0xff]   ;;  %270 = vst.msk [vmem:[#allocation2 + $0x8] sm:$0xff] %vm269_vm4, %v12671_v0 }
  0x60   : > { %481 = vmatpush1.bf16.msra.mxu0 %v12888_v16  ;;  %522 = vmatpush1.bf16.msra.mxu1 %v12912_v22  ;;  %v12993_v43 = vsel %vm334_vm0, %v9480_v40, 0  ;;  %v9500_v47 = vld [vmem:[%s14147_s1 + $0x120] sm:$0xff]  ;;  %v9502_v48 = vld [vmem:[%s14147_s1 + $0x130] sm:$0x77]  ;;  %v9501_v49 = vld [vmem:[%s14147_s1 + $0x128] sm:$0xff]  ;;  %272 = vst.msk [vmem:[#allocation2 + $0x18] sm:$0xff] %vm269_vm4, %v12671_v0 }
  0x61   : > { %9463 = vmatprep.subr.msk.bf16.mxu0 %vm334_vm0, %v12914_v23  ;;  %9465 = vmatprep.subr.msk.bf16.mxu1 %vm334_vm0, %v12921_v26  ;;  %v12998_v44 = vsel %vm334_vm0, %v9482_v42, 0  ;;  %v9503_v50 = vld [vmem:[%s14147_s1 + $0x138] sm:$0x77]  ;;  %v13029_v51 = vld [vmem:[%s12862_s14 + $0x8] sm:$0xf]  ;;  %v13041_v54 = vcombine.high %v9500_v47, %v9502_v48  ;;  %v9508_v56 = vcombine.low %v9500_v47, %v9502_v48  ;;  %v9492_v60 = vld [vmem:[%s14147_s1 + $0xe0] sm:$0xff] }
  0x62   : > { %512 = vmatprep.mubr.bf16.mxu0 %v12671_v0  ;;  %553 = vmatprep.mubr.bf16.mxu1 %v12671_v0  ;;  %v13034_v52 = vld [vmem:[%s14147_s1 + $0x100] ss:$16 sps:$4 sm:$0xff]   ;;  %v13039_v53 = vld [vmem:[%s14147_s1 + $0x108] ss:$16 sps:$4 sm:$0xff]   ;;  %v13043_v55 = vcombine.high %v9501_v49, %v9503_v50  ;;  %v9510_v57 = vcombine.low %v9501_v49, %v9503_v50  ;;  %v13052_v58 = vld [vmem:[%s14147_s1 + $0xc4] ss:$16 sps:$4 sm:$0xff]  }
  0x63   : > { %v13057_v59 = vld [vmem:[%s14147_s1 + $0xcc] ss:$16 sps:$4 sm:$0xff]   ;;  %v9494_v61 = vld [vmem:[%s14147_s1 + $0xf0] sm:$0x77]  ;;  %v13078_v5 = vsel %vm334_vm0, %v9508_v56, 0  ;;  %v9532_v32 = vld [vmem:[%s14147_s1 + $0x160] sm:$0xff] }
  0x64   : > { %483 = vmatpush1.bf16.msra.mxu0 %v12937_v29  ;;  %524 = vmatpush1.bf16.msra.mxu1 %v12942_v30  ;;  %v9493_v62 = vld [vmem:[%s14147_s1 + $0xe8] sm:$0xff]  ;;  %v9495_v63 = vld [vmem:[%s14147_s1 + $0xf8] sm:$0x77]  ;;  %v13081_v6 = vsel %vm334_vm0, %v9510_v57, 0  ;;  %v13088_v7 = vld [vmem:[%s14147_s1 + $0xc0] ss:$16 sps:$4 sm:$0xff]   ;;  %v13097_v11 = vcombine.high %v9492_v60, %v9494_v61  ;;  %v9520_v12 = vcombine.low %v9492_v60, %v9494_v61 }
  0x65   : > { %624 = vmatprep.subr.bf16.mxu0 %v12932_v28  ;;  %665 = vmatprep.subr.bf16.mxu1 %v12947_v31  ;;  %v13093_v8 = vld [vmem:[%s14147_s1 + $0xc8] ss:$16 sps:$4 sm:$0xff]   ;;  %v13101_v19 = vcombine.high %v9493_v62, %v9495_v63  ;;  %v9522_v20 = vcombine.low %v9493_v62, %v9495_v63  ;;  %v13110_v21 = vld [vmem:[%s14147_s1 + $0x144] ss:$16 sps:$4 sm:$0xff]   ;;  %v13117_v24 = vld [vmem:[%s14147_s1 + $0x14c] ss:$16 sps:$4 sm:$0xff]  }
  0x66   : > { %v13122_v25 = vsel %vm334_vm0, %v9520_v12, 0  ;;  %v9534_v33 = vld [vmem:[%s14147_s1 + $0x170] sm:$0x77]  ;;  %v9533_v34 = vld [vmem:[%s14147_s1 + $0x168] sm:$0xff]  ;;  %v9535_v35 = vld [vmem:[%s14147_s1 + $0x178] sm:$0x77] }
  0x67   : > { %v13127_v27 = vsel %vm334_vm0, %v9522_v20, 0  ;;  %v13150_v40 = vld [vmem:[%s14147_s1 + $0x140] ss:$16 sps:$4 sm:$0xff]   ;;  %v13155_v42 = vld [vmem:[%s14147_s1 + $0x148] ss:$16 sps:$4 sm:$0xff]   ;;  %v13157_v47 = vcombine.high %v9532_v32, %v9534_v33  ;;  %v9540_v48 = vcombine.low %v9532_v32, %v9534_v33  ;;  %v13159_v49 = vcombine.high %v9533_v34, %v9535_v35 }
  0x68   : > { %v9542_v50 = vcombine.low %v9533_v34, %v9535_v35  ;;  %v13413_v60 = vld [vmem:[%s12862_s14 + $0x8] sm:$0xf]  ;;  %v11872_v61 = vld [vmem:[%s14147_s1 + $0xa0] sm:$0xff]  ;;  %v13470_v33 = vld [vmem:[%s14147_s1 + $0x10c] ss:$16 sps:$4 sm:$0xff]   ;;  %vm1696_vm6 = vcmask 1047556  }
  0x69   : > { %v13170_v56 = vsel %vm334_vm0, %v9540_v48, 0  ;;  %v13438_v12 = vld [vmem:[%s14147_s1 + $0x88] ss:$16 sps:$4 sm:$0xff]   ;;  %v13464_v32 = vld [vmem:[%s14147_s1 + $0x104] ss:$16 sps:$4 sm:$0xff]   ;;  %vm3948_vm13 = vcmask 523264  }
  0x6a   : > { %v13175_v57 = vsel %vm334_vm0, %v9542_v50, 0  ;;  %v11878_v35 = vld [vmem:[%s14147_s1 + $0x120] sm:$0xff]  ;;  %v9636_v50 = vld [vmem:[%s14147_s1 + $0xf0] sm:$0x77]  ;;  %vm1694_vm5 = vsmask.f32 3328 }
  0x6b   : > { %9464 = vmatmul.mubr.msk.bf16.vlgmr.msra.gmra.mrb[0].mxu0 %vm330_vm1, %v12968_v36  ;;  %9466 = vmatmul.mubr.msk.bf16.vlgmr.msra.gmra.mrb[0].mxu1 %vm330_vm1, %v12968_v36  ;;  %vm1697_vm7 = vsmask.f32 7424  ;;  %vm13791_vm8 = vmand %vm267_vm2, %vm1694_vm5  ;;  %vm3134_vm14 = vsmask.f32 7954  ;;  %vm3132_vm15 = vsmask.f32 7938 }
  0x6c   : > { %625 = vmatpush1.bf16.msra.mxu0 %v12973_v37  ;;  %666 = vmatpush1.bf16.msra.mxu1 %v12978_v38  ;;  %vm13799_vm9 = vmand %vm1696_vm6, %vm1697_vm7 }
  0x6d   : > { %9484 = vmatprep.subr.msk.bf16.mxu0 %vm334_vm0, %v12980_v39  ;;  %9486 = vmatprep.subr.msk.bf16.mxu1 %vm334_vm0, %v12982_v41  ;;  %vm13807_vm10 = vmand %vm268_vm3, %vm1697_vm7 }
  0x6e   : > { %656 = vmatprep.mubr.bf16.mxu0 %v12671_v0  ;;  %697 = vmatprep.mubr.bf16.mxu1 %v12671_v0  ;;  %vm1699_vm11 = vmor %vm13799_vm9, %vm13791_vm8 }
  0x6f   : > { %vm1705_vm12 = vmor %vm13807_vm10, %vm13791_vm8 }
  0x70   : > { %627 = vmatpush1.bf16.msra.mxu0 %v12993_v43  ;;  %668 = vmatpush1.bf16.msra.mxu1 %v12998_v44  ;;  %vm3140_vm4 = vmand %vm268_vm3, %vm3134_vm14 }
  0x71   : > { %776 = vmatprep.subr.bf16.mxu0 %v13003_v45  ;;  %817 = vmatprep.subr.bf16.mxu1 %v13008_v46 }
  0x77   : > { %9485 = vmatmul.mubr.msk.bf16.vlgmr.msra.gmra.mrb[0].mxu0 %vm330_vm1, %v13029_v51  ;;  %9487 = vmatmul.mubr.msk.bf16.vlgmr.msra.gmra.mrb[0].mxu1 %vm330_vm1, %v13029_v51 }
  0x78   : > { %777 = vmatpush1.bf16.msra.mxu0 %v13034_v52  ;;  %818 = vmatpush1.bf16.msra.mxu1 %v13039_v53 }
  0x79   : > { %9512 = vmatprep.subr.msk.bf16.mxu0 %vm334_vm0, %v13041_v54  ;;  %9514 = vmatprep.subr.msk.bf16.mxu1 %vm334_vm0, %v13043_v55 }
  0x7a   : > { %808 = vmatprep.mubr.bf16.mxu0 %v12671_v0  ;;  %849 = vmatprep.mubr.bf16.mxu1 %v12671_v0 }
  0x7c   : > { %779 = vmatpush1.bf16.msra.mxu0 %v13078_v5  ;;  %820 = vmatpush1.bf16.msra.mxu1 %v13081_v6 }
  0x7d   : > { %906 = vmatprep.subr.bf16.mxu0 %v13052_v58  ;;  %947 = vmatprep.subr.bf16.mxu1 %v13057_v59 }
  0x7f   : > { %9513 = vmatmul.mubr.msk.bf16.vlgmr.msra.gmra.mrb[4].mxu0 %vm330_vm1, %v12883_v15  ;;  %9515 = vmatmul.mubr.msk.bf16.vlgmr.msra.gmra.mrb[4].mxu1 %vm330_vm1, %v12883_v15 }
  0x80   : > { %907 = vmatpush1.bf16.msra.mxu0 %v13088_v7  ;;  %948 = vmatpush1.bf16.msra.mxu1 %v13093_v8 }
  0x81   : > { %9524 = vmatprep.subr.msk.bf16.mxu0 %vm334_vm0, %v13097_v11  ;;  %9526 = vmatprep.subr.msk.bf16.mxu1 %vm334_vm0, %v13101_v19 }
  0x82   : > { %938 = vmatprep.mubr.bf16.mxu0 %v12671_v0  ;;  %979 = vmatprep.mubr.bf16.mxu1 %v12671_v0 }
  0x84   : > { %909 = vmatpush1.bf16.msra.mxu0 %v13122_v25  ;;  %950 = vmatpush1.bf16.msra.mxu1 %v13127_v27 }
  0x85   : > { %1045 = vmatprep.subr.bf16.mxu0 %v13110_v21  ;;  %1086 = vmatprep.subr.bf16.mxu1 %v13117_v24 }
  0x8b   : > { %9525 = vmatmul.mubr.msk.bf16.vlgmr.msra.gmra.mrb[4].mxu0 %vm330_vm1, %v12968_v36  ;;  %9527 = vmatmul.mubr.msk.bf16.vlgmr.msra.gmra.mrb[4].mxu1 %vm330_vm1, %v12968_v36 }
  0x8c   : > { %1046 = vmatpush1.bf16.msra.mxu0 %v13150_v40  ;;  %1087 = vmatpush1.bf16.msra.mxu1 %v13155_v42 }
  0x8d   : > { %9544 = vmatprep.subr.msk.bf16.mxu0 %vm334_vm0, %v13157_v47  ;;  %9546 = vmatprep.subr.msk.bf16.mxu1 %vm334_vm0, %v13159_v49 }
  0x8e   : > { %1077 = vmatprep.mubr.bf16.mxu0 %v12671_v0  ;;  %1118 = vmatprep.mubr.bf16.mxu1 %v12671_v0 }
  0x90   : > { %1048 = vmatpush1.bf16.msra.mxu0 %v13170_v56  ;;  %1089 = vmatpush1.bf16.msra.mxu1 %v13175_v57 }
  0x91   : > { %1135 = vmatprep.subr.bf16.mxu0 %v12825_v1  ;;  %1176 = vmatprep.subr.bf16.mxu1 %v12831_v2  ;;  %v9556_v1 = vld [vmem:[%s12862_s14 + $0xc] sm:$0xf]  ;;  %v9583_v2 = vld [vmem:[%s14147_s1 + $0x70] sm:$0x77] }
  0x97   : > { %9545 = vmatmul.mubr.msk.bf16.vlgmr.msra.gmra.mrb[4].mxu0 %vm330_vm1, %v13029_v51  ;;  %9547 = vmatmul.mubr.msk.bf16.vlgmr.msra.gmra.mrb[4].mxu1 %vm330_vm1, %v13029_v51 }
  0x98   : > { %1136 = vmatpush1.bf16.msra.mxu0 %v12837_v3  ;;  %1177 = vmatpush1.bf16.msra.mxu1 %v12842_v4  ;;  %v9584_v3 = vld [vmem:[%s14147_s1 + $0x78] sm:$0x77]  ;;  %v13285_v4 = vld [vmem:[%s14147_s1 + $0x44] ss:$16 sps:$4 sm:$0xff]  }
  0x99   : > { %9548 = vmatprep.subr.msk.bf16.mxu0 %vm334_vm0, %v12866_v9  ;;  %9550 = vmatprep.subr.msk.bf16.mxu1 %vm334_vm0, %v12868_v10  ;;  %v13291_v9 = vld [vmem:[%s14147_s1 + $0x4c] ss:$16 sps:$4 sm:$0xff]   ;;  %v11860_v10 = vld [vmem:[%s14147_s1 + $0x60] sm:$0xff] }
  0x9a   : > { %1167 = vmatprep.mubr.bf16.mxu0 %v12671_v0  ;;  %1208 = vmatprep.mubr.bf16.mxu1 %v12671_v0 }
  0x9c   : > { %1138 = vmatpush1.bf16.msra.mxu0 %v12880_v14  ;;  %1179 = vmatpush1.bf16.msra.mxu1 %v12896_v18  ;;  %v11861_v14 = vld [vmem:[%s14147_s1 + $0x68] sm:$0xff]  ;;  %v1716_v18 = vld [vmem:[%s14147_s1 + $0x30] sm:$0x77] }
  0x9d   : > { %1217 = vmatprep.subr.bf16.mxu0 %v12873_v13  ;;  %1258 = vmatprep.subr.bf16.mxu1 %v12893_v17  ;;  %v13297_v13 = vcombine.high %v11860_v10, %v9583_v2  ;;  %v9591_v17 = vcombine.low %v11861_v14, %v9584_v3 }
  0x9f   : > { %9549 = vmatmul.mubr.msk.bf16.vlgmr.msra.gmra.mrb[8].mxu0 %vm330_vm1, %v13029_v51  ;;  %9551 = vmatmul.mubr.msk.bf16.vlgmr.msra.gmra.mrb[8].mxu1 %vm330_vm1, %v13029_v51 }
  0xa0   : > { %1218 = vmatpush1.bf16.msra.mxu0 %v12888_v16  ;;  %1259 = vmatpush1.bf16.msra.mxu1 %v12912_v22  ;;  %v9589_v16 = vcombine.low %v11860_v10, %v9583_v2  ;;  %v13312_v22 = vld [vmem:[%s14147_s1 + $0x40] ss:$16 sps:$4 sm:$0xff]  }
  0xa1   : > { %9552 = vmatprep.subr.msk.bf16.mxu0 %vm334_vm0, %v12914_v23  ;;  %9554 = vmatprep.subr.msk.bf16.mxu1 %vm334_vm0, %v12921_v26  ;;  %v13318_v23 = vld [vmem:[%s14147_s1 + $0x48] ss:$16 sps:$4 sm:$0xff]   ;;  %v11882_v10 = vld [vmem:[%s14147_s1 + $0xe0] sm:$0xff] }
  0xa2   : > { %1249 = vmatprep.mubr.bf16.mxu0 %v12671_v0  ;;  %1290 = vmatprep.mubr.bf16.mxu1 %v12671_v0  ;;  %v1717_v26 = vld [vmem:[%s14147_s1 + $0x38] sm:$0x77] }
  0xa4   : > { %1220 = vmatpush1.bf16.msra.mxu0 %v12937_v29  ;;  %1261 = vmatpush1.bf16.msra.mxu1 %v12942_v30  ;;  %v13332_v29 = vsel %vm334_vm0, %v9591_v17, 0  ;;  %v13337_v30 = vld [vmem:[%s12862_s14 + $0xc] sm:$0xf] }
  0xa5   : > { %1304 = vmatprep.subr.bf16.mxu0 %v12932_v28  ;;  %1345 = vmatprep.subr.bf16.mxu1 %v12947_v31  ;;  %v13329_v28 = vsel %vm334_vm0, %v9589_v16, 0  ;;  %v11864_v31 = vld [vmem:[%s14147_s1 + $0x20] sm:$0xff]  ;;  %v13535_v17 = vld [vmem:[%s14147_s1 + $0xcc] ss:$16 sps:$4 sm:$0xff]  }
  0xa6   : > { %v13344_v36 = vcombine.high %v11864_v31, %v1716_v18  ;;  %v13529_v16 = vld [vmem:[%s14147_s1 + $0xc4] ss:$16 sps:$4 sm:$0xff]  }
  0xab   : > { %9553 = vmatmul.mubr.msk.bf16.vlgmr.msra.gmra.mrb[8].mxu0 %vm330_vm1, %v12883_v15  ;;  %9555 = vmatmul.mubr.msk.bf16.vlgmr.msra.gmra.mrb[8].mxu1 %vm330_vm1, %v12883_v15 }
  0xac   : > { %1305 = vmatpush1.bf16.msra.mxu0 %v12973_v37  ;;  %1346 = vmatpush1.bf16.msra.mxu1 %v12978_v38  ;;  %v13349_v37 = vld [vmem:[%s14147_s1 + $0x4] ss:$16 sps:$4 sm:$0xff]   ;;  %v13355_v38 = vld [vmem:[%s14147_s1 + $0xc] ss:$16 sps:$4 sm:$0xff]  }
  0xad   : > { %9557 = vmatprep.subr.msk.bf16.mxu0 %vm334_vm0, %v12980_v39  ;;  %9559 = vmatprep.subr.msk.bf16.mxu1 %vm334_vm0, %v12982_v41  ;;  %v9601_v39 = vcombine.low %v11864_v31, %v1716_v18  ;;  %v11867_v41 = vld [vmem:[%s14147_s1 + $0x28] sm:$0xff]  ;;  %v9662_v18 = vcombine.low %v11882_v10, %v9636_v50 }
  0xae   : > { %1336 = vmatprep.mubr.bf16.mxu0 %v12671_v0  ;;  %1377 = vmatprep.mubr.bf16.mxu1 %v12671_v0 }
  0xb0   : > { %1307 = vmatpush1.bf16.msra.mxu0 %v12993_v43  ;;  %1348 = vmatpush1.bf16.msra.mxu1 %v12998_v44  ;;  %v13361_v43 = vcombine.high %v11867_v41, %v1717_v26  ;;  %v9603_v44 = vcombine.low %v11867_v41, %v1717_v26  ;;  %v11885_v26 = vld [vmem:[%s14147_s1 + $0xe8] sm:$0xff]  ;;  %v13550_v41 = vld [vmem:[%s14147_s1 + $0xc0] ss:$16 sps:$4 sm:$0xff]  }
  0xb1   : > { %1394 = vmatprep.subr.bf16.mxu0 %v13003_v45  ;;  %1435 = vmatprep.subr.bf16.mxu1 %v13008_v46  ;;  %v13370_v45 = vld [vmem:[%s14147_s1] ss:$16 sps:$4 sm:$0xff]   ;;  %v13376_v46 = vld [vmem:[%s14147_s1 + $0x8] ss:$16 sps:$4 sm:$0xff]  }
  0xb7   : > { %9558 = vmatmul.mubr.msk.bf16.vlgmr.msra.gmra.mrb[8].mxu0 %vm330_vm1, %v9556_v1  ;;  %9560 = vmatmul.mubr.msk.bf16.vlgmr.msra.gmra.mrb[8].mxu1 %vm330_vm1, %v9556_v1 }
  0xb8   : > { %1395 = vmatpush1.bf16.msra.mxu0 %v13034_v52  ;;  %1436 = vmatpush1.bf16.msra.mxu1 %v13039_v53  ;;  %v13387_v52 = vsel %vm334_vm0, %v9603_v44, 0  ;;  %v9615_v53 = vld [vmem:[%s14147_s1 + $0xb0] sm:$0x77]  ;;  %v13556_v44 = vld [vmem:[%s14147_s1 + $0xc8] ss:$16 sps:$4 sm:$0xff]  }
  0xb9   : > { %9561 = vmatprep.subr.msk.bf16.mxu0 %vm334_vm0, %v13041_v54  ;;  %9563 = vmatprep.subr.msk.bf16.mxu1 %vm334_vm0, %v13043_v55  ;;  %v9616_v54 = vld [vmem:[%s14147_s1 + $0xb8] sm:$0x77]  ;;  %v13402_v55 = vld [vmem:[%s14147_s1 + $0x84] ss:$16 sps:$4 sm:$0xff]   ;;  %v13418_v62 = vcombine.high %v11872_v61, %v9615_v53  ;;  %v9622_v63 = vcombine.low %v11872_v61, %v9615_v53  ;;  %v13562_v53 = vsel %vm334_vm0, %v9662_v18, 0 }
  0xba   : > { %1426 = vmatprep.mubr.bf16.mxu0 %v12671_v0  ;;  %1467 = vmatprep.mubr.bf16.mxu1 %v12671_v0  ;;  %v13582_v61 = vld [vmem:[%s14147_s1 + $0x14c] ss:$16 sps:$4 sm:$0xff]  }
  0xbb   : > { %v10889_v18 = vld [vmem:[#allocation5 + $0x448] ss:$16 sps:$4 sm:$0xff]  }
  0xbc   : > { %1397 = vmatpush1.bf16.msra.mxu0 %v13078_v5  ;;  %1438 = vmatpush1.bf16.msra.mxu1 %v13081_v6  ;;  %v11873_v5 = vld [vmem:[%s14147_s1 + $0xa8] sm:$0xff] }
  0xbd   : > { %1476 = vmatprep.subr.bf16.mxu0 %v13052_v58  ;;  %1517 = vmatprep.subr.bf16.mxu1 %v13057_v59  ;;  %v13408_v58 = vld [vmem:[%s14147_s1 + $0x8c] ss:$16 sps:$4 sm:$0xff]   ;;  %v10836_v59 = vld [vmem:[%s12862_s14] ss:$0 sps:$4 sm:$0xff]   ;;  %v13423_v6 = vcombine.high %v11873_v5, %v9616_v54 }
  0xbf   : > { %9562 = vmatmul.mubr.msk.bf16.vlgmr.msra.gmra.mrb[12].mxu0 %vm330_vm1, %v13029_v51  ;;  %9564 = vmatmul.mubr.msk.bf16.vlgmr.msra.gmra.mrb[12].mxu1 %vm330_vm1, %v13029_v51  ;;  %v13382_v51 = vsel %vm334_vm0, %v9601_v39, 0 }
  0xc0   : > { %1477 = vmatpush1.bf16.msra.mxu0 %v13088_v7  ;;  %1518 = vmatpush1.bf16.msra.mxu1 %v13093_v8  ;;  %v9624_v7 = vcombine.low %v11873_v5, %v9616_v54  ;;  %v2008_v8 = vshll.u32 %v10836_v59, 16  ;;  %v9677_v5 = vld [vmem:[%s14147_s1 + $0x178] sm:$0x77] }
  0xc1   : > { %9565 = vmatprep.subr.msk.bf16.mxu0 %vm334_vm0, %v13097_v11  ;;  %9567 = vmatprep.subr.msk.bf16.mxu1 %vm334_vm0, %v13101_v19  ;;  %v13432_v11 = vld [vmem:[%s14147_s1 + $0x80] ss:$16 sps:$4 sm:$0xff]   ;;  %v13444_v19 = vsel %vm334_vm0, %v9622_v63, 0 }
  0xc2   : > { %1508 = vmatprep.mubr.bf16.mxu0 %v12671_v0  ;;  %1549 = vmatprep.mubr.bf16.mxu1 %v12671_v0  ;;  %v13449_v20 = vsel %vm334_vm0, %v9624_v7, 0  ;;  %v9676_v63 = vld [vmem:[%s14147_s1 + $0x170] sm:$0x77]  ;;  %v11890_v7 = vld [vmem:[%s14147_s1 + $0x160] sm:$0xff] }
  0xc4   : > { %1479 = vmatpush1.bf16.msra.mxu0 %v13122_v25  ;;  %1520 = vmatpush1.bf16.msra.mxu1 %v13127_v27  ;;  %v9644_v25 = vld [vmem:[%s14147_s1 + $0x130] sm:$0x77]  ;;  %v9645_v27 = vld [vmem:[%s14147_s1 + $0x138] sm:$0x77] }
  0xc5   : > { %1558 = vmatprep.subr.bf16.mxu0 %v13110_v21  ;;  %1599 = vmatprep.subr.bf16.mxu1 %v13117_v24  ;;  %v2006_v21 = vshrl.u32 %v10836_v59, 16  ;;  %v2010_v24 = vrot.slane %v2008_v8, 1  ;;  %v9650_v48 = vcombine.low %v11878_v35, %v9644_v25  ;;  %v13576_v59 = vld [vmem:[%s14147_s1 + $0x144] ss:$16 sps:$4 sm:$0xff]   ;;  %v13594_v8 = vcombine.high %v11890_v7, %v9676_v63 }
  0xc7   : > { %v13473_v34 = vor.u32 %v2010_v24, %v2006_v21  ;;  %v13512_v2 = vsel %vm334_vm0, %v9650_v48, 0  ;;  %v9682_v21 = vcombine.low %v11890_v7, %v9676_v63  ;;  %v11891_v24 = vld [vmem:[%s14147_s1 + $0x168] sm:$0xff]  ;;  %v10897_v7 = vld [vmem:[#allocation5 + $0x46c] ss:$16 sps:$4 sm:$0xff]  }
  0xc9   : > { %v13620_v48 = vsel %vm334_vm0, %v9682_v21, 0  ;;  %v10895_v21 = vld [vmem:[#allocation5 + $0x468] ss:$16 sps:$4 sm:$0xff]  }
  0xcb   : > { %9566 = vmatmul.mubr.msk.bf16.vlgmr.msra.gmra.mrb[12].mxu0 %vm330_vm1, %v12883_v15  ;;  %9568 = vmatmul.mubr.msk.bf16.vlgmr.msra.gmra.mrb[12].mxu1 %vm330_vm1, %v12883_v15  ;;  %v13302_v15 = vcombine.high %v11861_v14, %v9584_v3  ;;  %v13524_v14 = vcombine.high %v11882_v10, %v9636_v50  ;;  %v10877_v50 = vld [vmem:[#allocation5 + $0x408] ss:$16 sps:$4 sm:$0xff]   ;;  %v10891_v10 = vld [vmem:[#allocation5 + $0x44c] ss:$16 sps:$4 sm:$0xff]  }
  0xcc   : > { %1559 = vmatpush1.bf16.msra.mxu0 %v13150_v40  ;;  %1600 = vmatpush1.bf16.msra.mxu1 %v13155_v42  ;;  %v13478_v40 = vcombine.high %v11878_v35, %v9644_v25  ;;  %v11879_v42 = vld [vmem:[%s14147_s1 + $0x128] sm:$0xff]  ;;  %v13599_v25 = vcombine.high %v11891_v24, %v9677_v5  ;;  %v13608_v35 = vld [vmem:[%s14147_s1 + $0x140] ss:$16 sps:$4 sm:$0xff]  }
  0xcd   : > { %9569 = vmatprep.subr.msk.bf16.mxu0 %vm334_vm0, %v13157_v47  ;;  %9571 = vmatprep.subr.msk.bf16.mxu1 %vm334_vm0, %v13159_v49  ;;  %v13483_v47 = vcombine.high %v11879_v42, %v9645_v27  ;;  %v9652_v49 = vcombine.low %v11879_v42, %v9645_v27  ;;  %v9684_v27 = vcombine.low %v11891_v24, %v9677_v5  ;;  %v13614_v42 = vld [vmem:[%s14147_s1 + $0x148] ss:$16 sps:$4 sm:$0xff]  }
  0xce   : > { %1590 = vmatprep.mubr.bf16.mxu0 %v12671_v0  ;;  %1631 = vmatprep.mubr.bf16.mxu1 %v12671_v0  ;;  %v10894_v5 = vld [vmem:[#allocation5 + $0x464] ss:$16 sps:$4 sm:$0xff]  }
  0xcf   : > { %v13515_v3 = vsel %vm334_vm0, %v9652_v49, 0  ;;  %v10874_v49 = vld [vmem:[#allocation5 + $0x400] ss:$16 sps:$4 sm:$0xff]   ;;  %v10900_v24 = vld [vmem:[#allocation5 + $0x484] ss:$16 sps:$4 sm:$0xff]  }
  0xd0   : > { %1561 = vmatpush1.bf16.msra.mxu0 %v13170_v56  ;;  %1602 = vmatpush1.bf16.msra.mxu1 %v13175_v57  ;;  %v13495_v56 = vld [vmem:[%s14147_s1 + $0x100] ss:$16 sps:$4 sm:$0xff]   ;;  %v13501_v57 = vld [vmem:[%s14147_s1 + $0x108] ss:$16 sps:$4 sm:$0xff]  }
  0xd1   : > { %1778 = vmatprep.subr.bf16.mxu0 %v13285_v4  ;;  %1819 = vmatprep.subr.bf16.mxu1 %v13291_v9 }
  0xd7   : > { %9570 = vmatmul.mubr.msk.bf16.vlgmr.msra.gmra.mrb[12].mxu0 %vm330_vm1, %v9556_v1  ;;  %9572 = vmatmul.mubr.msk.bf16.vlgmr.msra.gmra.mrb[12].mxu1 %vm330_vm1, %v9556_v1  ;;  %v9637_v1 = vld [vmem:[%s14147_s1 + $0xf8] sm:$0x77] }
  0xd8   : > { %1779 = vmatpush1.bf16.msra.mxu0 %v13312_v22  ;;  %1820 = vmatpush1.bf16.msra.mxu1 %v13318_v23  ;;  %v13541_v31 = vcombine.high %v11885_v26, %v9637_v1  ;;  %v9664_v39 = vcombine.low %v11885_v26, %v9637_v1  ;;  %v10880_v1 = vld [vmem:[#allocation5 + $0x420] ss:$16 sps:$4 sm:$0xff]  }
  0xd9   : > { %9593 = vmatprep.subr.msk.bf16.mxu0 %vm334_vm0, %v13297_v13  ;;  %9595 = vmatprep.subr.msk.bf16.mxu1 %vm334_vm0, %v13302_v15 }
  0xda   : > { %1810 = vmatprep.mubr.bf16.mxu0 %v12671_v0  ;;  %1851 = vmatprep.mubr.bf16.mxu1 %v12671_v0  ;;  %v13567_v54 = vsel %vm334_vm0, %v9664_v39, 0 }
  0xdc   : > { %1781 = vmatpush1.bf16.msra.mxu0 %v13329_v28  ;;  %1822 = vmatpush1.bf16.msra.mxu1 %v13332_v29 }
  0xdd   : > { %1911 = vmatprep.subr.bf16.mxu0 %v13349_v37  ;;  %1952 = vmatprep.subr.bf16.mxu1 %v13355_v38 }
  0xdf   : > { %9594 = vmatmul.mubr.msk.bf16.vlgmr.msra.gmra.mrb[16].mxu0 %vm330_vm1, %v13337_v30  ;;  %9596 = vmatmul.mubr.msk.bf16.vlgmr.msra.gmra.mrb[16].mxu1 %vm330_vm1, %v13337_v30 }
  0xe0   : > { %1912 = vmatpush1.bf16.msra.mxu0 %v13370_v45  ;;  %1953 = vmatpush1.bf16.msra.mxu1 %v13376_v46 }
  0xe1   : > { %9605 = vmatprep.subr.msk.bf16.mxu0 %vm334_vm0, %v13344_v36  ;;  %9607 = vmatprep.subr.msk.bf16.mxu1 %vm334_vm0, %v13361_v43 }
  0xe2   : > { %1943 = vmatprep.mubr.bf16.mxu0 %v12671_v0  ;;  %1984 = vmatprep.mubr.bf16.mxu1 %v12671_v0 }
  0xe4   : > { %1914 = vmatpush1.bf16.msra.mxu0 %v13382_v51  ;;  %1955 = vmatpush1.bf16.msra.mxu1 %v13387_v52 }
  0xe5   : > { %2063 = vmatprep.subr.bf16.mxu0 %v13402_v55  ;;  %2104 = vmatprep.subr.bf16.mxu1 %v13408_v58 }
  0xeb   : > { %9606 = vmatmul.mubr.msk.bf16.vlgmr.msra.gmra.mrb[16].mxu0 %vm330_vm1, %v13413_v60  ;;  %9608 = vmatmul.mubr.msk.bf16.vlgmr.msra.gmra.mrb[16].mxu1 %vm330_vm1, %v13413_v60 }
  0xec   : > { %2064 = vmatpush1.bf16.msra.mxu0 %v13432_v11  ;;  %2105 = vmatpush1.bf16.msra.mxu1 %v13438_v12 }
  0xed   : > { %9626 = vmatprep.subr.msk.bf16.mxu0 %vm334_vm0, %v13418_v62  ;;  %9628 = vmatprep.subr.msk.bf16.mxu1 %vm334_vm0, %v13423_v6 }
  0xee   : > { %2095 = vmatprep.mubr.bf16.mxu0 %v12671_v0  ;;  %2136 = vmatprep.mubr.bf16.mxu1 %v12671_v0 }
  0xf0   : > { %2066 = vmatpush1.bf16.msra.mxu0 %v13444_v19  ;;  %2107 = vmatpush1.bf16.msra.mxu1 %v13449_v20 }
  0xf1   : > { %2213 = vmatprep.subr.bf16.mxu0 %v13464_v32  ;;  %2254 = vmatprep.subr.bf16.mxu1 %v13470_v33 }
  0xf7   : > { %9627 = vmatmul.mubr.msk.bf16.vlgmr.msra.gmra.mrb[16].mxu0 %vm330_vm1, %v13473_v34  ;;  %9629 = vmatmul.mubr.msk.bf16.vlgmr.msra.gmra.mrb[16].mxu1 %vm330_vm1, %v13473_v34 }
  0xf8   : > { %2214 = vmatpush1.bf16.msra.mxu0 %v13495_v56  ;;  %2255 = vmatpush1.bf16.msra.mxu1 %v13501_v57 }
  0xf9   : > { %9654 = vmatprep.subr.msk.bf16.mxu0 %vm334_vm0, %v13478_v40  ;;  %9656 = vmatprep.subr.msk.bf16.mxu1 %vm334_vm0, %v13483_v47 }
  0xfa   : > { %2245 = vmatprep.mubr.bf16.mxu0 %v12671_v0  ;;  %2286 = vmatprep.mubr.bf16.mxu1 %v12671_v0 }
  0xfc   : > { %2216 = vmatpush1.bf16.msra.mxu0 %v13512_v2  ;;  %2257 = vmatpush1.bf16.msra.mxu1 %v13515_v3 }
  0xfd   : > { %2343 = vmatprep.subr.bf16.mxu0 %v13529_v16  ;;  %2384 = vmatprep.subr.bf16.mxu1 %v13535_v17 }
  0xff   : > { %9655 = vmatmul.mubr.msk.bf16.vlgmr.msra.gmra.mrb[20].mxu0 %vm330_vm1, %v13337_v30  ;;  %9657 = vmatmul.mubr.msk.bf16.vlgmr.msra.gmra.mrb[20].mxu1 %vm330_vm1, %v13337_v30 }
 0x100   : > { %2344 = vmatpush1.bf16.msra.mxu0 %v13550_v41  ;;  %2385 = vmatpush1.bf16.msra.mxu1 %v13556_v44 }
 0x101   : > { %9666 = vmatprep.subr.msk.bf16.mxu0 %vm334_vm0, %v13524_v14  ;;  %9668 = vmatprep.subr.msk.bf16.mxu1 %vm334_vm0, %v13541_v31 }
 0x102   : > { %2375 = vmatprep.mubr.bf16.mxu0 %v12671_v0  ;;  %2416 = vmatprep.mubr.bf16.mxu1 %v12671_v0 }
 0x104   : > { %2346 = vmatpush1.bf16.msra.mxu0 %v13562_v53  ;;  %2387 = vmatpush1.bf16.msra.mxu1 %v13567_v54 }
 0x105   : > { %2481 = vmatprep.subr.bf16.mxu0 %v13576_v59  ;;  %2522 = vmatprep.subr.bf16.mxu1 %v13582_v61 }
 0x10b   : > { %9667 = vmatmul.mubr.msk.bf16.vlgmr.msra.gmra.mrb[20].mxu0 %vm330_vm1, %v13413_v60  ;;  %9669 = vmatmul.mubr.msk.bf16.vlgmr.msra.gmra.mrb[20].mxu1 %vm330_vm1, %v13413_v60  ;;  %v13625_v60 = vsel %vm334_vm0, %v9684_v27, 0  ;;  %v10898_v27 = vld [vmem:[#allocation5 + $0x480] ss:$16 sps:$4 sm:$0xff]  }
 0x10c   : > { %2482 = vmatpush1.bf16.msra.mxu0 %v13608_v35  ;;  %2523 = vmatpush1.bf16.msra.mxu1 %v13614_v42 }
 0x10d   : > { %9686 = vmatprep.subr.msk.bf16.mxu0 %vm334_vm0, %v13594_v8  ;;  %9688 = vmatprep.subr.msk.bf16.mxu1 %vm334_vm0, %v13599_v25 }
 0x10e   : > { %2513 = vmatprep.mubr.bf16.mxu0 %v12671_v0  ;;  %2554 = vmatprep.mubr.bf16.mxu1 %v12671_v0 }
 0x110   : > { %2484 = vmatpush1.bf16.msra.mxu0 %v13620_v48  ;;  %2525 = vmatpush1.bf16.msra.mxu1 %v13625_v60 }
 0x111   : > { %2571 = vmatprep.subr.bf16.mxu0 %v13285_v4  ;;  %2612 = vmatprep.subr.bf16.mxu1 %v13291_v9  ;;  %v10849_v4 = vld [vmem:[%s12862_s14 + $0x4] ss:$0 sps:$4 sm:$0xff]  }
 0x112   : > { %v2742_v9 = vshll.u32 %v10849_v4, 16 }
 0x117   : > { %9687 = vmatmul.mubr.msk.bf16.vlgmr.msra.gmra.mrb[20].mxu0 %vm330_vm1, %v13473_v34  ;;  %9689 = vmatmul.mubr.msk.bf16.vlgmr.msra.gmra.mrb[20].mxu1 %vm330_vm1, %v13473_v34 }
 0x118   : > { %2572 = vmatpush1.bf16.msra.mxu0 %v13312_v22  ;;  %2613 = vmatpush1.bf16.msra.mxu1 %v13318_v23 }
 0x119   : > { %9690 = vmatprep.subr.msk.bf16.mxu0 %vm334_vm0, %v13297_v13  ;;  %9692 = vmatprep.subr.msk.bf16.mxu1 %vm334_vm0, %v13302_v15  ;;  %v2740_v13 = vshrl.u32 %v10849_v4, 16  ;;  %v2744_v15 = vrot.slane %v2742_v9, 1  ;;  %v10907_v4 = vld [vmem:[#allocation5 + $0x4a8] ss:$16 sps:$4 sm:$0xff]   ;;  %v10912_v9 = vld [vmem:[#allocation5 + $0x4c4] ss:$16 sps:$4 sm:$0xff]  }
 0x11a   : > { %2603 = vmatprep.mubr.bf16.mxu0 %v12671_v0  ;;  %2644 = vmatprep.mubr.bf16.mxu1 %v12671_v0 }
 0x11b   : > { %v2745_v22 = vor.u32 %v2744_v15, %v2740_v13  ;;  %v10915_v13 = vld [vmem:[#allocation5 + $0x4cc] ss:$16 sps:$4 sm:$0xff]   ;;  %v10910_v15 = vld [vmem:[#allocation5 + $0x4c0] ss:$16 sps:$4 sm:$0xff]  }
 0x11c   : > { %2574 = vmatpush1.bf16.msra.mxu0 %v13329_v28  ;;  %2615 = vmatpush1.bf16.msra.mxu1 %v13332_v29 }
 0x11d   : > { %2653 = vmatprep.subr.bf16.mxu0 %v13349_v37  ;;  %2694 = vmatprep.subr.bf16.mxu1 %v13355_v38 }
 0x11f   : > { %9691 = vmatmul.mubr.msk.bf16.vlgmr.msra.gmra.mrb[24].mxu0 %vm330_vm1, %v13473_v34  ;;  %9693 = vmatmul.mubr.msk.bf16.vlgmr.msra.gmra.mrb[24].mxu1 %vm330_vm1, %v13473_v34 }
 0x120   : > { %2654 = vmatpush1.bf16.msra.mxu0 %v13370_v45  ;;  %2695 = vmatpush1.bf16.msra.mxu1 %v13376_v46  ;;  %v10852_v46 = vld [vmem:[#allocation5 + $0x384] ss:$16 sps:$4 sm:$0xff]  }
 0x121   : > { %9694 = vmatprep.subr.msk.bf16.mxu0 %vm334_vm0, %v13344_v36  ;;  %9696 = vmatprep.subr.msk.bf16.mxu1 %vm334_vm0, %v13361_v43 }
 0x122   : > { %2685 = vmatprep.mubr.bf16.mxu0 %v12671_v0  ;;  %2726 = vmatprep.mubr.bf16.mxu1 %v12671_v0 }
 0x124   : > { %2656 = vmatpush1.bf16.msra.mxu0 %v13382_v51  ;;  %2697 = vmatpush1.bf16.msra.mxu1 %v13387_v52  ;;  %v10855_v51 = vld [vmem:[#allocation5 + $0x38c] ss:$16 sps:$4 sm:$0xff]   ;;  %v10853_v52 = vld [vmem:[#allocation5 + $0x388] ss:$16 sps:$4 sm:$0xff]  }
 0x125   : > { %2749 = vmatprep.subr.bf16.mxu0 %v13402_v55  ;;  %2790 = vmatprep.subr.bf16.mxu1 %v13408_v58  ;;  %v10858_v55 = vld [vmem:[#allocation5 + $0x3a4] ss:$16 sps:$4 sm:$0xff]   ;;  %v10861_v58 = vld [vmem:[#allocation5 + $0x3ac] ss:$16 sps:$4 sm:$0xff]  }
 0x12b   : > { %9695 = vmatmul.mubr.msk.bf16.vlgmr.msra.gmra.mrb[24].mxu0 %vm330_vm1, %v13337_v30  ;;  %9697 = vmatmul.mubr.msk.bf16.vlgmr.msra.gmra.mrb[24].mxu1 %vm330_vm1, %v13337_v30 }
 0x12c   : > { %2750 = vmatpush1.bf16.msra.mxu0 %v13432_v11  ;;  %2791 = vmatpush1.bf16.msra.mxu1 %v13438_v12  ;;  %v10867_v11 = vld [vmem:[#allocation5 + $0x3cc] ss:$16 sps:$4 sm:$0xff]   ;;  %v10862_v12 = vld [vmem:[#allocation5 + $0x3c0] ss:$16 sps:$4 sm:$0xff]  }
 0x12d   : > { %9700 = vmatprep.subr.msk.bf16.mxu0 %vm334_vm0, %v13418_v62  ;;  %9702 = vmatprep.subr.msk.bf16.mxu1 %vm334_vm0, %v13423_v6  ;;  %v10856_v62 = vld [vmem:[#allocation5 + $0x3a0] ss:$16 sps:$4 sm:$0xff]   ;;  %v10859_v6 = vld [vmem:[#allocation5 + $0x3a8] ss:$16 sps:$4 sm:$0xff]  }
 0x12e   : > { %2781 = vmatprep.mubr.bf16.mxu0 %v12671_v0  ;;  %2822 = vmatprep.mubr.bf16.mxu1 %v12671_v0 }
 0x130   : > { %2752 = vmatpush1.bf16.msra.mxu0 %v13444_v19  ;;  %2793 = vmatpush1.bf16.msra.mxu1 %v13449_v20  ;;  %v10865_v19 = vld [vmem:[#allocation5 + $0x3c8] ss:$16 sps:$4 sm:$0xff]   ;;  %v10870_v20 = vld [vmem:[#allocation5 + $0x3e4] ss:$16 sps:$4 sm:$0xff]  }
 0x131   : > { %2839 = vmatprep.subr.bf16.mxu0 %v13464_v32  ;;  %2880 = vmatprep.subr.bf16.mxu1 %v13470_v33  ;;  %v10873_v32 = vld [vmem:[#allocation5 + $0x3ec] ss:$16 sps:$4 sm:$0xff]   ;;  %v10868_v33 = vld [vmem:[#allocation5 + $0x3e0] ss:$16 sps:$4 sm:$0xff]  }
 0x137   : > { %9701 = vmatmul.mubr.msk.bf16.vlgmr.msra.gmra.mrb[24].mxu0 %vm330_vm1, %v2745_v22  ;;  %9703 = vmatmul.mubr.msk.bf16.vlgmr.msra.gmra.mrb[24].mxu1 %vm330_vm1, %v2745_v22 }
 0x138   : > { %2840 = vmatpush1.bf16.msra.mxu0 %v13495_v56  ;;  %2881 = vmatpush1.bf16.msra.mxu1 %v13501_v57  ;;  %v10882_v56 = vld [vmem:[#allocation5 + $0x424] ss:$16 sps:$4 sm:$0xff]   ;;  %v10885_v57 = vld [vmem:[#allocation5 + $0x42c] ss:$16 sps:$4 sm:$0xff]  }
 0x139   : > { %9704 = vmatprep.subr.msk.bf16.mxu0 %vm334_vm0, %v13478_v40  ;;  %9706 = vmatprep.subr.msk.bf16.mxu1 %vm334_vm0, %v13483_v47  ;;  %v10876_v40 = vld [vmem:[#allocation5 + $0x404] ss:$16 sps:$4 sm:$0xff]   ;;  %v10879_v47 = vld [vmem:[#allocation5 + $0x40c] ss:$16 sps:$4 sm:$0xff]  }
 0x13a   : > { %2871 = vmatprep.mubr.bf16.mxu0 %v12671_v0  ;;  %2912 = vmatprep.mubr.bf16.mxu1 %v12671_v0 }
 0x13c   : > { %2842 = vmatpush1.bf16.msra.mxu0 %v13512_v2  ;;  %2883 = vmatpush1.bf16.msra.mxu1 %v13515_v3  ;;  %v10883_v2 = vld [vmem:[#allocation5 + $0x428] ss:$16 sps:$4 sm:$0xff]   ;;  %v10888_v3 = vld [vmem:[#allocation5 + $0x444] ss:$16 sps:$4 sm:$0xff]  }
 0x13d   : > { %2921 = vmatprep.subr.bf16.mxu0 %v13529_v16  ;;  %2962 = vmatprep.subr.bf16.mxu1 %v13535_v17  ;;  %v10886_v17 = vld [vmem:[#allocation5 + $0x440] ss:$16 sps:$4 sm:$0xff]  }
 0x13f   : > { %9705 = vmatmul.mubr.msk.bf16.vlgmr.msra.gmra.mrb[28].mxu0 %vm330_vm1, %v13473_v34  ;;  %9707 = vmatmul.mubr.msk.bf16.vlgmr.msra.gmra.mrb[28].mxu1 %vm330_vm1, %v13473_v34  ;;  %v10871_v34 = vld [vmem:[#allocation5 + $0x3e8] ss:$16 sps:$4 sm:$0xff]  }
 0x140   : > { %2922 = vmatpush1.bf16.msra.mxu0 %v13550_v41  ;;  %2963 = vmatpush1.bf16.msra.mxu1 %v13556_v44 }
 0x141   : > { %9708 = vmatprep.subr.msk.bf16.mxu0 %vm334_vm0, %v13524_v14  ;;  %9710 = vmatprep.subr.msk.bf16.mxu1 %vm334_vm0, %v13541_v31 }
 0x142   : > { %2953 = vmatprep.mubr.bf16.mxu0 %v12671_v0  ;;  %2994 = vmatprep.mubr.bf16.mxu1 %v12671_v0 }
 0x144   : > { %2924 = vmatpush1.bf16.msra.mxu0 %v13562_v53  ;;  %2965 = vmatpush1.bf16.msra.mxu1 %v13567_v54 }
 0x145   : > { %3003 = vmatprep.subr.bf16.mxu0 %v13576_v59  ;;  %3044 = vmatprep.subr.bf16.mxu1 %v13582_v61 }
 0x14a   : > { %v13716_v23 = vpop.f32.mrb[0].mxu0  ;;  %v13718_v28 = vpop.f32.mrb[0].mxu1 }
 0x14b   : > { %v13720_v29 = vpop.f32.mrb[1].mxu0  ;;  %9709 = vmatmul.mubr.msk.bf16.vlgmr.msra.gmra.mrb[28].mxu0 %vm330_vm1, %v13337_v30  ;;  %9711 = vmatmul.mubr.msk.bf16.vlgmr.msra.gmra.mrb[28].mxu1 %vm330_vm1, %v13337_v30  ;;  %v13726_v36 = vpop.f32.mrb[1].mxu1  ;;  %v10850_v30 = vld [vmem:[#allocation5 + $0x380] ss:$16 sps:$4 sm:$0xff]  }
 0x14c   : > { %v662_v37 = vpop.f32.mrb[2].mxu0  ;;  %3004 = vmatpush1.bf16.msra.mxu0 %v13608_v35  ;;  %3045 = vmatpush1.bf16.msra.mxu1 %v13614_v42  ;;  %v703_v38 = vpop.f32.mrb[2].mxu1  ;;  %v10901_v35 = vld [vmem:[#allocation5 + $0x488] ss:$16 sps:$4 sm:$0xff]   ;;  %v10906_v42 = vld [vmem:[#allocation5 + $0x4a4] ss:$16 sps:$4 sm:$0xff]  }
 0x14d   : > { %v663_v43 = vpop.f32.mrb[3].mxu0  ;;  %9712 = vmatprep.subr.msk.bf16.mxu0 %vm334_vm0, %v13594_v8  ;;  %9714 = vmatprep.subr.msk.bf16.mxu1 %vm334_vm0, %v13599_v25  ;;  %v704_v45 = vpop.f32.mrb[3].mxu1  ;;  %v10892_v8 = vld [vmem:[#allocation5 + $0x460] ss:$16 sps:$4 sm:$0xff]   ;;  %v10903_v25 = vld [vmem:[#allocation5 + $0x48c] ss:$16 sps:$4 sm:$0xff]   ;;  %vm13907_vm0 = vmand %vm1696_vm6, %vm3134_vm14 }
 0x14e   : > { %3035 = vmatprep.mubr.bf16.mxu0 %v12671_v0  ;;  %3076 = vmatprep.mubr.bf16.mxu1 %v12671_v0  ;;  %v10864_v0 = vld [vmem:[#allocation5 + $0x3c4] ss:$16 sps:$4 sm:$0xff]   ;;  %v10921_v38 = vld [vmem:[#allocation5 + $0x4ec] ss:$16 sps:$4 sm:$0xff]   ;;  %v10916_v43 = vld [vmem:[#allocation5 + $0x4e0] ss:$16 sps:$4 sm:$0xff]  }
 0x14f   : > { %v10918_v37 = vld [vmem:[#allocation5 + $0x4e4] ss:$16 sps:$4 sm:$0xff]   ;;  %v10919_v45 = vld [vmem:[#allocation5 + $0x4e8] ss:$16 sps:$4 sm:$0xff]  }
 0x150   : > { %3006 = vmatpush1.bf16.msra.mxu0 %v13620_v48  ;;  %3047 = vmatpush1.bf16.msra.mxu1 %v13625_v60  ;;  %v10909_v48 = vld [vmem:[#allocation5 + $0x4ac] ss:$16 sps:$4 sm:$0xff]   ;;  %v10904_v60 = vld [vmem:[#allocation5 + $0x4a0] ss:$16 sps:$4 sm:$0xff]  }
 0x151   : > { %3952 = vmatprep.subr.bf16.mxu0 %v10852_v46  ;;  %4034 = vmatprep.subr.bf16.mxu1 %v10855_v51  ;;  %v10924_v46 = vld [vmem:[#allocation5 + $0x504] ss:$16 sps:$4 sm:$0xff]   ;;  %v10927_v51 = vld [vmem:[#allocation5 + $0x50c] ss:$16 sps:$4 sm:$0xff]  }
 0x157   : > { %9713 = vmatmul.mubr.msk.bf16.vlgmr.msra.gmra.mrb[28].mxu0 %vm330_vm1, %v2745_v22  ;;  %9715 = vmatmul.mubr.msk.bf16.vlgmr.msra.gmra.mrb[28].mxu1 %vm330_vm1, %v2745_v22  ;;  %v10913_v22 = vld [vmem:[#allocation5 + $0x4c8] ss:$16 sps:$4 sm:$0xff]   ;;  %vm3133_vm1 = vmand %vm267_vm2, %vm3132_vm15 }
 0x158   : > { %3953 = vmatpush1.bf16.msra.mxu0 %v10850_v30  ;;  %4035 = vmatpush1.bf16.msra.mxu1 %v10853_v52  ;;  %v10922_v30 = vld [vmem:[#allocation5 + $0x500] ss:$16 sps:$4 sm:$0xff]   ;;  %v10925_v52 = vld [vmem:[#allocation5 + $0x508] ss:$16 sps:$4 sm:$0xff]   ;;  %vm3136_vm5 = vmor %vm13907_vm0, %vm3133_vm1 }
 0x159   : > { %3954 = vmatprep.subr.bf16.mxu0 %v10858_v55  ;;  %4036 = vmatprep.subr.bf16.mxu1 %v10861_v58  ;;  %v10930_v55 = vld [vmem:[#allocation5 + $0x524] ss:$16 sps:$4 sm:$0xff]   ;;  %v10933_v58 = vld [vmem:[#allocation5 + $0x52c] ss:$16 sps:$4 sm:$0xff]   ;;  %vm3141_vm7 = vmor %vm3140_vm4, %vm3133_vm1 }
 0x15c   : > { %3955 = vmatpush1.bf16.msra.mxu0 %v10856_v62  ;;  %4037 = vmatpush1.bf16.msra.mxu1 %v10859_v6  ;;  %v10928_v62 = vld [vmem:[#allocation5 + $0x520] ss:$16 sps:$4 sm:$0xff]   ;;  %v10931_v6 = vld [vmem:[#allocation5 + $0x528] ss:$16 sps:$4 sm:$0xff]  }
 0x15d   : > { %3956 = vmatprep.subr.bf16.mxu0 %v10864_v0  ;;  %4038 = vmatprep.subr.bf16.mxu1 %v10867_v11  ;;  %v10936_v0 = vld [vmem:[#allocation5 + $0x544] ss:$16 sps:$4 sm:$0xff]   ;;  %v10939_v11 = vld [vmem:[#allocation5 + $0x54c] ss:$16 sps:$4 sm:$0xff]  }
 0x160   : > { %3957 = vmatpush1.bf16.msra.mxu0 %v10862_v12  ;;  %4039 = vmatpush1.bf16.msra.mxu1 %v10865_v19 }
 0x161   : > { %3958 = vmatprep.subr.bf16.mxu0 %v10870_v20  ;;  %4040 = vmatprep.subr.bf16.mxu1 %v10873_v32 }
 0x164   : > { %3959 = vmatpush1.bf16.msra.mxu0 %v10868_v33  ;;  %4041 = vmatpush1.bf16.msra.mxu1 %v10871_v34 }
 0x165   : > { %3960 = vmatprep.subr.bf16.mxu0 %v10876_v40  ;;  %4042 = vmatprep.subr.bf16.mxu1 %v10879_v47 }
 0x168   : > { %3961 = vmatpush1.bf16.msra.mxu0 %v10874_v49  ;;  %4043 = vmatpush1.bf16.msra.mxu1 %v10877_v50 }
 0x169   : > { %3962 = vmatprep.subr.bf16.mxu0 %v10882_v56  ;;  %4044 = vmatprep.subr.bf16.mxu1 %v10885_v57  ;;  %v10937_v56 = vld [vmem:[#allocation5 + $0x548] ss:$16 sps:$4 sm:$0xff]  }
 0x16a   : > { %v13740_v14 = vpop.f32.mrb[4].mxu0  ;;  %v13742_v16 = vpop.f32.mrb[4].mxu1 }
 0x16b   : > { %v1131_v26 = vmax.f32 %v13716_v23, %v13740_v14  ;;  %v1133_v31 = vmax.f32 %v13718_v28, %v13742_v16  ;;  %v13748_v39 = vpop.f32.mrb[5].mxu0  ;;  %v13750_v41 = vpop.f32.mrb[5].mxu1  ;;  %v10934_v23 = vld [vmem:[#allocation5 + $0x540] ss:$16 sps:$4 sm:$0xff]   ;;  %v10942_v28 = vld [vmem:[#allocation5 + $0x564] ss:$16 sps:$4 sm:$0xff]   ;;  %v1649_v14 = vlaneseq }
 0x16c   : > { %v1132_v44 = vmax.f32 %v13720_v29, %v13748_v39  ;;  %v1134_v53 = vmax.f32 %v13726_v36, %v13750_v41  ;;  %v1083_v54 = vpop.f32.mrb[6].mxu0  ;;  %v1124_v59 = vpop.f32.mrb[6].mxu1  ;;  %3963 = vmatpush1.bf16.msra.mxu0 %v10880_v1  ;;  %4045 = vmatpush1.bf16.msra.mxu1 %v10883_v2  ;;  %v10945_v2 = vld [vmem:[#allocation5 + $0x56c] ss:$16 sps:$4 sm:$0xff]   ;;  %v10940_v29 = vld [vmem:[#allocation5 + $0x560] ss:$16 sps:$4 sm:$0xff]  }
 0x16d   : > { %v1084_v61 = vpop.f32.mrb[7].mxu0  ;;  %v1125_v63 = vpop.f32.mrb[7].mxu1  ;;  %3964 = vmatprep.subr.bf16.mxu0 %v10888_v3  ;;  %4046 = vmatprep.subr.bf16.mxu1 %v10891_v10  ;;  %v10943_v3 = vld [vmem:[#allocation5 + $0x568] ss:$16 sps:$4 sm:$0xff]   ;;  %v10948_v36 = vld [vmem:[#allocation5 + $0x584] ss:$16 sps:$4 sm:$0xff]  }
 0x16e   : > { %v10951_v10 = vld [vmem:[#allocation5 + $0x58c] ss:$16 sps:$4 sm:$0xff]   ;;  %v13768_v16 = vshrl.u32 %v1649_v14, 7 }
 0x170   : > { %3965 = vmatpush1.bf16.msra.mxu0 %v10886_v17  ;;  %4047 = vmatpush1.bf16.msra.mxu1 %v10889_v18  ;;  %v1651_v17 = vsub.s32 0, %v13768_v16  ;;  %v1659_v18 = vsub.s32 2, %v13768_v16  ;;  %v1663_v39 = vsub.s32 3, %v13768_v16 }
 0x171   : > { %3966 = vmatprep.subr.bf16.mxu0 %v10894_v5  ;;  %4048 = vmatprep.subr.bf16.mxu1 %v10897_v7 }
 0x174   : > { %3967 = vmatpush1.bf16.msra.mxu0 %v10892_v8  ;;  %4049 = vmatpush1.bf16.msra.mxu1 %v10895_v21 }
 0x175   : > { %3968 = vmatprep.subr.bf16.mxu0 %v10900_v24  ;;  %4050 = vmatprep.subr.bf16.mxu1 %v10903_v25 }
 0x178   : > { %3969 = vmatpush1.bf16.msra.mxu0 %v10898_v27  ;;  %4051 = vmatpush1.bf16.msra.mxu1 %v10901_v35 }
 0x179   : > { %3970 = vmatprep.subr.bf16.mxu0 %v10906_v42  ;;  %4052 = vmatprep.subr.bf16.mxu1 %v10909_v48 }
 0x17c   : > { %3971 = vmatpush1.bf16.msra.mxu0 %v10904_v60  ;;  %4053 = vmatpush1.bf16.msra.mxu1 %v10907_v4 }
 0x17d   : > { %3972 = vmatprep.subr.bf16.mxu0 %v10912_v9  ;;  %4054 = vmatprep.subr.bf16.mxu1 %v10915_v13 }
 0x180   : > { %3973 = vmatpush1.bf16.msra.mxu0 %v10910_v15  ;;  %4055 = vmatpush1.bf16.msra.mxu1 %v10913_v22 }
 0x181   : > { %3974 = vmatprep.subr.bf16.mxu0 %v10918_v37  ;;  %4056 = vmatprep.subr.bf16.mxu1 %v10921_v38 }
 0x184   : > { %3975 = vmatpush1.bf16.msra.mxu0 %v10916_v43  ;;  %4057 = vmatpush1.bf16.msra.mxu1 %v10919_v45 }
 0x185   : > { %3976 = vmatprep.subr.bf16.mxu0 %v10924_v46  ;;  %4058 = vmatprep.subr.bf16.mxu1 %v10927_v51  ;;  %v1706_v46 = vld [vmem:[#allocation2 + $0x8] sm:$0xff] }
 0x188   : > { %3977 = vmatpush1.bf16.msra.mxu0 %v10922_v30  ;;  %4059 = vmatpush1.bf16.msra.mxu1 %v10925_v52 }
 0x189   : > { %3978 = vmatprep.subr.bf16.mxu0 %v10930_v55  ;;  %4060 = vmatprep.subr.bf16.mxu1 %v10933_v58 }
 0x18a   : > { %v1338_v12 = vpop.f32.mrb[8].mxu0  ;;  %v1379_v19 = vpop.f32.mrb[8].mxu1 }
 0x18b   : > { %v1390_v20 = vmax.f32 %v1131_v26, %v1338_v12  ;;  %v1392_v32 = vmax.f32 %v1133_v31, %v1379_v19  ;;  %v1340_v33 = vpop.f32.mrb[9].mxu0  ;;  %v1381_v34 = vpop.f32.mrb[9].mxu1  ;;  %v273_v26 = vld [vmem:[#allocation3] sm:$0xf]  ;;  %v1655_v31 = vsub.s32 1, %v13768_v16 }
 0x18c   : > { %v1391_v40 = vmax.f32 %v1132_v44, %v1340_v33  ;;  %v1393_v47 = vmax.f32 %v1134_v53, %v1381_v34  ;;  %v1342_v49 = vpop.f32.mrb[10].mxu0  ;;  %v1383_v50 = vpop.f32.mrb[10].mxu1  ;;  %3979 = vmatpush1.bf16.msra.mxu0 %v10928_v62  ;;  %4061 = vmatpush1.bf16.msra.mxu1 %v10931_v6  ;;  %v13776_v41 = vrot.slane %v273_v26, %v1651_v17  ;;  %v10946_v6 = vld [vmem:[#allocation5 + $0x580] ss:$16 sps:$4 sm:$0xff]   ;;  %v10957_v12 = vld [vmem:[#allocation5 + $0x5ac] ss:$16 sps:$4 sm:$0xff]  }
 0x18d   : > { %v1343_v57 = vpop.f32.mrb[11].mxu0  ;;  %v1384_v1 = vpop.f32.mrb[11].mxu1  ;;  %3980 = vmatprep.subr.bf16.mxu0 %v10936_v0  ;;  %4062 = vmatprep.subr.bf16.mxu1 %v10939_v11  ;;  %v13780_v44 = vrot.slane %v273_v26, %v1659_v18  ;;  %v13784_v59 = vrot.slane %v273_v26, %v1655_v31  ;;  %v13788_v61 = vrot.slane %v273_v26, %v1663_v39  ;;  %v10949_v0 = vld [vmem:[#allocation5 + $0x588] ss:$16 sps:$4 sm:$0xff]   ;;  %v10954_v11 = vld [vmem:[#allocation5 + $0x5a4] ss:$16 sps:$4 sm:$0xff]  }
 0x18e   : > { %v10960_v33 = vld [vmem:[#allocation5 + $0x5c4] ss:$16 sps:$4 sm:$0xff]   ;;  %v10963_v34 = vld [vmem:[#allocation5 + $0x5cc] ss:$16 sps:$4 sm:$0xff]  }
 0x18f   : > { %v10966_v49 = vld [vmem:[#allocation5 + $0x5e4] ss:$16 sps:$4 sm:$0xff]   ;;  %v10969_v50 = vld [vmem:[#allocation5 + $0x5ec] ss:$16 sps:$4 sm:$0xff]  }
 0x190   : > { %3981 = vmatpush1.bf16.msra.mxu0 %v10934_v23  ;;  %4063 = vmatpush1.bf16.msra.mxu1 %v10937_v56  ;;  %v10964_v23 = vld [vmem:[#allocation5 + $0x5e0] ss:$16 sps:$4 sm:$0xff]   ;;  %v10967_v56 = vld [vmem:[#allocation5 + $0x5e8] ss:$16 sps:$4 sm:$0xff]   ;;  %v10972_v57 = vld [vmem:[#allocation5 + $0x604] ss:$16 sps:$4 sm:$0xff]  }
 0x191   : > { %3982 = vmatprep.subr.bf16.mxu0 %v10942_v28  ;;  %4064 = vmatprep.subr.bf16.mxu1 %v10945_v2  ;;  %v10975_v1 = vld [vmem:[#allocation5 + $0x60c] ss:$16 sps:$4 sm:$0xff]   ;;  %v10970_v28 = vld [vmem:[#allocation5 + $0x600] ss:$16 sps:$4 sm:$0xff]   ;;  %v10973_v2 = vld [vmem:[#allocation5 + $0x608] ss:$16 sps:$4 sm:$0xff]  }
 0x192   : > { %v10984_v26 = vld [vmem:[#allocation5 + $0x644] ss:$16 sps:$4 sm:$0xff]  }
 0x194   : > { %3983 = vmatpush1.bf16.msra.mxu0 %v10940_v29  ;;  %4065 = vmatpush1.bf16.msra.mxu1 %v10943_v3  ;;  %v10978_v29 = vld [vmem:[#allocation5 + $0x624] ss:$16 sps:$4 sm:$0xff]   ;;  %v10981_v3 = vld [vmem:[#allocation5 + $0x62c] ss:$16 sps:$4 sm:$0xff]  }
 0x195   : > { %3993 = vmatprep.subr.bf16.mxu0 %v10948_v36  ;;  %4075 = vmatprep.subr.bf16.mxu1 %v10951_v10  ;;  %v10976_v36 = vld [vmem:[#allocation5 + $0x620] ss:$16 sps:$4 sm:$0xff]   ;;  %v10979_v10 = vld [vmem:[#allocation5 + $0x628] ss:$16 sps:$4 sm:$0xff]  }
 0x1aa   : > { %v1592_v53 = vpop.f32.mrb[12].mxu0  ;;  %v1633_v54 = vpop.f32.mrb[12].mxu1 }
 0x1ab   : > { %v1644_v63 = vmax.f32 %v1390_v20, %v1592_v53  ;;  %v1646_v5 = vmax.f32 %v1392_v32, %v1633_v54  ;;  %v1594_v7 = vpop.f32.mrb[13].mxu0  ;;  %v1635_v8 = vpop.f32.mrb[13].mxu1  ;;  %v10952_v20 = vld [vmem:[#allocation5 + $0x5a0] ss:$16 sps:$4 sm:$0xff]   ;;  %v10955_v32 = vld [vmem:[#allocation5 + $0x5a8] ss:$16 sps:$4 sm:$0xff]  }
 0x1ac   : > { %v1645_v21 = vmax.f32 %v1391_v40, %v1594_v7  ;;  %v1647_v25 = vmax.f32 %v1393_v47, %v1635_v8  ;;  %v1596_v27 = vpop.f32.mrb[14].mxu0  ;;  %v1637_v35 = vpop.f32.mrb[14].mxu1  ;;  %v10958_v40 = vld [vmem:[#allocation5 + $0x5c0] ss:$16 sps:$4 sm:$0xff]   ;;  %v10961_v47 = vld [vmem:[#allocation5 + $0x5c8] ss:$16 sps:$4 sm:$0xff]  }
 0x1ad   : > { %v1669_v42 = vadd.f32 %v13776_v41, %v1644_v63  ;;  %v1671_v48 = vadd.f32 %v13780_v44, %v1646_v5  ;;  %v1597_v4 = vpop.f32.mrb[15].mxu0  ;;  %v1638_v9 = vpop.f32.mrb[15].mxu1  ;;  %v10987_v53 = vld [vmem:[#allocation5 + $0x64c] ss:$16 sps:$4 sm:$0xff]   ;;  %v10985_v27 = vld [vmem:[#allocation5 + $0x648] ss:$16 sps:$4 sm:$0xff]  }
 0x1ae   : > { %v1670_v13 = vadd.f32 %v13784_v59, %v1645_v21  ;;  %v1672_v15 = vadd.f32 %v13788_v61, %v1647_v25  ;;  %v10982_v25 = vld [vmem:[#allocation5 + $0x640] ss:$16 sps:$4 sm:$0xff]   ;;  %v10991_v9 = vld [vmem:[#allocation5 + $0x668] ss:$16 sps:$4 sm:$0xff]  }
 0x1af   : > { %v1673_v37 = vmax.f32 %v1669_v42, 0.0  ;;  %v1675_v38 = vmax.f32 %v1671_v48, 0.0  ;;  %v10990_v42 = vld [vmem:[#allocation5 + $0x664] ss:$16 sps:$4 sm:$0xff]   ;;  %v10993_v48 = vld [vmem:[#allocation5 + $0x66c] ss:$16 sps:$4 sm:$0xff]  }
 0x1b0   : > { %v1674_v43 = vmax.f32 %v1670_v13, 0.0  ;;  %v1676_v45 = vmax.f32 %v1672_v15, 0.0  ;;  %v10988_v4 = vld [vmem:[#allocation5 + $0x660] ss:$16 sps:$4 sm:$0xff]   ;;  %v10996_v13 = vld [vmem:[#allocation5 + $0x684] ss:$16 sps:$4 sm:$0xff]  }
 0x1b1   : > { %v10999_v15 = vld [vmem:[#allocation5 + $0x68c] ss:$16 sps:$4 sm:$0xff]  }
 0x1b2   : > { %v10428_v51 = vpack.c.bf16 %v1674_v43, %v1673_v37  ;;  %v10429_v30 = vpack.c.bf16 %v1676_v45, %v1675_v38  ;;  %v10994_v37 = vld [vmem:[#allocation5 + $0x680] ss:$16 sps:$4 sm:$0xff]   ;;  %v10997_v38 = vld [vmem:[#allocation5 + $0x688] ss:$16 sps:$4 sm:$0xff]   ;;  %v11002_v43 = vld [vmem:[#allocation5 + $0x6a4] ss:$16 sps:$4 sm:$0xff]  }
 0x1b3   : > { %v11005_v45 = vld [vmem:[#allocation5 + $0x6ac] ss:$16 sps:$4 sm:$0xff]  }
 0x1b4   : > { %v1701_v52 = vsel %vm1699_vm11, %v10428_v51, 0  ;;  %v13829_v55 = vsel %vm1705_vm12, %v10429_v30, %v1706_v46  ;;  %v11000_v46 = vld [vmem:[#allocation5 + $0x6a0] ss:$16 sps:$4 sm:$0xff]   ;;  %v11003_v51 = vld [vmem:[#allocation5 + $0x6a8] ss:$16 sps:$4 sm:$0xff]  }
 0x1b5   : > { %v13831_v58 = vcombine.low %v1701_v52, %v1701_v52  ;;  %v13833_v62 = vcombine.high %v1701_v52, %v1701_v52  ;;  %1708 = vst [vmem:[#allocation2 + $0x8] sm:$0xff] %v13829_v55  ;;  %v13840_v19 = vcombine.high %v13829_v55, %v13829_v55  ;;  %v11008_v30 = vld [vmem:[#allocation5 + $0x6c4] ss:$16 sps:$4 sm:$0xff]   ;;  %v11011_v52 = vld [vmem:[#allocation5 + $0x6cc] ss:$16 sps:$4 sm:$0xff]  }
 0x1b7   : > { %3984 = vmatprep.mubr.bf16.mxu0 %v13833_v62  ;;  %4066 = vmatprep.mubr.bf16.mxu1 %v13833_v62 }
 0x1b8   : > { %3985 = vmatmul.mubr.bf16.vlgmr.msra.gmra.mrb[32].mxu0 %v13831_v58  ;;  %4067 = vmatmul.mubr.bf16.vlgmr.msra.gmra.mrb[32].mxu1 %v13831_v58 }
 0x1b9   : > { %3994 = vmatpush1.bf16.msra.mxu0 %v10946_v6  ;;  %4076 = vmatpush1.bf16.msra.mxu1 %v10949_v0  ;;  %v11006_v6 = vld [vmem:[#allocation5 + $0x6c0] ss:$16 sps:$4 sm:$0xff]   ;;  %v11009_v0 = vld [vmem:[#allocation5 + $0x6c8] ss:$16 sps:$4 sm:$0xff]  }
 0x1ba   : > { %9834 = vmatprep.mubr.msk.bf16.mxu0 %vm3948_vm13, %v13840_v19  ;;  %9835 = vmatprep.mubr.msk.bf16.mxu1 %vm3948_vm13, %v13840_v19 }
 0x1bb   : > { %3995 = vmatprep.subr.bf16.mxu0 %v10954_v11  ;;  %4077 = vmatprep.subr.bf16.mxu1 %v10957_v12  ;;  %v11014_v11 = vld [vmem:[#allocation5 + $0x6e4] ss:$16 sps:$4 sm:$0xff]   ;;  %v11017_v12 = vld [vmem:[#allocation5 + $0x6ec] ss:$16 sps:$4 sm:$0xff]  }
 0x1bd   : > { %3996 = vmatpush1.bf16.msra.mxu0 %v10952_v20  ;;  %4078 = vmatpush1.bf16.msra.mxu1 %v10955_v32  ;;  %v11012_v20 = vld [vmem:[#allocation5 + $0x6e0] ss:$16 sps:$4 sm:$0xff]   ;;  %v11015_v32 = vld [vmem:[#allocation5 + $0x6e8] ss:$16 sps:$4 sm:$0xff]  }
 0x1be   : > { %3997 = vmatprep.subr.bf16.mxu0 %v10960_v33  ;;  %4079 = vmatprep.subr.bf16.mxu1 %v10963_v34  ;;  %v11020_v33 = vld [vmem:[#allocation5 + $0x4] ss:$16 sps:$4 sm:$0xff]   ;;  %v11023_v34 = vld [vmem:[#allocation5 + $0xc] ss:$16 sps:$4 sm:$0xff]  }
 0x1c1   : > { %3998 = vmatpush1.bf16.msra.mxu0 %v10958_v40  ;;  %4080 = vmatpush1.bf16.msra.mxu1 %v10961_v47  ;;  %v11018_v40 = vld [vmem:[#allocation5] ss:$16 sps:$4 sm:$0xff]   ;;  %v11021_v47 = vld [vmem:[#allocation5 + $0x8] ss:$16 sps:$4 sm:$0xff]  }
 0x1c2   : > { %3999 = vmatprep.subr.bf16.mxu0 %v10966_v49  ;;  %4081 = vmatprep.subr.bf16.mxu1 %v10969_v50  ;;  %v13858_v49 = vcombine.low %v13829_v55, %v13829_v55  ;;  %v11026_v50 = vld [vmem:[#allocation5 + $0x24] ss:$16 sps:$4 sm:$0xff]  }
 0x1c3   : > { %v11032_v55 = vld [vmem:[#allocation5 + $0x44] ss:$16 sps:$4 sm:$0xff]  }
 0x1c5   : > { %4000 = vmatpush1.bf16.msra.mxu0 %v10964_v23  ;;  %4082 = vmatpush1.bf16.msra.mxu1 %v10967_v56  ;;  %v11029_v23 = vld [vmem:[#allocation5 + $0x2c] ss:$16 sps:$4 sm:$0xff]   ;;  %v11024_v56 = vld [vmem:[#allocation5 + $0x20] ss:$16 sps:$4 sm:$0xff]  }
 0x1c6   : > { %4001 = vmatprep.subr.bf16.mxu0 %v10972_v57  ;;  %4083 = vmatprep.subr.bf16.mxu1 %v10975_v1  ;;  %v11027_v57 = vld [vmem:[#allocation5 + $0x28] ss:$16 sps:$4 sm:$0xff]  }
 0x1c9   : > { %4002 = vmatpush1.bf16.msra.mxu0 %v10970_v28  ;;  %4084 = vmatpush1.bf16.msra.mxu1 %v10973_v2  ;;  %v11035_v2 = vld [vmem:[#allocation5 + $0x4c] ss:$16 sps:$4 sm:$0xff]  }
 0x1ca   : > { %v13848_v14 = vpop.f32.mrb[16].mxu0  ;;  %4003 = vmatprep.subr.bf16.mxu0 %v10978_v29  ;;  %4085 = vmatprep.subr.bf16.mxu1 %v10981_v3  ;;  %v13850_v54 = vpop.f32.mrb[16].mxu1 }
 0x1cb   : > { %v13852_v63 = vpop.f32.mrb[17].mxu0  ;;  %v13854_v5 = vpop.f32.mrb[17].mxu1 }
 0x1cc   : > { %v2101_v7 = vpop.f32.mrb[18].mxu0  ;;  %v2142_v8 = vpop.f32.mrb[18].mxu1 }
 0x1cd   : > { %v2102_v21 = vpop.f32.mrb[19].mxu0  ;;  %4004 = vmatpush1.bf16.msra.mxu0 %v10976_v36  ;;  %4086 = vmatpush1.bf16.msra.mxu1 %v10979_v10  ;;  %v2143_v35 = vpop.f32.mrb[19].mxu1 }
 0x1ce   : > { %4005 = vmatprep.subr.bf16.mxu0 %v10984_v26  ;;  %4087 = vmatprep.subr.bf16.mxu1 %v10987_v53  ;;  %v11033_v35 = vld [vmem:[#allocation5 + $0x48] ss:$16 sps:$4 sm:$0xff]  }
 0x1d1   : > { %4006 = vmatpush1.bf16.msra.mxu0 %v10982_v25  ;;  %4088 = vmatpush1.bf16.msra.mxu1 %v10985_v27  ;;  %v11030_v27 = vld [vmem:[#allocation5 + $0x40] ss:$16 sps:$4 sm:$0xff]  }
 0x1d2   : > { %4007 = vmatprep.subr.bf16.mxu0 %v10990_v42  ;;  %4089 = vmatprep.subr.bf16.mxu1 %v10993_v48  ;;  %v11038_v42 = vld [vmem:[#allocation5 + $0x64] ss:$16 sps:$4 sm:$0xff]   ;;  %v11041_v48 = vld [vmem:[#allocation5 + $0x6c] ss:$16 sps:$4 sm:$0xff]  }
 0x1d5   : > { %4008 = vmatpush1.bf16.msra.mxu0 %v10988_v4  ;;  %4090 = vmatpush1.bf16.msra.mxu1 %v10991_v9  ;;  %v11036_v4 = vld [vmem:[#allocation5 + $0x60] ss:$16 sps:$4 sm:$0xff]   ;;  %v11039_v9 = vld [vmem:[#allocation5 + $0x68] ss:$16 sps:$4 sm:$0xff]  }
 0x1d6   : > { %4009 = vmatprep.subr.bf16.mxu0 %v10996_v13  ;;  %4091 = vmatprep.subr.bf16.mxu1 %v10999_v15  ;;  %v11044_v13 = vld [vmem:[#allocation5 + $0x84] ss:$16 sps:$4 sm:$0xff]   ;;  %v11047_v15 = vld [vmem:[#allocation5 + $0x8c] ss:$16 sps:$4 sm:$0xff]  }
 0x1d9   : > { %4010 = vmatpush1.bf16.msra.mxu0 %v10994_v37  ;;  %4092 = vmatpush1.bf16.msra.mxu1 %v10997_v38  ;;  %v11042_v37 = vld [vmem:[#allocation5 + $0x80] ss:$16 sps:$4 sm:$0xff]   ;;  %v11045_v38 = vld [vmem:[#allocation5 + $0x88] ss:$16 sps:$4 sm:$0xff]  }
 0x1da   : > { %4011 = vmatprep.subr.bf16.mxu0 %v11002_v43  ;;  %4093 = vmatprep.subr.bf16.mxu1 %v11005_v45  ;;  %v11050_v43 = vld [vmem:[#allocation5 + $0xa4] ss:$16 sps:$4 sm:$0xff]   ;;  %v11053_v45 = vld [vmem:[#allocation5 + $0xac] ss:$16 sps:$4 sm:$0xff]  }
 0x1dd   : > { %4012 = vmatpush1.bf16.msra.mxu0 %v11000_v46  ;;  %4094 = vmatpush1.bf16.msra.mxu1 %v11003_v51  ;;  %v11048_v46 = vld [vmem:[#allocation5 + $0xa0] ss:$16 sps:$4 sm:$0xff]   ;;  %v11051_v51 = vld [vmem:[#allocation5 + $0xa8] ss:$16 sps:$4 sm:$0xff]  }
 0x1de   : > { %4013 = vmatprep.subr.bf16.mxu0 %v11008_v30  ;;  %4095 = vmatprep.subr.bf16.mxu1 %v11011_v52  ;;  %v11056_v30 = vld [vmem:[#allocation5 + $0xc4] ss:$16 sps:$4 sm:$0xff]   ;;  %v11059_v52 = vld [vmem:[#allocation5 + $0xcc] ss:$16 sps:$4 sm:$0xff]  }
 0x1e1   : > { %4014 = vmatpush1.bf16.msra.mxu0 %v11006_v6  ;;  %4096 = vmatpush1.bf16.msra.mxu1 %v11009_v0  ;;  %v11054_v6 = vld [vmem:[#allocation5 + $0xc0] ss:$16 sps:$4 sm:$0xff]   ;;  %v11057_v0 = vld [vmem:[#allocation5 + $0xc8] ss:$16 sps:$4 sm:$0xff]  }
 0x1e2   : > { %4015 = vmatprep.subr.bf16.mxu0 %v11014_v11  ;;  %4097 = vmatprep.subr.bf16.mxu1 %v11017_v12  ;;  %v11062_v11 = vld [vmem:[#allocation5 + $0xe4] ss:$16 sps:$4 sm:$0xff]   ;;  %v11065_v12 = vld [vmem:[#allocation5 + $0xec] ss:$16 sps:$4 sm:$0xff]  }
 0x1e5   : > { %4016 = vmatpush1.bf16.msra.mxu0 %v11012_v20  ;;  %4098 = vmatpush1.bf16.msra.mxu1 %v11015_v32  ;;  %v11060_v20 = vld [vmem:[#allocation5 + $0xe0] ss:$16 sps:$4 sm:$0xff]   ;;  %v11063_v32 = vld [vmem:[#allocation5 + $0xe8] ss:$16 sps:$4 sm:$0xff]  }
 0x1e6   : > { %4692 = vmatprep.subr.bf16.mxu0 %v11020_v33  ;;  %4774 = vmatprep.subr.bf16.mxu1 %v11023_v34  ;;  %v11068_v33 = vld [vmem:[#allocation5 + $0x104] ss:$16 sps:$4 sm:$0xff]   ;;  %v11071_v34 = vld [vmem:[#allocation5 + $0x10c] ss:$16 sps:$4 sm:$0xff]  }
 0x1e8   : > { %4026 = vmatmul.mubr.bf16.vlgmr.msra.gmra.mrb[32].mxu0 %v13858_v49  ;;  %4108 = vmatmul.mubr.bf16.vlgmr.msra.gmra.mrb[32].mxu1 %v13858_v49 }
 0x1e9   : > { %4693 = vmatpush1.bf16.msra.mxu0 %v11018_v40  ;;  %4775 = vmatpush1.bf16.msra.mxu1 %v11021_v47  ;;  %v11066_v40 = vld [vmem:[#allocation5 + $0x100] ss:$16 sps:$4 sm:$0xff]   ;;  %v11069_v47 = vld [vmem:[#allocation5 + $0x108] ss:$16 sps:$4 sm:$0xff]  }
 0x1ea   : > { %v13862_v1 = vpop.f32.mrb[20].mxu0  ;;  %v13864_v28 = vpop.f32.mrb[20].mxu1  ;;  %4694 = vmatprep.subr.bf16.mxu0 %v11026_v50  ;;  %4776 = vmatprep.subr.bf16.mxu1 %v11029_v23  ;;  %v11074_v50 = vld [vmem:[#allocation5 + $0x124] ss:$16 sps:$4 sm:$0xff]   ;;  %v11077_v23 = vld [vmem:[#allocation5 + $0x12c] ss:$16 sps:$4 sm:$0xff]  }
 0x1eb   : > { %v2567_v29 = vmax.f32 %v13848_v14, %v13862_v1  ;;  %v2569_v3 = vmax.f32 %v13850_v54, %v13864_v28  ;;  %v13870_v36 = vpop.f32.mrb[21].mxu0  ;;  %v13872_v10 = vpop.f32.mrb[21].mxu1  ;;  %v11078_v54 = vld [vmem:[#allocation5 + $0x140] ss:$16 sps:$4 sm:$0xff]   ;;  %v11081_v28 = vld [vmem:[#allocation5 + $0x148] ss:$16 sps:$4 sm:$0xff]  }
 0x1ec   : > { %v2568_v26 = vmax.f32 %v13852_v63, %v13870_v36  ;;  %v2570_v53 = vmax.f32 %v13854_v5, %v13872_v10  ;;  %v2519_v7 = vpop.f32.mrb[22].mxu0  ;;  %v2560_v8 = vpop.f32.mrb[22].mxu1  ;;  %v11084_v63 = vld [vmem:[#allocation5 + $0x160] ss:$16 sps:$4 sm:$0xff]   ;;  %v11087_v36 = vld [vmem:[#allocation5 + $0x168] ss:$16 sps:$4 sm:$0xff]  }
 0x1ed   : > { %v2520_v21 = vpop.f32.mrb[23].mxu0  ;;  %v2561_v25 = vpop.f32.mrb[23].mxu1  ;;  %4695 = vmatpush1.bf16.msra.mxu0 %v11024_v56  ;;  %4777 = vmatpush1.bf16.msra.mxu1 %v11027_v57  ;;  %v11072_v56 = vld [vmem:[#allocation5 + $0x120] ss:$16 sps:$4 sm:$0xff]   ;;  %v11075_v57 = vld [vmem:[#allocation5 + $0x128] ss:$16 sps:$4 sm:$0xff]  }
 0x1ee   : > { %4696 = vmatprep.subr.bf16.mxu0 %v11032_v55  ;;  %4778 = vmatprep.subr.bf16.mxu1 %v11035_v2  ;;  %v11080_v7 = vld [vmem:[#allocation5 + $0x144] ss:$16 sps:$4 sm:$0xff]   ;;  %v11083_v8 = vld [vmem:[#allocation5 + $0x14c] ss:$16 sps:$4 sm:$0xff]  }
 0x1ef   : > { %v11092_v5 = vld [vmem:[#allocation5 + $0x184] ss:$16 sps:$4 sm:$0xff]   ;;  %v11095_v10 = vld [vmem:[#allocation5 + $0x18c] ss:$16 sps:$4 sm:$0xff]  }
 0x1f1   : > { %4697 = vmatpush1.bf16.msra.mxu0 %v11030_v27  ;;  %4779 = vmatpush1.bf16.msra.mxu1 %v11033_v35 }
 0x1f2   : > { %4698 = vmatprep.subr.bf16.mxu0 %v11038_v42  ;;  %4780 = vmatprep.subr.bf16.mxu1 %v11041_v48 }
 0x1f5   : > { %4699 = vmatpush1.bf16.msra.mxu0 %v11036_v4  ;;  %4781 = vmatpush1.bf16.msra.mxu1 %v11039_v9  ;;  %v11089_v9 = vld [vmem:[#allocation5 + $0x16c] ss:$16 sps:$4 sm:$0xff]  }
 0x1f6   : > { %4700 = vmatprep.subr.bf16.mxu0 %v11044_v13  ;;  %4782 = vmatprep.subr.bf16.mxu1 %v11047_v15  ;;  %v11098_v13 = vld [vmem:[#allocation5 + $0x1a4] ss:$16 sps:$4 sm:$0xff]   ;;  %v11101_v15 = vld [vmem:[#allocation5 + $0x1ac] ss:$16 sps:$4 sm:$0xff]  }
 0x1f9   : > { %4701 = vmatpush1.bf16.msra.mxu0 %v11042_v37  ;;  %4783 = vmatpush1.bf16.msra.mxu1 %v11045_v38  ;;  %v11096_v37 = vld [vmem:[#allocation5 + $0x1a0] ss:$16 sps:$4 sm:$0xff]   ;;  %v11099_v38 = vld [vmem:[#allocation5 + $0x1a8] ss:$16 sps:$4 sm:$0xff]  }
 0x1fa   : > { %4702 = vmatprep.subr.bf16.mxu0 %v11050_v43  ;;  %4784 = vmatprep.subr.bf16.mxu1 %v11053_v45  ;;  %v11104_v43 = vld [vmem:[#allocation5 + $0x1c4] ss:$16 sps:$4 sm:$0xff]   ;;  %v11107_v45 = vld [vmem:[#allocation5 + $0x1cc] ss:$16 sps:$4 sm:$0xff]  }
 0x1fd   : > { %4703 = vmatpush1.bf16.msra.mxu0 %v11048_v46  ;;  %4785 = vmatpush1.bf16.msra.mxu1 %v11051_v51  ;;  %v11102_v46 = vld [vmem:[#allocation5 + $0x1c0] ss:$16 sps:$4 sm:$0xff]   ;;  %v11105_v51 = vld [vmem:[#allocation5 + $0x1c8] ss:$16 sps:$4 sm:$0xff]  }
 0x1fe   : > { %4704 = vmatprep.subr.bf16.mxu0 %v11056_v30  ;;  %4786 = vmatprep.subr.bf16.mxu1 %v11059_v52  ;;  %v11110_v30 = vld [vmem:[#allocation5 + $0x1e4] ss:$16 sps:$4 sm:$0xff]   ;;  %v11113_v52 = vld [vmem:[#allocation5 + $0x1ec] ss:$16 sps:$4 sm:$0xff]  }
 0x201   : > { %4705 = vmatpush1.bf16.msra.mxu0 %v11054_v6  ;;  %4787 = vmatpush1.bf16.msra.mxu1 %v11057_v0  ;;  %v11108_v6 = vld [vmem:[#allocation5 + $0x1e0] ss:$16 sps:$4 sm:$0xff]   ;;  %v11111_v0 = vld [vmem:[#allocation5 + $0x1e8] ss:$16 sps:$4 sm:$0xff]  }
 0x202   : > { %4706 = vmatprep.subr.bf16.mxu0 %v11062_v11  ;;  %4788 = vmatprep.subr.bf16.mxu1 %v11065_v12  ;;  %v11116_v11 = vld [vmem:[#allocation5 + $0x204] ss:$16 sps:$4 sm:$0xff]   ;;  %v11119_v12 = vld [vmem:[#allocation5 + $0x20c] ss:$16 sps:$4 sm:$0xff]  }
 0x205   : > { %4707 = vmatpush1.bf16.msra.mxu0 %v11060_v20  ;;  %4789 = vmatpush1.bf16.msra.mxu1 %v11063_v32 }
 0x206   : > { %4708 = vmatprep.subr.bf16.mxu0 %v11068_v33  ;;  %4790 = vmatprep.subr.bf16.mxu1 %v11071_v34 }
 0x209   : > { %4709 = vmatpush1.bf16.msra.mxu0 %v11066_v40  ;;  %4791 = vmatpush1.bf16.msra.mxu1 %v11069_v47 }
 0x20a   : > { %v2783_v55 = vpop.f32.mrb[24].mxu0  ;;  %v2824_v2 = vpop.f32.mrb[24].mxu1  ;;  %4710 = vmatprep.subr.bf16.mxu0 %v11074_v50  ;;  %4792 = vmatprep.subr.bf16.mxu1 %v11077_v23 }
 0x20b   : > { %v13881_v21 = vmax.f32 %v2567_v29, %v2783_v55  ;;  %v13886_v25 = vmax.f32 %v2569_v3, %v2824_v2  ;;  %v2785_v27 = vpop.f32.mrb[25].mxu0  ;;  %v2826_v35 = vpop.f32.mrb[25].mxu1  ;;  %v11086_v3 = vld [vmem:[#allocation5 + $0x164] ss:$16 sps:$4 sm:$0xff]  }
 0x20c   : > { %v13891_v42 = vmax.f32 %v2568_v26, %v2785_v27  ;;  %v13896_v48 = vmax.f32 %v2570_v53, %v2826_v35  ;;  %v2787_v14 = vpop.f32.mrb[26].mxu0  ;;  %v2828_v1 = vpop.f32.mrb[26].mxu1  ;;  %v11090_v26 = vld [vmem:[#allocation5 + $0x180] ss:$16 sps:$4 sm:$0xff]   ;;  %v11093_v53 = vld [vmem:[#allocation5 + $0x188] ss:$16 sps:$4 sm:$0xff]  }
 0x20d   : > { %v2788_v29 = vpop.f32.mrb[27].mxu0  ;;  %v2829_v4 = vpop.f32.mrb[27].mxu1  ;;  %4711 = vmatpush1.bf16.msra.mxu0 %v11072_v56  ;;  %4793 = vmatpush1.bf16.msra.mxu1 %v11075_v57 }
 0x20e   : > { %4712 = vmatprep.subr.bf16.mxu0 %v11080_v7  ;;  %4794 = vmatprep.subr.bf16.mxu1 %v11083_v8 }
 0x211   : > { %4713 = vmatpush1.bf16.msra.mxu0 %v11078_v54  ;;  %4795 = vmatpush1.bf16.msra.mxu1 %v11081_v28  ;;  %v3142_v28 = vld [vmem:[#allocation2 + $0x18] sm:$0xff] }
 0x212   : > { %4714 = vmatprep.subr.bf16.mxu0 %v11086_v3  ;;  %4796 = vmatprep.subr.bf16.mxu1 %v11089_v9 }
 0x215   : > { %4715 = vmatpush1.bf16.msra.mxu0 %v11084_v63  ;;  %4797 = vmatpush1.bf16.msra.mxu1 %v11087_v36 }
 0x216   : > { %4716 = vmatprep.subr.bf16.mxu0 %v11092_v5  ;;  %4798 = vmatprep.subr.bf16.mxu1 %v11095_v10  ;;  %v11114_v10 = vld [vmem:[#allocation5 + $0x200] ss:$16 sps:$4 sm:$0xff]  }
 0x219   : > { %4717 = vmatpush1.bf16.msra.mxu0 %v11090_v26  ;;  %4799 = vmatpush1.bf16.msra.mxu1 %v11093_v53  ;;  %v11117_v26 = vld [vmem:[#allocation5 + $0x208] ss:$16 sps:$4 sm:$0xff]  }
 0x21a   : > { %4718 = vmatprep.subr.bf16.mxu0 %v11098_v13  ;;  %4800 = vmatprep.subr.bf16.mxu1 %v11101_v15  ;;  %v11122_v13 = vld [vmem:[#allocation5 + $0x224] ss:$16 sps:$4 sm:$0xff]   ;;  %v11125_v15 = vld [vmem:[#allocation5 + $0x22c] ss:$16 sps:$4 sm:$0xff]  }
 0x21d   : > { %4719 = vmatpush1.bf16.msra.mxu0 %v11096_v37  ;;  %4801 = vmatpush1.bf16.msra.mxu1 %v11099_v38  ;;  %v11120_v38 = vld [vmem:[#allocation5 + $0x220] ss:$16 sps:$4 sm:$0xff]  }
 0x21e   : > { %4720 = vmatprep.subr.bf16.mxu0 %v11104_v43  ;;  %4802 = vmatprep.subr.bf16.mxu1 %v11107_v45  ;;  %v11123_v43 = vld [vmem:[#allocation5 + $0x228] ss:$16 sps:$4 sm:$0xff]   ;;  %v11128_v45 = vld [vmem:[#allocation5 + $0x244] ss:$16 sps:$4 sm:$0xff]  }
 0x221   : > { %4721 = vmatpush1.bf16.msra.mxu0 %v11102_v46  ;;  %4803 = vmatpush1.bf16.msra.mxu1 %v11105_v51  ;;  %v11131_v46 = vld [vmem:[#allocation5 + $0x24c] ss:$16 sps:$4 sm:$0xff]   ;;  %v11126_v51 = vld [vmem:[#allocation5 + $0x240] ss:$16 sps:$4 sm:$0xff]  }
 0x222   : > { %4722 = vmatprep.subr.bf16.mxu0 %v11110_v30  ;;  %4804 = vmatprep.subr.bf16.mxu1 %v11113_v52  ;;  %v11129_v30 = vld [vmem:[#allocation5 + $0x248] ss:$16 sps:$4 sm:$0xff]   ;;  %v11134_v52 = vld [vmem:[#allocation5 + $0x264] ss:$16 sps:$4 sm:$0xff]  }
 0x225   : > { %4723 = vmatpush1.bf16.msra.mxu0 %v11108_v6  ;;  %4805 = vmatpush1.bf16.msra.mxu1 %v11111_v0  ;;  %v11137_v6 = vld [vmem:[#allocation5 + $0x26c] ss:$16 sps:$4 sm:$0xff]   ;;  %v11132_v0 = vld [vmem:[#allocation5 + $0x260] ss:$16 sps:$4 sm:$0xff]  }
 0x226   : > { %4733 = vmatprep.subr.bf16.mxu0 %v11116_v11  ;;  %4815 = vmatprep.subr.bf16.mxu1 %v11119_v12  ;;  %v11135_v11 = vld [vmem:[#allocation5 + $0x268] ss:$16 sps:$4 sm:$0xff]   ;;  %v11140_v12 = vld [vmem:[#allocation5 + $0x284] ss:$16 sps:$4 sm:$0xff]  }
 0x22a   : > { %v3037_v20 = vpop.f32.mrb[28].mxu0  ;;  %v3078_v32 = vpop.f32.mrb[28].mxu1 }
 0x22b   : > { %v3089_v33 = vmax.f32 %v13881_v21, %v3037_v20  ;;  %v3091_v34 = vmax.f32 %v13886_v25, %v3078_v32  ;;  %v3039_v40 = vpop.f32.mrb[29].mxu0  ;;  %v3080_v47 = vpop.f32.mrb[29].mxu1  ;;  %v11143_v20 = vld [vmem:[#allocation5 + $0x28c] ss:$16 sps:$4 sm:$0xff]   ;;  %v11138_v32 = vld [vmem:[#allocation5 + $0x280] ss:$16 sps:$4 sm:$0xff]  }
 0x22c   : > { %v3090_v50 = vmax.f32 %v13891_v42, %v3039_v40  ;;  %v3092_v23 = vmax.f32 %v13896_v48, %v3080_v47  ;;  %v3041_v56 = vpop.f32.mrb[30].mxu0  ;;  %v3082_v57 = vpop.f32.mrb[30].mxu1  ;;  %v11149_v40 = vld [vmem:[#allocation5 + $0x2ac] ss:$16 sps:$4 sm:$0xff]   ;;  %v11144_v47 = vld [vmem:[#allocation5 + $0x2a0] ss:$16 sps:$4 sm:$0xff]  }
 0x22d   : > { %v3093_v55 = vadd.f32 %v3089_v33, %v13776_v41  ;;  %v3095_v2 = vadd.f32 %v3091_v34, %v13780_v44  ;;  %v3042_v7 = vpop.f32.mrb[31].mxu0  ;;  %v3083_v8 = vpop.f32.mrb[31].mxu1  ;;  %v11141_v33 = vld [vmem:[#allocation5 + $0x288] ss:$16 sps:$4 sm:$0xff]   ;;  %v11146_v34 = vld [vmem:[#allocation5 + $0x2a4] ss:$16 sps:$4 sm:$0xff]  }
 0x22e   : > { %v3094_v27 = vadd.f32 %v3090_v50, %v13784_v59  ;;  %v3096_v21 = vadd.f32 %v3092_v23, %v13788_v61  ;;  %v11147_v50 = vld [vmem:[#allocation5 + $0x2a8] ss:$16 sps:$4 sm:$0xff]   ;;  %v11152_v23 = vld [vmem:[#allocation5 + $0x2c4] ss:$16 sps:$4 sm:$0xff]   ;;  %v11155_v56 = vld [vmem:[#allocation5 + $0x2cc] ss:$16 sps:$4 sm:$0xff]  }
 0x22f   : > { %v3097_v25 = vmax.f32 %v3093_v55, 0.0  ;;  %v3099_v35 = vmax.f32 %v3095_v2, 0.0  ;;  %v11150_v57 = vld [vmem:[#allocation5 + $0x2c0] ss:$16 sps:$4 sm:$0xff]   ;;  %v11153_v55 = vld [vmem:[#allocation5 + $0x2c8] ss:$16 sps:$4 sm:$0xff]  }
 0x230   : > { %v3098_v14 = vmax.f32 %v3094_v27, 0.0  ;;  %v3100_v42 = vmax.f32 %v3096_v21, 0.0  ;;  %v11158_v2 = vld [vmem:[#allocation5 + $0x2e4] ss:$16 sps:$4 sm:$0xff]   ;;  %v11161_v7 = vld [vmem:[#allocation5 + $0x2ec] ss:$16 sps:$4 sm:$0xff]  }
 0x231   : > { %v11156_v8 = vld [vmem:[#allocation5 + $0x2e0] ss:$16 sps:$4 sm:$0xff]   ;;  %v11159_v27 = vld [vmem:[#allocation5 + $0x2e8] ss:$16 sps:$4 sm:$0xff]   ;;  %v11164_v21 = vld [vmem:[#allocation5 + $0x304] ss:$16 sps:$4 sm:$0xff]  }
 0x232   : > { %v10430_v41 = vpack.c.bf16 %v3098_v14, %v3097_v25  ;;  %v10431_v1 = vpack.c.bf16 %v3100_v42, %v3099_v35  ;;  %v11167_v25 = vld [vmem:[#allocation5 + $0x30c] ss:$16 sps:$4 sm:$0xff]   ;;  %v11162_v35 = vld [vmem:[#allocation5 + $0x300] ss:$16 sps:$4 sm:$0xff]   ;;  %v11165_v14 = vld [vmem:[#allocation5 + $0x308] ss:$16 sps:$4 sm:$0xff]  }
 0x233   : > { %v11170_v42 = vld [vmem:[#allocation5 + $0x324] ss:$16 sps:$4 sm:$0xff]   ;;  %v11173_v48 = vld [vmem:[#allocation5 + $0x32c] ss:$16 sps:$4 sm:$0xff]  }
 0x234   : > { %v3116_v44 = vshrl.u32 %v10430_v41, 16  ;;  %v3123_v29 = vshrl.u32 %v10431_v1, 16  ;;  %v3119_v61 = vshll.u32 %v10430_v41, 16  ;;  %v3126_v54 = vshll.u32 %v10431_v1, 16  ;;  %v11168_v41 = vld [vmem:[#allocation5 + $0x320] ss:$16 sps:$4 sm:$0xff]  }
 0x235   : > { %v11171_v1 = vld [vmem:[#allocation5 + $0x328] ss:$16 sps:$4 sm:$0xff]  }
 0x236   : > { %v3118_v59 = vrot.slane %v3116_v44, 7  ;;  %v3125_v4 = vrot.slane %v3123_v29, 7  ;;  %v11176_v44 = vld [vmem:[#allocation5 + $0x344] ss:$16 sps:$4 sm:$0xff]   ;;  %v11179_v29 = vld [vmem:[#allocation5 + $0x34c] ss:$16 sps:$4 sm:$0xff]  }
 0x238   : > { %v3121_v3 = vor.u32 %v3119_v61, %v3118_v59  ;;  %v3128_v9 = vor.u32 %v3126_v54, %v3125_v4  ;;  %v11174_v59 = vld [vmem:[#allocation5 + $0x340] ss:$16 sps:$4 sm:$0xff]   ;;  %v11177_v61 = vld [vmem:[#allocation5 + $0x348] ss:$16 sps:$4 sm:$0xff]   ;;  %v11182_v4 = vld [vmem:[#allocation5 + $0x364] ss:$16 sps:$4 sm:$0xff]  }
 0x239   : > { %v11185_v54 = vld [vmem:[#allocation5 + $0x36c] ss:$16 sps:$4 sm:$0xff]  }
 0x23a   : > { %v3138_v63 = vsel %vm3136_vm5, %v3121_v3, 0  ;;  %v13915_v36 = vsel %vm3141_vm7, %v3128_v9, %v3142_v28  ;;  %v11180_v3 = vld [vmem:[#allocation5 + $0x360] ss:$16 sps:$4 sm:$0xff]   ;;  %v11183_v9 = vld [vmem:[#allocation5 + $0x368] ss:$16 sps:$4 sm:$0xff]  }
 0x23b   : > { %3144 = vst [vmem:[#allocation2 + $0x18] sm:$0xff] %v13915_v36  ;;  %v13918_v5 = vcombine.high %v3138_v63, %v3138_v63  ;;  %v13920_v53 = vcombine.low %v3138_v63, %v3138_v63  ;;  %v13928_v37 = vcombine.high %v13915_v36, %v13915_v36  ;;  %v11188_v63 = vld [vmem:[#allocation5 + $0x704] ss:$16 sps:$4 sm:$0xff]  }
 0x23d   : > { %4724 = vmatprep.mubr.bf16.mxu0 %v13918_v5  ;;  %4806 = vmatprep.mubr.bf16.mxu1 %v13918_v5  ;;  %v4979_v28 = vshll.u32 %v13918_v5, 16 }
 0x23e   : > { %4725 = vmatmul.mubr.bf16.vlgmr.msra.gmra.mrb[32].mxu0 %v13920_v53  ;;  %4807 = vmatmul.mubr.bf16.vlgmr.msra.gmra.mrb[32].mxu1 %v13920_v53 }
 0x23f   : > { %4734 = vmatpush1.bf16.msra.mxu0 %v11114_v10  ;;  %4816 = vmatpush1.bf16.msra.mxu1 %v11117_v26  ;;  %v11191_v10 = vld [vmem:[#allocation5 + $0x70c] ss:$16 sps:$4 sm:$0xff]   ;;  %v4981_v26 = vrot.slane %v4979_v28, 1  ;;  %v11246_v28 = vld [vmem:[#allocation5 + $0x840] ss:$16 sps:$4 sm:$0xff]  }
 0x240   : > { %9952 = vmatprep.mubr.msk.bf16.mxu0 %vm3948_vm13, %v13928_v37  ;;  %9953 = vmatprep.mubr.msk.bf16.mxu1 %vm3948_vm13, %v13928_v37 }
 0x241   : > { %4735 = vmatprep.subr.bf16.mxu0 %v11122_v13  ;;  %4817 = vmatprep.subr.bf16.mxu1 %v11125_v15  ;;  %v11186_v13 = vld [vmem:[#allocation5 + $0x700] ss:$16 sps:$4 sm:$0xff]   ;;  %v4977_v15 = vshrl.u32 %v13918_v5, 16 }
 0x243   : > { %4736 = vmatpush1.bf16.msra.mxu0 %v11120_v38  ;;  %4818 = vmatpush1.bf16.msra.mxu1 %v11123_v43  ;;  %v13938_v38 = vcombine.low %v13915_v36, %v13915_v36  ;;  %v11189_v43 = vld [vmem:[#allocation5 + $0x708] ss:$16 sps:$4 sm:$0xff]  }
 0x244   : > { %4737 = vmatprep.subr.bf16.mxu0 %v11128_v45  ;;  %4819 = vmatprep.subr.bf16.mxu1 %v11131_v46  ;;  %v13940_v45 = vor.u32 %v4981_v26, %v4977_v15  ;;  %v11194_v46 = vld [vmem:[#allocation5 + $0x724] ss:$16 sps:$4 sm:$0xff]   ;;  %v11195_v36 = vld [vmem:[#allocation5 + $0x728] ss:$16 sps:$4 sm:$0xff]   ;;  %v11263_v15 = vld [vmem:[#allocation5 + $0x88c] ss:$16 sps:$4 sm:$0xff]  }
 0x245   : > { %v11255_v26 = vld [vmem:[#allocation5 + $0x868] ss:$16 sps:$4 sm:$0xff]  }
 0x247   : > { %4738 = vmatpush1.bf16.msra.mxu0 %v11126_v51  ;;  %4820 = vmatpush1.bf16.msra.mxu1 %v11129_v30  ;;  %v11197_v51 = vld [vmem:[#allocation5 + $0x72c] ss:$16 sps:$4 sm:$0xff]   ;;  %v11192_v30 = vld [vmem:[#allocation5 + $0x720] ss:$16 sps:$4 sm:$0xff]  }
 0x248   : > { %4739 = vmatprep.subr.bf16.mxu0 %v11134_v52  ;;  %4821 = vmatprep.subr.bf16.mxu1 %v11137_v6  ;;  %v11200_v52 = vld [vmem:[#allocation5 + $0x744] ss:$16 sps:$4 sm:$0xff]   ;;  %v11203_v6 = vld [vmem:[#allocation5 + $0x74c] ss:$16 sps:$4 sm:$0xff]  }
 0x24b   : > { %4740 = vmatpush1.bf16.msra.mxu0 %v11132_v0  ;;  %4822 = vmatpush1.bf16.msra.mxu1 %v11135_v11  ;;  %v11198_v0 = vld [vmem:[#allocation5 + $0x740] ss:$16 sps:$4 sm:$0xff]   ;;  %v11201_v11 = vld [vmem:[#allocation5 + $0x748] ss:$16 sps:$4 sm:$0xff]  }
 0x24c   : > { %4741 = vmatprep.subr.bf16.mxu0 %v11140_v12  ;;  %4823 = vmatprep.subr.bf16.mxu1 %v11143_v20  ;;  %v11206_v12 = vld [vmem:[#allocation5 + $0x764] ss:$16 sps:$4 sm:$0xff]   ;;  %v11209_v20 = vld [vmem:[#allocation5 + $0x76c] ss:$16 sps:$4 sm:$0xff]  }
 0x24f   : > { %4742 = vmatpush1.bf16.msra.mxu0 %v11138_v32  ;;  %4824 = vmatpush1.bf16.msra.mxu1 %v11141_v33  ;;  %v11204_v32 = vld [vmem:[#allocation5 + $0x760] ss:$16 sps:$4 sm:$0xff]   ;;  %v11207_v33 = vld [vmem:[#allocation5 + $0x768] ss:$16 sps:$4 sm:$0xff]  }
 0x250   : > { %4743 = vmatprep.subr.bf16.mxu0 %v11146_v34  ;;  %4825 = vmatprep.subr.bf16.mxu1 %v11149_v40  ;;  %v11212_v34 = vld [vmem:[#allocation5 + $0x784] ss:$16 sps:$4 sm:$0xff]   ;;  %v11215_v40 = vld [vmem:[#allocation5 + $0x78c] ss:$16 sps:$4 sm:$0xff]  }
 0x253   : > { %4744 = vmatpush1.bf16.msra.mxu0 %v11144_v47  ;;  %4826 = vmatpush1.bf16.msra.mxu1 %v11147_v50  ;;  %v11210_v47 = vld [vmem:[#allocation5 + $0x780] ss:$16 sps:$4 sm:$0xff]   ;;  %v11213_v50 = vld [vmem:[#allocation5 + $0x788] ss:$16 sps:$4 sm:$0xff]  }
 0x254   : > { %4745 = vmatprep.subr.bf16.mxu0 %v11152_v23  ;;  %4827 = vmatprep.subr.bf16.mxu1 %v11155_v56  ;;  %v11218_v23 = vld [vmem:[#allocation5 + $0x7a4] ss:$16 sps:$4 sm:$0xff]   ;;  %v11221_v56 = vld [vmem:[#allocation5 + $0x7ac] ss:$16 sps:$4 sm:$0xff]  }
 0x257   : > { %4746 = vmatpush1.bf16.msra.mxu0 %v11150_v57  ;;  %4828 = vmatpush1.bf16.msra.mxu1 %v11153_v55  ;;  %v11216_v57 = vld [vmem:[#allocation5 + $0x7a0] ss:$16 sps:$4 sm:$0xff]   ;;  %v11219_v55 = vld [vmem:[#allocation5 + $0x7a8] ss:$16 sps:$4 sm:$0xff]  }
 0x258   : > { %4747 = vmatprep.subr.bf16.mxu0 %v11158_v2  ;;  %4829 = vmatprep.subr.bf16.mxu1 %v11161_v7  ;;  %v11224_v2 = vld [vmem:[#allocation5 + $0x7c4] ss:$16 sps:$4 sm:$0xff]   ;;  %v11227_v7 = vld [vmem:[#allocation5 + $0x7cc] ss:$16 sps:$4 sm:$0xff]  }
 0x25b   : > { %4748 = vmatpush1.bf16.msra.mxu0 %v11156_v8  ;;  %4830 = vmatpush1.bf16.msra.mxu1 %v11159_v27  ;;  %v11222_v8 = vld [vmem:[#allocation5 + $0x7c0] ss:$16 sps:$4 sm:$0xff]   ;;  %v11225_v27 = vld [vmem:[#allocation5 + $0x7c8] ss:$16 sps:$4 sm:$0xff]  }
 0x25c   : > { %4749 = vmatprep.subr.bf16.mxu0 %v11164_v21  ;;  %4831 = vmatprep.subr.bf16.mxu1 %v11167_v25  ;;  %v11230_v21 = vld [vmem:[#allocation5 + $0x7e4] ss:$16 sps:$4 sm:$0xff]   ;;  %v11233_v25 = vld [vmem:[#allocation5 + $0x7ec] ss:$16 sps:$4 sm:$0xff]  }
 0x25f   : > { %4750 = vmatpush1.bf16.msra.mxu0 %v11162_v35  ;;  %4832 = vmatpush1.bf16.msra.mxu1 %v11165_v14  ;;  %v11228_v35 = vld [vmem:[#allocation5 + $0x7e0] ss:$16 sps:$4 sm:$0xff]   ;;  %v11231_v14 = vld [vmem:[#allocation5 + $0x7e8] ss:$16 sps:$4 sm:$0xff]  }
 0x260   : > { %4751 = vmatprep.subr.bf16.mxu0 %v11170_v42  ;;  %4833 = vmatprep.subr.bf16.mxu1 %v11173_v48  ;;  %v11236_v42 = vld [vmem:[#allocation5 + $0x804] ss:$16 sps:$4 sm:$0xff]   ;;  %v11239_v48 = vld [vmem:[#allocation5 + $0x80c] ss:$16 sps:$4 sm:$0xff]  }
 0x263   : > { %4752 = vmatpush1.bf16.msra.mxu0 %v11168_v41  ;;  %4834 = vmatpush1.bf16.msra.mxu1 %v11171_v1  ;;  %v11234_v41 = vld [vmem:[#allocation5 + $0x800] ss:$16 sps:$4 sm:$0xff]   ;;  %v11237_v1 = vld [vmem:[#allocation5 + $0x808] ss:$16 sps:$4 sm:$0xff]  }
 0x264   : > { %4753 = vmatprep.subr.bf16.mxu0 %v11176_v44  ;;  %4835 = vmatprep.subr.bf16.mxu1 %v11179_v29  ;;  %v11242_v44 = vld [vmem:[#allocation5 + $0x824] ss:$16 sps:$4 sm:$0xff]   ;;  %v11245_v29 = vld [vmem:[#allocation5 + $0x82c] ss:$16 sps:$4 sm:$0xff]  }
 0x267   : > { %4754 = vmatpush1.bf16.msra.mxu0 %v11174_v59  ;;  %4836 = vmatpush1.bf16.msra.mxu1 %v11177_v61  ;;  %v11240_v59 = vld [vmem:[#allocation5 + $0x820] ss:$16 sps:$4 sm:$0xff]   ;;  %v11243_v61 = vld [vmem:[#allocation5 + $0x828] ss:$16 sps:$4 sm:$0xff]  }
 0x268   : > { %4755 = vmatprep.subr.bf16.mxu0 %v11182_v4  ;;  %4837 = vmatprep.subr.bf16.mxu1 %v11185_v54  ;;  %v11248_v4 = vld [vmem:[#allocation5 + $0x844] ss:$16 sps:$4 sm:$0xff]   ;;  %v11251_v54 = vld [vmem:[#allocation5 + $0x84c] ss:$16 sps:$4 sm:$0xff]  }
 0x26b   : > { %4756 = vmatpush1.bf16.msra.mxu0 %v11180_v3  ;;  %4838 = vmatpush1.bf16.msra.mxu1 %v11183_v9  ;;  %v11249_v3 = vld [vmem:[#allocation5 + $0x848] ss:$16 sps:$4 sm:$0xff]   ;;  %v11254_v9 = vld [vmem:[#allocation5 + $0x864] ss:$16 sps:$4 sm:$0xff]  }
 0x26c   : > { %5562 = vmatprep.subr.bf16.mxu0 %v11188_v63  ;;  %5644 = vmatprep.subr.bf16.mxu1 %v11191_v10  ;;  %v11257_v63 = vld [vmem:[#allocation5 + $0x86c] ss:$16 sps:$4 sm:$0xff]   ;;  %v11252_v10 = vld [vmem:[#allocation5 + $0x860] ss:$16 sps:$4 sm:$0xff]  }
 0x26e   : > { %4766 = vmatmul.mubr.bf16.vlgmr.msra.gmra.mrb[32].mxu0 %v13938_v38  ;;  %4848 = vmatmul.mubr.bf16.vlgmr.msra.gmra.mrb[32].mxu1 %v13938_v38 }
 0x26f   : > { %5563 = vmatpush1.bf16.msra.mxu0 %v11186_v13  ;;  %5594 = vmatprep.mubr.bf16.mxu0 %v13940_v45  ;;  %v11260_v13 = vld [vmem:[#allocation5 + $0x884] ss:$16 sps:$4 sm:$0xff]  }
 0x270   : > { %5645 = vmatpush1.bf16.msra.mxu1 %v11189_v43  ;;  %5676 = vmatprep.mubr.bf16.mxu1 %v13940_v45  ;;  %v11258_v43 = vld [vmem:[#allocation5 + $0x880] ss:$16 sps:$4 sm:$0xff]  }
 0x271   : > { %5564 = vmatprep.subr.bf16.mxu0 %v11194_v46  ;;  %5646 = vmatprep.subr.bf16.mxu1 %v11197_v51  ;;  %v11261_v46 = vld [vmem:[#allocation5 + $0x888] ss:$16 sps:$4 sm:$0xff]   ;;  %v11266_v51 = vld [vmem:[#allocation5 + $0x8a4] ss:$16 sps:$4 sm:$0xff]  }
 0x273   : > { %5565 = vmatpush1.bf16.msra.mxu0 %v11192_v30  ;;  %v11269_v30 = vld [vmem:[#allocation5 + $0x8ac] ss:$16 sps:$4 sm:$0xff]  }
 0x274   : > { %5647 = vmatpush1.bf16.msra.mxu1 %v11195_v36  ;;  %5566 = vmatprep.subr.bf16.mxu0 %v11200_v52  ;;  %v11264_v36 = vld [vmem:[#allocation5 + $0x8a0] ss:$16 sps:$4 sm:$0xff]   ;;  %v11267_v52 = vld [vmem:[#allocation5 + $0x8a8] ss:$16 sps:$4 sm:$0xff]  }
 0x275   : > { %5648 = vmatprep.subr.bf16.mxu1 %v11203_v6  ;;  %v11272_v6 = vld [vmem:[#allocation5 + $0x8c4] ss:$16 sps:$4 sm:$0xff]  }
 0x277   : > { %5567 = vmatpush1.bf16.msra.mxu0 %v11198_v0  ;;  %v11275_v0 = vld [vmem:[#allocation5 + $0x8cc] ss:$16 sps:$4 sm:$0xff]  }
 0x278   : > { %5649 = vmatpush1.bf16.msra.mxu1 %v11201_v11  ;;  %5568 = vmatprep.subr.bf16.mxu0 %v11206_v12  ;;  %v11270_v11 = vld [vmem:[#allocation5 + $0x8c0] ss:$16 sps:$4 sm:$0xff]   ;;  %v11273_v12 = vld [vmem:[#allocation5 + $0x8c8] ss:$16 sps:$4 sm:$0xff]  }
 0x279   : > { %5650 = vmatprep.subr.bf16.mxu1 %v11209_v20  ;;  %v11278_v20 = vld [vmem:[#allocation5 + $0x8e4] ss:$16 sps:$4 sm:$0xff]  }
 0x27b   : > { %5569 = vmatpush1.bf16.msra.mxu0 %v11204_v32  ;;  %v4972_v32 = vshll.u32 %v13920_v53, 16 }
 0x27c   : > { %5651 = vmatpush1.bf16.msra.mxu1 %v11207_v33  ;;  %5570 = vmatprep.subr.bf16.mxu0 %v11212_v34  ;;  %v11281_v33 = vld [vmem:[#allocation5 + $0x8ec] ss:$16 sps:$4 sm:$0xff]   ;;  %v4992_v34 = vshll.u32 %v13928_v37, 16 }
 0x27d   : > { %5652 = vmatprep.subr.bf16.mxu1 %v11215_v40  ;;  %v11276_v40 = vld [vmem:[#allocation5 + $0x8e0] ss:$16 sps:$4 sm:$0xff]  }
 0x27f   : > { %5571 = vmatpush1.bf16.msra.mxu0 %v11210_v47  ;;  %v11279_v47 = vld [vmem:[#allocation5 + $0x8e8] ss:$16 sps:$4 sm:$0xff]  }
 0x280   : > { %5653 = vmatpush1.bf16.msra.mxu1 %v11213_v50  ;;  %5572 = vmatprep.subr.bf16.mxu0 %v11218_v23  ;;  %v4974_v50 = vrot.slane %v4972_v32, 1  ;;  %v11284_v23 = vld [vmem:[#allocation5 + $0x904] ss:$16 sps:$4 sm:$0xff]  }
 0x281   : > { %5654 = vmatprep.subr.bf16.mxu1 %v11221_v56  ;;  %v11287_v56 = vld [vmem:[#allocation5 + $0x90c] ss:$16 sps:$4 sm:$0xff]   ;;  %v11338_v32 = vld [vmem:[#allocation5 + $0xa24] ss:$16 sps:$4 sm:$0xff]  }
 0x283   : > { %5573 = vmatpush1.bf16.msra.mxu0 %v11216_v57  ;;  %v4970_v57 = vshrl.u32 %v13920_v53, 16 }
 0x284   : > { %5655 = vmatpush1.bf16.msra.mxu1 %v11219_v55  ;;  %5574 = vmatprep.subr.bf16.mxu0 %v11224_v2  ;;  %v4994_v55 = vrot.slane %v4992_v34, 1  ;;  %v11282_v2 = vld [vmem:[#allocation5 + $0x900] ss:$16 sps:$4 sm:$0xff]  }
 0x285   : > { %5656 = vmatprep.subr.bf16.mxu1 %v11227_v7  ;;  %v13949_v7 = vor.u32 %v4974_v50, %v4970_v57  ;;  %v11336_v34 = vld [vmem:[#allocation5 + $0xa20] ss:$16 sps:$4 sm:$0xff]   ;;  %v11347_v50 = vld [vmem:[#allocation5 + $0xa4c] ss:$16 sps:$4 sm:$0xff]   ;;  %v11350_v57 = vld [vmem:[#allocation5 + $0xa64] ss:$16 sps:$4 sm:$0xff]  }
 0x287   : > { %5575 = vmatpush1.bf16.msra.mxu0 %v11222_v8  ;;  %v11285_v8 = vld [vmem:[#allocation5 + $0x908] ss:$16 sps:$4 sm:$0xff]  }
 0x288   : > { %5657 = vmatpush1.bf16.msra.mxu1 %v11225_v27  ;;  %5576 = vmatprep.subr.bf16.mxu0 %v11230_v21  ;;  %v4990_v27 = vshrl.u32 %v13928_v37, 16  ;;  %v11290_v21 = vld [vmem:[#allocation5 + $0x924] ss:$16 sps:$4 sm:$0xff]  }
 0x289   : > { %5658 = vmatprep.subr.bf16.mxu1 %v11233_v25 }
 0x28a   : > { %v13953_v25 = vor.u32 %v4994_v55, %v4990_v27  ;;  %v4986_v55 = vshll.u32 %v13938_v38, 16  ;;  %v11351_v27 = vld [vmem:[#allocation5 + $0xa68] ss:$16 sps:$4 sm:$0xff]  }
 0x28b   : > { %5577 = vmatpush1.bf16.msra.mxu0 %v11228_v35  ;;  %v11293_v35 = vld [vmem:[#allocation5 + $0x92c] ss:$16 sps:$4 sm:$0xff]  }
 0x28c   : > { %5659 = vmatpush1.bf16.msra.mxu1 %v11231_v14  ;;  %5578 = vmatprep.subr.bf16.mxu0 %v11236_v42  ;;  %v11288_v14 = vld [vmem:[#allocation5 + $0x920] ss:$16 sps:$4 sm:$0xff]   ;;  %v11291_v42 = vld [vmem:[#allocation5 + $0x928] ss:$16 sps:$4 sm:$0xff]  }
 0x28d   : > { %5660 = vmatprep.subr.bf16.mxu1 %v11239_v48  ;;  %v11296_v48 = vld [vmem:[#allocation5 + $0x944] ss:$16 sps:$4 sm:$0xff]  }
 0x28f   : > { %5579 = vmatpush1.bf16.msra.mxu0 %v11234_v41  ;;  %v11299_v41 = vld [vmem:[#allocation5 + $0x94c] ss:$16 sps:$4 sm:$0xff]  }
 0x290   : > { %5661 = vmatpush1.bf16.msra.mxu1 %v11237_v1  ;;  %5580 = vmatprep.subr.bf16.mxu0 %v11242_v44  ;;  %v11294_v1 = vld [vmem:[#allocation5 + $0x940] ss:$16 sps:$4 sm:$0xff]   ;;  %v11297_v44 = vld [vmem:[#allocation5 + $0x948] ss:$16 sps:$4 sm:$0xff]  }
 0x291   : > { %5662 = vmatprep.subr.bf16.mxu1 %v11245_v29  ;;  %v11302_v29 = vld [vmem:[#allocation5 + $0x964] ss:$16 sps:$4 sm:$0xff]  }
 0x293   : > { %5581 = vmatpush1.bf16.msra.mxu0 %v11240_v59  ;;  %v11305_v59 = vld [vmem:[#allocation5 + $0x96c] ss:$16 sps:$4 sm:$0xff]  }
 0x294   : > { %5663 = vmatpush1.bf16.msra.mxu1 %v11243_v61  ;;  %5582 = vmatprep.subr.bf16.mxu0 %v11248_v4  ;;  %v11300_v61 = vld [vmem:[#allocation5 + $0x960] ss:$16 sps:$4 sm:$0xff]   ;;  %v11303_v4 = vld [vmem:[#allocation5 + $0x968] ss:$16 sps:$4 sm:$0xff]  }
 0x295   : > { %5664 = vmatprep.subr.bf16.mxu1 %v11251_v54  ;;  %v11308_v54 = vld [vmem:[#allocation5 + $0x984] ss:$16 sps:$4 sm:$0xff]  }
 0x297   : > { %5583 = vmatpush1.bf16.msra.mxu0 %v11246_v28  ;;  %v11311_v28 = vld [vmem:[#allocation5 + $0x98c] ss:$16 sps:$4 sm:$0xff]  }
 0x298   : > { %5665 = vmatpush1.bf16.msra.mxu1 %v11249_v3  ;;  %5584 = vmatprep.subr.bf16.mxu0 %v11254_v9  ;;  %v11306_v3 = vld [vmem:[#allocation5 + $0x980] ss:$16 sps:$4 sm:$0xff]   ;;  %v11309_v9 = vld [vmem:[#allocation5 + $0x988] ss:$16 sps:$4 sm:$0xff]  }
 0x299   : > { %5666 = vmatprep.subr.bf16.mxu1 %v11257_v63  ;;  %v11314_v63 = vld [vmem:[#allocation5 + $0x9a4] ss:$16 sps:$4 sm:$0xff]  }
 0x29b   : > { %5585 = vmatpush1.bf16.msra.mxu0 %v11252_v10  ;;  %v11317_v10 = vld [vmem:[#allocation5 + $0x9ac] ss:$16 sps:$4 sm:$0xff]  }
 0x29c   : > { %5667 = vmatpush1.bf16.msra.mxu1 %v11255_v26  ;;  %5586 = vmatprep.subr.bf16.mxu0 %v11260_v13  ;;  %v11312_v26 = vld [vmem:[#allocation5 + $0x9a0] ss:$16 sps:$4 sm:$0xff]   ;;  %v11315_v13 = vld [vmem:[#allocation5 + $0x9a8] ss:$16 sps:$4 sm:$0xff]  }
 0x29d   : > { %5668 = vmatprep.subr.bf16.mxu1 %v11263_v15  ;;  %v11320_v15 = vld [vmem:[#allocation5 + $0x9c4] ss:$16 sps:$4 sm:$0xff]  }
 0x29f   : > { %5587 = vmatpush1.bf16.msra.mxu0 %v11258_v43  ;;  %v11323_v43 = vld [vmem:[#allocation5 + $0x9cc] ss:$16 sps:$4 sm:$0xff]  }
 0x2a0   : > { %5669 = vmatpush1.bf16.msra.mxu1 %v11261_v46  ;;  %5588 = vmatprep.subr.bf16.mxu0 %v11266_v51  ;;  %v11318_v46 = vld [vmem:[#allocation5 + $0x9c0] ss:$16 sps:$4 sm:$0xff]   ;;  %v11321_v51 = vld [vmem:[#allocation5 + $0x9c8] ss:$16 sps:$4 sm:$0xff]  }
 0x2a1   : > { %5670 = vmatprep.subr.bf16.mxu1 %v11269_v30  ;;  %v11326_v30 = vld [vmem:[#allocation5 + $0x9e4] ss:$16 sps:$4 sm:$0xff]  }
 0x2a3   : > { %5589 = vmatpush1.bf16.msra.mxu0 %v11264_v36  ;;  %v11329_v36 = vld [vmem:[#allocation5 + $0x9ec] ss:$16 sps:$4 sm:$0xff]  }
 0x2a4   : > { %5671 = vmatpush1.bf16.msra.mxu1 %v11267_v52  ;;  %5590 = vmatprep.subr.bf16.mxu0 %v11272_v6  ;;  %v11324_v52 = vld [vmem:[#allocation5 + $0x9e0] ss:$16 sps:$4 sm:$0xff]   ;;  %v11327_v6 = vld [vmem:[#allocation5 + $0x9e8] ss:$16 sps:$4 sm:$0xff]  }
 0x2a5   : > { %5672 = vmatprep.subr.bf16.mxu1 %v11275_v0  ;;  %v11332_v0 = vld [vmem:[#allocation5 + $0xa04] ss:$16 sps:$4 sm:$0xff]  }
 0x2a7   : > { %5591 = vmatpush1.bf16.msra.mxu0 %v11270_v11  ;;  %v11335_v11 = vld [vmem:[#allocation5 + $0xa0c] ss:$16 sps:$4 sm:$0xff]  }
 0x2a8   : > { %5673 = vmatpush1.bf16.msra.mxu1 %v11273_v12  ;;  %5592 = vmatprep.subr.bf16.mxu0 %v11278_v20  ;;  %v11330_v12 = vld [vmem:[#allocation5 + $0xa00] ss:$16 sps:$4 sm:$0xff]   ;;  %v11333_v20 = vld [vmem:[#allocation5 + $0xa08] ss:$16 sps:$4 sm:$0xff]  }
 0x2a9   : > { %5674 = vmatprep.subr.bf16.mxu1 %v11281_v33  ;;  %v11341_v33 = vld [vmem:[#allocation5 + $0xa2c] ss:$16 sps:$4 sm:$0xff]  }
 0x2ab   : > { %5593 = vmatpush1.bf16.msra.mxu0 %v11276_v40  ;;  %v11339_v40 = vld [vmem:[#allocation5 + $0xa28] ss:$16 sps:$4 sm:$0xff]  }
 0x2ac   : > { %5675 = vmatpush1.bf16.msra.mxu1 %v11279_v47  ;;  %5603 = vmatprep.subr.bf16.mxu0 %v11284_v23  ;;  %v11344_v47 = vld [vmem:[#allocation5 + $0xa44] ss:$16 sps:$4 sm:$0xff]   ;;  %v11342_v23 = vld [vmem:[#allocation5 + $0xa40] ss:$16 sps:$4 sm:$0xff]  }
 0x2ad   : > { %5685 = vmatprep.subr.bf16.mxu1 %v11287_v56  ;;  %v11345_v56 = vld [vmem:[#allocation5 + $0xa48] ss:$16 sps:$4 sm:$0xff]  }
 0x2ae   : > { %5595 = vmatmul.mubr.bf16.vlgmr.msra.gmra.mrb[32].mxu0 %v13949_v7 }
 0x2af   : > { %5677 = vmatmul.mubr.bf16.vlgmr.msra.gmra.mrb[32].mxu1 %v13949_v7  ;;  %5604 = vmatpush1.bf16.msra.mxu0 %v11282_v2  ;;  %v11353_v2 = vld [vmem:[#allocation5 + $0xa6c] ss:$16 sps:$4 sm:$0xff]  }
 0x2b0   : > { %10066 = vmatprep.mubr.msk.bf16.mxu0 %vm3948_vm13, %v13953_v25  ;;  %5686 = vmatpush1.bf16.msra.mxu1 %v11285_v8  ;;  %v11348_v8 = vld [vmem:[#allocation5 + $0xa60] ss:$16 sps:$4 sm:$0xff]  }
 0x2b1   : > { %10067 = vmatprep.mubr.msk.bf16.mxu1 %vm3948_vm13, %v13953_v25  ;;  %5605 = vmatprep.subr.bf16.mxu0 %v11290_v21  ;;  %v4988_v21 = vrot.slane %v4986_v55, 1  ;;  %v11408_v55 = vld [vmem:[#allocation5 + $0xf20] ss:$16 sps:$4 sm:$0xff]  }
 0x2b2   : > { %5687 = vmatprep.subr.bf16.mxu1 %v11293_v35  ;;  %v11356_v35 = vld [vmem:[#allocation5 + $0xe04] ss:$16 sps:$4 sm:$0xff]  }
 0x2b3   : > { %5606 = vmatpush1.bf16.msra.mxu0 %v11288_v14  ;;  %v11359_v14 = vld [vmem:[#allocation5 + $0xe0c] ss:$16 sps:$4 sm:$0xff]  }
 0x2b4   : > { %5688 = vmatpush1.bf16.msra.mxu1 %v11291_v42  ;;  %5607 = vmatprep.subr.bf16.mxu0 %v11296_v48  ;;  %v4984_v42 = vshrl.u32 %v13938_v38, 16  ;;  %v11354_v48 = vld [vmem:[#allocation5 + $0xe00] ss:$16 sps:$4 sm:$0xff]  }
 0x2b5   : > { %5689 = vmatprep.subr.bf16.mxu1 %v11299_v41 }
 0x2b6   : > { %v13962_v41 = vor.u32 %v4988_v21, %v4984_v42  ;;  %v11414_v21 = vld [vmem:[#allocation5 + $0xf40] ss:$16 sps:$4 sm:$0xff]   ;;  %v11425_v42 = vld [vmem:[#allocation5 + $0xf6c] ss:$16 sps:$4 sm:$0xff]  }
 0x2b7   : > { %5608 = vmatpush1.bf16.msra.mxu0 %v11294_v1  ;;  %v11357_v1 = vld [vmem:[#allocation5 + $0xe08] ss:$16 sps:$4 sm:$0xff]  }
 0x2b8   : > { %5690 = vmatpush1.bf16.msra.mxu1 %v11297_v44  ;;  %5609 = vmatprep.subr.bf16.mxu0 %v11302_v29  ;;  %v11362_v44 = vld [vmem:[#allocation5 + $0xe24] ss:$16 sps:$4 sm:$0xff]   ;;  %v11365_v29 = vld [vmem:[#allocation5 + $0xe2c] ss:$16 sps:$4 sm:$0xff]  }
 0x2b9   : > { %5691 = vmatprep.subr.bf16.mxu1 %v11305_v59  ;;  %v11360_v59 = vld [vmem:[#allocation5 + $0xe20] ss:$16 sps:$4 sm:$0xff]  }
 0x2bb   : > { %5610 = vmatpush1.bf16.msra.mxu0 %v11300_v61  ;;  %v11363_v61 = vld [vmem:[#allocation5 + $0xe28] ss:$16 sps:$4 sm:$0xff]  }
 0x2bc   : > { %5692 = vmatpush1.bf16.msra.mxu1 %v11303_v4  ;;  %5611 = vmatprep.subr.bf16.mxu0 %v11308_v54  ;;  %v11368_v4 = vld [vmem:[#allocation5 + $0xe44] ss:$16 sps:$4 sm:$0xff]   ;;  %v11371_v54 = vld [vmem:[#allocation5 + $0xe4c] ss:$16 sps:$4 sm:$0xff]  }
 0x2bd   : > { %5693 = vmatprep.subr.bf16.mxu1 %v11311_v28  ;;  %v11366_v28 = vld [vmem:[#allocation5 + $0xe40] ss:$16 sps:$4 sm:$0xff]  }
 0x2bf   : > { %5612 = vmatpush1.bf16.msra.mxu0 %v11306_v3  ;;  %v11369_v3 = vld [vmem:[#allocation5 + $0xe48] ss:$16 sps:$4 sm:$0xff]  }
 0x2c0   : > { %5694 = vmatpush1.bf16.msra.mxu1 %v11309_v9  ;;  %5613 = vmatprep.subr.bf16.mxu0 %v11314_v63  ;;  %v11374_v9 = vld [vmem:[#allocation5 + $0xe64] ss:$16 sps:$4 sm:$0xff]   ;;  %v11377_v63 = vld [vmem:[#allocation5 + $0xe6c] ss:$16 sps:$4 sm:$0xff]  }
 0x2c1   : > { %5695 = vmatprep.subr.bf16.mxu1 %v11317_v10  ;;  %v11372_v10 = vld [vmem:[#allocation5 + $0xe60] ss:$16 sps:$4 sm:$0xff]  }
 0x2c3   : > { %5614 = vmatpush1.bf16.msra.mxu0 %v11312_v26  ;;  %v11375_v26 = vld [vmem:[#allocation5 + $0xe68] ss:$16 sps:$4 sm:$0xff]  }
 0x2c4   : > { %5696 = vmatpush1.bf16.msra.mxu1 %v11315_v13  ;;  %5615 = vmatprep.subr.bf16.mxu0 %v11320_v15  ;;  %v11380_v13 = vld [vmem:[#allocation5 + $0xe84] ss:$16 sps:$4 sm:$0xff]   ;;  %v11383_v15 = vld [vmem:[#allocation5 + $0xe8c] ss:$16 sps:$4 sm:$0xff]  }
 0x2c5   : > { %5697 = vmatprep.subr.bf16.mxu1 %v11323_v43  ;;  %v11378_v43 = vld [vmem:[#allocation5 + $0xe80] ss:$16 sps:$4 sm:$0xff]  }
 0x2c7   : > { %5616 = vmatpush1.bf16.msra.mxu0 %v11318_v46  ;;  %v11381_v46 = vld [vmem:[#allocation5 + $0xe88] ss:$16 sps:$4 sm:$0xff]  }
 0x2c8   : > { %5698 = vmatpush1.bf16.msra.mxu1 %v11321_v51  ;;  %5617 = vmatprep.subr.bf16.mxu0 %v11326_v30  ;;  %v11386_v51 = vld [vmem:[#allocation5 + $0xea4] ss:$16 sps:$4 sm:$0xff]   ;;  %v11389_v30 = vld [vmem:[#allocation5 + $0xeac] ss:$16 sps:$4 sm:$0xff]  }
 0x2c9   : > { %5699 = vmatprep.subr.bf16.mxu1 %v11329_v36  ;;  %v11384_v36 = vld [vmem:[#allocation5 + $0xea0] ss:$16 sps:$4 sm:$0xff]  }
 0x2cb   : > { %5618 = vmatpush1.bf16.msra.mxu0 %v11324_v52  ;;  %v11387_v52 = vld [vmem:[#allocation5 + $0xea8] ss:$16 sps:$4 sm:$0xff]  }
 0x2cc   : > { %5700 = vmatpush1.bf16.msra.mxu1 %v11327_v6  ;;  %5619 = vmatprep.subr.bf16.mxu0 %v11332_v0  ;;  %v11392_v6 = vld [vmem:[#allocation5 + $0xec4] ss:$16 sps:$4 sm:$0xff]   ;;  %v11395_v0 = vld [vmem:[#allocation5 + $0xecc] ss:$16 sps:$4 sm:$0xff]  }
 0x2cd   : > { %5701 = vmatprep.subr.bf16.mxu1 %v11335_v11  ;;  %v11390_v11 = vld [vmem:[#allocation5 + $0xec0] ss:$16 sps:$4 sm:$0xff]  }
 0x2cf   : > { %5620 = vmatpush1.bf16.msra.mxu0 %v11330_v12  ;;  %v11393_v12 = vld [vmem:[#allocation5 + $0xec8] ss:$16 sps:$4 sm:$0xff]  }
 0x2d0   : > { %5702 = vmatpush1.bf16.msra.mxu1 %v11333_v20  ;;  %5621 = vmatprep.subr.bf16.mxu0 %v11338_v32  ;;  %v11398_v20 = vld [vmem:[#allocation5 + $0xee4] ss:$16 sps:$4 sm:$0xff]   ;;  %v11401_v32 = vld [vmem:[#allocation5 + $0xeec] ss:$16 sps:$4 sm:$0xff]  }
 0x2d1   : > { %5703 = vmatprep.subr.bf16.mxu1 %v11341_v33  ;;  %v11396_v33 = vld [vmem:[#allocation5 + $0xee0] ss:$16 sps:$4 sm:$0xff]  }
 0x2d3   : > { %5622 = vmatpush1.bf16.msra.mxu0 %v11336_v34  ;;  %v11399_v34 = vld [vmem:[#allocation5 + $0xee8] ss:$16 sps:$4 sm:$0xff]  }
 0x2d4   : > { %5704 = vmatpush1.bf16.msra.mxu1 %v11339_v40  ;;  %5623 = vmatprep.subr.bf16.mxu0 %v11344_v47  ;;  %v11404_v40 = vld [vmem:[#allocation5 + $0xf04] ss:$16 sps:$4 sm:$0xff]   ;;  %v11407_v47 = vld [vmem:[#allocation5 + $0xf0c] ss:$16 sps:$4 sm:$0xff]  }
 0x2d5   : > { %5705 = vmatprep.subr.bf16.mxu1 %v11347_v50  ;;  %v11402_v50 = vld [vmem:[#allocation5 + $0xf00] ss:$16 sps:$4 sm:$0xff]  }
 0x2d7   : > { %5624 = vmatpush1.bf16.msra.mxu0 %v11342_v23  ;;  %v11405_v23 = vld [vmem:[#allocation5 + $0xf08] ss:$16 sps:$4 sm:$0xff]  }
 0x2d8   : > { %5706 = vmatpush1.bf16.msra.mxu1 %v11345_v56  ;;  %5625 = vmatprep.subr.bf16.mxu0 %v11350_v57  ;;  %v11410_v56 = vld [vmem:[#allocation5 + $0xf24] ss:$16 sps:$4 sm:$0xff]   ;;  %v11413_v57 = vld [vmem:[#allocation5 + $0xf2c] ss:$16 sps:$4 sm:$0xff]  }
 0x2d9   : > { %5707 = vmatprep.subr.bf16.mxu1 %v11353_v2  ;;  %v11411_v2 = vld [vmem:[#allocation5 + $0xf28] ss:$16 sps:$4 sm:$0xff]  }
 0x2db   : > { %5626 = vmatpush1.bf16.msra.mxu0 %v11348_v8  ;;  %v11416_v8 = vld [vmem:[#allocation5 + $0xf44] ss:$16 sps:$4 sm:$0xff]  }
 0x2dc   : > { %5708 = vmatpush1.bf16.msra.mxu1 %v11351_v27  ;;  %6516 = vmatprep.subr.bf16.mxu0 %v11356_v35  ;;  %v11419_v27 = vld [vmem:[#allocation5 + $0xf4c] ss:$16 sps:$4 sm:$0xff]   ;;  %v11417_v35 = vld [vmem:[#allocation5 + $0xf48] ss:$16 sps:$4 sm:$0xff]  }
 0x2dd   : > { %6598 = vmatprep.subr.bf16.mxu1 %v11359_v14  ;;  %v11422_v14 = vld [vmem:[#allocation5 + $0xf64] ss:$16 sps:$4 sm:$0xff]  }
 0x2de   : > { %5636 = vmatmul.mubr.bf16.vlgmr.msra.gmra.mrb[32].mxu0 %v13962_v41 }
 0x2df   : > { %5718 = vmatmul.mubr.bf16.vlgmr.msra.gmra.mrb[32].mxu1 %v13962_v41  ;;  %6517 = vmatpush1.bf16.msra.mxu0 %v11354_v48  ;;  %v11420_v48 = vld [vmem:[#allocation5 + $0xf60] ss:$16 sps:$4 sm:$0xff]  }
 0x2e0   : > { %6548 = vmatprep.mubr.bf16.mxu0 %v13833_v62  ;;  %6599 = vmatpush1.bf16.msra.mxu1 %v11357_v1  ;;  %v11423_v1 = vld [vmem:[#allocation5 + $0xf68] ss:$16 sps:$4 sm:$0xff]  }
 0x2e1   : > { %6630 = vmatprep.mubr.bf16.mxu1 %v13833_v62  ;;  %6518 = vmatprep.subr.bf16.mxu0 %v11362_v44  ;;  %v11428_v44 = vld [vmem:[#allocation5 + $0xf84] ss:$16 sps:$4 sm:$0xff]  }
 0x2e2   : > { %6600 = vmatprep.subr.bf16.mxu1 %v11365_v29  ;;  %v11431_v29 = vld [vmem:[#allocation5 + $0xf8c] ss:$16 sps:$4 sm:$0xff]  }
 0x2e3   : > { %6519 = vmatpush1.bf16.msra.mxu0 %v11360_v59  ;;  %v11426_v59 = vld [vmem:[#allocation5 + $0xf80] ss:$16 sps:$4 sm:$0xff]  }
 0x2e4   : > { %6601 = vmatpush1.bf16.msra.mxu1 %v11363_v61  ;;  %6520 = vmatprep.subr.bf16.mxu0 %v11368_v4  ;;  %v11429_v61 = vld [vmem:[#allocation5 + $0xf88] ss:$16 sps:$4 sm:$0xff]   ;;  %v11434_v4 = vld [vmem:[#allocation5 + $0xfa4] ss:$16 sps:$4 sm:$0xff]  }
 0x2e5   : > { %6602 = vmatprep.subr.bf16.mxu1 %v11371_v54  ;;  %v11437_v54 = vld [vmem:[#allocation5 + $0xfac] ss:$16 sps:$4 sm:$0xff]  }
 0x2e7   : > { %6521 = vmatpush1.bf16.msra.mxu0 %v11366_v28  ;;  %v11432_v28 = vld [vmem:[#allocation5 + $0xfa0] ss:$16 sps:$4 sm:$0xff]  }
 0x2e8   : > { %6603 = vmatpush1.bf16.msra.mxu1 %v11369_v3  ;;  %6522 = vmatprep.subr.bf16.mxu0 %v11374_v9  ;;  %v11435_v3 = vld [vmem:[#allocation5 + $0xfa8] ss:$16 sps:$4 sm:$0xff]   ;;  %v11440_v9 = vld [vmem:[#allocation5 + $0xfc4] ss:$16 sps:$4 sm:$0xff]  }
 0x2e9   : > { %6604 = vmatprep.subr.bf16.mxu1 %v11377_v63  ;;  %v11443_v63 = vld [vmem:[#allocation5 + $0xfcc] ss:$16 sps:$4 sm:$0xff]  }
 0x2eb   : > { %6523 = vmatpush1.bf16.msra.mxu0 %v11372_v10  ;;  %v11438_v10 = vld [vmem:[#allocation5 + $0xfc0] ss:$16 sps:$4 sm:$0xff]  }
 0x2ec   : > { %6605 = vmatpush1.bf16.msra.mxu1 %v11375_v26  ;;  %6524 = vmatprep.subr.bf16.mxu0 %v11380_v13  ;;  %v11441_v26 = vld [vmem:[#allocation5 + $0xfc8] ss:$16 sps:$4 sm:$0xff]   ;;  %v11446_v13 = vld [vmem:[#allocation5 + $0xfe4] ss:$16 sps:$4 sm:$0xff]  }
 0x2ed   : > { %6606 = vmatprep.subr.bf16.mxu1 %v11383_v15  ;;  %v11449_v15 = vld [vmem:[#allocation5 + $0xfec] ss:$16 sps:$4 sm:$0xff]  }
 0x2ef   : > { %6525 = vmatpush1.bf16.msra.mxu0 %v11378_v43  ;;  %v11444_v43 = vld [vmem:[#allocation5 + $0xfe0] ss:$16 sps:$4 sm:$0xff]  }
 0x2f0   : > { %6607 = vmatpush1.bf16.msra.mxu1 %v11381_v46  ;;  %6526 = vmatprep.subr.bf16.mxu0 %v11386_v51  ;;  %v11447_v46 = vld [vmem:[#allocation5 + $0xfe8] ss:$16 sps:$4 sm:$0xff]   ;;  %v11452_v51 = vld [vmem:[#allocation5 + $0x1004] ss:$16 sps:$4 sm:$0xff]  }
 0x2f1   : > { %6608 = vmatprep.subr.bf16.mxu1 %v11389_v30  ;;  %v11455_v30 = vld [vmem:[#allocation5 + $0x100c] ss:$16 sps:$4 sm:$0xff]  }
 0x2f3   : > { %6527 = vmatpush1.bf16.msra.mxu0 %v11384_v36  ;;  %v11450_v36 = vld [vmem:[#allocation5 + $0x1000] ss:$16 sps:$4 sm:$0xff]  }
 0x2f4   : > { %6609 = vmatpush1.bf16.msra.mxu1 %v11387_v52  ;;  %6528 = vmatprep.subr.bf16.mxu0 %v11392_v6  ;;  %v11453_v52 = vld [vmem:[#allocation5 + $0x1008] ss:$16 sps:$4 sm:$0xff]   ;;  %v11458_v6 = vld [vmem:[#allocation5 + $0x1024] ss:$16 sps:$4 sm:$0xff]  }
 0x2f5   : > { %6610 = vmatprep.subr.bf16.mxu1 %v11395_v0  ;;  %v11461_v0 = vld [vmem:[#allocation5 + $0x102c] ss:$16 sps:$4 sm:$0xff]  }
 0x2f7   : > { %6529 = vmatpush1.bf16.msra.mxu0 %v11390_v11  ;;  %v11456_v11 = vld [vmem:[#allocation5 + $0x1020] ss:$16 sps:$4 sm:$0xff]  }
 0x2f8   : > { %6611 = vmatpush1.bf16.msra.mxu1 %v11393_v12  ;;  %6530 = vmatprep.subr.bf16.mxu0 %v11398_v20  ;;  %v11459_v12 = vld [vmem:[#allocation5 + $0x1028] ss:$16 sps:$4 sm:$0xff]   ;;  %v11464_v20 = vld [vmem:[#allocation5 + $0x1044] ss:$16 sps:$4 sm:$0xff]  }
 0x2f9   : > { %6612 = vmatprep.subr.bf16.mxu1 %v11401_v32  ;;  %v11467_v32 = vld [vmem:[#allocation5 + $0x104c] ss:$16 sps:$4 sm:$0xff]  }
 0x2fb   : > { %6531 = vmatpush1.bf16.msra.mxu0 %v11396_v33  ;;  %v11462_v33 = vld [vmem:[#allocation5 + $0x1040] ss:$16 sps:$4 sm:$0xff]  }
 0x2fc   : > { %6613 = vmatpush1.bf16.msra.mxu1 %v11399_v34  ;;  %6532 = vmatprep.subr.bf16.mxu0 %v11404_v40  ;;  %v11465_v34 = vld [vmem:[#allocation5 + $0x1048] ss:$16 sps:$4 sm:$0xff]   ;;  %v11470_v40 = vld [vmem:[#allocation5 + $0x1064] ss:$16 sps:$4 sm:$0xff]  }
 0x2fd   : > { %6614 = vmatprep.subr.bf16.mxu1 %v11407_v47  ;;  %v11473_v47 = vld [vmem:[#allocation5 + $0x106c] ss:$16 sps:$4 sm:$0xff]  }
 0x2ff   : > { %6533 = vmatpush1.bf16.msra.mxu0 %v11402_v50  ;;  %v11468_v50 = vld [vmem:[#allocation5 + $0x1060] ss:$16 sps:$4 sm:$0xff]  }
 0x300   : > { %6615 = vmatpush1.bf16.msra.mxu1 %v11405_v23  ;;  %6534 = vmatprep.subr.bf16.mxu0 %v11410_v56  ;;  %v11471_v23 = vld [vmem:[#allocation5 + $0x1068] ss:$16 sps:$4 sm:$0xff]   ;;  %v11476_v56 = vld [vmem:[#allocation5 + $0x1084] ss:$16 sps:$4 sm:$0xff]  }
 0x301   : > { %6616 = vmatprep.subr.bf16.mxu1 %v11413_v57  ;;  %v11479_v57 = vld [vmem:[#allocation5 + $0x108c] ss:$16 sps:$4 sm:$0xff]  }
 0x303   : > { %6535 = vmatpush1.bf16.msra.mxu0 %v11408_v55  ;;  %v11474_v55 = vld [vmem:[#allocation5 + $0x1080] ss:$16 sps:$4 sm:$0xff]  }
 0x304   : > { %6617 = vmatpush1.bf16.msra.mxu1 %v11411_v2  ;;  %6536 = vmatprep.subr.bf16.mxu0 %v11416_v8  ;;  %v11477_v2 = vld [vmem:[#allocation5 + $0x1088] ss:$16 sps:$4 sm:$0xff]   ;;  %v11482_v8 = vld [vmem:[#allocation5 + $0x10a4] ss:$16 sps:$4 sm:$0xff]  }
 0x305   : > { %6618 = vmatprep.subr.bf16.mxu1 %v11419_v27  ;;  %v11485_v27 = vld [vmem:[#allocation5 + $0x10ac] ss:$16 sps:$4 sm:$0xff]  }
 0x307   : > { %6537 = vmatpush1.bf16.msra.mxu0 %v11414_v21  ;;  %v11480_v21 = vld [vmem:[#allocation5 + $0x10a0] ss:$16 sps:$4 sm:$0xff]  }
 0x308   : > { %6619 = vmatpush1.bf16.msra.mxu1 %v11417_v35  ;;  %6538 = vmatprep.subr.bf16.mxu0 %v11422_v14  ;;  %v11483_v35 = vld [vmem:[#allocation5 + $0x10a8] ss:$16 sps:$4 sm:$0xff]   ;;  %v11488_v14 = vld [vmem:[#allocation5 + $0x10c4] ss:$16 sps:$4 sm:$0xff]  }
 0x309   : > { %6620 = vmatprep.subr.bf16.mxu1 %v11425_v42  ;;  %v11491_v42 = vld [vmem:[#allocation5 + $0x10cc] ss:$16 sps:$4 sm:$0xff]  }
 0x30b   : > { %6539 = vmatpush1.bf16.msra.mxu0 %v11420_v48  ;;  %v11486_v48 = vld [vmem:[#allocation5 + $0x10c0] ss:$16 sps:$4 sm:$0xff]  }
 0x30c   : > { %6621 = vmatpush1.bf16.msra.mxu1 %v11423_v1  ;;  %6540 = vmatprep.subr.bf16.mxu0 %v11428_v44  ;;  %v11489_v1 = vld [vmem:[#allocation5 + $0x10c8] ss:$16 sps:$4 sm:$0xff]   ;;  %v11494_v44 = vld [vmem:[#allocation5 + $0x10e4] ss:$16 sps:$4 sm:$0xff]  }
 0x30d   : > { %6622 = vmatprep.subr.bf16.mxu1 %v11431_v29  ;;  %v11497_v29 = vld [vmem:[#allocation5 + $0x10ec] ss:$16 sps:$4 sm:$0xff]  }
 0x30f   : > { %6541 = vmatpush1.bf16.msra.mxu0 %v11426_v59  ;;  %v11492_v59 = vld [vmem:[#allocation5 + $0x10e0] ss:$16 sps:$4 sm:$0xff]  }
 0x310   : > { %6623 = vmatpush1.bf16.msra.mxu1 %v11429_v61  ;;  %6542 = vmatprep.subr.bf16.mxu0 %v11434_v4  ;;  %v11495_v61 = vld [vmem:[#allocation5 + $0x10e8] ss:$16 sps:$4 sm:$0xff]   ;;  %v11500_v4 = vld [vmem:[#allocation5 + $0x1104] ss:$16 sps:$4 sm:$0xff]  }
 0x311   : > { %6624 = vmatprep.subr.bf16.mxu1 %v11437_v54  ;;  %v11503_v54 = vld [vmem:[#allocation5 + $0x110c] ss:$16 sps:$4 sm:$0xff]  }
 0x313   : > { %6543 = vmatpush1.bf16.msra.mxu0 %v11432_v28  ;;  %v11498_v28 = vld [vmem:[#allocation5 + $0x1100] ss:$16 sps:$4 sm:$0xff]  }
 0x314   : > { %6625 = vmatpush1.bf16.msra.mxu1 %v11435_v3  ;;  %6544 = vmatprep.subr.bf16.mxu0 %v11440_v9  ;;  %v11501_v3 = vld [vmem:[#allocation5 + $0x1108] ss:$16 sps:$4 sm:$0xff]   ;;  %v11506_v9 = vld [vmem:[#allocation5 + $0x1124] ss:$16 sps:$4 sm:$0xff]  }
 0x315   : > { %6626 = vmatprep.subr.bf16.mxu1 %v11443_v63  ;;  %v11509_v63 = vld [vmem:[#allocation5 + $0x112c] ss:$16 sps:$4 sm:$0xff]  }
 0x317   : > { %6545 = vmatpush1.bf16.msra.mxu0 %v11438_v10  ;;  %v11504_v10 = vld [vmem:[#allocation5 + $0x1120] ss:$16 sps:$4 sm:$0xff]  }
 0x318   : > { %6627 = vmatpush1.bf16.msra.mxu1 %v11441_v26  ;;  %6546 = vmatprep.subr.bf16.mxu0 %v11446_v13  ;;  %v11507_v26 = vld [vmem:[#allocation5 + $0x1128] ss:$16 sps:$4 sm:$0xff]   ;;  %v11512_v13 = vld [vmem:[#allocation5 + $0x1144] ss:$16 sps:$4 sm:$0xff]  }
 0x319   : > { %6628 = vmatprep.subr.bf16.mxu1 %v11449_v15  ;;  %v11515_v15 = vld [vmem:[#allocation5 + $0x114c] ss:$16 sps:$4 sm:$0xff]  }
 0x31b   : > { %6547 = vmatpush1.bf16.msra.mxu0 %v11444_v43  ;;  %v11510_v43 = vld [vmem:[#allocation5 + $0x1140] ss:$16 sps:$4 sm:$0xff]  }
 0x31c   : > { %6629 = vmatpush1.bf16.msra.mxu1 %v11447_v46  ;;  %6557 = vmatprep.subr.bf16.mxu0 %v11452_v51  ;;  %v11513_v46 = vld [vmem:[#allocation5 + $0x1148] ss:$16 sps:$4 sm:$0xff]   ;;  %v11518_v51 = vld [vmem:[#allocation5 + $0x1164] ss:$16 sps:$4 sm:$0xff]  }
 0x31d   : > { %6639 = vmatprep.subr.bf16.mxu1 %v11455_v30  ;;  %v11521_v30 = vld [vmem:[#allocation5 + $0x116c] ss:$16 sps:$4 sm:$0xff]  }
 0x31e   : > { %6549 = vmatmul.mubr.bf16.vlgmr.msra.gmra.mrb[36].mxu0 %v13831_v58 }
 0x31f   : > { %6631 = vmatmul.mubr.bf16.vlgmr.msra.gmra.mrb[36].mxu1 %v13831_v58  ;;  %6558 = vmatpush1.bf16.msra.mxu0 %v11450_v36  ;;  %v11516_v36 = vld [vmem:[#allocation5 + $0x1160] ss:$16 sps:$4 sm:$0xff]  }
 0x320   : > { %10180 = vmatprep.mubr.msk.bf16.mxu0 %vm3948_vm13, %v13840_v19  ;;  %6640 = vmatpush1.bf16.msra.mxu1 %v11453_v52  ;;  %v11519_v52 = vld [vmem:[#allocation5 + $0x1168] ss:$16 sps:$4 sm:$0xff]  }
 0x321   : > { %10181 = vmatprep.mubr.msk.bf16.mxu1 %vm3948_vm13, %v13840_v19  ;;  %6559 = vmatprep.subr.bf16.mxu0 %v11458_v6  ;;  %v11524_v6 = vld [vmem:[#allocation5 + $0xa84] ss:$16 sps:$4 sm:$0xff]  }
 0x322   : > { %6641 = vmatprep.subr.bf16.mxu1 %v11461_v0  ;;  %v11527_v0 = vld [vmem:[#allocation5 + $0xa8c] ss:$16 sps:$4 sm:$0xff]  }
 0x323   : > { %6560 = vmatpush1.bf16.msra.mxu0 %v11456_v11  ;;  %v11522_v11 = vld [vmem:[#allocation5 + $0xa80] ss:$16 sps:$4 sm:$0xff]  }
 0x324   : > { %6642 = vmatpush1.bf16.msra.mxu1 %v11459_v12  ;;  %6561 = vmatprep.subr.bf16.mxu0 %v11464_v20  ;;  %v11525_v12 = vld [vmem:[#allocation5 + $0xa88] ss:$16 sps:$4 sm:$0xff]   ;;  %v11530_v20 = vld [vmem:[#allocation5 + $0xaa4] ss:$16 sps:$4 sm:$0xff]  }
 0x325   : > { %6643 = vmatprep.subr.bf16.mxu1 %v11467_v32  ;;  %v11533_v32 = vld [vmem:[#allocation5 + $0xaac] ss:$16 sps:$4 sm:$0xff]  }
 0x327   : > { %6562 = vmatpush1.bf16.msra.mxu0 %v11462_v33  ;;  %v11528_v33 = vld [vmem:[#allocation5 + $0xaa0] ss:$16 sps:$4 sm:$0xff]  }
 0x328   : > { %6644 = vmatpush1.bf16.msra.mxu1 %v11465_v34  ;;  %6563 = vmatprep.subr.bf16.mxu0 %v11470_v40  ;;  %v11531_v34 = vld [vmem:[#allocation5 + $0xaa8] ss:$16 sps:$4 sm:$0xff]   ;;  %v11536_v40 = vld [vmem:[#allocation5 + $0xac4] ss:$16 sps:$4 sm:$0xff]  }
 0x329   : > { %6645 = vmatprep.subr.bf16.mxu1 %v11473_v47  ;;  %v11539_v47 = vld [vmem:[#allocation5 + $0xacc] ss:$16 sps:$4 sm:$0xff]  }
 0x32b   : > { %6564 = vmatpush1.bf16.msra.mxu0 %v11468_v50  ;;  %v11534_v50 = vld [vmem:[#allocation5 + $0xac0] ss:$16 sps:$4 sm:$0xff]  }
 0x32c   : > { %6646 = vmatpush1.bf16.msra.mxu1 %v11471_v23  ;;  %6565 = vmatprep.subr.bf16.mxu0 %v11476_v56  ;;  %v11537_v23 = vld [vmem:[#allocation5 + $0xac8] ss:$16 sps:$4 sm:$0xff]   ;;  %v11542_v56 = vld [vmem:[#allocation5 + $0xae4] ss:$16 sps:$4 sm:$0xff]  }
 0x32d   : > { %6647 = vmatprep.subr.bf16.mxu1 %v11479_v57  ;;  %v11545_v57 = vld [vmem:[#allocation5 + $0xaec] ss:$16 sps:$4 sm:$0xff]  }
 0x32f   : > { %6566 = vmatpush1.bf16.msra.mxu0 %v11474_v55  ;;  %v11540_v55 = vld [vmem:[#allocation5 + $0xae0] ss:$16 sps:$4 sm:$0xff]  }
 0x330   : > { %6648 = vmatpush1.bf16.msra.mxu1 %v11477_v2  ;;  %6567 = vmatprep.subr.bf16.mxu0 %v11482_v8  ;;  %v11543_v2 = vld [vmem:[#allocation5 + $0xae8] ss:$16 sps:$4 sm:$0xff]   ;;  %v11548_v8 = vld [vmem:[#allocation5 + $0xb04] ss:$16 sps:$4 sm:$0xff]  }
 0x331   : > { %6649 = vmatprep.subr.bf16.mxu1 %v11485_v27  ;;  %v11551_v27 = vld [vmem:[#allocation5 + $0xb0c] ss:$16 sps:$4 sm:$0xff]  }
 0x333   : > { %6568 = vmatpush1.bf16.msra.mxu0 %v11480_v21  ;;  %v11549_v21 = vld [vmem:[#allocation5 + $0xb08] ss:$16 sps:$4 sm:$0xff]  }
 0x334   : > { %6650 = vmatpush1.bf16.msra.mxu1 %v11483_v35  ;;  %6569 = vmatprep.subr.bf16.mxu0 %v11488_v14  ;;  %v11554_v35 = vld [vmem:[#allocation5 + $0xb24] ss:$16 sps:$4 sm:$0xff]   ;;  %v11557_v14 = vld [vmem:[#allocation5 + $0xb2c] ss:$16 sps:$4 sm:$0xff]  }
 0x335   : > { %6651 = vmatprep.subr.bf16.mxu1 %v11491_v42  ;;  %v11552_v42 = vld [vmem:[#allocation5 + $0xb20] ss:$16 sps:$4 sm:$0xff]  }
 0x337   : > { %6570 = vmatpush1.bf16.msra.mxu0 %v11486_v48  ;;  %v11555_v48 = vld [vmem:[#allocation5 + $0xb28] ss:$16 sps:$4 sm:$0xff]  }
 0x338   : > { %6652 = vmatpush1.bf16.msra.mxu1 %v11489_v1  ;;  %6571 = vmatprep.subr.bf16.mxu0 %v11494_v44  ;;  %v11560_v1 = vld [vmem:[#allocation5 + $0xb44] ss:$16 sps:$4 sm:$0xff]   ;;  %v11563_v44 = vld [vmem:[#allocation5 + $0xb4c] ss:$16 sps:$4 sm:$0xff]  }
 0x339   : > { %6653 = vmatprep.subr.bf16.mxu1 %v11497_v29  ;;  %v11558_v29 = vld [vmem:[#allocation5 + $0xb40] ss:$16 sps:$4 sm:$0xff]  }
 0x33b   : > { %6572 = vmatpush1.bf16.msra.mxu0 %v11492_v59  ;;  %v11561_v59 = vld [vmem:[#allocation5 + $0xb48] ss:$16 sps:$4 sm:$0xff]  }
 0x33c   : > { %6654 = vmatpush1.bf16.msra.mxu1 %v11495_v61  ;;  %6573 = vmatprep.subr.bf16.mxu0 %v11500_v4  ;;  %v11566_v61 = vld [vmem:[#allocation5 + $0xb64] ss:$16 sps:$4 sm:$0xff]   ;;  %v11569_v4 = vld [vmem:[#allocation5 + $0xb6c] ss:$16 sps:$4 sm:$0xff]  }
 0x33d   : > { %6655 = vmatprep.subr.bf16.mxu1 %v11503_v54  ;;  %v11564_v54 = vld [vmem:[#allocation5 + $0xb60] ss:$16 sps:$4 sm:$0xff]  }
 0x33f   : > { %6574 = vmatpush1.bf16.msra.mxu0 %v11498_v28  ;;  %v11567_v28 = vld [vmem:[#allocation5 + $0xb68] ss:$16 sps:$4 sm:$0xff]  }
 0x340   : > { %6656 = vmatpush1.bf16.msra.mxu1 %v11501_v3  ;;  %6575 = vmatprep.subr.bf16.mxu0 %v11506_v9  ;;  %v11572_v3 = vld [vmem:[#allocation5 + $0xb84] ss:$16 sps:$4 sm:$0xff]   ;;  %v11575_v9 = vld [vmem:[#allocation5 + $0xb8c] ss:$16 sps:$4 sm:$0xff]  }
 0x341   : > { %6657 = vmatprep.subr.bf16.mxu1 %v11509_v63  ;;  %v11570_v63 = vld [vmem:[#allocation5 + $0xb80] ss:$16 sps:$4 sm:$0xff]  }
 0x343   : > { %6576 = vmatpush1.bf16.msra.mxu0 %v11504_v10  ;;  %v11573_v10 = vld [vmem:[#allocation5 + $0xb88] ss:$16 sps:$4 sm:$0xff]  }
 0x344   : > { %6658 = vmatpush1.bf16.msra.mxu1 %v11507_v26  ;;  %6577 = vmatprep.subr.bf16.mxu0 %v11512_v13  ;;  %v11578_v26 = vld [vmem:[#allocation5 + $0xba4] ss:$16 sps:$4 sm:$0xff]   ;;  %v11581_v13 = vld [vmem:[#allocation5 + $0xbac] ss:$16 sps:$4 sm:$0xff]  }
 0x345   : > { %6659 = vmatprep.subr.bf16.mxu1 %v11515_v15  ;;  %v11576_v15 = vld [vmem:[#allocation5 + $0xba0] ss:$16 sps:$4 sm:$0xff]  }
 0x347   : > { %6578 = vmatpush1.bf16.msra.mxu0 %v11510_v43  ;;  %v11579_v43 = vld [vmem:[#allocation5 + $0xba8] ss:$16 sps:$4 sm:$0xff]  }
 0x348   : > { %6660 = vmatpush1.bf16.msra.mxu1 %v11513_v46  ;;  %6579 = vmatprep.subr.bf16.mxu0 %v11518_v51  ;;  %v11584_v46 = vld [vmem:[#allocation5 + $0xbc4] ss:$16 sps:$4 sm:$0xff]   ;;  %v11587_v51 = vld [vmem:[#allocation5 + $0xbcc] ss:$16 sps:$4 sm:$0xff]  }
 0x349   : > { %6661 = vmatprep.subr.bf16.mxu1 %v11521_v30  ;;  %v11582_v30 = vld [vmem:[#allocation5 + $0xbc0] ss:$16 sps:$4 sm:$0xff]  }
 0x34b   : > { %6580 = vmatpush1.bf16.msra.mxu0 %v11516_v36  ;;  %v11585_v36 = vld [vmem:[#allocation5 + $0xbc8] ss:$16 sps:$4 sm:$0xff]  }
 0x34c   : > { %6662 = vmatpush1.bf16.msra.mxu1 %v11519_v52  ;;  %7240 = vmatprep.subr.bf16.mxu0 %v11524_v6  ;;  %v11590_v52 = vld [vmem:[#allocation5 + $0xbe4] ss:$16 sps:$4 sm:$0xff]   ;;  %v11593_v6 = vld [vmem:[#allocation5 + $0xbec] ss:$16 sps:$4 sm:$0xff]  }
 0x34d   : > { %7322 = vmatprep.subr.bf16.mxu1 %v11527_v0  ;;  %v11588_v0 = vld [vmem:[#allocation5 + $0xbe0] ss:$16 sps:$4 sm:$0xff]  }
 0x34e   : > { %6590 = vmatmul.mubr.bf16.vlgmr.msra.gmra.mrb[36].mxu0 %v13858_v49 }
 0x34f   : > { %6672 = vmatmul.mubr.bf16.vlgmr.msra.gmra.mrb[36].mxu1 %v13858_v49  ;;  %7241 = vmatpush1.bf16.msra.mxu0 %v11522_v11  ;;  %v11591_v11 = vld [vmem:[#allocation5 + $0xbe8] ss:$16 sps:$4 sm:$0xff]  }
 0x350   : > { %7272 = vmatprep.mubr.bf16.mxu0 %v13918_v5  ;;  %7323 = vmatpush1.bf16.msra.mxu1 %v11525_v12  ;;  %v11596_v12 = vld [vmem:[#allocation5 + $0xc04] ss:$16 sps:$4 sm:$0xff]  }
 0x351   : > { %7354 = vmatprep.mubr.bf16.mxu1 %v13918_v5  ;;  %7242 = vmatprep.subr.bf16.mxu0 %v11530_v20  ;;  %v11546_v5 = vld [vmem:[#allocation5 + $0xb00] ss:$16 sps:$4 sm:$0xff]   ;;  %v11599_v20 = vld [vmem:[#allocation5 + $0xc0c] ss:$16 sps:$4 sm:$0xff]  }
 0x352   : > { %7324 = vmatprep.subr.bf16.mxu1 %v11533_v32  ;;  %v11594_v32 = vld [vmem:[#allocation5 + $0xc00] ss:$16 sps:$4 sm:$0xff]  }
 0x353   : > { %7243 = vmatpush1.bf16.msra.mxu0 %v11528_v33  ;;  %v11597_v33 = vld [vmem:[#allocation5 + $0xc08] ss:$16 sps:$4 sm:$0xff]  }
 0x354   : > { %7325 = vmatpush1.bf16.msra.mxu1 %v11531_v34  ;;  %7244 = vmatprep.subr.bf16.mxu0 %v11536_v40  ;;  %v11602_v34 = vld [vmem:[#allocation5 + $0xc24] ss:$16 sps:$4 sm:$0xff]   ;;  %v11605_v40 = vld [vmem:[#allocation5 + $0xc2c] ss:$16 sps:$4 sm:$0xff]  }
 0x355   : > { %7326 = vmatprep.subr.bf16.mxu1 %v11539_v47  ;;  %v11600_v47 = vld [vmem:[#allocation5 + $0xc20] ss:$16 sps:$4 sm:$0xff]  }
 0x357   : > { %7245 = vmatpush1.bf16.msra.mxu0 %v11534_v50  ;;  %v11603_v50 = vld [vmem:[#allocation5 + $0xc28] ss:$16 sps:$4 sm:$0xff]  }
 0x358   : > { %7327 = vmatpush1.bf16.msra.mxu1 %v11537_v23  ;;  %7246 = vmatprep.subr.bf16.mxu0 %v11542_v56  ;;  %v11608_v23 = vld [vmem:[#allocation5 + $0xc44] ss:$16 sps:$4 sm:$0xff]   ;;  %v11611_v56 = vld [vmem:[#allocation5 + $0xc4c] ss:$16 sps:$4 sm:$0xff]  }
 0x359   : > { %7328 = vmatprep.subr.bf16.mxu1 %v11545_v57  ;;  %v11606_v57 = vld [vmem:[#allocation5 + $0xc40] ss:$16 sps:$4 sm:$0xff]  }
 0x35b   : > { %7247 = vmatpush1.bf16.msra.mxu0 %v11540_v55  ;;  %v11609_v55 = vld [vmem:[#allocation5 + $0xc48] ss:$16 sps:$4 sm:$0xff]  }
 0x35c   : > { %7329 = vmatpush1.bf16.msra.mxu1 %v11543_v2  ;;  %7248 = vmatprep.subr.bf16.mxu0 %v11548_v8  ;;  %v11614_v2 = vld [vmem:[#allocation5 + $0xc64] ss:$16 sps:$4 sm:$0xff]   ;;  %v11617_v8 = vld [vmem:[#allocation5 + $0xc6c] ss:$16 sps:$4 sm:$0xff]  }
 0x35d   : > { %7330 = vmatprep.subr.bf16.mxu1 %v11551_v27  ;;  %v11612_v27 = vld [vmem:[#allocation5 + $0xc60] ss:$16 sps:$4 sm:$0xff]  }
 0x35f   : > { %7249 = vmatpush1.bf16.msra.mxu0 %v11546_v5  ;;  %v11615_v5 = vld [vmem:[#allocation5 + $0xc68] ss:$16 sps:$4 sm:$0xff]  }
 0x360   : > { %7331 = vmatpush1.bf16.msra.mxu1 %v11549_v21  ;;  %7250 = vmatprep.subr.bf16.mxu0 %v11554_v35  ;;  %v11620_v21 = vld [vmem:[#allocation5 + $0xc84] ss:$16 sps:$4 sm:$0xff]   ;;  %v11623_v35 = vld [vmem:[#allocation5 + $0xc8c] ss:$16 sps:$4 sm:$0xff]  }
 0x361   : > { %7332 = vmatprep.subr.bf16.mxu1 %v11557_v14  ;;  %v11618_v14 = vld [vmem:[#allocation5 + $0xc80] ss:$16 sps:$4 sm:$0xff]  }
 0x363   : > { %7251 = vmatpush1.bf16.msra.mxu0 %v11552_v42  ;;  %v11621_v42 = vld [vmem:[#allocation5 + $0xc88] ss:$16 sps:$4 sm:$0xff]  }
 0x364   : > { %7333 = vmatpush1.bf16.msra.mxu1 %v11555_v48  ;;  %7252 = vmatprep.subr.bf16.mxu0 %v11560_v1  ;;  %v11626_v48 = vld [vmem:[#allocation5 + $0xca4] ss:$16 sps:$4 sm:$0xff]   ;;  %v11629_v1 = vld [vmem:[#allocation5 + $0xcac] ss:$16 sps:$4 sm:$0xff]  }
 0x365   : > { %7334 = vmatprep.subr.bf16.mxu1 %v11563_v44  ;;  %v11624_v44 = vld [vmem:[#allocation5 + $0xca0] ss:$16 sps:$4 sm:$0xff]  }
 0x367   : > { %7253 = vmatpush1.bf16.msra.mxu0 %v11558_v29  ;;  %v11627_v29 = vld [vmem:[#allocation5 + $0xca8] ss:$16 sps:$4 sm:$0xff]  }
 0x368   : > { %7335 = vmatpush1.bf16.msra.mxu1 %v11561_v59  ;;  %7254 = vmatprep.subr.bf16.mxu0 %v11566_v61  ;;  %v11632_v59 = vld [vmem:[#allocation5 + $0xcc4] ss:$16 sps:$4 sm:$0xff]   ;;  %v11635_v61 = vld [vmem:[#allocation5 + $0xccc] ss:$16 sps:$4 sm:$0xff]  }
 0x369   : > { %7336 = vmatprep.subr.bf16.mxu1 %v11569_v4  ;;  %v11630_v4 = vld [vmem:[#allocation5 + $0xcc0] ss:$16 sps:$4 sm:$0xff]  }
 0x36b   : > { %7255 = vmatpush1.bf16.msra.mxu0 %v11564_v54  ;;  %v11633_v54 = vld [vmem:[#allocation5 + $0xcc8] ss:$16 sps:$4 sm:$0xff]  }
 0x36c   : > { %7337 = vmatpush1.bf16.msra.mxu1 %v11567_v28  ;;  %7256 = vmatprep.subr.bf16.mxu0 %v11572_v3  ;;  %v11641_v28 = vld [vmem:[#allocation5 + $0xcec] ss:$16 sps:$4 sm:$0xff]   ;;  %v11636_v3 = vld [vmem:[#allocation5 + $0xce0] ss:$16 sps:$4 sm:$0xff]  }
 0x36d   : > { %7338 = vmatprep.subr.bf16.mxu1 %v11575_v9  ;;  %v11639_v9 = vld [vmem:[#allocation5 + $0xce8] ss:$16 sps:$4 sm:$0xff]  }
 0x36f   : > { %7257 = vmatpush1.bf16.msra.mxu0 %v11570_v63  ;;  %v11644_v63 = vld [vmem:[#allocation5 + $0xd04] ss:$16 sps:$4 sm:$0xff]  }
 0x370   : > { %7339 = vmatpush1.bf16.msra.mxu1 %v11573_v10  ;;  %7258 = vmatprep.subr.bf16.mxu0 %v11578_v26  ;;  %v11647_v10 = vld [vmem:[#allocation5 + $0xd0c] ss:$16 sps:$4 sm:$0xff]   ;;  %v11645_v26 = vld [vmem:[#allocation5 + $0xd08] ss:$16 sps:$4 sm:$0xff]  }
 0x371   : > { %7340 = vmatprep.subr.bf16.mxu1 %v11581_v13  ;;  %v11650_v13 = vld [vmem:[#allocation5 + $0xd24] ss:$16 sps:$4 sm:$0xff]  }
 0x373   : > { %7259 = vmatpush1.bf16.msra.mxu0 %v11576_v15  ;;  %v11653_v15 = vld [vmem:[#allocation5 + $0xd2c] ss:$16 sps:$4 sm:$0xff]  }
 0x374   : > { %7341 = vmatpush1.bf16.msra.mxu1 %v11579_v43  ;;  %7260 = vmatprep.subr.bf16.mxu0 %v11584_v46  ;;  %v11648_v43 = vld [vmem:[#allocation5 + $0xd20] ss:$16 sps:$4 sm:$0xff]   ;;  %v11651_v46 = vld [vmem:[#allocation5 + $0xd28] ss:$16 sps:$4 sm:$0xff]  }
 0x375   : > { %7342 = vmatprep.subr.bf16.mxu1 %v11587_v51  ;;  %v11656_v51 = vld [vmem:[#allocation5 + $0xd44] ss:$16 sps:$4 sm:$0xff]  }
 0x377   : > { %7261 = vmatpush1.bf16.msra.mxu0 %v11582_v30  ;;  %v11659_v30 = vld [vmem:[#allocation5 + $0xd4c] ss:$16 sps:$4 sm:$0xff]  }
 0x378   : > { %7343 = vmatpush1.bf16.msra.mxu1 %v11585_v36  ;;  %7262 = vmatprep.subr.bf16.mxu0 %v11590_v52  ;;  %v11654_v36 = vld [vmem:[#allocation5 + $0xd40] ss:$16 sps:$4 sm:$0xff]   ;;  %v11657_v52 = vld [vmem:[#allocation5 + $0xd48] ss:$16 sps:$4 sm:$0xff]  }
 0x379   : > { %7344 = vmatprep.subr.bf16.mxu1 %v11593_v6  ;;  %v11662_v6 = vld [vmem:[#allocation5 + $0xd64] ss:$16 sps:$4 sm:$0xff]  }
 0x37b   : > { %7263 = vmatpush1.bf16.msra.mxu0 %v11588_v0  ;;  %v11665_v0 = vld [vmem:[#allocation5 + $0xd6c] ss:$16 sps:$4 sm:$0xff]  }
 0x37c   : > { %7345 = vmatpush1.bf16.msra.mxu1 %v11591_v11  ;;  %7264 = vmatprep.subr.bf16.mxu0 %v11596_v12  ;;  %v11660_v11 = vld [vmem:[#allocation5 + $0xd60] ss:$16 sps:$4 sm:$0xff]   ;;  %v11663_v12 = vld [vmem:[#allocation5 + $0xd68] ss:$16 sps:$4 sm:$0xff]  }
 0x37d   : > { %7346 = vmatprep.subr.bf16.mxu1 %v11599_v20  ;;  %v11668_v20 = vld [vmem:[#allocation5 + $0xd84] ss:$16 sps:$4 sm:$0xff]  }
 0x37f   : > { %7265 = vmatpush1.bf16.msra.mxu0 %v11594_v32  ;;  %v11671_v32 = vld [vmem:[#allocation5 + $0xd8c] ss:$16 sps:$4 sm:$0xff]  }
 0x380   : > { %7347 = vmatpush1.bf16.msra.mxu1 %v11597_v33  ;;  %7266 = vmatprep.subr.bf16.mxu0 %v11602_v34  ;;  %v11666_v33 = vld [vmem:[#allocation5 + $0xd80] ss:$16 sps:$4 sm:$0xff]   ;;  %v11669_v34 = vld [vmem:[#allocation5 + $0xd88] ss:$16 sps:$4 sm:$0xff]  }
 0x381   : > { %7348 = vmatprep.subr.bf16.mxu1 %v11605_v40  ;;  %v11674_v40 = vld [vmem:[#allocation5 + $0xda4] ss:$16 sps:$4 sm:$0xff]  }
 0x383   : > { %7267 = vmatpush1.bf16.msra.mxu0 %v11600_v47  ;;  %v11677_v47 = vld [vmem:[#allocation5 + $0xdac] ss:$16 sps:$4 sm:$0xff]  }
 0x384   : > { %7349 = vmatpush1.bf16.msra.mxu1 %v11603_v50  ;;  %7268 = vmatprep.subr.bf16.mxu0 %v11608_v23  ;;  %v11672_v50 = vld [vmem:[#allocation5 + $0xda0] ss:$16 sps:$4 sm:$0xff]   ;;  %v11675_v23 = vld [vmem:[#allocation5 + $0xda8] ss:$16 sps:$4 sm:$0xff]  }
 0x385   : > { %7350 = vmatprep.subr.bf16.mxu1 %v11611_v56  ;;  %v11680_v56 = vld [vmem:[#allocation5 + $0xdc4] ss:$16 sps:$4 sm:$0xff]  }
 0x387   : > { %7269 = vmatpush1.bf16.msra.mxu0 %v11606_v57 }
 0x388   : > { %7351 = vmatpush1.bf16.msra.mxu1 %v11609_v55  ;;  %7270 = vmatprep.subr.bf16.mxu0 %v11614_v2  ;;  %v11683_v55 = vld [vmem:[#allocation5 + $0xdcc] ss:$16 sps:$4 sm:$0xff]  }
 0x389   : > { %7352 = vmatprep.subr.bf16.mxu1 %v11617_v8 }
 0x38b   : > { %7271 = vmatpush1.bf16.msra.mxu0 %v11612_v27 }
 0x38c   : > { %7353 = vmatpush1.bf16.msra.mxu1 %v11615_v5  ;;  %7281 = vmatprep.subr.bf16.mxu0 %v11620_v21  ;;  %v11678_v21 = vld [vmem:[#allocation5 + $0xdc0] ss:$16 sps:$4 sm:$0xff]  }
 0x38d   : > { %7363 = vmatprep.subr.bf16.mxu1 %v11623_v35 }
 0x38e   : > { %7273 = vmatmul.mubr.bf16.vlgmr.msra.gmra.mrb[36].mxu0 %v13920_v53 }
 0x38f   : > { %7355 = vmatmul.mubr.bf16.vlgmr.msra.gmra.mrb[36].mxu1 %v13920_v53  ;;  %7282 = vmatpush1.bf16.msra.mxu0 %v11618_v14  ;;  %v11638_v53 = vld [vmem:[#allocation5 + $0xce4] ss:$16 sps:$4 sm:$0xff]  }
 0x390   : > { %10294 = vmatprep.mubr.msk.bf16.mxu0 %vm3948_vm13, %v13928_v37  ;;  %7364 = vmatpush1.bf16.msra.mxu1 %v11621_v42  ;;  %v11681_v42 = vld [vmem:[#allocation5 + $0xdc8] ss:$16 sps:$4 sm:$0xff]  }
 0x391   : > { %10295 = vmatprep.mubr.msk.bf16.mxu1 %vm3948_vm13, %v13928_v37  ;;  %7283 = vmatprep.subr.bf16.mxu0 %v11626_v48  ;;  %v11642_v37 = vld [vmem:[#allocation5 + $0xd00] ss:$16 sps:$4 sm:$0xff]   ;;  %v11686_v48 = vld [vmem:[#allocation5 + $0xde4] ss:$16 sps:$4 sm:$0xff]  }
 0x392   : > { %7365 = vmatprep.subr.bf16.mxu1 %v11629_v1 }
 0x393   : > { %7284 = vmatpush1.bf16.msra.mxu0 %v11624_v44  ;;  %v11689_v44 = vld [vmem:[#allocation5 + $0xdec] ss:$16 sps:$4 sm:$0xff]  }
 0x394   : > { %7366 = vmatpush1.bf16.msra.mxu1 %v11627_v29  ;;  %7285 = vmatprep.subr.bf16.mxu0 %v11632_v59  ;;  %v11684_v29 = vld [vmem:[#allocation5 + $0xde0] ss:$16 sps:$4 sm:$0xff]   ;;  %v11687_v59 = vld [vmem:[#allocation5 + $0xde8] ss:$16 sps:$4 sm:$0xff]  }
 0x395   : > { %7367 = vmatprep.subr.bf16.mxu1 %v11635_v61  ;;  %v11692_v61 = vld [vmem:[#allocation5 + $0x1184] ss:$16 sps:$4 sm:$0xff]  }
 0x397   : > { %7286 = vmatpush1.bf16.msra.mxu0 %v11630_v4  ;;  %v11695_v4 = vld [vmem:[#allocation5 + $0x118c] ss:$16 sps:$4 sm:$0xff]  }
 0x398   : > { %7368 = vmatpush1.bf16.msra.mxu1 %v11633_v54  ;;  %7287 = vmatprep.subr.bf16.mxu0 %v11638_v53  ;;  %v11690_v54 = vld [vmem:[#allocation5 + $0x1180] ss:$16 sps:$4 sm:$0xff]   ;;  %v11693_v53 = vld [vmem:[#allocation5 + $0x1188] ss:$16 sps:$4 sm:$0xff]  }
 0x399   : > { %7369 = vmatprep.subr.bf16.mxu1 %v11641_v28  ;;  %v11698_v28 = vld [vmem:[#allocation5 + $0x11a4] ss:$16 sps:$4 sm:$0xff]  }
 0x39b   : > { %7288 = vmatpush1.bf16.msra.mxu0 %v11636_v3  ;;  %v11701_v3 = vld [vmem:[#allocation5 + $0x11ac] ss:$16 sps:$4 sm:$0xff]  }
 0x39c   : > { %7370 = vmatpush1.bf16.msra.mxu1 %v11639_v9  ;;  %7289 = vmatprep.subr.bf16.mxu0 %v11644_v63  ;;  %v11696_v9 = vld [vmem:[#allocation5 + $0x11a0] ss:$16 sps:$4 sm:$0xff]   ;;  %v11699_v63 = vld [vmem:[#allocation5 + $0x11a8] ss:$16 sps:$4 sm:$0xff]  }
 0x39d   : > { %7371 = vmatprep.subr.bf16.mxu1 %v11647_v10  ;;  %v11704_v10 = vld [vmem:[#allocation5 + $0x11c4] ss:$16 sps:$4 sm:$0xff]  }
 0x39f   : > { %7290 = vmatpush1.bf16.msra.mxu0 %v11642_v37  ;;  %v11707_v37 = vld [vmem:[#allocation5 + $0x11cc] ss:$16 sps:$4 sm:$0xff]  }
 0x3a0   : > { %7372 = vmatpush1.bf16.msra.mxu1 %v11645_v26  ;;  %7291 = vmatprep.subr.bf16.mxu0 %v11650_v13  ;;  %v11702_v26 = vld [vmem:[#allocation5 + $0x11c0] ss:$16 sps:$4 sm:$0xff]   ;;  %v11705_v13 = vld [vmem:[#allocation5 + $0x11c8] ss:$16 sps:$4 sm:$0xff]  }
 0x3a1   : > { %7373 = vmatprep.subr.bf16.mxu1 %v11653_v15  ;;  %v11710_v15 = vld [vmem:[#allocation5 + $0x11e4] ss:$16 sps:$4 sm:$0xff]  }
 0x3a3   : > { %7292 = vmatpush1.bf16.msra.mxu0 %v11648_v43  ;;  %v11708_v43 = vld [vmem:[#allocation5 + $0x11e0] ss:$16 sps:$4 sm:$0xff]  }
 0x3a4   : > { %7374 = vmatpush1.bf16.msra.mxu1 %v11651_v46  ;;  %7293 = vmatprep.subr.bf16.mxu0 %v11656_v51  ;;  %v11711_v46 = vld [vmem:[#allocation5 + $0x11e8] ss:$16 sps:$4 sm:$0xff]   ;;  %v11716_v51 = vld [vmem:[#allocation5 + $0x1204] ss:$16 sps:$4 sm:$0xff]  }
 0x3a5   : > { %7375 = vmatprep.subr.bf16.mxu1 %v11659_v30  ;;  %v11719_v30 = vld [vmem:[#allocation5 + $0x120c] ss:$16 sps:$4 sm:$0xff]  }
 0x3a7   : > { %7294 = vmatpush1.bf16.msra.mxu0 %v11654_v36  ;;  %v11714_v36 = vld [vmem:[#allocation5 + $0x1200] ss:$16 sps:$4 sm:$0xff]  }
 0x3a8   : > { %7376 = vmatpush1.bf16.msra.mxu1 %v11657_v52  ;;  %7295 = vmatprep.subr.bf16.mxu0 %v11662_v6  ;;  %v11717_v52 = vld [vmem:[#allocation5 + $0x1208] ss:$16 sps:$4 sm:$0xff]   ;;  %v11722_v6 = vld [vmem:[#allocation5 + $0x1224] ss:$16 sps:$4 sm:$0xff]  }
 0x3a9   : > { %7377 = vmatprep.subr.bf16.mxu1 %v11665_v0  ;;  %v11725_v0 = vld [vmem:[#allocation5 + $0x122c] ss:$16 sps:$4 sm:$0xff]  }
 0x3ab   : > { %7296 = vmatpush1.bf16.msra.mxu0 %v11660_v11  ;;  %v11720_v11 = vld [vmem:[#allocation5 + $0x1220] ss:$16 sps:$4 sm:$0xff]  }
 0x3ac   : > { %7378 = vmatpush1.bf16.msra.mxu1 %v11663_v12  ;;  %7297 = vmatprep.subr.bf16.mxu0 %v11668_v20  ;;  %v11723_v12 = vld [vmem:[#allocation5 + $0x1228] ss:$16 sps:$4 sm:$0xff]   ;;  %v11728_v20 = vld [vmem:[#allocation5 + $0x1244] ss:$16 sps:$4 sm:$0xff]  }
 0x3ad   : > { %7379 = vmatprep.subr.bf16.mxu1 %v11671_v32  ;;  %v11731_v32 = vld [vmem:[#allocation5 + $0x124c] ss:$16 sps:$4 sm:$0xff]  }
 0x3af   : > { %7298 = vmatpush1.bf16.msra.mxu0 %v11666_v33  ;;  %v11726_v33 = vld [vmem:[#allocation5 + $0x1240] ss:$16 sps:$4 sm:$0xff]  }
 0x3b0   : > { %7380 = vmatpush1.bf16.msra.mxu1 %v11669_v34  ;;  %7299 = vmatprep.subr.bf16.mxu0 %v11674_v40  ;;  %v11729_v34 = vld [vmem:[#allocation5 + $0x1248] ss:$16 sps:$4 sm:$0xff]   ;;  %v11734_v40 = vld [vmem:[#allocation5 + $0x1264] ss:$16 sps:$4 sm:$0xff]  }
 0x3b1   : > { %v13984_v57 = vpop.f32.mrb[32].mxu0  ;;  %7381 = vmatprep.subr.bf16.mxu1 %v11677_v47  ;;  %v11737_v47 = vld [vmem:[#allocation5 + $0x126c] ss:$16 sps:$4 sm:$0xff]  }
 0x3b2   : > { %v13986_v2 = vpop.f32.mrb[32].mxu1  ;;  %v13988_v8 = vpop.f32.mrb[33].mxu0 }
 0x3b3   : > { %v13990_v27 = vpop.f32.mrb[33].mxu1  ;;  %v5641_v5 = vpop.f32.mrb[34].mxu0  ;;  %7300 = vmatpush1.bf16.msra.mxu0 %v11672_v50  ;;  %v11732_v50 = vld [vmem:[#allocation5 + $0x1260] ss:$16 sps:$4 sm:$0xff]  }
 0x3b4   : > { %v5723_v35 = vpop.f32.mrb[34].mxu1  ;;  %7382 = vmatpush1.bf16.msra.mxu1 %v11675_v23  ;;  %v5642_v14 = vpop.f32.mrb[35].mxu0  ;;  %7301 = vmatprep.subr.bf16.mxu0 %v11680_v56  ;;  %v11735_v23 = vld [vmem:[#allocation5 + $0x1268] ss:$16 sps:$4 sm:$0xff]   ;;  %v11740_v56 = vld [vmem:[#allocation5 + $0x1284] ss:$16 sps:$4 sm:$0xff]  }
 0x3b5   : > { %v5724_v1 = vpop.f32.mrb[35].mxu1  ;;  %7383 = vmatprep.subr.bf16.mxu1 %v11683_v55  ;;  %v11743_v55 = vld [vmem:[#allocation5 + $0x128c] ss:$16 sps:$4 sm:$0xff]   ;;  %v11738_v5 = vld [vmem:[#allocation5 + $0x1280] ss:$16 sps:$4 sm:$0xff]  }
 0x3b6   : > { %v11746_v35 = vld [vmem:[#allocation5 + $0x12a4] ss:$16 sps:$4 sm:$0xff]   ;;  %v11749_v14 = vld [vmem:[#allocation5 + $0x12ac] ss:$16 sps:$4 sm:$0xff]  }
 0x3b7   : > { %7302 = vmatpush1.bf16.msra.mxu0 %v11678_v21  ;;  %v11741_v21 = vld [vmem:[#allocation5 + $0x1288] ss:$16 sps:$4 sm:$0xff]   ;;  %v11752_v1 = vld [vmem:[#allocation5 + $0x12c4] ss:$16 sps:$4 sm:$0xff]  }
 0x3b8   : > { %7384 = vmatpush1.bf16.msra.mxu1 %v11681_v42  ;;  %7303 = vmatprep.subr.bf16.mxu0 %v11686_v48  ;;  %v11744_v42 = vld [vmem:[#allocation5 + $0x12a0] ss:$16 sps:$4 sm:$0xff]   ;;  %v11747_v48 = vld [vmem:[#allocation5 + $0x12a8] ss:$16 sps:$4 sm:$0xff]  }
 0x3b9   : > { %7385 = vmatprep.subr.bf16.mxu1 %v11689_v44  ;;  %v11755_v44 = vld [vmem:[#allocation5 + $0x12cc] ss:$16 sps:$4 sm:$0xff]  }
 0x3bb   : > { %7304 = vmatpush1.bf16.msra.mxu0 %v11684_v29  ;;  %v11750_v29 = vld [vmem:[#allocation5 + $0x12c0] ss:$16 sps:$4 sm:$0xff]  }
 0x3bc   : > { %7386 = vmatpush1.bf16.msra.mxu1 %v11687_v59  ;;  %8077 = vmatprep.subr.bf16.mxu0 %v11692_v61  ;;  %v11753_v59 = vld [vmem:[#allocation5 + $0x12c8] ss:$16 sps:$4 sm:$0xff]   ;;  %v11758_v61 = vld [vmem:[#allocation5 + $0x12e4] ss:$16 sps:$4 sm:$0xff]  }
 0x3bd   : > { %8159 = vmatprep.subr.bf16.mxu1 %v11695_v4  ;;  %v11761_v4 = vld [vmem:[#allocation5 + $0x12ec] ss:$16 sps:$4 sm:$0xff]  }
 0x3be   : > { %7314 = vmatmul.mubr.bf16.vlgmr.msra.gmra.mrb[36].mxu0 %v13938_v38 }
 0x3bf   : > { %7396 = vmatmul.mubr.bf16.vlgmr.msra.gmra.mrb[36].mxu1 %v13938_v38  ;;  %8078 = vmatpush1.bf16.msra.mxu0 %v11690_v54  ;;  %v11713_v38 = vld [vmem:[#allocation5 + $0x11ec] ss:$16 sps:$4 sm:$0xff]   ;;  %v11756_v54 = vld [vmem:[#allocation5 + $0x12e0] ss:$16 sps:$4 sm:$0xff]  }
 0x3c0   : > { %8109 = vmatprep.mubr.bf16.mxu0 %v13940_v45  ;;  %8160 = vmatpush1.bf16.msra.mxu1 %v11693_v53  ;;  %v11759_v53 = vld [vmem:[#allocation5 + $0x12e8] ss:$16 sps:$4 sm:$0xff]  }
 0x3c1   : > { %8191 = vmatprep.mubr.bf16.mxu1 %v13940_v45  ;;  %8079 = vmatprep.subr.bf16.mxu0 %v11698_v28  ;;  %v11764_v28 = vld [vmem:[#allocation5 + $0x1304] ss:$16 sps:$4 sm:$0xff]  }
 0x3c2   : > { %8161 = vmatprep.subr.bf16.mxu1 %v11701_v3  ;;  %v11767_v3 = vld [vmem:[#allocation5 + $0x130c] ss:$16 sps:$4 sm:$0xff]  }
 0x3c3   : > { %8080 = vmatpush1.bf16.msra.mxu0 %v11696_v9  ;;  %v11762_v9 = vld [vmem:[#allocation5 + $0x1300] ss:$16 sps:$4 sm:$0xff]  }
 0x3c4   : > { %8162 = vmatpush1.bf16.msra.mxu1 %v11699_v63  ;;  %8081 = vmatprep.subr.bf16.mxu0 %v11704_v10  ;;  %v11765_v63 = vld [vmem:[#allocation5 + $0x1308] ss:$16 sps:$4 sm:$0xff]   ;;  %v11770_v10 = vld [vmem:[#allocation5 + $0x1324] ss:$16 sps:$4 sm:$0xff]  }
 0x3c5   : > { %8163 = vmatprep.subr.bf16.mxu1 %v11707_v37  ;;  %v11773_v37 = vld [vmem:[#allocation5 + $0x132c] ss:$16 sps:$4 sm:$0xff]  }
 0x3c7   : > { %8082 = vmatpush1.bf16.msra.mxu0 %v11702_v26  ;;  %v11768_v26 = vld [vmem:[#allocation5 + $0x1320] ss:$16 sps:$4 sm:$0xff]  }
 0x3c8   : > { %8164 = vmatpush1.bf16.msra.mxu1 %v11705_v13  ;;  %8083 = vmatprep.subr.bf16.mxu0 %v11710_v15  ;;  %v11771_v13 = vld [vmem:[#allocation5 + $0x1328] ss:$16 sps:$4 sm:$0xff]   ;;  %v11776_v15 = vld [vmem:[#allocation5 + $0x1344] ss:$16 sps:$4 sm:$0xff]  }
 0x3c9   : > { %8165 = vmatprep.subr.bf16.mxu1 %v11713_v38  ;;  %v11779_v38 = vld [vmem:[#allocation5 + $0x134c] ss:$16 sps:$4 sm:$0xff]  }
 0x3cb   : > { %8084 = vmatpush1.bf16.msra.mxu0 %v11708_v43  ;;  %v11774_v43 = vld [vmem:[#allocation5 + $0x1340] ss:$16 sps:$4 sm:$0xff]  }
 0x3cc   : > { %8166 = vmatpush1.bf16.msra.mxu1 %v11711_v46  ;;  %8085 = vmatprep.subr.bf16.mxu0 %v11716_v51  ;;  %v11777_v46 = vld [vmem:[#allocation5 + $0x1348] ss:$16 sps:$4 sm:$0xff]   ;;  %v11782_v51 = vld [vmem:[#allocation5 + $0x1364] ss:$16 sps:$4 sm:$0xff]  }
 0x3cd   : > { %8167 = vmatprep.subr.bf16.mxu1 %v11719_v30  ;;  %v11785_v30 = vld [vmem:[#allocation5 + $0x136c] ss:$16 sps:$4 sm:$0xff]  }
 0x3cf   : > { %8086 = vmatpush1.bf16.msra.mxu0 %v11714_v36  ;;  %v11780_v36 = vld [vmem:[#allocation5 + $0x1360] ss:$16 sps:$4 sm:$0xff]  }
 0x3d0   : > { %8168 = vmatpush1.bf16.msra.mxu1 %v11717_v52  ;;  %8087 = vmatprep.subr.bf16.mxu0 %v11722_v6  ;;  %v11783_v52 = vld [vmem:[#allocation5 + $0x1368] ss:$16 sps:$4 sm:$0xff]   ;;  %v11788_v6 = vld [vmem:[#allocation5 + $0x1384] ss:$16 sps:$4 sm:$0xff]  }
 0x3d1   : > { %8169 = vmatprep.subr.bf16.mxu1 %v11725_v0  ;;  %v11791_v0 = vld [vmem:[#allocation5 + $0x138c] ss:$16 sps:$4 sm:$0xff]  }
 0x3d3   : > { %8088 = vmatpush1.bf16.msra.mxu0 %v11720_v11  ;;  %v11786_v11 = vld [vmem:[#allocation5 + $0x1380] ss:$16 sps:$4 sm:$0xff]  }
 0x3d4   : > { %8170 = vmatpush1.bf16.msra.mxu1 %v11723_v12  ;;  %8089 = vmatprep.subr.bf16.mxu0 %v11728_v20  ;;  %v11789_v12 = vld [vmem:[#allocation5 + $0x1388] ss:$16 sps:$4 sm:$0xff]   ;;  %v11794_v20 = vld [vmem:[#allocation5 + $0x13a4] ss:$16 sps:$4 sm:$0xff]  }
 0x3d5   : > { %8171 = vmatprep.subr.bf16.mxu1 %v11731_v32  ;;  %v11797_v32 = vld [vmem:[#allocation5 + $0x13ac] ss:$16 sps:$4 sm:$0xff]  }
 0x3d7   : > { %8090 = vmatpush1.bf16.msra.mxu0 %v11726_v33  ;;  %v11792_v33 = vld [vmem:[#allocation5 + $0x13a0] ss:$16 sps:$4 sm:$0xff]  }
 0x3d8   : > { %8172 = vmatpush1.bf16.msra.mxu1 %v11729_v34  ;;  %8091 = vmatprep.subr.bf16.mxu0 %v11734_v40  ;;  %v11795_v34 = vld [vmem:[#allocation5 + $0x13a8] ss:$16 sps:$4 sm:$0xff]   ;;  %v11800_v40 = vld [vmem:[#allocation5 + $0x13c4] ss:$16 sps:$4 sm:$0xff]  }
 0x3d9   : > { %8173 = vmatprep.subr.bf16.mxu1 %v11737_v47  ;;  %v11803_v47 = vld [vmem:[#allocation5 + $0x13cc] ss:$16 sps:$4 sm:$0xff]  }
 0x3db   : > { %8092 = vmatpush1.bf16.msra.mxu0 %v11732_v50  ;;  %v11798_v50 = vld [vmem:[#allocation5 + $0x13c0] ss:$16 sps:$4 sm:$0xff]  }
 0x3dc   : > { %8174 = vmatpush1.bf16.msra.mxu1 %v11735_v23  ;;  %8093 = vmatprep.subr.bf16.mxu0 %v11740_v56  ;;  %v11801_v23 = vld [vmem:[#allocation5 + $0x13c8] ss:$16 sps:$4 sm:$0xff]   ;;  %v11806_v56 = vld [vmem:[#allocation5 + $0x13e4] ss:$16 sps:$4 sm:$0xff]  }
 0x3dd   : > { %8175 = vmatprep.subr.bf16.mxu1 %v11743_v55  ;;  %v11809_v55 = vld [vmem:[#allocation5 + $0x13ec] ss:$16 sps:$4 sm:$0xff]  }
 0x3df   : > { %8094 = vmatpush1.bf16.msra.mxu0 %v11738_v5  ;;  %v11804_v5 = vld [vmem:[#allocation5 + $0x13e0] ss:$16 sps:$4 sm:$0xff]  }
 0x3e0   : > { %8176 = vmatpush1.bf16.msra.mxu1 %v11741_v21  ;;  %8095 = vmatprep.subr.bf16.mxu0 %v11746_v35  ;;  %v11807_v21 = vld [vmem:[#allocation5 + $0x13e8] ss:$16 sps:$4 sm:$0xff]   ;;  %v11812_v35 = vld [vmem:[#allocation5 + $0x1404] ss:$16 sps:$4 sm:$0xff]  }
 0x3e1   : > { %8177 = vmatprep.subr.bf16.mxu1 %v11749_v14  ;;  %v11815_v14 = vld [vmem:[#allocation5 + $0x140c] ss:$16 sps:$4 sm:$0xff]  }
 0x3e3   : > { %8096 = vmatpush1.bf16.msra.mxu0 %v11744_v42  ;;  %v11810_v42 = vld [vmem:[#allocation5 + $0x1400] ss:$16 sps:$4 sm:$0xff]  }
 0x3e4   : > { %8178 = vmatpush1.bf16.msra.mxu1 %v11747_v48  ;;  %8097 = vmatprep.subr.bf16.mxu0 %v11752_v1  ;;  %v11813_v48 = vld [vmem:[#allocation5 + $0x1408] ss:$16 sps:$4 sm:$0xff]   ;;  %v11818_v1 = vld [vmem:[#allocation5 + $0x1424] ss:$16 sps:$4 sm:$0xff]  }
 0x3e5   : > { %8179 = vmatprep.subr.bf16.mxu1 %v11755_v44  ;;  %v11821_v44 = vld [vmem:[#allocation5 + $0x142c] ss:$16 sps:$4 sm:$0xff]  }
 0x3e7   : > { %8098 = vmatpush1.bf16.msra.mxu0 %v11750_v29  ;;  %v11816_v29 = vld [vmem:[#allocation5 + $0x1420] ss:$16 sps:$4 sm:$0xff]  }
 0x3e8   : > { %8180 = vmatpush1.bf16.msra.mxu1 %v11753_v59  ;;  %8099 = vmatprep.subr.bf16.mxu0 %v11758_v61  ;;  %v11819_v59 = vld [vmem:[#allocation5 + $0x1428] ss:$16 sps:$4 sm:$0xff]   ;;  %v11824_v61 = vld [vmem:[#allocation5 + $0x1444] ss:$16 sps:$4 sm:$0xff]  }
 0x3e9   : > { %8181 = vmatprep.subr.bf16.mxu1 %v11761_v4  ;;  %v11827_v4 = vld [vmem:[#allocation5 + $0x144c] ss:$16 sps:$4 sm:$0xff]  }
 0x3eb   : > { %8100 = vmatpush1.bf16.msra.mxu0 %v11756_v54  ;;  %v11822_v54 = vld [vmem:[#allocation5 + $0x1440] ss:$16 sps:$4 sm:$0xff]  }
 0x3ec   : > { %8182 = vmatpush1.bf16.msra.mxu1 %v11759_v53  ;;  %8101 = vmatprep.subr.bf16.mxu0 %v11764_v28  ;;  %v11825_v53 = vld [vmem:[#allocation5 + $0x1448] ss:$16 sps:$4 sm:$0xff]   ;;  %v11830_v28 = vld [vmem:[#allocation5 + $0x1464] ss:$16 sps:$4 sm:$0xff]  }
 0x3ed   : > { %8183 = vmatprep.subr.bf16.mxu1 %v11767_v3  ;;  %v11833_v3 = vld [vmem:[#allocation5 + $0x146c] ss:$16 sps:$4 sm:$0xff]  }
 0x3ef   : > { %8102 = vmatpush1.bf16.msra.mxu0 %v11762_v9  ;;  %v11828_v9 = vld [vmem:[#allocation5 + $0x1460] ss:$16 sps:$4 sm:$0xff]  }
 0x3f0   : > { %8184 = vmatpush1.bf16.msra.mxu1 %v11765_v63  ;;  %8103 = vmatprep.subr.bf16.mxu0 %v11770_v10  ;;  %v11831_v63 = vld [vmem:[#allocation5 + $0x1468] ss:$16 sps:$4 sm:$0xff]   ;;  %v11836_v10 = vld [vmem:[#allocation5 + $0x1484] ss:$16 sps:$4 sm:$0xff]  }
 0x3f1   : > { %8185 = vmatprep.subr.bf16.mxu1 %v11773_v37  ;;  %v11839_v37 = vld [vmem:[#allocation5 + $0x148c] ss:$16 sps:$4 sm:$0xff]  }
 0x3f3   : > { %8104 = vmatpush1.bf16.msra.mxu0 %v11768_v26  ;;  %v11834_v26 = vld [vmem:[#allocation5 + $0x1480] ss:$16 sps:$4 sm:$0xff]  }
 0x3f4   : > { %8186 = vmatpush1.bf16.msra.mxu1 %v11771_v13  ;;  %8105 = vmatprep.subr.bf16.mxu0 %v11776_v15  ;;  %v11837_v13 = vld [vmem:[#allocation5 + $0x1488] ss:$16 sps:$4 sm:$0xff]   ;;  %v11842_v15 = vld [vmem:[#allocation5 + $0x14a4] ss:$16 sps:$4 sm:$0xff]  }
 0x3f5   : > { %8187 = vmatprep.subr.bf16.mxu1 %v11779_v38  ;;  %v11845_v38 = vld [vmem:[#allocation5 + $0x14ac] ss:$16 sps:$4 sm:$0xff]  }
 0x3f7   : > { %8106 = vmatpush1.bf16.msra.mxu0 %v11774_v43  ;;  %v11840_v43 = vld [vmem:[#allocation5 + $0x14a0] ss:$16 sps:$4 sm:$0xff]  }
 0x3f8   : > { %8188 = vmatpush1.bf16.msra.mxu1 %v11777_v46  ;;  %8107 = vmatprep.subr.bf16.mxu0 %v11782_v51  ;;  %v11843_v46 = vld [vmem:[#allocation5 + $0x14a8] ss:$16 sps:$4 sm:$0xff]   ;;  %v11848_v51 = vld [vmem:[#allocation5 + $0x14c4] ss:$16 sps:$4 sm:$0xff]  }
 0x3f9   : > { %8189 = vmatprep.subr.bf16.mxu1 %v11785_v30  ;;  %v11851_v30 = vld [vmem:[#allocation5 + $0x14cc] ss:$16 sps:$4 sm:$0xff]  }
 0x3fb   : > { %8108 = vmatpush1.bf16.msra.mxu0 %v11780_v36  ;;  %v11846_v36 = vld [vmem:[#allocation5 + $0x14c0] ss:$16 sps:$4 sm:$0xff]  }
 0x3fc   : > { %8190 = vmatpush1.bf16.msra.mxu1 %v11783_v52  ;;  %8118 = vmatprep.subr.bf16.mxu0 %v11788_v6  ;;  %v11849_v52 = vld [vmem:[#allocation5 + $0x14c8] ss:$16 sps:$4 sm:$0xff]   ;;  %v11854_v6 = vld [vmem:[#allocation5 + $0x14e4] ss:$16 sps:$4 sm:$0xff]  }
 0x3fd   : > { %8200 = vmatprep.subr.bf16.mxu1 %v11791_v0  ;;  %v11857_v0 = vld [vmem:[#allocation5 + $0x14ec] ss:$16 sps:$4 sm:$0xff]  }
 0x3fe   : > { %8110 = vmatmul.mubr.bf16.vlgmr.msra.gmra.mrb[36].mxu0 %v13949_v7 }
 0x3ff   : > { %8192 = vmatmul.mubr.bf16.vlgmr.msra.gmra.mrb[36].mxu1 %v13949_v7  ;;  %8119 = vmatpush1.bf16.msra.mxu0 %v11786_v11  ;;  %v11852_v11 = vld [vmem:[#allocation5 + $0x14e0] ss:$16 sps:$4 sm:$0xff]  }
 0x400   : > { %10408 = vmatprep.mubr.msk.bf16.mxu0 %vm3948_vm13, %v13953_v25  ;;  %8201 = vmatpush1.bf16.msra.mxu1 %v11789_v12  ;;  %v11855_v12 = vld [vmem:[#allocation5 + $0x14e8] ss:$16 sps:$4 sm:$0xff]  }
 0x401   : > { %10409 = vmatprep.mubr.msk.bf16.mxu1 %vm3948_vm13, %v13953_v25  ;;  %8120 = vmatprep.subr.bf16.mxu0 %v11794_v20  ;;  %v11894_v20 = vld [vmem:[#allocation5 + $0x384] ss:$16 sps:$4 sm:$0xff]  }
 0x402   : > { %8202 = vmatprep.subr.bf16.mxu1 %v11797_v32  ;;  %v11895_v32 = vld [vmem:[#allocation5 + $0x38c] ss:$16 sps:$4 sm:$0xff]  }
 0x403   : > { %8121 = vmatpush1.bf16.msra.mxu0 %v11792_v33  ;;  %v11896_v33 = vld [vmem:[#allocation5 + $0x380] ss:$16 sps:$4 sm:$0xff]  }
 0x404   : > { %8203 = vmatpush1.bf16.msra.mxu1 %v11795_v34  ;;  %8122 = vmatprep.subr.bf16.mxu0 %v11800_v40  ;;  %v11897_v34 = vld [vmem:[#allocation5 + $0x388] ss:$16 sps:$4 sm:$0xff]   ;;  %v11898_v40 = vld [vmem:[#allocation5 + $0x3a4] ss:$16 sps:$4 sm:$0xff]  }
 0x405   : > { %8204 = vmatprep.subr.bf16.mxu1 %v11803_v47  ;;  %v11899_v47 = vld [vmem:[#allocation5 + $0x3ac] ss:$16 sps:$4 sm:$0xff]  }
 0x407   : > { %8123 = vmatpush1.bf16.msra.mxu0 %v11798_v50  ;;  %v11900_v50 = vld [vmem:[#allocation5 + $0x3a0] ss:$16 sps:$4 sm:$0xff]  }
 0x408   : > { %8205 = vmatpush1.bf16.msra.mxu1 %v11801_v23  ;;  %8124 = vmatprep.subr.bf16.mxu0 %v11806_v56  ;;  %v11901_v23 = vld [vmem:[#allocation5 + $0x3a8] ss:$16 sps:$4 sm:$0xff]   ;;  %v11902_v56 = vld [vmem:[#allocation5 + $0x3c4] ss:$16 sps:$4 sm:$0xff]  }
 0x409   : > { %8206 = vmatprep.subr.bf16.mxu1 %v11809_v55  ;;  %v11903_v55 = vld [vmem:[#allocation5 + $0x3cc] ss:$16 sps:$4 sm:$0xff]  }
 0x40b   : > { %8125 = vmatpush1.bf16.msra.mxu0 %v11804_v5  ;;  %v11904_v5 = vld [vmem:[#allocation5 + $0x3c0] ss:$16 sps:$4 sm:$0xff]  }
 0x40c   : > { %8207 = vmatpush1.bf16.msra.mxu1 %v11807_v21  ;;  %8126 = vmatprep.subr.bf16.mxu0 %v11812_v35  ;;  %v11905_v21 = vld [vmem:[#allocation5 + $0x3c8] ss:$16 sps:$4 sm:$0xff]   ;;  %v11906_v35 = vld [vmem:[#allocation5 + $0x3e4] ss:$16 sps:$4 sm:$0xff]  }
 0x40d   : > { %8208 = vmatprep.subr.bf16.mxu1 %v11815_v14  ;;  %v11907_v14 = vld [vmem:[#allocation5 + $0x3ec] ss:$16 sps:$4 sm:$0xff]  }
 0x40f   : > { %8127 = vmatpush1.bf16.msra.mxu0 %v11810_v42  ;;  %v11908_v42 = vld [vmem:[#allocation5 + $0x3e0] ss:$16 sps:$4 sm:$0xff]  }
 0x410   : > { %8209 = vmatpush1.bf16.msra.mxu1 %v11813_v48  ;;  %8128 = vmatprep.subr.bf16.mxu0 %v11818_v1  ;;  %v11909_v48 = vld [vmem:[#allocation5 + $0x3e8] ss:$16 sps:$4 sm:$0xff]   ;;  %v11910_v1 = vld [vmem:[#allocation5 + $0x404] ss:$16 sps:$4 sm:$0xff]  }
 0x411   : > { %8210 = vmatprep.subr.bf16.mxu1 %v11821_v44  ;;  %v11911_v44 = vld [vmem:[#allocation5 + $0x40c] ss:$16 sps:$4 sm:$0xff]  }
 0x413   : > { %8129 = vmatpush1.bf16.msra.mxu0 %v11816_v29  ;;  %v11912_v29 = vld [vmem:[#allocation5 + $0x400] ss:$16 sps:$4 sm:$0xff]  }
 0x414   : > { %8211 = vmatpush1.bf16.msra.mxu1 %v11819_v59  ;;  %8130 = vmatprep.subr.bf16.mxu0 %v11824_v61  ;;  %v11913_v59 = vld [vmem:[#allocation5 + $0x408] ss:$16 sps:$4 sm:$0xff]   ;;  %v11914_v61 = vld [vmem:[#allocation5 + $0x424] ss:$16 sps:$4 sm:$0xff]  }
 0x415   : > { %8212 = vmatprep.subr.bf16.mxu1 %v11827_v4  ;;  %v11915_v4 = vld [vmem:[#allocation5 + $0x42c] ss:$16 sps:$4 sm:$0xff]  }
 0x417   : > { %8131 = vmatpush1.bf16.msra.mxu0 %v11822_v54  ;;  %v11916_v54 = vld [vmem:[#allocation5 + $0x420] ss:$16 sps:$4 sm:$0xff]  }
 0x418   : > { %8213 = vmatpush1.bf16.msra.mxu1 %v11825_v53  ;;  %8132 = vmatprep.subr.bf16.mxu0 %v11830_v28  ;;  %v11917_v53 = vld [vmem:[#allocation5 + $0x428] ss:$16 sps:$4 sm:$0xff]   ;;  %v11918_v28 = vld [vmem:[#allocation5 + $0x444] ss:$16 sps:$4 sm:$0xff]  }
 0x419   : > { %8214 = vmatprep.subr.bf16.mxu1 %v11833_v3  ;;  %v11919_v3 = vld [vmem:[#allocation5 + $0x44c] ss:$16 sps:$4 sm:$0xff]  }
 0x41b   : > { %8133 = vmatpush1.bf16.msra.mxu0 %v11828_v9  ;;  %v11920_v9 = vld [vmem:[#allocation5 + $0x440] ss:$16 sps:$4 sm:$0xff]  }
 0x41c   : > { %8215 = vmatpush1.bf16.msra.mxu1 %v11831_v63  ;;  %8134 = vmatprep.subr.bf16.mxu0 %v11836_v10  ;;  %v11921_v63 = vld [vmem:[#allocation5 + $0x448] ss:$16 sps:$4 sm:$0xff]   ;;  %v11922_v10 = vld [vmem:[#allocation5 + $0x464] ss:$16 sps:$4 sm:$0xff]  }
 0x41d   : > { %8216 = vmatprep.subr.bf16.mxu1 %v11839_v37  ;;  %v11923_v37 = vld [vmem:[#allocation5 + $0x46c] ss:$16 sps:$4 sm:$0xff]  }
 0x41f   : > { %8135 = vmatpush1.bf16.msra.mxu0 %v11834_v26  ;;  %v11924_v26 = vld [vmem:[#allocation5 + $0x460] ss:$16 sps:$4 sm:$0xff]  }
 0x420   : > { %8217 = vmatpush1.bf16.msra.mxu1 %v11837_v13  ;;  %8136 = vmatprep.subr.bf16.mxu0 %v11842_v15  ;;  %v11925_v13 = vld [vmem:[#allocation5 + $0x468] ss:$16 sps:$4 sm:$0xff]   ;;  %v11926_v15 = vld [vmem:[#allocation5 + $0x484] ss:$16 sps:$4 sm:$0xff]  }
 0x421   : > { %8218 = vmatprep.subr.bf16.mxu1 %v11845_v38  ;;  %v11927_v38 = vld [vmem:[#allocation5 + $0x48c] ss:$16 sps:$4 sm:$0xff]  }
 0x423   : > { %8137 = vmatpush1.bf16.msra.mxu0 %v11840_v43  ;;  %v11928_v43 = vld [vmem:[#allocation5 + $0x480] ss:$16 sps:$4 sm:$0xff]  }
 0x424   : > { %8219 = vmatpush1.bf16.msra.mxu1 %v11843_v46  ;;  %8138 = vmatprep.subr.bf16.mxu0 %v11848_v51  ;;  %v11929_v46 = vld [vmem:[#allocation5 + $0x488] ss:$16 sps:$4 sm:$0xff]   ;;  %v11930_v51 = vld [vmem:[#allocation5 + $0x4a4] ss:$16 sps:$4 sm:$0xff]  }
 0x425   : > { %8220 = vmatprep.subr.bf16.mxu1 %v11851_v30  ;;  %v11931_v30 = vld [vmem:[#allocation5 + $0x4ac] ss:$16 sps:$4 sm:$0xff]  }
 0x427   : > { %8139 = vmatpush1.bf16.msra.mxu0 %v11846_v36  ;;  %v11932_v36 = vld [vmem:[#allocation5 + $0x4a0] ss:$16 sps:$4 sm:$0xff]  }
 0x428   : > { %8221 = vmatpush1.bf16.msra.mxu1 %v11849_v52  ;;  %8140 = vmatprep.subr.bf16.mxu0 %v11854_v6  ;;  %v11933_v52 = vld [vmem:[#allocation5 + $0x4a8] ss:$16 sps:$4 sm:$0xff]   ;;  %v11934_v6 = vld [vmem:[#allocation5 + $0x4c4] ss:$16 sps:$4 sm:$0xff]  }
 0x429   : > { %8222 = vmatprep.subr.bf16.mxu1 %v11857_v0  ;;  %v11935_v0 = vld [vmem:[#allocation5 + $0x4cc] ss:$16 sps:$4 sm:$0xff]  }
 0x42b   : > { %8141 = vmatpush1.bf16.msra.mxu0 %v11852_v11  ;;  %v11936_v11 = vld [vmem:[#allocation5 + $0x4c0] ss:$16 sps:$4 sm:$0xff]  }
 0x42c   : > { %8223 = vmatpush1.bf16.msra.mxu1 %v11855_v12  ;;  %8249 = vmatprep.subr.bf16.mxu0 %v11894_v20  ;;  %v11937_v12 = vld [vmem:[#allocation5 + $0x4c8] ss:$16 sps:$4 sm:$0xff]   ;;  %v11938_v20 = vld [vmem:[#allocation5 + $0x4e4] ss:$16 sps:$4 sm:$0xff]  }
 0x42d   : > { %8331 = vmatprep.subr.bf16.mxu1 %v11895_v32  ;;  %v11939_v32 = vld [vmem:[#allocation5 + $0x4ec] ss:$16 sps:$4 sm:$0xff]  }
 0x42e   : > { %8151 = vmatmul.mubr.bf16.vlgmr.msra.gmra.mrb[36].mxu0 %v13962_v41 }
 0x42f   : > { %8233 = vmatmul.mubr.bf16.vlgmr.msra.gmra.mrb[36].mxu1 %v13962_v41  ;;  %8250 = vmatpush1.bf16.msra.mxu0 %v11896_v33  ;;  %v11940_v33 = vld [vmem:[#allocation5 + $0x4e0] ss:$16 sps:$4 sm:$0xff]  }
 0x430   : > { %8281 = vmatprep.mubr.bf16.mxu0 %v13940_v45  ;;  %8332 = vmatpush1.bf16.msra.mxu1 %v11897_v34  ;;  %v11941_v34 = vld [vmem:[#allocation5 + $0x4e8] ss:$16 sps:$4 sm:$0xff]  }
 0x431   : > { %8363 = vmatprep.mubr.bf16.mxu1 %v13940_v45  ;;  %8251 = vmatprep.subr.bf16.mxu0 %v11898_v40  ;;  %v11942_v40 = vld [vmem:[#allocation5 + $0x504] ss:$16 sps:$4 sm:$0xff]  }
 0x432   : > { %8333 = vmatprep.subr.bf16.mxu1 %v11899_v47  ;;  %v11943_v47 = vld [vmem:[#allocation5 + $0x50c] ss:$16 sps:$4 sm:$0xff]  }
 0x433   : > { %8252 = vmatpush1.bf16.msra.mxu0 %v11900_v50  ;;  %v11944_v50 = vld [vmem:[#allocation5 + $0x500] ss:$16 sps:$4 sm:$0xff]  }
 0x434   : > { %8334 = vmatpush1.bf16.msra.mxu1 %v11901_v23  ;;  %8253 = vmatprep.subr.bf16.mxu0 %v11902_v56  ;;  %v11945_v23 = vld [vmem:[#allocation5 + $0x508] ss:$16 sps:$4 sm:$0xff]   ;;  %v11946_v56 = vld [vmem:[#allocation5 + $0x524] ss:$16 sps:$4 sm:$0xff]  }
 0x435   : > { %8335 = vmatprep.subr.bf16.mxu1 %v11903_v55  ;;  %v11947_v55 = vld [vmem:[#allocation5 + $0x52c] ss:$16 sps:$4 sm:$0xff]  }
 0x437   : > { %8254 = vmatpush1.bf16.msra.mxu0 %v11904_v5  ;;  %v11948_v5 = vld [vmem:[#allocation5 + $0x520] ss:$16 sps:$4 sm:$0xff]  }
 0x438   : > { %8336 = vmatpush1.bf16.msra.mxu1 %v11905_v21  ;;  %8255 = vmatprep.subr.bf16.mxu0 %v11906_v35  ;;  %v11949_v21 = vld [vmem:[#allocation5 + $0x528] ss:$16 sps:$4 sm:$0xff]   ;;  %v11950_v35 = vld [vmem:[#allocation5 + $0x544] ss:$16 sps:$4 sm:$0xff]  }
 0x439   : > { %8337 = vmatprep.subr.bf16.mxu1 %v11907_v14  ;;  %v11951_v14 = vld [vmem:[#allocation5 + $0x54c] ss:$16 sps:$4 sm:$0xff]  }
 0x43b   : > { %8256 = vmatpush1.bf16.msra.mxu0 %v11908_v42  ;;  %v11952_v42 = vld [vmem:[#allocation5 + $0x540] ss:$16 sps:$4 sm:$0xff]  }
 0x43c   : > { %8338 = vmatpush1.bf16.msra.mxu1 %v11909_v48  ;;  %8257 = vmatprep.subr.bf16.mxu0 %v11910_v1  ;;  %v11953_v48 = vld [vmem:[#allocation5 + $0x548] ss:$16 sps:$4 sm:$0xff]   ;;  %v11954_v1 = vld [vmem:[#allocation5 + $0x564] ss:$16 sps:$4 sm:$0xff]  }
 0x43d   : > { %8339 = vmatprep.subr.bf16.mxu1 %v11911_v44  ;;  %v11955_v44 = vld [vmem:[#allocation5 + $0x56c] ss:$16 sps:$4 sm:$0xff]  }
 0x43f   : > { %8258 = vmatpush1.bf16.msra.mxu0 %v11912_v29  ;;  %v11956_v29 = vld [vmem:[#allocation5 + $0x560] ss:$16 sps:$4 sm:$0xff]  }
 0x440   : > { %8340 = vmatpush1.bf16.msra.mxu1 %v11913_v59  ;;  %8259 = vmatprep.subr.bf16.mxu0 %v11914_v61  ;;  %v11957_v59 = vld [vmem:[#allocation5 + $0x568] ss:$16 sps:$4 sm:$0xff]   ;;  %v11958_v61 = vld [vmem:[#allocation5 + $0x584] ss:$16 sps:$4 sm:$0xff]  }
 0x441   : > { %8341 = vmatprep.subr.bf16.mxu1 %v11915_v4  ;;  %v11959_v4 = vld [vmem:[#allocation5 + $0x58c] ss:$16 sps:$4 sm:$0xff]  }
 0x443   : > { %8260 = vmatpush1.bf16.msra.mxu0 %v11916_v54  ;;  %v11960_v54 = vld [vmem:[#allocation5 + $0x580] ss:$16 sps:$4 sm:$0xff]  }
 0x444   : > { %8342 = vmatpush1.bf16.msra.mxu1 %v11917_v53  ;;  %8261 = vmatprep.subr.bf16.mxu0 %v11918_v28  ;;  %v11961_v53 = vld [vmem:[#allocation5 + $0x588] ss:$16 sps:$4 sm:$0xff]   ;;  %v11962_v28 = vld [vmem:[#allocation5 + $0x5a4] ss:$16 sps:$4 sm:$0xff]  }
 0x445   : > { %8343 = vmatprep.subr.bf16.mxu1 %v11919_v3  ;;  %v11963_v3 = vld [vmem:[#allocation5 + $0x5ac] ss:$16 sps:$4 sm:$0xff]  }
 0x447   : > { %8262 = vmatpush1.bf16.msra.mxu0 %v11920_v9  ;;  %v11964_v9 = vld [vmem:[#allocation5 + $0x5a0] ss:$16 sps:$4 sm:$0xff]  }
 0x448   : > { %8344 = vmatpush1.bf16.msra.mxu1 %v11921_v63  ;;  %8263 = vmatprep.subr.bf16.mxu0 %v11922_v10  ;;  %v11965_v63 = vld [vmem:[#allocation5 + $0x5a8] ss:$16 sps:$4 sm:$0xff]   ;;  %v11966_v10 = vld [vmem:[#allocation5 + $0x5c4] ss:$16 sps:$4 sm:$0xff]  }
 0x449   : > { %8345 = vmatprep.subr.bf16.mxu1 %v11923_v37  ;;  %v11967_v37 = vld [vmem:[#allocation5 + $0x5cc] ss:$16 sps:$4 sm:$0xff]  }
 0x44b   : > { %8264 = vmatpush1.bf16.msra.mxu0 %v11924_v26  ;;  %v11968_v26 = vld [vmem:[#allocation5 + $0x5c0] ss:$16 sps:$4 sm:$0xff]  }
 0x44c   : > { %8346 = vmatpush1.bf16.msra.mxu1 %v11925_v13  ;;  %8265 = vmatprep.subr.bf16.mxu0 %v11926_v15  ;;  %v11969_v13 = vld [vmem:[#allocation5 + $0x5c8] ss:$16 sps:$4 sm:$0xff]   ;;  %v11970_v15 = vld [vmem:[#allocation5 + $0x5e4] ss:$16 sps:$4 sm:$0xff]  }
 0x44d   : > { %8347 = vmatprep.subr.bf16.mxu1 %v11927_v38  ;;  %v11971_v38 = vld [vmem:[#allocation5 + $0x5ec] ss:$16 sps:$4 sm:$0xff]  }
 0x44f   : > { %8266 = vmatpush1.bf16.msra.mxu0 %v11928_v43  ;;  %v11972_v43 = vld [vmem:[#allocation5 + $0x5e0] ss:$16 sps:$4 sm:$0xff]  }
 0x450   : > { %8348 = vmatpush1.bf16.msra.mxu1 %v11929_v46  ;;  %8267 = vmatprep.subr.bf16.mxu0 %v11930_v51  ;;  %v11973_v46 = vld [vmem:[#allocation5 + $0x5e8] ss:$16 sps:$4 sm:$0xff]   ;;  %v11974_v51 = vld [vmem:[#allocation5 + $0x604] ss:$16 sps:$4 sm:$0xff]  }
 0x451   : > { %8349 = vmatprep.subr.bf16.mxu1 %v11931_v30  ;;  %v11975_v30 = vld [vmem:[#allocation5 + $0x60c] ss:$16 sps:$4 sm:$0xff]  }
 0x453   : > { %8268 = vmatpush1.bf16.msra.mxu0 %v11932_v36  ;;  %v11976_v36 = vld [vmem:[#allocation5 + $0x600] ss:$16 sps:$4 sm:$0xff]  }
 0x454   : > { %8350 = vmatpush1.bf16.msra.mxu1 %v11933_v52  ;;  %8269 = vmatprep.subr.bf16.mxu0 %v11934_v6  ;;  %v11977_v52 = vld [vmem:[#allocation5 + $0x608] ss:$16 sps:$4 sm:$0xff]   ;;  %v11978_v6 = vld [vmem:[#allocation5 + $0x624] ss:$16 sps:$4 sm:$0xff]  }
 0x455   : > { %8351 = vmatprep.subr.bf16.mxu1 %v11935_v0  ;;  %v11979_v0 = vld [vmem:[#allocation5 + $0x62c] ss:$16 sps:$4 sm:$0xff]  }
 0x457   : > { %8270 = vmatpush1.bf16.msra.mxu0 %v11936_v11  ;;  %v11980_v11 = vld [vmem:[#allocation5 + $0x620] ss:$16 sps:$4 sm:$0xff]  }
 0x458   : > { %8352 = vmatpush1.bf16.msra.mxu1 %v11937_v12  ;;  %8271 = vmatprep.subr.bf16.mxu0 %v11938_v20  ;;  %v11981_v12 = vld [vmem:[#allocation5 + $0x628] ss:$16 sps:$4 sm:$0xff]   ;;  %v11982_v20 = vld [vmem:[#allocation5 + $0x644] ss:$16 sps:$4 sm:$0xff]  }
 0x459   : > { %8353 = vmatprep.subr.bf16.mxu1 %v11939_v32  ;;  %v11983_v32 = vld [vmem:[#allocation5 + $0x64c] ss:$16 sps:$4 sm:$0xff]  }
 0x45b   : > { %8272 = vmatpush1.bf16.msra.mxu0 %v11940_v33  ;;  %v11984_v33 = vld [vmem:[#allocation5 + $0x640] ss:$16 sps:$4 sm:$0xff]  }
 0x45c   : > { %8354 = vmatpush1.bf16.msra.mxu1 %v11941_v34  ;;  %8273 = vmatprep.subr.bf16.mxu0 %v11942_v40  ;;  %v11985_v34 = vld [vmem:[#allocation5 + $0x648] ss:$16 sps:$4 sm:$0xff]   ;;  %v11986_v40 = vld [vmem:[#allocation5 + $0x664] ss:$16 sps:$4 sm:$0xff]  }
 0x45d   : > { %8355 = vmatprep.subr.bf16.mxu1 %v11943_v47  ;;  %v11987_v47 = vld [vmem:[#allocation5 + $0x66c] ss:$16 sps:$4 sm:$0xff]  }
 0x45f   : > { %8274 = vmatpush1.bf16.msra.mxu0 %v11944_v50  ;;  %v11988_v50 = vld [vmem:[#allocation5 + $0x660] ss:$16 sps:$4 sm:$0xff]  }
 0x460   : > { %8356 = vmatpush1.bf16.msra.mxu1 %v11945_v23  ;;  %8275 = vmatprep.subr.bf16.mxu0 %v11946_v56  ;;  %v11989_v23 = vld [vmem:[#allocation5 + $0x668] ss:$16 sps:$4 sm:$0xff]   ;;  %v11990_v56 = vld [vmem:[#allocation5 + $0x684] ss:$16 sps:$4 sm:$0xff]  }
 0x461   : > { %8357 = vmatprep.subr.bf16.mxu1 %v11947_v55  ;;  %v11991_v55 = vld [vmem:[#allocation5 + $0x68c] ss:$16 sps:$4 sm:$0xff]  }
 0x463   : > { %8276 = vmatpush1.bf16.msra.mxu0 %v11948_v5  ;;  %v11992_v5 = vld [vmem:[#allocation5 + $0x680] ss:$16 sps:$4 sm:$0xff]  }
 0x464   : > { %8358 = vmatpush1.bf16.msra.mxu1 %v11949_v21  ;;  %8277 = vmatprep.subr.bf16.mxu0 %v11950_v35  ;;  %v11993_v21 = vld [vmem:[#allocation5 + $0x688] ss:$16 sps:$4 sm:$0xff]   ;;  %v11994_v35 = vld [vmem:[#allocation5 + $0x6a4] ss:$16 sps:$4 sm:$0xff]  }
 0x465   : > { %8359 = vmatprep.subr.bf16.mxu1 %v11951_v14  ;;  %v11995_v14 = vld [vmem:[#allocation5 + $0x6ac] ss:$16 sps:$4 sm:$0xff]  }
 0x467   : > { %8278 = vmatpush1.bf16.msra.mxu0 %v11952_v42  ;;  %v11996_v42 = vld [vmem:[#allocation5 + $0x6a0] ss:$16 sps:$4 sm:$0xff]  }
 0x468   : > { %8360 = vmatpush1.bf16.msra.mxu1 %v11953_v48  ;;  %8279 = vmatprep.subr.bf16.mxu0 %v11954_v1  ;;  %v11997_v48 = vld [vmem:[#allocation5 + $0x6a8] ss:$16 sps:$4 sm:$0xff]   ;;  %v11998_v1 = vld [vmem:[#allocation5 + $0x6c4] ss:$16 sps:$4 sm:$0xff]  }
 0x469   : > { %8361 = vmatprep.subr.bf16.mxu1 %v11955_v44  ;;  %v11999_v44 = vld [vmem:[#allocation5 + $0x6cc] ss:$16 sps:$4 sm:$0xff]  }
 0x46b   : > { %8280 = vmatpush1.bf16.msra.mxu0 %v11956_v29  ;;  %v12000_v29 = vld [vmem:[#allocation5 + $0x6c0] ss:$16 sps:$4 sm:$0xff]  }
 0x46c   : > { %8362 = vmatpush1.bf16.msra.mxu1 %v11957_v59  ;;  %8290 = vmatprep.subr.bf16.mxu0 %v11958_v61  ;;  %v12001_v59 = vld [vmem:[#allocation5 + $0x6c8] ss:$16 sps:$4 sm:$0xff]   ;;  %v12002_v61 = vld [vmem:[#allocation5 + $0x6e4] ss:$16 sps:$4 sm:$0xff]  }
 0x46d   : > { %8372 = vmatprep.subr.bf16.mxu1 %v11959_v4  ;;  %v12003_v4 = vld [vmem:[#allocation5 + $0x6ec] ss:$16 sps:$4 sm:$0xff]  }
 0x46e   : > { %8282 = vmatmul.mubr.bf16.vlgmr.msra.gmra.mrb[40].mxu0 %v13949_v7 }
 0x46f   : > { %8364 = vmatmul.mubr.bf16.vlgmr.msra.gmra.mrb[40].mxu1 %v13949_v7  ;;  %8291 = vmatpush1.bf16.msra.mxu0 %v11960_v54  ;;  %v12004_v54 = vld [vmem:[#allocation5 + $0x6e0] ss:$16 sps:$4 sm:$0xff]  }
 0x470   : > { %10410 = vmatprep.mubr.msk.bf16.mxu0 %vm3948_vm13, %v13953_v25  ;;  %8373 = vmatpush1.bf16.msra.mxu1 %v11961_v53  ;;  %v12005_v53 = vld [vmem:[#allocation5 + $0x6e8] ss:$16 sps:$4 sm:$0xff]  }
 0x471   : > { %10411 = vmatprep.mubr.msk.bf16.mxu1 %vm3948_vm13, %v13953_v25  ;;  %8292 = vmatprep.subr.bf16.mxu0 %v11962_v28  ;;  %v12006_v28 = vld [vmem:[#allocation5 + $0x4] ss:$16 sps:$4 sm:$0xff]  }
 0x472   : > { %8374 = vmatprep.subr.bf16.mxu1 %v11963_v3  ;;  %v12007_v3 = vld [vmem:[#allocation5 + $0xc] ss:$16 sps:$4 sm:$0xff]  }
 0x473   : > { %8293 = vmatpush1.bf16.msra.mxu0 %v11964_v9  ;;  %v12008_v9 = vld [vmem:[#allocation5] ss:$16 sps:$4 sm:$0xff]  }
 0x474   : > { %8375 = vmatpush1.bf16.msra.mxu1 %v11965_v63  ;;  %8294 = vmatprep.subr.bf16.mxu0 %v11966_v10  ;;  %v12009_v63 = vld [vmem:[#allocation5 + $0x8] ss:$16 sps:$4 sm:$0xff]   ;;  %v12010_v10 = vld [vmem:[#allocation5 + $0x24] ss:$16 sps:$4 sm:$0xff]  }
 0x475   : > { %8376 = vmatprep.subr.bf16.mxu1 %v11967_v37  ;;  %v12011_v37 = vld [vmem:[#allocation5 + $0x2c] ss:$16 sps:$4 sm:$0xff]  }
 0x477   : > { %8295 = vmatpush1.bf16.msra.mxu0 %v11968_v26  ;;  %v12012_v26 = vld [vmem:[#allocation5 + $0x20] ss:$16 sps:$4 sm:$0xff]  }
 0x478   : > { %8377 = vmatpush1.bf16.msra.mxu1 %v11969_v13  ;;  %8296 = vmatprep.subr.bf16.mxu0 %v11970_v15  ;;  %v12013_v13 = vld [vmem:[#allocation5 + $0x28] ss:$16 sps:$4 sm:$0xff]   ;;  %v12014_v15 = vld [vmem:[#allocation5 + $0x44] ss:$16 sps:$4 sm:$0xff]  }
 0x479   : > { %8378 = vmatprep.subr.bf16.mxu1 %v11971_v38  ;;  %v12015_v38 = vld [vmem:[#allocation5 + $0x4c] ss:$16 sps:$4 sm:$0xff]  }
 0x47b   : > { %8297 = vmatpush1.bf16.msra.mxu0 %v11972_v43  ;;  %v12016_v43 = vld [vmem:[#allocation5 + $0x40] ss:$16 sps:$4 sm:$0xff]  }
 0x47c   : > { %8379 = vmatpush1.bf16.msra.mxu1 %v11973_v46  ;;  %8298 = vmatprep.subr.bf16.mxu0 %v11974_v51  ;;  %v12017_v46 = vld [vmem:[#allocation5 + $0x48] ss:$16 sps:$4 sm:$0xff]   ;;  %v12018_v51 = vld [vmem:[#allocation5 + $0x64] ss:$16 sps:$4 sm:$0xff]  }
 0x47d   : > { %8380 = vmatprep.subr.bf16.mxu1 %v11975_v30  ;;  %v12019_v30 = vld [vmem:[#allocation5 + $0x6c] ss:$16 sps:$4 sm:$0xff]  }
 0x47f   : > { %8299 = vmatpush1.bf16.msra.mxu0 %v11976_v36  ;;  %v12020_v36 = vld [vmem:[#allocation5 + $0x60] ss:$16 sps:$4 sm:$0xff]  }
 0x480   : > { %8381 = vmatpush1.bf16.msra.mxu1 %v11977_v52  ;;  %8300 = vmatprep.subr.bf16.mxu0 %v11978_v6  ;;  %v12021_v52 = vld [vmem:[#allocation5 + $0x68] ss:$16 sps:$4 sm:$0xff]   ;;  %v12022_v6 = vld [vmem:[#allocation5 + $0x84] ss:$16 sps:$4 sm:$0xff]  }
 0x481   : > { %8382 = vmatprep.subr.bf16.mxu1 %v11979_v0  ;;  %v12023_v0 = vld [vmem:[#allocation5 + $0x8c] ss:$16 sps:$4 sm:$0xff]  }
 0x483   : > { %8301 = vmatpush1.bf16.msra.mxu0 %v11980_v11  ;;  %v12024_v11 = vld [vmem:[#allocation5 + $0x80] ss:$16 sps:$4 sm:$0xff]  }
 0x484   : > { %8383 = vmatpush1.bf16.msra.mxu1 %v11981_v12  ;;  %8302 = vmatprep.subr.bf16.mxu0 %v11982_v20  ;;  %v12025_v12 = vld [vmem:[#allocation5 + $0x88] ss:$16 sps:$4 sm:$0xff]   ;;  %v12026_v20 = vld [vmem:[#allocation5 + $0xa4] ss:$16 sps:$4 sm:$0xff]  }
 0x485   : > { %8384 = vmatprep.subr.bf16.mxu1 %v11983_v32  ;;  %v12027_v32 = vld [vmem:[#allocation5 + $0xac] ss:$16 sps:$4 sm:$0xff]  }
 0x487   : > { %8303 = vmatpush1.bf16.msra.mxu0 %v11984_v33  ;;  %v12028_v33 = vld [vmem:[#allocation5 + $0xa0] ss:$16 sps:$4 sm:$0xff]  }
 0x488   : > { %8385 = vmatpush1.bf16.msra.mxu1 %v11985_v34  ;;  %8304 = vmatprep.subr.bf16.mxu0 %v11986_v40  ;;  %v12029_v34 = vld [vmem:[#allocation5 + $0xa8] ss:$16 sps:$4 sm:$0xff]   ;;  %v12030_v40 = vld [vmem:[#allocation5 + $0xc4] ss:$16 sps:$4 sm:$0xff]  }
 0x489   : > { %8386 = vmatprep.subr.bf16.mxu1 %v11987_v47  ;;  %v12031_v47 = vld [vmem:[#allocation5 + $0xcc] ss:$16 sps:$4 sm:$0xff]  }
 0x48b   : > { %8305 = vmatpush1.bf16.msra.mxu0 %v11988_v50  ;;  %v12032_v50 = vld [vmem:[#allocation5 + $0xc0] ss:$16 sps:$4 sm:$0xff]  }
 0x48c   : > { %8387 = vmatpush1.bf16.msra.mxu1 %v11989_v23  ;;  %8306 = vmatprep.subr.bf16.mxu0 %v11990_v56  ;;  %v12033_v23 = vld [vmem:[#allocation5 + $0xc8] ss:$16 sps:$4 sm:$0xff]   ;;  %v12034_v56 = vld [vmem:[#allocation5 + $0xe4] ss:$16 sps:$4 sm:$0xff]  }
 0x48d   : > { %8388 = vmatprep.subr.bf16.mxu1 %v11991_v55  ;;  %v12035_v55 = vld [vmem:[#allocation5 + $0xec] ss:$16 sps:$4 sm:$0xff]  }
 0x48f   : > { %8307 = vmatpush1.bf16.msra.mxu0 %v11992_v5  ;;  %v12036_v5 = vld [vmem:[#allocation5 + $0xe0] ss:$16 sps:$4 sm:$0xff]  }
 0x490   : > { %8389 = vmatpush1.bf16.msra.mxu1 %v11993_v21  ;;  %8308 = vmatprep.subr.bf16.mxu0 %v11994_v35  ;;  %v12037_v21 = vld [vmem:[#allocation5 + $0xe8] ss:$16 sps:$4 sm:$0xff]   ;;  %v12038_v35 = vld [vmem:[#allocation5 + $0x104] ss:$16 sps:$4 sm:$0xff]  }
 0x491   : > { %8390 = vmatprep.subr.bf16.mxu1 %v11995_v14  ;;  %v12039_v14 = vld [vmem:[#allocation5 + $0x10c] ss:$16 sps:$4 sm:$0xff]  }
 0x493   : > { %8309 = vmatpush1.bf16.msra.mxu0 %v11996_v42  ;;  %v12040_v42 = vld [vmem:[#allocation5 + $0x100] ss:$16 sps:$4 sm:$0xff]  }
 0x494   : > { %8391 = vmatpush1.bf16.msra.mxu1 %v11997_v48  ;;  %8310 = vmatprep.subr.bf16.mxu0 %v11998_v1  ;;  %v12041_v48 = vld [vmem:[#allocation5 + $0x108] ss:$16 sps:$4 sm:$0xff]   ;;  %v12042_v1 = vld [vmem:[#allocation5 + $0x124] ss:$16 sps:$4 sm:$0xff]  }
 0x495   : > { %8392 = vmatprep.subr.bf16.mxu1 %v11999_v44  ;;  %v12043_v44 = vld [vmem:[#allocation5 + $0x12c] ss:$16 sps:$4 sm:$0xff]  }
 0x497   : > { %8311 = vmatpush1.bf16.msra.mxu0 %v12000_v29  ;;  %v12044_v29 = vld [vmem:[#allocation5 + $0x120] ss:$16 sps:$4 sm:$0xff]  }
 0x498   : > { %8393 = vmatpush1.bf16.msra.mxu1 %v12001_v59  ;;  %8312 = vmatprep.subr.bf16.mxu0 %v12002_v61  ;;  %v12045_v59 = vld [vmem:[#allocation5 + $0x128] ss:$16 sps:$4 sm:$0xff]   ;;  %v12046_v61 = vld [vmem:[#allocation5 + $0x144] ss:$16 sps:$4 sm:$0xff]  }
 0x499   : > { %8394 = vmatprep.subr.bf16.mxu1 %v12003_v4  ;;  %v12047_v4 = vld [vmem:[#allocation5 + $0x14c] ss:$16 sps:$4 sm:$0xff]  }
 0x49b   : > { %8313 = vmatpush1.bf16.msra.mxu0 %v12004_v54  ;;  %v12048_v54 = vld [vmem:[#allocation5 + $0x140] ss:$16 sps:$4 sm:$0xff]  }
 0x49c   : > { %8395 = vmatpush1.bf16.msra.mxu1 %v12005_v53  ;;  %8413 = vmatprep.subr.bf16.mxu0 %v12006_v28  ;;  %v12049_v53 = vld [vmem:[#allocation5 + $0x148] ss:$16 sps:$4 sm:$0xff]   ;;  %v12050_v28 = vld [vmem:[#allocation5 + $0x164] ss:$16 sps:$4 sm:$0xff]  }
 0x49d   : > { %8495 = vmatprep.subr.bf16.mxu1 %v12007_v3  ;;  %v12051_v3 = vld [vmem:[#allocation5 + $0x16c] ss:$16 sps:$4 sm:$0xff]  }
 0x49e   : > { %8323 = vmatmul.mubr.bf16.vlgmr.msra.gmra.mrb[40].mxu0 %v13962_v41 }
 0x49f   : > { %8405 = vmatmul.mubr.bf16.vlgmr.msra.gmra.mrb[40].mxu1 %v13962_v41  ;;  %8414 = vmatpush1.bf16.msra.mxu0 %v12008_v9  ;;  %v12052_v9 = vld [vmem:[#allocation5 + $0x160] ss:$16 sps:$4 sm:$0xff]  }
 0x4a0   : > { %8445 = vmatprep.mubr.bf16.mxu0 %v13833_v62  ;;  %8496 = vmatpush1.bf16.msra.mxu1 %v12009_v63  ;;  %v12053_v63 = vld [vmem:[#allocation5 + $0x168] ss:$16 sps:$4 sm:$0xff]  }
 0x4a1   : > { %8527 = vmatprep.mubr.bf16.mxu1 %v13833_v62  ;;  %8415 = vmatprep.subr.bf16.mxu0 %v12010_v10  ;;  %v12054_v10 = vld [vmem:[#allocation5 + $0x184] ss:$16 sps:$4 sm:$0xff]  }
 0x4a2   : > { %8497 = vmatprep.subr.bf16.mxu1 %v12011_v37  ;;  %v12055_v37 = vld [vmem:[#allocation5 + $0x18c] ss:$16 sps:$4 sm:$0xff]  }
 0x4a3   : > { %8416 = vmatpush1.bf16.msra.mxu0 %v12012_v26  ;;  %v12056_v26 = vld [vmem:[#allocation5 + $0x180] ss:$16 sps:$4 sm:$0xff]  }
 0x4a4   : > { %8498 = vmatpush1.bf16.msra.mxu1 %v12013_v13  ;;  %8417 = vmatprep.subr.bf16.mxu0 %v12014_v15  ;;  %v12057_v13 = vld [vmem:[#allocation5 + $0x188] ss:$16 sps:$4 sm:$0xff]   ;;  %v12058_v15 = vld [vmem:[#allocation5 + $0x1a4] ss:$16 sps:$4 sm:$0xff]  }
 0x4a5   : > { %8499 = vmatprep.subr.bf16.mxu1 %v12015_v38  ;;  %v12059_v38 = vld [vmem:[#allocation5 + $0x1ac] ss:$16 sps:$4 sm:$0xff]  }
 0x4a7   : > { %8418 = vmatpush1.bf16.msra.mxu0 %v12016_v43  ;;  %v12060_v43 = vld [vmem:[#allocation5 + $0x1a0] ss:$16 sps:$4 sm:$0xff]  }
 0x4a8   : > { %8500 = vmatpush1.bf16.msra.mxu1 %v12017_v46  ;;  %8419 = vmatprep.subr.bf16.mxu0 %v12018_v51  ;;  %v12061_v46 = vld [vmem:[#allocation5 + $0x1a8] ss:$16 sps:$4 sm:$0xff]   ;;  %v12062_v51 = vld [vmem:[#allocation5 + $0x1c4] ss:$16 sps:$4 sm:$0xff]  }
 0x4a9   : > { %8501 = vmatprep.subr.bf16.mxu1 %v12019_v30  ;;  %v12063_v30 = vld [vmem:[#allocation5 + $0x1cc] ss:$16 sps:$4 sm:$0xff]  }
 0x4ab   : > { %8420 = vmatpush1.bf16.msra.mxu0 %v12020_v36  ;;  %v12064_v36 = vld [vmem:[#allocation5 + $0x1c0] ss:$16 sps:$4 sm:$0xff]  }
 0x4ac   : > { %8502 = vmatpush1.bf16.msra.mxu1 %v12021_v52  ;;  %8421 = vmatprep.subr.bf16.mxu0 %v12022_v6  ;;  %v12065_v52 = vld [vmem:[#allocation5 + $0x1c8] ss:$16 sps:$4 sm:$0xff]   ;;  %v12066_v6 = vld [vmem:[#allocation5 + $0x1e4] ss:$16 sps:$4 sm:$0xff]  }
 0x4ad   : > { %8503 = vmatprep.subr.bf16.mxu1 %v12023_v0  ;;  %v12067_v0 = vld [vmem:[#allocation5 + $0x1ec] ss:$16 sps:$4 sm:$0xff]  }
 0x4af   : > { %8422 = vmatpush1.bf16.msra.mxu0 %v12024_v11  ;;  %v12068_v11 = vld [vmem:[#allocation5 + $0x1e0] ss:$16 sps:$4 sm:$0xff]  }
 0x4b0   : > { %8504 = vmatpush1.bf16.msra.mxu1 %v12025_v12  ;;  %8423 = vmatprep.subr.bf16.mxu0 %v12026_v20  ;;  %v12069_v12 = vld [vmem:[#allocation5 + $0x1e8] ss:$16 sps:$4 sm:$0xff]   ;;  %v12070_v20 = vld [vmem:[#allocation5 + $0x204] ss:$16 sps:$4 sm:$0xff]  }
 0x4b1   : > { %8505 = vmatprep.subr.bf16.mxu1 %v12027_v32  ;;  %v12071_v32 = vld [vmem:[#allocation5 + $0x20c] ss:$16 sps:$4 sm:$0xff]  }
 0x4b3   : > { %8424 = vmatpush1.bf16.msra.mxu0 %v12028_v33  ;;  %v12072_v33 = vld [vmem:[#allocation5 + $0x200] ss:$16 sps:$4 sm:$0xff]  }
 0x4b4   : > { %8506 = vmatpush1.bf16.msra.mxu1 %v12029_v34  ;;  %8425 = vmatprep.subr.bf16.mxu0 %v12030_v40  ;;  %v12073_v34 = vld [vmem:[#allocation5 + $0x208] ss:$16 sps:$4 sm:$0xff]   ;;  %v12074_v40 = vld [vmem:[#allocation5 + $0x224] ss:$16 sps:$4 sm:$0xff]  }
 0x4b5   : > { %8507 = vmatprep.subr.bf16.mxu1 %v12031_v47  ;;  %v12075_v47 = vld [vmem:[#allocation5 + $0x22c] ss:$16 sps:$4 sm:$0xff]  }
 0x4b7   : > { %8426 = vmatpush1.bf16.msra.mxu0 %v12032_v50  ;;  %v12076_v50 = vld [vmem:[#allocation5 + $0x220] ss:$16 sps:$4 sm:$0xff]  }
 0x4b8   : > { %8508 = vmatpush1.bf16.msra.mxu1 %v12033_v23  ;;  %8427 = vmatprep.subr.bf16.mxu0 %v12034_v56  ;;  %v12077_v23 = vld [vmem:[#allocation5 + $0x228] ss:$16 sps:$4 sm:$0xff]   ;;  %v12078_v56 = vld [vmem:[#allocation5 + $0x244] ss:$16 sps:$4 sm:$0xff]  }
 0x4b9   : > { %8509 = vmatprep.subr.bf16.mxu1 %v12035_v55  ;;  %v12079_v55 = vld [vmem:[#allocation5 + $0x24c] ss:$16 sps:$4 sm:$0xff]  }
 0x4bb   : > { %8428 = vmatpush1.bf16.msra.mxu0 %v12036_v5  ;;  %v12080_v5 = vld [vmem:[#allocation5 + $0x240] ss:$16 sps:$4 sm:$0xff]  }
 0x4bc   : > { %8510 = vmatpush1.bf16.msra.mxu1 %v12037_v21  ;;  %8429 = vmatprep.subr.bf16.mxu0 %v12038_v35  ;;  %v12081_v21 = vld [vmem:[#allocation5 + $0x248] ss:$16 sps:$4 sm:$0xff]   ;;  %v12082_v35 = vld [vmem:[#allocation5 + $0x264] ss:$16 sps:$4 sm:$0xff]  }
 0x4bd   : > { %8511 = vmatprep.subr.bf16.mxu1 %v12039_v14  ;;  %v12083_v14 = vld [vmem:[#allocation5 + $0x26c] ss:$16 sps:$4 sm:$0xff]  }
 0x4bf   : > { %8430 = vmatpush1.bf16.msra.mxu0 %v12040_v42  ;;  %v12084_v42 = vld [vmem:[#allocation5 + $0x260] ss:$16 sps:$4 sm:$0xff]  }
 0x4c0   : > { %8512 = vmatpush1.bf16.msra.mxu1 %v12041_v48  ;;  %8431 = vmatprep.subr.bf16.mxu0 %v12042_v1  ;;  %v12085_v48 = vld [vmem:[#allocation5 + $0x268] ss:$16 sps:$4 sm:$0xff]   ;;  %v12086_v1 = vld [vmem:[#allocation5 + $0x284] ss:$16 sps:$4 sm:$0xff]  }
 0x4c1   : > { %8513 = vmatprep.subr.bf16.mxu1 %v12043_v44  ;;  %v12087_v44 = vld [vmem:[#allocation5 + $0x28c] ss:$16 sps:$4 sm:$0xff]  }
 0x4c3   : > { %8432 = vmatpush1.bf16.msra.mxu0 %v12044_v29  ;;  %v12088_v29 = vld [vmem:[#allocation5 + $0x280] ss:$16 sps:$4 sm:$0xff]  }
 0x4c4   : > { %8514 = vmatpush1.bf16.msra.mxu1 %v12045_v59  ;;  %8433 = vmatprep.subr.bf16.mxu0 %v12046_v61  ;;  %v12089_v59 = vld [vmem:[#allocation5 + $0x288] ss:$16 sps:$4 sm:$0xff]   ;;  %v12090_v61 = vld [vmem:[#allocation5 + $0x2a4] ss:$16 sps:$4 sm:$0xff]  }
 0x4c5   : > { %8515 = vmatprep.subr.bf16.mxu1 %v12047_v4  ;;  %v12091_v4 = vld [vmem:[#allocation5 + $0x2ac] ss:$16 sps:$4 sm:$0xff]  }
 0x4c7   : > { %8434 = vmatpush1.bf16.msra.mxu0 %v12048_v54  ;;  %v12092_v54 = vld [vmem:[#allocation5 + $0x2a0] ss:$16 sps:$4 sm:$0xff]  }
 0x4c8   : > { %8516 = vmatpush1.bf16.msra.mxu1 %v12049_v53  ;;  %8435 = vmatprep.subr.bf16.mxu0 %v12050_v28  ;;  %v12093_v53 = vld [vmem:[#allocation5 + $0x2a8] ss:$16 sps:$4 sm:$0xff]   ;;  %v12094_v28 = vld [vmem:[#allocation5 + $0x2c4] ss:$16 sps:$4 sm:$0xff]  }
 0x4c9   : > { %8517 = vmatprep.subr.bf16.mxu1 %v12051_v3  ;;  %v12095_v3 = vld [vmem:[#allocation5 + $0x2cc] ss:$16 sps:$4 sm:$0xff]  }
 0x4cb   : > { %8436 = vmatpush1.bf16.msra.mxu0 %v12052_v9  ;;  %v12096_v9 = vld [vmem:[#allocation5 + $0x2c0] ss:$16 sps:$4 sm:$0xff]  }
 0x4cc   : > { %8518 = vmatpush1.bf16.msra.mxu1 %v12053_v63  ;;  %8437 = vmatprep.subr.bf16.mxu0 %v12054_v10  ;;  %v12097_v63 = vld [vmem:[#allocation5 + $0x2c8] ss:$16 sps:$4 sm:$0xff]   ;;  %v12098_v10 = vld [vmem:[#allocation5 + $0x2e4] ss:$16 sps:$4 sm:$0xff]  }
 0x4cd   : > { %8519 = vmatprep.subr.bf16.mxu1 %v12055_v37  ;;  %v12099_v37 = vld [vmem:[#allocation5 + $0x2ec] ss:$16 sps:$4 sm:$0xff]  }
 0x4cf   : > { %8438 = vmatpush1.bf16.msra.mxu0 %v12056_v26  ;;  %v12100_v26 = vld [vmem:[#allocation5 + $0x2e0] ss:$16 sps:$4 sm:$0xff]  }
 0x4d0   : > { %8520 = vmatpush1.bf16.msra.mxu1 %v12057_v13  ;;  %8439 = vmatprep.subr.bf16.mxu0 %v12058_v15  ;;  %v12101_v13 = vld [vmem:[#allocation5 + $0x2e8] ss:$16 sps:$4 sm:$0xff]   ;;  %v12102_v15 = vld [vmem:[#allocation5 + $0x304] ss:$16 sps:$4 sm:$0xff]  }
 0x4d1   : > { %8521 = vmatprep.subr.bf16.mxu1 %v12059_v38  ;;  %v12103_v38 = vld [vmem:[#allocation5 + $0x30c] ss:$16 sps:$4 sm:$0xff]  }
 0x4d3   : > { %8440 = vmatpush1.bf16.msra.mxu0 %v12060_v43  ;;  %v12104_v43 = vld [vmem:[#allocation5 + $0x300] ss:$16 sps:$4 sm:$0xff]  }
 0x4d4   : > { %8522 = vmatpush1.bf16.msra.mxu1 %v12061_v46  ;;  %8441 = vmatprep.subr.bf16.mxu0 %v12062_v51  ;;  %v12105_v46 = vld [vmem:[#allocation5 + $0x308] ss:$16 sps:$4 sm:$0xff]   ;;  %v12106_v51 = vld [vmem:[#allocation5 + $0x324] ss:$16 sps:$4 sm:$0xff]  }
 0x4d5   : > { %8523 = vmatprep.subr.bf16.mxu1 %v12063_v30 }
 0x4d7   : > { %8442 = vmatpush1.bf16.msra.mxu0 %v12064_v36  ;;  %v12107_v36 = vld [vmem:[#allocation5 + $0x32c] ss:$16 sps:$4 sm:$0xff]  }
 0x4d8   : > { %8524 = vmatpush1.bf16.msra.mxu1 %v12065_v52  ;;  %8443 = vmatprep.subr.bf16.mxu0 %v12066_v6 }
 0x4d9   : > { %8525 = vmatprep.subr.bf16.mxu1 %v12067_v0 }
 0x4db   : > { %8444 = vmatpush1.bf16.msra.mxu0 %v12068_v11 }
 0x4dc   : > { %8526 = vmatpush1.bf16.msra.mxu1 %v12069_v12  ;;  %8454 = vmatprep.subr.bf16.mxu0 %v12070_v20 }
 0x4dd   : > { %8536 = vmatprep.subr.bf16.mxu1 %v12071_v32 }
 0x4de   : > { %8446 = vmatmul.mubr.bf16.vlgmr.msra.gmra.mrb[40].mxu0 %v13831_v58 }
 0x4df   : > { %8528 = vmatmul.mubr.bf16.vlgmr.msra.gmra.mrb[40].mxu1 %v13831_v58  ;;  %8455 = vmatpush1.bf16.msra.mxu0 %v12072_v33  ;;  %v12108_v33 = vld [vmem:[#allocation5 + $0x320] ss:$16 sps:$4 sm:$0xff]  }
 0x4e0   : > { %10412 = vmatprep.mubr.msk.bf16.mxu0 %vm3948_vm13, %v13840_v19  ;;  %8537 = vmatpush1.bf16.msra.mxu1 %v12073_v34 }
 0x4e1   : > { %10413 = vmatprep.mubr.msk.bf16.mxu1 %vm3948_vm13, %v13840_v19  ;;  %8456 = vmatprep.subr.bf16.mxu0 %v12074_v40 }
 0x4e2   : > { %8538 = vmatprep.subr.bf16.mxu1 %v12075_v47  ;;  %v12109_v47 = vld [vmem:[#allocation5 + $0x328] ss:$16 sps:$4 sm:$0xff]  }
 0x4e3   : > { %8457 = vmatpush1.bf16.msra.mxu0 %v12076_v50 }
 0x4e4   : > { %8539 = vmatpush1.bf16.msra.mxu1 %v12077_v23  ;;  %8458 = vmatprep.subr.bf16.mxu0 %v12078_v56  ;;  %v12110_v23 = vld [vmem:[#allocation5 + $0x344] ss:$16 sps:$4 sm:$0xff]  }
 0x4e5   : > { %8540 = vmatprep.subr.bf16.mxu1 %v12079_v55  ;;  %v12111_v55 = vld [vmem:[#allocation5 + $0x34c] ss:$16 sps:$4 sm:$0xff]  }
 0x4e7   : > { %8459 = vmatpush1.bf16.msra.mxu0 %v12080_v5  ;;  %v8587_v5 = vshll.u32 %v13833_v62, 16 }
 0x4e8   : > { %8541 = vmatpush1.bf16.msra.mxu1 %v12081_v21  ;;  %8460 = vmatprep.subr.bf16.mxu0 %v12082_v35  ;;  %v12112_v21 = vld [vmem:[#allocation5 + $0x340] ss:$16 sps:$4 sm:$0xff]   ;;  %v12113_v35 = vld [vmem:[#allocation5 + $0x348] ss:$16 sps:$4 sm:$0xff]  }
 0x4e9   : > { %8542 = vmatprep.subr.bf16.mxu1 %v12083_v14  ;;  %v12114_v14 = vld [vmem:[#allocation5 + $0x364] ss:$16 sps:$4 sm:$0xff]  }
 0x4eb   : > { %8461 = vmatpush1.bf16.msra.mxu0 %v12084_v42  ;;  %v12115_v42 = vld [vmem:[#allocation5 + $0x36c] ss:$16 sps:$4 sm:$0xff]  }
 0x4ec   : > { %8543 = vmatpush1.bf16.msra.mxu1 %v12085_v48  ;;  %8462 = vmatprep.subr.bf16.mxu0 %v12086_v1  ;;  %v8589_v48 = vrot.slane %v8587_v5, 1  ;;  %v12116_v1 = vld [vmem:[#allocation5 + $0x360] ss:$16 sps:$4 sm:$0xff]  }
 0x4ed   : > { %8544 = vmatprep.subr.bf16.mxu1 %v12087_v44  ;;  %v12117_v44 = vld [vmem:[#allocation5 + $0x368] ss:$16 sps:$4 sm:$0xff]   ;;  %v12144_v5 = vld [vmem:[#allocation5 + $0x7c0] ss:$16 sps:$4 sm:$0xff]  }
 0x4ef   : > { %8463 = vmatpush1.bf16.msra.mxu0 %v12088_v29  ;;  %v12118_v29 = vld [vmem:[#allocation5 + $0x704] ss:$16 sps:$4 sm:$0xff]  }
 0x4f0   : > { %8545 = vmatpush1.bf16.msra.mxu1 %v12089_v59  ;;  %8464 = vmatprep.subr.bf16.mxu0 %v12090_v61  ;;  %v8585_v59 = vshrl.u32 %v13833_v62, 16  ;;  %v12119_v61 = vld [vmem:[#allocation5 + $0x70c] ss:$16 sps:$4 sm:$0xff]  }
 0x4f1   : > { %8546 = vmatprep.subr.bf16.mxu1 %v12091_v4 }
 0x4f2   : > { %v14041_v4 = vor.u32 %v8589_v48, %v8585_v59  ;;  %v12149_v48 = vld [vmem:[#allocation5 + $0x7e8] ss:$16 sps:$4 sm:$0xff]  }
 0x4f3   : > { %8465 = vmatpush1.bf16.msra.mxu0 %v12092_v54  ;;  %v12120_v54 = vld [vmem:[#allocation5 + $0x700] ss:$16 sps:$4 sm:$0xff]   ;;  %v12153_v59 = vld [vmem:[#allocation5 + $0x808] ss:$16 sps:$4 sm:$0xff]  }
 0x4f4   : > { %8547 = vmatpush1.bf16.msra.mxu1 %v12093_v53  ;;  %8466 = vmatprep.subr.bf16.mxu0 %v12094_v28  ;;  %v12121_v53 = vld [vmem:[#allocation5 + $0x708] ss:$16 sps:$4 sm:$0xff]   ;;  %v12122_v28 = vld [vmem:[#allocation5 + $0x724] ss:$16 sps:$4 sm:$0xff]  }
 0x4f5   : > { %8548 = vmatprep.subr.bf16.mxu1 %v12095_v3  ;;  %v12123_v3 = vld [vmem:[#allocation5 + $0x72c] ss:$16 sps:$4 sm:$0xff]  }
 0x4f7   : > { %8467 = vmatpush1.bf16.msra.mxu0 %v12096_v9  ;;  %v12124_v9 = vld [vmem:[#allocation5 + $0x720] ss:$16 sps:$4 sm:$0xff]  }
 0x4f8   : > { %8549 = vmatpush1.bf16.msra.mxu1 %v12097_v63  ;;  %8468 = vmatprep.subr.bf16.mxu0 %v12098_v10  ;;  %v12125_v63 = vld [vmem:[#allocation5 + $0x728] ss:$16 sps:$4 sm:$0xff]   ;;  %v12126_v10 = vld [vmem:[#allocation5 + $0x744] ss:$16 sps:$4 sm:$0xff]  }
 0x4f9   : > { %8550 = vmatprep.subr.bf16.mxu1 %v12099_v37  ;;  %v12127_v37 = vld [vmem:[#allocation5 + $0x74c] ss:$16 sps:$4 sm:$0xff]  }
 0x4fb   : > { %8469 = vmatpush1.bf16.msra.mxu0 %v12100_v26  ;;  %v12128_v26 = vld [vmem:[#allocation5 + $0x740] ss:$16 sps:$4 sm:$0xff]  }
 0x4fc   : > { %8551 = vmatpush1.bf16.msra.mxu1 %v12101_v13  ;;  %8470 = vmatprep.subr.bf16.mxu0 %v12102_v15  ;;  %v12129_v13 = vld [vmem:[#allocation5 + $0x748] ss:$16 sps:$4 sm:$0xff]   ;;  %v12130_v15 = vld [vmem:[#allocation5 + $0x764] ss:$16 sps:$4 sm:$0xff]  }
 0x4fd   : > { %8552 = vmatprep.subr.bf16.mxu1 %v12103_v38  ;;  %v12131_v38 = vld [vmem:[#allocation5 + $0x76c] ss:$16 sps:$4 sm:$0xff]  }
 0x4ff   : > { %8471 = vmatpush1.bf16.msra.mxu0 %v12104_v43  ;;  %v12132_v43 = vld [vmem:[#allocation5 + $0x760] ss:$16 sps:$4 sm:$0xff]  }
 0x500   : > { %8553 = vmatpush1.bf16.msra.mxu1 %v12105_v46  ;;  %8472 = vmatprep.subr.bf16.mxu0 %v12106_v51  ;;  %v12133_v46 = vld [vmem:[#allocation5 + $0x768] ss:$16 sps:$4 sm:$0xff]   ;;  %v12134_v51 = vld [vmem:[#allocation5 + $0x784] ss:$16 sps:$4 sm:$0xff]  }
 0x501   : > { %v14022_v30 = vpop.f32.mrb[36].mxu0  ;;  %8554 = vmatprep.subr.bf16.mxu1 %v12107_v36  ;;  %v12135_v36 = vld [vmem:[#allocation5 + $0x78c] ss:$16 sps:$4 sm:$0xff]  }
 0x502   : > { %v8245_v52 = vmax.f32 %v13984_v57, %v14022_v30  ;;  %v14026_v6 = vpop.f32.mrb[36].mxu1  ;;  %v14028_v0 = vpop.f32.mrb[37].mxu0 }
 0x503   : > { %v8247_v11 = vmax.f32 %v13986_v2, %v14026_v6  ;;  %v8246_v12 = vmax.f32 %v13988_v8, %v14028_v0  ;;  %v14034_v20 = vpop.f32.mrb[37].mxu1  ;;  %v8156_v32 = vpop.f32.mrb[38].mxu0  ;;  %8473 = vmatpush1.bf16.msra.mxu0 %v12108_v33  ;;  %v12137_v33 = vld [vmem:[#allocation5 + $0x788] ss:$16 sps:$4 sm:$0xff]   ;;  %v12446_v6 = vld [vmem:[#allocation5 + $0xdc4] ss:$16 sps:$4 sm:$0xff]  }
 0x504   : > { %v8248_v34 = vmax.f32 %v13990_v27, %v14034_v20  ;;  %v8238_v40 = vpop.f32.mrb[38].mxu1  ;;  %8555 = vmatpush1.bf16.msra.mxu1 %v12109_v47  ;;  %v8157_v50 = vpop.f32.mrb[39].mxu0  ;;  %8474 = vmatprep.subr.bf16.mxu0 %v12110_v23  ;;  %v12136_v32 = vld [vmem:[#allocation5 + $0x780] ss:$16 sps:$4 sm:$0xff]   ;;  %v12139_v47 = vld [vmem:[#allocation5 + $0x7ac] ss:$16 sps:$4 sm:$0xff]  }
 0x505   : > { %v8239_v56 = vpop.f32.mrb[39].mxu1  ;;  %8556 = vmatprep.subr.bf16.mxu1 %v12111_v55  ;;  %v12138_v40 = vld [vmem:[#allocation5 + $0x7a4] ss:$16 sps:$4 sm:$0xff]   ;;  %v12140_v50 = vld [vmem:[#allocation5 + $0x7a0] ss:$16 sps:$4 sm:$0xff]  }
 0x506   : > { %v12141_v23 = vld [vmem:[#allocation5 + $0x7a8] ss:$16 sps:$4 sm:$0xff]   ;;  %v12142_v56 = vld [vmem:[#allocation5 + $0x7c4] ss:$16 sps:$4 sm:$0xff]   ;;  %v12143_v55 = vld [vmem:[#allocation5 + $0x7cc] ss:$16 sps:$4 sm:$0xff]  }
 0x507   : > { %8475 = vmatpush1.bf16.msra.mxu0 %v12112_v21  ;;  %v12145_v21 = vld [vmem:[#allocation5 + $0x7c8] ss:$16 sps:$4 sm:$0xff]   ;;  %v12448_v8 = vld [vmem:[#allocation5 + $0xdc0] ss:$16 sps:$4 sm:$0xff]  }
 0x508   : > { %8557 = vmatpush1.bf16.msra.mxu1 %v12113_v35  ;;  %8476 = vmatprep.subr.bf16.mxu0 %v12114_v14  ;;  %v12146_v35 = vld [vmem:[#allocation5 + $0x7e4] ss:$16 sps:$4 sm:$0xff]   ;;  %v12147_v14 = vld [vmem:[#allocation5 + $0x7ec] ss:$16 sps:$4 sm:$0xff]   ;;  %v12449_v0 = vld [vmem:[#allocation5 + $0xdc8] ss:$16 sps:$4 sm:$0xff]  }
 0x509   : > { %8558 = vmatprep.subr.bf16.mxu1 %v12115_v42  ;;  %v12148_v42 = vld [vmem:[#allocation5 + $0x7e0] ss:$16 sps:$4 sm:$0xff]   ;;  %v12453_v20 = vld [vmem:[#allocation5 + $0xde8] ss:$16 sps:$4 sm:$0xff]  }
 0x50a   : > { %v12452_v27 = vld [vmem:[#allocation5 + $0xde0] ss:$16 sps:$4 sm:$0xff]  }
 0x50b   : > { %8477 = vmatpush1.bf16.msra.mxu0 %v12116_v1  ;;  %v12150_v1 = vld [vmem:[#allocation5 + $0x804] ss:$16 sps:$4 sm:$0xff]  }
 0x50c   : > { %8559 = vmatpush1.bf16.msra.mxu1 %v12117_v44  ;;  %8610 = vmatprep.subr.bf16.mxu0 %v12118_v29  ;;  %v12151_v44 = vld [vmem:[#allocation5 + $0x80c] ss:$16 sps:$4 sm:$0xff]   ;;  %v12152_v29 = vld [vmem:[#allocation5 + $0x800] ss:$16 sps:$4 sm:$0xff]  }
 0x50d   : > { %8692 = vmatprep.subr.bf16.mxu1 %v12119_v61  ;;  %v12154_v61 = vld [vmem:[#allocation5 + $0x824] ss:$16 sps:$4 sm:$0xff]  }
 0x50e   : > { %8487 = vmatmul.mubr.bf16.vlgmr.msra.gmra.mrb[40].mxu0 %v13858_v49 }
 0x50f   : > { %8569 = vmatmul.mubr.bf16.vlgmr.msra.gmra.mrb[40].mxu1 %v13858_v49  ;;  %8611 = vmatpush1.bf16.msra.mxu0 %v12120_v54  ;;  %v12155_v54 = vld [vmem:[#allocation5 + $0x82c] ss:$16 sps:$4 sm:$0xff]  }
 0x510   : > { %8642 = vmatprep.mubr.bf16.mxu0 %v14041_v4  ;;  %8693 = vmatpush1.bf16.msra.mxu1 %v12121_v53  ;;  %v12156_v53 = vld [vmem:[#allocation5 + $0x820] ss:$16 sps:$4 sm:$0xff]  }
 0x511   : > { %8724 = vmatprep.mubr.bf16.mxu1 %v14041_v4  ;;  %8612 = vmatprep.subr.bf16.mxu0 %v12122_v28  ;;  %v12157_v28 = vld [vmem:[#allocation5 + $0x828] ss:$16 sps:$4 sm:$0xff]  }
 0x512   : > { %8694 = vmatprep.subr.bf16.mxu1 %v12123_v3  ;;  %v12158_v3 = vld [vmem:[#allocation5 + $0x844] ss:$16 sps:$4 sm:$0xff]  }
 0x513   : > { %8613 = vmatpush1.bf16.msra.mxu0 %v12124_v9  ;;  %v12159_v9 = vld [vmem:[#allocation5 + $0x84c] ss:$16 sps:$4 sm:$0xff]  }
 0x514   : > { %8695 = vmatpush1.bf16.msra.mxu1 %v12125_v63  ;;  %8614 = vmatprep.subr.bf16.mxu0 %v12126_v10  ;;  %v12160_v63 = vld [vmem:[#allocation5 + $0x840] ss:$16 sps:$4 sm:$0xff]   ;;  %v12161_v10 = vld [vmem:[#allocation5 + $0x848] ss:$16 sps:$4 sm:$0xff]  }
 0x515   : > { %8696 = vmatprep.subr.bf16.mxu1 %v12127_v37  ;;  %v12162_v37 = vld [vmem:[#allocation5 + $0x864] ss:$16 sps:$4 sm:$0xff]  }
 0x517   : > { %8615 = vmatpush1.bf16.msra.mxu0 %v12128_v26  ;;  %v12163_v26 = vld [vmem:[#allocation5 + $0x86c] ss:$16 sps:$4 sm:$0xff]  }
 0x518   : > { %8697 = vmatpush1.bf16.msra.mxu1 %v12129_v13  ;;  %8616 = vmatprep.subr.bf16.mxu0 %v12130_v15  ;;  %v12164_v13 = vld [vmem:[#allocation5 + $0x860] ss:$16 sps:$4 sm:$0xff]   ;;  %v12165_v15 = vld [vmem:[#allocation5 + $0x868] ss:$16 sps:$4 sm:$0xff]  }
 0x519   : > { %8698 = vmatprep.subr.bf16.mxu1 %v12131_v38  ;;  %v12166_v38 = vld [vmem:[#allocation5 + $0x884] ss:$16 sps:$4 sm:$0xff]  }
 0x51b   : > { %8617 = vmatpush1.bf16.msra.mxu0 %v12132_v43  ;;  %v12167_v43 = vld [vmem:[#allocation5 + $0x88c] ss:$16 sps:$4 sm:$0xff]  }
 0x51c   : > { %8699 = vmatpush1.bf16.msra.mxu1 %v12133_v46  ;;  %8618 = vmatprep.subr.bf16.mxu0 %v12134_v51  ;;  %v12168_v46 = vld [vmem:[#allocation5 + $0x880] ss:$16 sps:$4 sm:$0xff]   ;;  %v12169_v51 = vld [vmem:[#allocation5 + $0x888] ss:$16 sps:$4 sm:$0xff]  }
 0x51d   : > { %8700 = vmatprep.subr.bf16.mxu1 %v12135_v36  ;;  %v12170_v36 = vld [vmem:[#allocation5 + $0x8a4] ss:$16 sps:$4 sm:$0xff]  }
 0x51f   : > { %8619 = vmatpush1.bf16.msra.mxu0 %v12136_v32  ;;  %v12171_v32 = vld [vmem:[#allocation5 + $0x8ac] ss:$16 sps:$4 sm:$0xff]  }
 0x520   : > { %8701 = vmatpush1.bf16.msra.mxu1 %v12137_v33  ;;  %8620 = vmatprep.subr.bf16.mxu0 %v12138_v40  ;;  %v12172_v33 = vld [vmem:[#allocation5 + $0x8a0] ss:$16 sps:$4 sm:$0xff]   ;;  %v12173_v40 = vld [vmem:[#allocation5 + $0x8a8] ss:$16 sps:$4 sm:$0xff]  }
 0x521   : > { %8702 = vmatprep.subr.bf16.mxu1 %v12139_v47  ;;  %v12174_v47 = vld [vmem:[#allocation5 + $0x8c4] ss:$16 sps:$4 sm:$0xff]  }
 0x523   : > { %8621 = vmatpush1.bf16.msra.mxu0 %v12140_v50  ;;  %v8580_v50 = vshll.u32 %v13831_v58, 16 }
 0x524   : > { %8703 = vmatpush1.bf16.msra.mxu1 %v12141_v23  ;;  %8622 = vmatprep.subr.bf16.mxu0 %v12142_v56  ;;  %v12175_v23 = vld [vmem:[#allocation5 + $0x8cc] ss:$16 sps:$4 sm:$0xff]   ;;  %v8600_v56 = vshll.u32 %v13840_v19, 16 }
 0x525   : > { %8704 = vmatprep.subr.bf16.mxu1 %v12143_v55  ;;  %v12176_v55 = vld [vmem:[#allocation5 + $0x8c0] ss:$16 sps:$4 sm:$0xff]  }
 0x527   : > { %8623 = vmatpush1.bf16.msra.mxu0 %v12144_v5  ;;  %v12177_v5 = vld [vmem:[#allocation5 + $0x8c8] ss:$16 sps:$4 sm:$0xff]  }
 0x528   : > { %8705 = vmatpush1.bf16.msra.mxu1 %v12145_v21  ;;  %8624 = vmatprep.subr.bf16.mxu0 %v12146_v35  ;;  %v12178_v21 = vld [vmem:[#allocation5 + $0x8e4] ss:$16 sps:$4 sm:$0xff]   ;;  %v8582_v35 = vrot.slane %v8580_v50, 1 }
 0x529   : > { %8706 = vmatprep.subr.bf16.mxu1 %v12147_v14  ;;  %v12179_v14 = vld [vmem:[#allocation5 + $0x8ec] ss:$16 sps:$4 sm:$0xff]   ;;  %v12202_v50 = vld [vmem:[#allocation5 + $0x9a4] ss:$16 sps:$4 sm:$0xff]  }
 0x52b   : > { %8625 = vmatpush1.bf16.msra.mxu0 %v12148_v42  ;;  %v8578_v42 = vshrl.u32 %v13831_v58, 16 }
 0x52c   : > { %8707 = vmatpush1.bf16.msra.mxu1 %v12149_v48  ;;  %8626 = vmatprep.subr.bf16.mxu0 %v12150_v1  ;;  %v8602_v48 = vrot.slane %v8600_v56, 1  ;;  %v12180_v1 = vld [vmem:[#allocation5 + $0x8e0] ss:$16 sps:$4 sm:$0xff]  }
 0x52d   : > { %8708 = vmatprep.subr.bf16.mxu1 %v12151_v44  ;;  %v12181_v44 = vld [vmem:[#allocation5 + $0x8e8] ss:$16 sps:$4 sm:$0xff]   ;;  %v12204_v56 = vld [vmem:[#allocation5 + $0x9a0] ss:$16 sps:$4 sm:$0xff]  }
 0x52f   : > { %8627 = vmatpush1.bf16.msra.mxu0 %v12152_v29  ;;  %v14049_v29 = vor.u32 %v8582_v35, %v8578_v42  ;;  %v12208_v35 = vld [vmem:[#allocation5 + $0x9c0] ss:$16 sps:$4 sm:$0xff]   ;;  %v12210_v42 = vld [vmem:[#allocation5 + $0x9e4] ss:$16 sps:$4 sm:$0xff]  }
 0x530   : > { %8709 = vmatpush1.bf16.msra.mxu1 %v12153_v59  ;;  %8628 = vmatprep.subr.bf16.mxu0 %v12154_v61  ;;  %v12182_v59 = vld [vmem:[#allocation5 + $0x904] ss:$16 sps:$4 sm:$0xff]   ;;  %v8598_v61 = vshrl.u32 %v13840_v19, 16 }
 0x531   : > { %8710 = vmatprep.subr.bf16.mxu1 %v12155_v54  ;;  %v12183_v54 = vld [vmem:[#allocation5 + $0x90c] ss:$16 sps:$4 sm:$0xff]  }
 0x533   : > { %8629 = vmatpush1.bf16.msra.mxu0 %v12156_v53  ;;  %v14053_v53 = vor.u32 %v8602_v48, %v8598_v61  ;;  %v12211_v48 = vld [vmem:[#allocation5 + $0x9ec] ss:$16 sps:$4 sm:$0xff]  }
 0x534   : > { %8711 = vmatpush1.bf16.msra.mxu1 %v12157_v28  ;;  %8630 = vmatprep.subr.bf16.mxu0 %v12158_v3  ;;  %v12184_v28 = vld [vmem:[#allocation5 + $0x900] ss:$16 sps:$4 sm:$0xff]   ;;  %v12185_v3 = vld [vmem:[#allocation5 + $0x908] ss:$16 sps:$4 sm:$0xff]   ;;  %v12215_v61 = vld [vmem:[#allocation5 + $0xa0c] ss:$16 sps:$4 sm:$0xff]  }
 0x535   : > { %8712 = vmatprep.subr.bf16.mxu1 %v12159_v9  ;;  %v12186_v9 = vld [vmem:[#allocation5 + $0x924] ss:$16 sps:$4 sm:$0xff]  }
 0x537   : > { %8631 = vmatpush1.bf16.msra.mxu0 %v12160_v63  ;;  %v12187_v63 = vld [vmem:[#allocation5 + $0x92c] ss:$16 sps:$4 sm:$0xff]  }
 0x538   : > { %8713 = vmatpush1.bf16.msra.mxu1 %v12161_v10  ;;  %8632 = vmatprep.subr.bf16.mxu0 %v12162_v37  ;;  %v12188_v10 = vld [vmem:[#allocation5 + $0x920] ss:$16 sps:$4 sm:$0xff]   ;;  %v12189_v37 = vld [vmem:[#allocation5 + $0x928] ss:$16 sps:$4 sm:$0xff]  }
 0x539   : > { %8714 = vmatprep.subr.bf16.mxu1 %v12163_v26  ;;  %v12190_v26 = vld [vmem:[#allocation5 + $0x944] ss:$16 sps:$4 sm:$0xff]  }
 0x53b   : > { %8633 = vmatpush1.bf16.msra.mxu0 %v12164_v13  ;;  %v12191_v13 = vld [vmem:[#allocation5 + $0x94c] ss:$16 sps:$4 sm:$0xff]  }
 0x53c   : > { %8715 = vmatpush1.bf16.msra.mxu1 %v12165_v15  ;;  %8634 = vmatprep.subr.bf16.mxu0 %v12166_v38  ;;  %v12192_v15 = vld [vmem:[#allocation5 + $0x940] ss:$16 sps:$4 sm:$0xff]   ;;  %v12193_v38 = vld [vmem:[#allocation5 + $0x948] ss:$16 sps:$4 sm:$0xff]  }
 0x53d   : > { %8716 = vmatprep.subr.bf16.mxu1 %v12167_v43  ;;  %v12194_v43 = vld [vmem:[#allocation5 + $0x964] ss:$16 sps:$4 sm:$0xff]  }
 0x53f   : > { %8635 = vmatpush1.bf16.msra.mxu0 %v12168_v46  ;;  %v12195_v46 = vld [vmem:[#allocation5 + $0x96c] ss:$16 sps:$4 sm:$0xff]  }
 0x540   : > { %8717 = vmatpush1.bf16.msra.mxu1 %v12169_v51  ;;  %8636 = vmatprep.subr.bf16.mxu0 %v12170_v36  ;;  %v12196_v51 = vld [vmem:[#allocation5 + $0x960] ss:$16 sps:$4 sm:$0xff]   ;;  %v12197_v36 = vld [vmem:[#allocation5 + $0x968] ss:$16 sps:$4 sm:$0xff]  }
 0x541   : > { %8718 = vmatprep.subr.bf16.mxu1 %v12171_v32  ;;  %v12198_v32 = vld [vmem:[#allocation5 + $0x984] ss:$16 sps:$4 sm:$0xff]  }
 0x543   : > { %8637 = vmatpush1.bf16.msra.mxu0 %v12172_v33  ;;  %v12199_v33 = vld [vmem:[#allocation5 + $0x98c] ss:$16 sps:$4 sm:$0xff]  }
 0x544   : > { %8719 = vmatpush1.bf16.msra.mxu1 %v12173_v40  ;;  %8638 = vmatprep.subr.bf16.mxu0 %v12174_v47  ;;  %v12200_v40 = vld [vmem:[#allocation5 + $0x980] ss:$16 sps:$4 sm:$0xff]   ;;  %v12201_v47 = vld [vmem:[#allocation5 + $0x988] ss:$16 sps:$4 sm:$0xff]  }
 0x545   : > { %8720 = vmatprep.subr.bf16.mxu1 %v12175_v23  ;;  %v12203_v23 = vld [vmem:[#allocation5 + $0x9ac] ss:$16 sps:$4 sm:$0xff]  }
 0x547   : > { %8639 = vmatpush1.bf16.msra.mxu0 %v12176_v55  ;;  %v12205_v55 = vld [vmem:[#allocation5 + $0x9a8] ss:$16 sps:$4 sm:$0xff]  }
 0x548   : > { %8721 = vmatpush1.bf16.msra.mxu1 %v12177_v5  ;;  %8640 = vmatprep.subr.bf16.mxu0 %v12178_v21  ;;  %v12206_v5 = vld [vmem:[#allocation5 + $0x9c4] ss:$16 sps:$4 sm:$0xff]   ;;  %v12207_v21 = vld [vmem:[#allocation5 + $0x9cc] ss:$16 sps:$4 sm:$0xff]  }
 0x549   : > { %8722 = vmatprep.subr.bf16.mxu1 %v12179_v14  ;;  %v12209_v14 = vld [vmem:[#allocation5 + $0x9c8] ss:$16 sps:$4 sm:$0xff]  }
 0x54b   : > { %8641 = vmatpush1.bf16.msra.mxu0 %v12180_v1  ;;  %v12212_v1 = vld [vmem:[#allocation5 + $0x9e0] ss:$16 sps:$4 sm:$0xff]  }
 0x54c   : > { %8723 = vmatpush1.bf16.msra.mxu1 %v12181_v44  ;;  %8651 = vmatprep.subr.bf16.mxu0 %v12182_v59  ;;  %v12213_v44 = vld [vmem:[#allocation5 + $0x9e8] ss:$16 sps:$4 sm:$0xff]   ;;  %v12214_v59 = vld [vmem:[#allocation5 + $0xa04] ss:$16 sps:$4 sm:$0xff]  }
 0x54d   : > { %8733 = vmatprep.subr.bf16.mxu1 %v12183_v54  ;;  %v12216_v54 = vld [vmem:[#allocation5 + $0xa00] ss:$16 sps:$4 sm:$0xff]  }
 0x54e   : > { %8643 = vmatmul.mubr.bf16.vlgmr.msra.gmra.mrb[40].mxu0 %v14049_v29 }
 0x54f   : > { %8725 = vmatmul.mubr.bf16.vlgmr.msra.gmra.mrb[40].mxu1 %v14049_v29  ;;  %8652 = vmatpush1.bf16.msra.mxu0 %v12184_v28  ;;  %v12217_v28 = vld [vmem:[#allocation5 + $0xa08] ss:$16 sps:$4 sm:$0xff]  }
 0x550   : > { %10414 = vmatprep.mubr.msk.bf16.mxu0 %vm3948_vm13, %v14053_v53  ;;  %8734 = vmatpush1.bf16.msra.mxu1 %v12185_v3  ;;  %v12218_v3 = vld [vmem:[#allocation5 + $0xa24] ss:$16 sps:$4 sm:$0xff]  }
 0x551   : > { %10415 = vmatprep.mubr.msk.bf16.mxu1 %vm3948_vm13, %v14053_v53  ;;  %8653 = vmatprep.subr.bf16.mxu0 %v12186_v9  ;;  %v12219_v9 = vld [vmem:[#allocation5 + $0xa2c] ss:$16 sps:$4 sm:$0xff]  }
 0x552   : > { %8735 = vmatprep.subr.bf16.mxu1 %v12187_v63  ;;  %v12220_v63 = vld [vmem:[#allocation5 + $0xa20] ss:$16 sps:$4 sm:$0xff]  }
 0x553   : > { %8654 = vmatpush1.bf16.msra.mxu0 %v12188_v10  ;;  %v12221_v10 = vld [vmem:[#allocation5 + $0xa28] ss:$16 sps:$4 sm:$0xff]  }
 0x554   : > { %8736 = vmatpush1.bf16.msra.mxu1 %v12189_v37  ;;  %8655 = vmatprep.subr.bf16.mxu0 %v12190_v26  ;;  %v12222_v37 = vld [vmem:[#allocation5 + $0xa44] ss:$16 sps:$4 sm:$0xff]   ;;  %v8594_v26 = vshll.u32 %v13858_v49, 16 }
 0x555   : > { %8737 = vmatprep.subr.bf16.mxu1 %v12191_v13  ;;  %v12223_v13 = vld [vmem:[#allocation5 + $0xa4c] ss:$16 sps:$4 sm:$0xff]  }
 0x557   : > { %8656 = vmatpush1.bf16.msra.mxu0 %v12192_v15  ;;  %v12224_v15 = vld [vmem:[#allocation5 + $0xa40] ss:$16 sps:$4 sm:$0xff]  }
 0x558   : > { %8738 = vmatpush1.bf16.msra.mxu1 %v12193_v38  ;;  %8657 = vmatprep.subr.bf16.mxu0 %v12194_v43  ;;  %v12225_v38 = vld [vmem:[#allocation5 + $0xa48] ss:$16 sps:$4 sm:$0xff]   ;;  %v12226_v43 = vld [vmem:[#allocation5 + $0xa64] ss:$16 sps:$4 sm:$0xff]  }
 0x559   : > { %8739 = vmatprep.subr.bf16.mxu1 %v12195_v46  ;;  %v8596_v46 = vrot.slane %v8594_v26, 1  ;;  %v12253_v26 = vld [vmem:[#allocation5 + $0xea8] ss:$16 sps:$4 sm:$0xff]  }
 0x55b   : > { %8658 = vmatpush1.bf16.msra.mxu0 %v12196_v51  ;;  %v12227_v51 = vld [vmem:[#allocation5 + $0xa6c] ss:$16 sps:$4 sm:$0xff]  }
 0x55c   : > { %8740 = vmatpush1.bf16.msra.mxu1 %v12197_v36  ;;  %8659 = vmatprep.subr.bf16.mxu0 %v12198_v32  ;;  %v8592_v36 = vshrl.u32 %v13858_v49, 16  ;;  %v12228_v32 = vld [vmem:[#allocation5 + $0xa60] ss:$16 sps:$4 sm:$0xff]  }
 0x55d   : > { %8741 = vmatprep.subr.bf16.mxu1 %v12199_v33  ;;  %v12229_v33 = vld [vmem:[#allocation5 + $0xa68] ss:$16 sps:$4 sm:$0xff]  }
 0x55f   : > { %8660 = vmatpush1.bf16.msra.mxu0 %v12200_v40  ;;  %v14062_v40 = vor.u32 %v8596_v46, %v8592_v36  ;;  %v12258_v46 = vld [vmem:[#allocation5 + $0xee4] ss:$16 sps:$4 sm:$0xff]   ;;  %v12260_v36 = vld [vmem:[#allocation5 + $0xee0] ss:$16 sps:$4 sm:$0xff]  }
 0x560   : > { %8742 = vmatpush1.bf16.msra.mxu1 %v12201_v47  ;;  %8661 = vmatprep.subr.bf16.mxu0 %v12202_v50  ;;  %v12230_v47 = vld [vmem:[#allocation5 + $0xe04] ss:$16 sps:$4 sm:$0xff]   ;;  %v12231_v50 = vld [vmem:[#allocation5 + $0xe0c] ss:$16 sps:$4 sm:$0xff]  }
 0x561   : > { %8743 = vmatprep.subr.bf16.mxu1 %v12203_v23  ;;  %v12232_v23 = vld [vmem:[#allocation5 + $0xe00] ss:$16 sps:$4 sm:$0xff]  }
 0x563   : > { %8662 = vmatpush1.bf16.msra.mxu0 %v12204_v56  ;;  %v12233_v56 = vld [vmem:[#allocation5 + $0xe08] ss:$16 sps:$4 sm:$0xff]  }
 0x564   : > { %8744 = vmatpush1.bf16.msra.mxu1 %v12205_v55  ;;  %8663 = vmatprep.subr.bf16.mxu0 %v12206_v5  ;;  %v12234_v55 = vld [vmem:[#allocation5 + $0xe24] ss:$16 sps:$4 sm:$0xff]   ;;  %v12235_v5 = vld [vmem:[#allocation5 + $0xe2c] ss:$16 sps:$4 sm:$0xff]  }
 0x565   : > { %8745 = vmatprep.subr.bf16.mxu1 %v12207_v21  ;;  %v12236_v21 = vld [vmem:[#allocation5 + $0xe20] ss:$16 sps:$4 sm:$0xff]  }
 0x567   : > { %8664 = vmatpush1.bf16.msra.mxu0 %v12208_v35  ;;  %v12237_v35 = vld [vmem:[#allocation5 + $0xe28] ss:$16 sps:$4 sm:$0xff]  }
 0x568   : > { %8746 = vmatpush1.bf16.msra.mxu1 %v12209_v14  ;;  %8665 = vmatprep.subr.bf16.mxu0 %v12210_v42  ;;  %v12238_v14 = vld [vmem:[#allocation5 + $0xe44] ss:$16 sps:$4 sm:$0xff]   ;;  %v12239_v42 = vld [vmem:[#allocation5 + $0xe4c] ss:$16 sps:$4 sm:$0xff]  }
 0x569   : > { %8747 = vmatprep.subr.bf16.mxu1 %v12211_v48  ;;  %v12240_v48 = vld [vmem:[#allocation5 + $0xe40] ss:$16 sps:$4 sm:$0xff]  }
 0x56b   : > { %8666 = vmatpush1.bf16.msra.mxu0 %v12212_v1  ;;  %v12241_v1 = vld [vmem:[#allocation5 + $0xe48] ss:$16 sps:$4 sm:$0xff]  }
 0x56c   : > { %8748 = vmatpush1.bf16.msra.mxu1 %v12213_v44  ;;  %8667 = vmatprep.subr.bf16.mxu0 %v12214_v59  ;;  %v12242_v44 = vld [vmem:[#allocation5 + $0xe64] ss:$16 sps:$4 sm:$0xff]   ;;  %v12243_v59 = vld [vmem:[#allocation5 + $0xe6c] ss:$16 sps:$4 sm:$0xff]  }
 0x56d   : > { %8749 = vmatprep.subr.bf16.mxu1 %v12215_v61  ;;  %v12245_v61 = vld [vmem:[#allocation5 + $0xe68] ss:$16 sps:$4 sm:$0xff]  }
 0x56f   : > { %8668 = vmatpush1.bf16.msra.mxu0 %v12216_v54  ;;  %v12246_v54 = vld [vmem:[#allocation5 + $0xe84] ss:$16 sps:$4 sm:$0xff]  }
 0x570   : > { %8750 = vmatpush1.bf16.msra.mxu1 %v12217_v28  ;;  %8669 = vmatprep.subr.bf16.mxu0 %v12218_v3  ;;  %v12247_v28 = vld [vmem:[#allocation5 + $0xe8c] ss:$16 sps:$4 sm:$0xff]   ;;  %v12248_v3 = vld [vmem:[#allocation5 + $0xe80] ss:$16 sps:$4 sm:$0xff]  }
 0x571   : > { %8751 = vmatprep.subr.bf16.mxu1 %v12219_v9  ;;  %v12249_v9 = vld [vmem:[#allocation5 + $0xe88] ss:$16 sps:$4 sm:$0xff]  }
 0x573   : > { %8670 = vmatpush1.bf16.msra.mxu0 %v12220_v63  ;;  %v12250_v63 = vld [vmem:[#allocation5 + $0xea4] ss:$16 sps:$4 sm:$0xff]  }
 0x574   : > { %8752 = vmatpush1.bf16.msra.mxu1 %v12221_v10  ;;  %8671 = vmatprep.subr.bf16.mxu0 %v12222_v37  ;;  %v12251_v10 = vld [vmem:[#allocation5 + $0xeac] ss:$16 sps:$4 sm:$0xff]   ;;  %v12252_v37 = vld [vmem:[#allocation5 + $0xea0] ss:$16 sps:$4 sm:$0xff]  }
 0x575   : > { %8753 = vmatprep.subr.bf16.mxu1 %v12223_v13  ;;  %v12254_v13 = vld [vmem:[#allocation5 + $0xec4] ss:$16 sps:$4 sm:$0xff]  }
 0x577   : > { %8672 = vmatpush1.bf16.msra.mxu0 %v12224_v15  ;;  %v12255_v15 = vld [vmem:[#allocation5 + $0xecc] ss:$16 sps:$4 sm:$0xff]  }
 0x578   : > { %8754 = vmatpush1.bf16.msra.mxu1 %v12225_v38  ;;  %8673 = vmatprep.subr.bf16.mxu0 %v12226_v43  ;;  %v12256_v38 = vld [vmem:[#allocation5 + $0xec0] ss:$16 sps:$4 sm:$0xff]   ;;  %v12257_v43 = vld [vmem:[#allocation5 + $0xec8] ss:$16 sps:$4 sm:$0xff]  }
 0x579   : > { %8755 = vmatprep.subr.bf16.mxu1 %v12227_v51  ;;  %v12259_v51 = vld [vmem:[#allocation5 + $0xeec] ss:$16 sps:$4 sm:$0xff]  }
 0x57b   : > { %8674 = vmatpush1.bf16.msra.mxu0 %v12228_v32  ;;  %v12261_v32 = vld [vmem:[#allocation5 + $0xee8] ss:$16 sps:$4 sm:$0xff]  }
 0x57c   : > { %8756 = vmatpush1.bf16.msra.mxu1 %v12229_v33  ;;  %8782 = vmatprep.subr.bf16.mxu0 %v12230_v47  ;;  %v12262_v33 = vld [vmem:[#allocation5 + $0xf04] ss:$16 sps:$4 sm:$0xff]   ;;  %v12263_v47 = vld [vmem:[#allocation5 + $0xf0c] ss:$16 sps:$4 sm:$0xff]  }
 0x57d   : > { %8864 = vmatprep.subr.bf16.mxu1 %v12231_v50  ;;  %v12264_v50 = vld [vmem:[#allocation5 + $0xf00] ss:$16 sps:$4 sm:$0xff]  }
 0x57e   : > { %8684 = vmatmul.mubr.bf16.vlgmr.msra.gmra.mrb[40].mxu0 %v14062_v40 }
 0x57f   : > { %8766 = vmatmul.mubr.bf16.vlgmr.msra.gmra.mrb[40].mxu1 %v14062_v40  ;;  %8783 = vmatpush1.bf16.msra.mxu0 %v12232_v23  ;;  %v12265_v23 = vld [vmem:[#allocation5 + $0xf08] ss:$16 sps:$4 sm:$0xff]  }
 0x580   : > { %8814 = vmatprep.mubr.bf16.mxu0 %v13940_v45  ;;  %8865 = vmatpush1.bf16.msra.mxu1 %v12233_v56  ;;  %v12266_v56 = vld [vmem:[#allocation5 + $0xf24] ss:$16 sps:$4 sm:$0xff]  }
 0x581   : > { %8896 = vmatprep.mubr.bf16.mxu1 %v13940_v45  ;;  %8784 = vmatprep.subr.bf16.mxu0 %v12234_v55  ;;  %v12244_v45 = vld [vmem:[#allocation5 + $0xe60] ss:$16 sps:$4 sm:$0xff]   ;;  %v12267_v55 = vld [vmem:[#allocation5 + $0xf2c] ss:$16 sps:$4 sm:$0xff]  }
 0x582   : > { %8866 = vmatprep.subr.bf16.mxu1 %v12235_v5  ;;  %v12268_v5 = vld [vmem:[#allocation5 + $0xf20] ss:$16 sps:$4 sm:$0xff]  }
 0x583   : > { %8785 = vmatpush1.bf16.msra.mxu0 %v12236_v21  ;;  %v12269_v21 = vld [vmem:[#allocation5 + $0xf28] ss:$16 sps:$4 sm:$0xff]  }
 0x584   : > { %8867 = vmatpush1.bf16.msra.mxu1 %v12237_v35  ;;  %8786 = vmatprep.subr.bf16.mxu0 %v12238_v14  ;;  %v12270_v35 = vld [vmem:[#allocation5 + $0xf44] ss:$16 sps:$4 sm:$0xff]   ;;  %v12271_v14 = vld [vmem:[#allocation5 + $0xf4c] ss:$16 sps:$4 sm:$0xff]  }
 0x585   : > { %8868 = vmatprep.subr.bf16.mxu1 %v12239_v42  ;;  %v12272_v42 = vld [vmem:[#allocation5 + $0xf40] ss:$16 sps:$4 sm:$0xff]  }
 0x587   : > { %8787 = vmatpush1.bf16.msra.mxu0 %v12240_v48  ;;  %v12273_v48 = vld [vmem:[#allocation5 + $0xf48] ss:$16 sps:$4 sm:$0xff]  }
 0x588   : > { %8869 = vmatpush1.bf16.msra.mxu1 %v12241_v1  ;;  %8788 = vmatprep.subr.bf16.mxu0 %v12242_v44  ;;  %v12274_v1 = vld [vmem:[#allocation5 + $0xf64] ss:$16 sps:$4 sm:$0xff]   ;;  %v12275_v44 = vld [vmem:[#allocation5 + $0xf6c] ss:$16 sps:$4 sm:$0xff]  }
 0x589   : > { %8870 = vmatprep.subr.bf16.mxu1 %v12243_v59  ;;  %v12276_v59 = vld [vmem:[#allocation5 + $0xf60] ss:$16 sps:$4 sm:$0xff]  }
 0x58b   : > { %8789 = vmatpush1.bf16.msra.mxu0 %v12244_v45  ;;  %v12277_v45 = vld [vmem:[#allocation5 + $0xf68] ss:$16 sps:$4 sm:$0xff]  }
 0x58c   : > { %8871 = vmatpush1.bf16.msra.mxu1 %v12245_v61  ;;  %8790 = vmatprep.subr.bf16.mxu0 %v12246_v54  ;;  %v12278_v61 = vld [vmem:[#allocation5 + $0xf84] ss:$16 sps:$4 sm:$0xff]   ;;  %v12279_v54 = vld [vmem:[#allocation5 + $0xf8c] ss:$16 sps:$4 sm:$0xff]  }
 0x58d   : > { %8872 = vmatprep.subr.bf16.mxu1 %v12247_v28  ;;  %v12280_v28 = vld [vmem:[#allocation5 + $0xf80] ss:$16 sps:$4 sm:$0xff]  }
 0x58f   : > { %8791 = vmatpush1.bf16.msra.mxu0 %v12248_v3  ;;  %v12281_v3 = vld [vmem:[#allocation5 + $0xf88] ss:$16 sps:$4 sm:$0xff]  }
 0x590   : > { %8873 = vmatpush1.bf16.msra.mxu1 %v12249_v9  ;;  %8792 = vmatprep.subr.bf16.mxu0 %v12250_v63  ;;  %v12282_v9 = vld [vmem:[#allocation5 + $0xfa4] ss:$16 sps:$4 sm:$0xff]   ;;  %v12283_v63 = vld [vmem:[#allocation5 + $0xfac] ss:$16 sps:$4 sm:$0xff]  }
 0x591   : > { %8874 = vmatprep.subr.bf16.mxu1 %v12251_v10  ;;  %v12284_v10 = vld [vmem:[#allocation5 + $0xfa0] ss:$16 sps:$4 sm:$0xff]  }
 0x593   : > { %8793 = vmatpush1.bf16.msra.mxu0 %v12252_v37  ;;  %v12285_v37 = vld [vmem:[#allocation5 + $0xfa8] ss:$16 sps:$4 sm:$0xff]  }
 0x594   : > { %8875 = vmatpush1.bf16.msra.mxu1 %v12253_v26  ;;  %8794 = vmatprep.subr.bf16.mxu0 %v12254_v13  ;;  %v12286_v26 = vld [vmem:[#allocation5 + $0xfc4] ss:$16 sps:$4 sm:$0xff]   ;;  %v12287_v13 = vld [vmem:[#allocation5 + $0xfcc] ss:$16 sps:$4 sm:$0xff]  }
 0x595   : > { %8876 = vmatprep.subr.bf16.mxu1 %v12255_v15  ;;  %v12288_v15 = vld [vmem:[#allocation5 + $0xfc0] ss:$16 sps:$4 sm:$0xff]  }
 0x597   : > { %8795 = vmatpush1.bf16.msra.mxu0 %v12256_v38  ;;  %v12289_v38 = vld [vmem:[#allocation5 + $0xfc8] ss:$16 sps:$4 sm:$0xff]  }
 0x598   : > { %8877 = vmatpush1.bf16.msra.mxu1 %v12257_v43  ;;  %8796 = vmatprep.subr.bf16.mxu0 %v12258_v46  ;;  %v12290_v43 = vld [vmem:[#allocation5 + $0xfe4] ss:$16 sps:$4 sm:$0xff]   ;;  %v12291_v46 = vld [vmem:[#allocation5 + $0xfec] ss:$16 sps:$4 sm:$0xff]  }
 0x599   : > { %8878 = vmatprep.subr.bf16.mxu1 %v12259_v51  ;;  %v12292_v51 = vld [vmem:[#allocation5 + $0xfe0] ss:$16 sps:$4 sm:$0xff]  }
 0x59b   : > { %8797 = vmatpush1.bf16.msra.mxu0 %v12260_v36  ;;  %v12293_v36 = vld [vmem:[#allocation5 + $0xfe8] ss:$16 sps:$4 sm:$0xff]  }
 0x59c   : > { %8879 = vmatpush1.bf16.msra.mxu1 %v12261_v32  ;;  %8798 = vmatprep.subr.bf16.mxu0 %v12262_v33  ;;  %v12294_v32 = vld [vmem:[#allocation5 + $0x1004] ss:$16 sps:$4 sm:$0xff]   ;;  %v12295_v33 = vld [vmem:[#allocation5 + $0x100c] ss:$16 sps:$4 sm:$0xff]  }
 0x59d   : > { %8880 = vmatprep.subr.bf16.mxu1 %v12263_v47  ;;  %v12296_v47 = vld [vmem:[#allocation5 + $0x1000] ss:$16 sps:$4 sm:$0xff]  }
 0x59f   : > { %8799 = vmatpush1.bf16.msra.mxu0 %v12264_v50  ;;  %v12297_v50 = vld [vmem:[#allocation5 + $0x1008] ss:$16 sps:$4 sm:$0xff]  }
 0x5a0   : > { %8881 = vmatpush1.bf16.msra.mxu1 %v12265_v23  ;;  %8800 = vmatprep.subr.bf16.mxu0 %v12266_v56  ;;  %v12298_v23 = vld [vmem:[#allocation5 + $0x1024] ss:$16 sps:$4 sm:$0xff]   ;;  %v12299_v56 = vld [vmem:[#allocation5 + $0x102c] ss:$16 sps:$4 sm:$0xff]  }
 0x5a1   : > { %8882 = vmatprep.subr.bf16.mxu1 %v12267_v55  ;;  %v12300_v55 = vld [vmem:[#allocation5 + $0x1020] ss:$16 sps:$4 sm:$0xff]  }
 0x5a3   : > { %8801 = vmatpush1.bf16.msra.mxu0 %v12268_v5  ;;  %v12301_v5 = vld [vmem:[#allocation5 + $0x1028] ss:$16 sps:$4 sm:$0xff]  }
 0x5a4   : > { %8883 = vmatpush1.bf16.msra.mxu1 %v12269_v21  ;;  %8802 = vmatprep.subr.bf16.mxu0 %v12270_v35  ;;  %v12302_v21 = vld [vmem:[#allocation5 + $0x1044] ss:$16 sps:$4 sm:$0xff]   ;;  %v12304_v35 = vld [vmem:[#allocation5 + $0x1040] ss:$16 sps:$4 sm:$0xff]  }
 0x5a5   : > { %8884 = vmatprep.subr.bf16.mxu1 %v12271_v14  ;;  %v12305_v14 = vld [vmem:[#allocation5 + $0x1048] ss:$16 sps:$4 sm:$0xff]  }
 0x5a7   : > { %8803 = vmatpush1.bf16.msra.mxu0 %v12272_v42  ;;  %v12306_v42 = vld [vmem:[#allocation5 + $0x1064] ss:$16 sps:$4 sm:$0xff]  }
 0x5a8   : > { %8885 = vmatpush1.bf16.msra.mxu1 %v12273_v48  ;;  %8804 = vmatprep.subr.bf16.mxu0 %v12274_v1  ;;  %v12307_v48 = vld [vmem:[#allocation5 + $0x106c] ss:$16 sps:$4 sm:$0xff]   ;;  %v12309_v1 = vld [vmem:[#allocation5 + $0x1068] ss:$16 sps:$4 sm:$0xff]  }
 0x5a9   : > { %8886 = vmatprep.subr.bf16.mxu1 %v12275_v44  ;;  %v12310_v44 = vld [vmem:[#allocation5 + $0x1084] ss:$16 sps:$4 sm:$0xff]  }
 0x5ab   : > { %8805 = vmatpush1.bf16.msra.mxu0 %v12276_v59  ;;  %v12311_v59 = vld [vmem:[#allocation5 + $0x108c] ss:$16 sps:$4 sm:$0xff]  }
 0x5ac   : > { %8887 = vmatpush1.bf16.msra.mxu1 %v12277_v45  ;;  %8806 = vmatprep.subr.bf16.mxu0 %v12278_v61  ;;  %v12312_v45 = vld [vmem:[#allocation5 + $0x1080] ss:$16 sps:$4 sm:$0xff]   ;;  %v12313_v61 = vld [vmem:[#allocation5 + $0x1088] ss:$16 sps:$4 sm:$0xff]  }
 0x5ad   : > { %8888 = vmatprep.subr.bf16.mxu1 %v12279_v54  ;;  %v12314_v54 = vld [vmem:[#allocation5 + $0x10a4] ss:$16 sps:$4 sm:$0xff]  }
 0x5af   : > { %8807 = vmatpush1.bf16.msra.mxu0 %v12280_v28  ;;  %v12315_v28 = vld [vmem:[#allocation5 + $0x10ac] ss:$16 sps:$4 sm:$0xff]  }
 0x5b0   : > { %8889 = vmatpush1.bf16.msra.mxu1 %v12281_v3  ;;  %8808 = vmatprep.subr.bf16.mxu0 %v12282_v9  ;;  %v12316_v3 = vld [vmem:[#allocation5 + $0x10a0] ss:$16 sps:$4 sm:$0xff]   ;;  %v12317_v9 = vld [vmem:[#allocation5 + $0x10a8] ss:$16 sps:$4 sm:$0xff]  }
 0x5b1   : > { %8890 = vmatprep.subr.bf16.mxu1 %v12283_v63  ;;  %v12318_v63 = vld [vmem:[#allocation5 + $0x10c4] ss:$16 sps:$4 sm:$0xff]  }
 0x5b3   : > { %8809 = vmatpush1.bf16.msra.mxu0 %v12284_v10  ;;  %v12319_v10 = vld [vmem:[#allocation5 + $0x10cc] ss:$16 sps:$4 sm:$0xff]  }
 0x5b4   : > { %8891 = vmatpush1.bf16.msra.mxu1 %v12285_v37  ;;  %8810 = vmatprep.subr.bf16.mxu0 %v12286_v26  ;;  %v12320_v37 = vld [vmem:[#allocation5 + $0x10c0] ss:$16 sps:$4 sm:$0xff]   ;;  %v12321_v26 = vld [vmem:[#allocation5 + $0x10c8] ss:$16 sps:$4 sm:$0xff]  }
 0x5b5   : > { %8892 = vmatprep.subr.bf16.mxu1 %v12287_v13  ;;  %v12322_v13 = vld [vmem:[#allocation5 + $0x10e4] ss:$16 sps:$4 sm:$0xff]  }
 0x5b7   : > { %8811 = vmatpush1.bf16.msra.mxu0 %v12288_v15  ;;  %v12323_v15 = vld [vmem:[#allocation5 + $0x10ec] ss:$16 sps:$4 sm:$0xff]  }
 0x5b8   : > { %8893 = vmatpush1.bf16.msra.mxu1 %v12289_v38  ;;  %8812 = vmatprep.subr.bf16.mxu0 %v12290_v43  ;;  %v12324_v38 = vld [vmem:[#allocation5 + $0x10e0] ss:$16 sps:$4 sm:$0xff]   ;;  %v12325_v43 = vld [vmem:[#allocation5 + $0x10e8] ss:$16 sps:$4 sm:$0xff]  }
 0x5b9   : > { %8894 = vmatprep.subr.bf16.mxu1 %v12291_v46  ;;  %v12326_v46 = vld [vmem:[#allocation5 + $0x1104] ss:$16 sps:$4 sm:$0xff]  }
 0x5bb   : > { %8813 = vmatpush1.bf16.msra.mxu0 %v12292_v51  ;;  %v12327_v51 = vld [vmem:[#allocation5 + $0x110c] ss:$16 sps:$4 sm:$0xff]  }
 0x5bc   : > { %8895 = vmatpush1.bf16.msra.mxu1 %v12293_v36  ;;  %8823 = vmatprep.subr.bf16.mxu0 %v12294_v32  ;;  %v12328_v36 = vld [vmem:[#allocation5 + $0x1100] ss:$16 sps:$4 sm:$0xff]   ;;  %v12329_v32 = vld [vmem:[#allocation5 + $0x1108] ss:$16 sps:$4 sm:$0xff]  }
 0x5bd   : > { %8905 = vmatprep.subr.bf16.mxu1 %v12295_v33  ;;  %v12330_v33 = vld [vmem:[#allocation5 + $0x1124] ss:$16 sps:$4 sm:$0xff]  }
 0x5be   : > { %8815 = vmatmul.mubr.bf16.vlgmr.msra.gmra.mrb[44].mxu0 %v13949_v7 }
 0x5bf   : > { %8897 = vmatmul.mubr.bf16.vlgmr.msra.gmra.mrb[44].mxu1 %v13949_v7  ;;  %8824 = vmatpush1.bf16.msra.mxu0 %v12296_v47  ;;  %v12303_v7 = vld [vmem:[#allocation5 + $0x104c] ss:$16 sps:$4 sm:$0xff]  }
 0x5c0   : > { %10416 = vmatprep.mubr.msk.bf16.mxu0 %vm3948_vm13, %v13953_v25  ;;  %8906 = vmatpush1.bf16.msra.mxu1 %v12297_v50  ;;  %v12331_v47 = vld [vmem:[#allocation5 + $0x112c] ss:$16 sps:$4 sm:$0xff]   ;;  %v12332_v50 = vld [vmem:[#allocation5 + $0x1120] ss:$16 sps:$4 sm:$0xff]  }
 0x5c1   : > { %10417 = vmatprep.mubr.msk.bf16.mxu1 %vm3948_vm13, %v13953_v25  ;;  %8825 = vmatprep.subr.bf16.mxu0 %v12298_v23  ;;  %v12308_v25 = vld [vmem:[#allocation5 + $0x1060] ss:$16 sps:$4 sm:$0xff]   ;;  %v12333_v23 = vld [vmem:[#allocation5 + $0x1128] ss:$16 sps:$4 sm:$0xff]  }
 0x5c2   : > { %8907 = vmatprep.subr.bf16.mxu1 %v12299_v56  ;;  %v12334_v56 = vld [vmem:[#allocation5 + $0x1144] ss:$16 sps:$4 sm:$0xff]  }
 0x5c3   : > { %8826 = vmatpush1.bf16.msra.mxu0 %v12300_v55  ;;  %v12335_v55 = vld [vmem:[#allocation5 + $0x114c] ss:$16 sps:$4 sm:$0xff]  }
 0x5c4   : > { %8908 = vmatpush1.bf16.msra.mxu1 %v12301_v5  ;;  %8827 = vmatprep.subr.bf16.mxu0 %v12302_v21  ;;  %v12336_v5 = vld [vmem:[#allocation5 + $0x1140] ss:$16 sps:$4 sm:$0xff]   ;;  %v12337_v21 = vld [vmem:[#allocation5 + $0x1148] ss:$16 sps:$4 sm:$0xff]  }
 0x5c5   : > { %8909 = vmatprep.subr.bf16.mxu1 %v12303_v7  ;;  %v12338_v7 = vld [vmem:[#allocation5 + $0x1164] ss:$16 sps:$4 sm:$0xff]  }
 0x5c7   : > { %8828 = vmatpush1.bf16.msra.mxu0 %v12304_v35  ;;  %v12339_v35 = vld [vmem:[#allocation5 + $0x116c] ss:$16 sps:$4 sm:$0xff]  }
 0x5c8   : > { %8910 = vmatpush1.bf16.msra.mxu1 %v12305_v14  ;;  %8829 = vmatprep.subr.bf16.mxu0 %v12306_v42  ;;  %v12340_v14 = vld [vmem:[#allocation5 + $0x1160] ss:$16 sps:$4 sm:$0xff]   ;;  %v12341_v42 = vld [vmem:[#allocation5 + $0x1168] ss:$16 sps:$4 sm:$0xff]  }
 0x5c9   : > { %8911 = vmatprep.subr.bf16.mxu1 %v12307_v48  ;;  %v12342_v48 = vld [vmem:[#allocation5 + $0xa84] ss:$16 sps:$4 sm:$0xff]  }
 0x5cb   : > { %8830 = vmatpush1.bf16.msra.mxu0 %v12308_v25  ;;  %v12343_v25 = vld [vmem:[#allocation5 + $0xa8c] ss:$16 sps:$4 sm:$0xff]  }
 0x5cc   : > { %8912 = vmatpush1.bf16.msra.mxu1 %v12309_v1  ;;  %8831 = vmatprep.subr.bf16.mxu0 %v12310_v44  ;;  %v12344_v1 = vld [vmem:[#allocation5 + $0xa80] ss:$16 sps:$4 sm:$0xff]   ;;  %v12345_v44 = vld [vmem:[#allocation5 + $0xa88] ss:$16 sps:$4 sm:$0xff]  }
 0x5cd   : > { %8913 = vmatprep.subr.bf16.mxu1 %v12311_v59  ;;  %v12346_v59 = vld [vmem:[#allocation5 + $0xaa4] ss:$16 sps:$4 sm:$0xff]  }
 0x5cf   : > { %8832 = vmatpush1.bf16.msra.mxu0 %v12312_v45  ;;  %v12347_v45 = vld [vmem:[#allocation5 + $0xaac] ss:$16 sps:$4 sm:$0xff]  }
 0x5d0   : > { %8914 = vmatpush1.bf16.msra.mxu1 %v12313_v61  ;;  %8833 = vmatprep.subr.bf16.mxu0 %v12314_v54  ;;  %v12348_v61 = vld [vmem:[#allocation5 + $0xaa0] ss:$16 sps:$4 sm:$0xff]   ;;  %v12349_v54 = vld [vmem:[#allocation5 + $0xaa8] ss:$16 sps:$4 sm:$0xff]  }
 0x5d1   : > { %8915 = vmatprep.subr.bf16.mxu1 %v12315_v28  ;;  %v12350_v28 = vld [vmem:[#allocation5 + $0xac4] ss:$16 sps:$4 sm:$0xff]  }
 0x5d3   : > { %8834 = vmatpush1.bf16.msra.mxu0 %v12316_v3  ;;  %v12351_v3 = vld [vmem:[#allocation5 + $0xacc] ss:$16 sps:$4 sm:$0xff]  }
 0x5d4   : > { %8916 = vmatpush1.bf16.msra.mxu1 %v12317_v9  ;;  %8835 = vmatprep.subr.bf16.mxu0 %v12318_v63  ;;  %v12353_v9 = vld [vmem:[#allocation5 + $0xac8] ss:$16 sps:$4 sm:$0xff]   ;;  %v12354_v63 = vld [vmem:[#allocation5 + $0xae4] ss:$16 sps:$4 sm:$0xff]  }
 0x5d5   : > { %8917 = vmatprep.subr.bf16.mxu1 %v12319_v10  ;;  %v12355_v10 = vld [vmem:[#allocation5 + $0xaec] ss:$16 sps:$4 sm:$0xff]  }
 0x5d7   : > { %8836 = vmatpush1.bf16.msra.mxu0 %v12320_v37  ;;  %v12357_v37 = vld [vmem:[#allocation5 + $0xae8] ss:$16 sps:$4 sm:$0xff]  }
 0x5d8   : > { %8918 = vmatpush1.bf16.msra.mxu1 %v12321_v26  ;;  %8837 = vmatprep.subr.bf16.mxu0 %v12322_v13  ;;  %v12358_v26 = vld [vmem:[#allocation5 + $0xb04] ss:$16 sps:$4 sm:$0xff]   ;;  %v12359_v13 = vld [vmem:[#allocation5 + $0xb0c] ss:$16 sps:$4 sm:$0xff]  }
 0x5d9   : > { %8919 = vmatprep.subr.bf16.mxu1 %v12323_v15  ;;  %v12360_v15 = vld [vmem:[#allocation5 + $0xb00] ss:$16 sps:$4 sm:$0xff]  }
 0x5db   : > { %8838 = vmatpush1.bf16.msra.mxu0 %v12324_v38  ;;  %v12361_v38 = vld [vmem:[#allocation5 + $0xb08] ss:$16 sps:$4 sm:$0xff]  }
 0x5dc   : > { %8920 = vmatpush1.bf16.msra.mxu1 %v12325_v43  ;;  %8839 = vmatprep.subr.bf16.mxu0 %v12326_v46  ;;  %v12362_v43 = vld [vmem:[#allocation5 + $0xb24] ss:$16 sps:$4 sm:$0xff]   ;;  %v12363_v46 = vld [vmem:[#allocation5 + $0xb2c] ss:$16 sps:$4 sm:$0xff]  }
 0x5dd   : > { %8921 = vmatprep.subr.bf16.mxu1 %v12327_v51  ;;  %v12364_v51 = vld [vmem:[#allocation5 + $0xb20] ss:$16 sps:$4 sm:$0xff]  }
 0x5df   : > { %8840 = vmatpush1.bf16.msra.mxu0 %v12328_v36  ;;  %v12365_v36 = vld [vmem:[#allocation5 + $0xb28] ss:$16 sps:$4 sm:$0xff]  }
 0x5e0   : > { %8922 = vmatpush1.bf16.msra.mxu1 %v12329_v32  ;;  %8841 = vmatprep.subr.bf16.mxu0 %v12330_v33  ;;  %v12366_v32 = vld [vmem:[#allocation5 + $0xb44] ss:$16 sps:$4 sm:$0xff]   ;;  %v12367_v33 = vld [vmem:[#allocation5 + $0xb4c] ss:$16 sps:$4 sm:$0xff]  }
 0x5e1   : > { %8923 = vmatprep.subr.bf16.mxu1 %v12331_v47  ;;  %v12368_v47 = vld [vmem:[#allocation5 + $0xb40] ss:$16 sps:$4 sm:$0xff]  }
 0x5e3   : > { %8842 = vmatpush1.bf16.msra.mxu0 %v12332_v50  ;;  %v12369_v50 = vld [vmem:[#allocation5 + $0xb48] ss:$16 sps:$4 sm:$0xff]  }
 0x5e4   : > { %8924 = vmatpush1.bf16.msra.mxu1 %v12333_v23  ;;  %8843 = vmatprep.subr.bf16.mxu0 %v12334_v56  ;;  %v12370_v23 = vld [vmem:[#allocation5 + $0xb64] ss:$16 sps:$4 sm:$0xff]   ;;  %v12371_v56 = vld [vmem:[#allocation5 + $0xb6c] ss:$16 sps:$4 sm:$0xff]  }
 0x5e5   : > { %8925 = vmatprep.subr.bf16.mxu1 %v12335_v55  ;;  %v12372_v55 = vld [vmem:[#allocation5 + $0xb60] ss:$16 sps:$4 sm:$0xff]  }
 0x5e7   : > { %8844 = vmatpush1.bf16.msra.mxu0 %v12336_v5  ;;  %v12373_v5 = vld [vmem:[#allocation5 + $0xb68] ss:$16 sps:$4 sm:$0xff]  }
 0x5e8   : > { %8926 = vmatpush1.bf16.msra.mxu1 %v12337_v21  ;;  %8845 = vmatprep.subr.bf16.mxu0 %v12338_v7  ;;  %v12374_v21 = vld [vmem:[#allocation5 + $0xb84] ss:$16 sps:$4 sm:$0xff]   ;;  %v12375_v7 = vld [vmem:[#allocation5 + $0xb8c] ss:$16 sps:$4 sm:$0xff]  }
 0x5e9   : > { %8927 = vmatprep.subr.bf16.mxu1 %v12339_v35  ;;  %v12376_v35 = vld [vmem:[#allocation5 + $0xb80] ss:$16 sps:$4 sm:$0xff]  }
 0x5eb   : > { %8846 = vmatpush1.bf16.msra.mxu0 %v12340_v14  ;;  %v12377_v14 = vld [vmem:[#allocation5 + $0xb88] ss:$16 sps:$4 sm:$0xff]  }
 0x5ec   : > { %8928 = vmatpush1.bf16.msra.mxu1 %v12341_v42  ;;  %8946 = vmatprep.subr.bf16.mxu0 %v12342_v48  ;;  %v12378_v42 = vld [vmem:[#allocation5 + $0xba4] ss:$16 sps:$4 sm:$0xff]   ;;  %v12379_v48 = vld [vmem:[#allocation5 + $0xbac] ss:$16 sps:$4 sm:$0xff]  }
 0x5ed   : > { %9028 = vmatprep.subr.bf16.mxu1 %v12343_v25  ;;  %v12380_v25 = vld [vmem:[#allocation5 + $0xba0] ss:$16 sps:$4 sm:$0xff]  }
 0x5ee   : > { %8856 = vmatmul.mubr.bf16.vlgmr.msra.gmra.mrb[44].mxu0 %v13962_v41 }
 0x5ef   : > { %8938 = vmatmul.mubr.bf16.vlgmr.msra.gmra.mrb[44].mxu1 %v13962_v41  ;;  %8947 = vmatpush1.bf16.msra.mxu0 %v12344_v1  ;;  %v12352_v41 = vld [vmem:[#allocation5 + $0xac0] ss:$16 sps:$4 sm:$0xff]   ;;  %v12381_v1 = vld [vmem:[#allocation5 + $0xba8] ss:$16 sps:$4 sm:$0xff]  }
 0x5f0   : > { %8978 = vmatprep.mubr.bf16.mxu0 %v13833_v62  ;;  %9029 = vmatpush1.bf16.msra.mxu1 %v12345_v44  ;;  %v12382_v44 = vld [vmem:[#allocation5 + $0xbc4] ss:$16 sps:$4 sm:$0xff]  }
 0x5f1   : > { %9060 = vmatprep.mubr.bf16.mxu1 %v13833_v62  ;;  %8948 = vmatprep.subr.bf16.mxu0 %v12346_v59  ;;  %v12356_v62 = vld [vmem:[#allocation5 + $0xae0] ss:$16 sps:$4 sm:$0xff]   ;;  %v12383_v59 = vld [vmem:[#allocation5 + $0xbcc] ss:$16 sps:$4 sm:$0xff]  }
 0x5f2   : > { %9030 = vmatprep.subr.bf16.mxu1 %v12347_v45  ;;  %v12384_v45 = vld [vmem:[#allocation5 + $0xbc0] ss:$16 sps:$4 sm:$0xff]  }
 0x5f3   : > { %8949 = vmatpush1.bf16.msra.mxu0 %v12348_v61  ;;  %v12385_v61 = vld [vmem:[#allocation5 + $0xbc8] ss:$16 sps:$4 sm:$0xff]  }
 0x5f4   : > { %9031 = vmatpush1.bf16.msra.mxu1 %v12349_v54  ;;  %8950 = vmatprep.subr.bf16.mxu0 %v12350_v28  ;;  %v12386_v54 = vld [vmem:[#allocation5 + $0xbe4] ss:$16 sps:$4 sm:$0xff]   ;;  %v12387_v28 = vld [vmem:[#allocation5 + $0xbec] ss:$16 sps:$4 sm:$0xff]  }
 0x5f5   : > { %9032 = vmatprep.subr.bf16.mxu1 %v12351_v3  ;;  %v12388_v3 = vld [vmem:[#allocation5 + $0xbe0] ss:$16 sps:$4 sm:$0xff]  }
 0x5f7   : > { %8951 = vmatpush1.bf16.msra.mxu0 %v12352_v41  ;;  %v12389_v41 = vld [vmem:[#allocation5 + $0xbe8] ss:$16 sps:$4 sm:$0xff]  }
 0x5f8   : > { %9033 = vmatpush1.bf16.msra.mxu1 %v12353_v9  ;;  %8952 = vmatprep.subr.bf16.mxu0 %v12354_v63  ;;  %v12390_v9 = vld [vmem:[#allocation5 + $0xc04] ss:$16 sps:$4 sm:$0xff]   ;;  %v12391_v63 = vld [vmem:[#allocation5 + $0xc0c] ss:$16 sps:$4 sm:$0xff]  }
 0x5f9   : > { %9034 = vmatprep.subr.bf16.mxu1 %v12355_v10  ;;  %v12392_v10 = vld [vmem:[#allocation5 + $0xc00] ss:$16 sps:$4 sm:$0xff]  }
 0x5fb   : > { %8953 = vmatpush1.bf16.msra.mxu0 %v12356_v62  ;;  %v12393_v62 = vld [vmem:[#allocation5 + $0xc08] ss:$16 sps:$4 sm:$0xff]  }
 0x5fc   : > { %9035 = vmatpush1.bf16.msra.mxu1 %v12357_v37  ;;  %8954 = vmatprep.subr.bf16.mxu0 %v12358_v26  ;;  %v12394_v37 = vld [vmem:[#allocation5 + $0xc24] ss:$16 sps:$4 sm:$0xff]   ;;  %v12395_v26 = vld [vmem:[#allocation5 + $0xc2c] ss:$16 sps:$4 sm:$0xff]  }
 0x5fd   : > { %9036 = vmatprep.subr.bf16.mxu1 %v12359_v13  ;;  %v12396_v13 = vld [vmem:[#allocation5 + $0xc20] ss:$16 sps:$4 sm:$0xff]  }
 0x5ff   : > { %8955 = vmatpush1.bf16.msra.mxu0 %v12360_v15  ;;  %v12397_v15 = vld [vmem:[#allocation5 + $0xc28] ss:$16 sps:$4 sm:$0xff]  }
 0x600   : > { %9037 = vmatpush1.bf16.msra.mxu1 %v12361_v38  ;;  %8956 = vmatprep.subr.bf16.mxu0 %v12362_v43  ;;  %v12398_v38 = vld [vmem:[#allocation5 + $0xc44] ss:$16 sps:$4 sm:$0xff]   ;;  %v12399_v43 = vld [vmem:[#allocation5 + $0xc4c] ss:$16 sps:$4 sm:$0xff]  }
 0x601   : > { %9038 = vmatprep.subr.bf16.mxu1 %v12363_v46  ;;  %v12400_v46 = vld [vmem:[#allocation5 + $0xc40] ss:$16 sps:$4 sm:$0xff]  }
 0x603   : > { %8957 = vmatpush1.bf16.msra.mxu0 %v12364_v51  ;;  %v12401_v51 = vld [vmem:[#allocation5 + $0xc48] ss:$16 sps:$4 sm:$0xff]  }
 0x604   : > { %9039 = vmatpush1.bf16.msra.mxu1 %v12365_v36  ;;  %8958 = vmatprep.subr.bf16.mxu0 %v12366_v32  ;;  %v12402_v36 = vld [vmem:[#allocation5 + $0xc64] ss:$16 sps:$4 sm:$0xff]   ;;  %v12403_v32 = vld [vmem:[#allocation5 + $0xc6c] ss:$16 sps:$4 sm:$0xff]  }
 0x605   : > { %9040 = vmatprep.subr.bf16.mxu1 %v12367_v33  ;;  %v12404_v33 = vld [vmem:[#allocation5 + $0xc60] ss:$16 sps:$4 sm:$0xff]  }
 0x607   : > { %8959 = vmatpush1.bf16.msra.mxu0 %v12368_v47  ;;  %v12405_v47 = vld [vmem:[#allocation5 + $0xc68] ss:$16 sps:$4 sm:$0xff]  }
 0x608   : > { %9041 = vmatpush1.bf16.msra.mxu1 %v12369_v50  ;;  %8960 = vmatprep.subr.bf16.mxu0 %v12370_v23  ;;  %v12406_v50 = vld [vmem:[#allocation5 + $0xc84] ss:$16 sps:$4 sm:$0xff]   ;;  %v12407_v23 = vld [vmem:[#allocation5 + $0xc8c] ss:$16 sps:$4 sm:$0xff]  }
 0x609   : > { %9042 = vmatprep.subr.bf16.mxu1 %v12371_v56  ;;  %v12408_v56 = vld [vmem:[#allocation5 + $0xc80] ss:$16 sps:$4 sm:$0xff]  }
 0x60b   : > { %8961 = vmatpush1.bf16.msra.mxu0 %v12372_v55  ;;  %v12409_v55 = vld [vmem:[#allocation5 + $0xc88] ss:$16 sps:$4 sm:$0xff]  }
 0x60c   : > { %9043 = vmatpush1.bf16.msra.mxu1 %v12373_v5  ;;  %8962 = vmatprep.subr.bf16.mxu0 %v12374_v21  ;;  %v12410_v5 = vld [vmem:[#allocation5 + $0xca4] ss:$16 sps:$4 sm:$0xff]   ;;  %v12411_v21 = vld [vmem:[#allocation5 + $0xcac] ss:$16 sps:$4 sm:$0xff]  }
 0x60d   : > { %9044 = vmatprep.subr.bf16.mxu1 %v12375_v7  ;;  %v12412_v7 = vld [vmem:[#allocation5 + $0xca0] ss:$16 sps:$4 sm:$0xff]  }
 0x60f   : > { %8963 = vmatpush1.bf16.msra.mxu0 %v12376_v35  ;;  %v12413_v35 = vld [vmem:[#allocation5 + $0xca8] ss:$16 sps:$4 sm:$0xff]  }
 0x610   : > { %9045 = vmatpush1.bf16.msra.mxu1 %v12377_v14  ;;  %8964 = vmatprep.subr.bf16.mxu0 %v12378_v42  ;;  %v12414_v14 = vld [vmem:[#allocation5 + $0xcc4] ss:$16 sps:$4 sm:$0xff]   ;;  %v12416_v42 = vld [vmem:[#allocation5 + $0xcc0] ss:$16 sps:$4 sm:$0xff]  }
 0x611   : > { %9046 = vmatprep.subr.bf16.mxu1 %v12379_v48  ;;  %v12417_v48 = vld [vmem:[#allocation5 + $0xcc8] ss:$16 sps:$4 sm:$0xff]  }
 0x613   : > { %8965 = vmatpush1.bf16.msra.mxu0 %v12380_v25  ;;  %v12418_v25 = vld [vmem:[#allocation5 + $0xce4] ss:$16 sps:$4 sm:$0xff]  }
 0x614   : > { %9047 = vmatpush1.bf16.msra.mxu1 %v12381_v1  ;;  %8966 = vmatprep.subr.bf16.mxu0 %v12382_v44  ;;  %v12419_v1 = vld [vmem:[#allocation5 + $0xcec] ss:$16 sps:$4 sm:$0xff]   ;;  %v12421_v44 = vld [vmem:[#allocation5 + $0xce8] ss:$16 sps:$4 sm:$0xff]  }
 0x615   : > { %9048 = vmatprep.subr.bf16.mxu1 %v12383_v59  ;;  %v12422_v59 = vld [vmem:[#allocation5 + $0xd04] ss:$16 sps:$4 sm:$0xff]  }
 0x617   : > { %8967 = vmatpush1.bf16.msra.mxu0 %v12384_v45  ;;  %v12423_v45 = vld [vmem:[#allocation5 + $0xd0c] ss:$16 sps:$4 sm:$0xff]  }
 0x618   : > { %9049 = vmatpush1.bf16.msra.mxu1 %v12385_v61  ;;  %8968 = vmatprep.subr.bf16.mxu0 %v12386_v54  ;;  %v12424_v61 = vld [vmem:[#allocation5 + $0xd00] ss:$16 sps:$4 sm:$0xff]   ;;  %v12425_v54 = vld [vmem:[#allocation5 + $0xd08] ss:$16 sps:$4 sm:$0xff]  }
 0x619   : > { %9050 = vmatprep.subr.bf16.mxu1 %v12387_v28  ;;  %v12426_v28 = vld [vmem:[#allocation5 + $0xd24] ss:$16 sps:$4 sm:$0xff]  }
 0x61b   : > { %8969 = vmatpush1.bf16.msra.mxu0 %v12388_v3  ;;  %v12427_v3 = vld [vmem:[#allocation5 + $0xd2c] ss:$16 sps:$4 sm:$0xff]  }
 0x61c   : > { %9051 = vmatpush1.bf16.msra.mxu1 %v12389_v41  ;;  %8970 = vmatprep.subr.bf16.mxu0 %v12390_v9  ;;  %v12428_v41 = vld [vmem:[#allocation5 + $0xd20] ss:$16 sps:$4 sm:$0xff]   ;;  %v12429_v9 = vld [vmem:[#allocation5 + $0xd28] ss:$16 sps:$4 sm:$0xff]  }
 0x61d   : > { %9052 = vmatprep.subr.bf16.mxu1 %v12391_v63  ;;  %v12430_v63 = vld [vmem:[#allocation5 + $0xd44] ss:$16 sps:$4 sm:$0xff]  }
 0x61f   : > { %8971 = vmatpush1.bf16.msra.mxu0 %v12392_v10  ;;  %v12431_v10 = vld [vmem:[#allocation5 + $0xd4c] ss:$16 sps:$4 sm:$0xff]  }
 0x620   : > { %9053 = vmatpush1.bf16.msra.mxu1 %v12393_v62  ;;  %8972 = vmatprep.subr.bf16.mxu0 %v12394_v37  ;;  %v12432_v62 = vld [vmem:[#allocation5 + $0xd40] ss:$16 sps:$4 sm:$0xff]   ;;  %v12433_v37 = vld [vmem:[#allocation5 + $0xd48] ss:$16 sps:$4 sm:$0xff]  }
 0x621   : > { %9054 = vmatprep.subr.bf16.mxu1 %v12395_v26  ;;  %v12434_v26 = vld [vmem:[#allocation5 + $0xd64] ss:$16 sps:$4 sm:$0xff]  }
 0x623   : > { %8973 = vmatpush1.bf16.msra.mxu0 %v12396_v13  ;;  %v12435_v13 = vld [vmem:[#allocation5 + $0xd6c] ss:$16 sps:$4 sm:$0xff]  }
 0x624   : > { %9055 = vmatpush1.bf16.msra.mxu1 %v12397_v15  ;;  %8974 = vmatprep.subr.bf16.mxu0 %v12398_v38  ;;  %v12436_v15 = vld [vmem:[#allocation5 + $0xd60] ss:$16 sps:$4 sm:$0xff]   ;;  %v12437_v38 = vld [vmem:[#allocation5 + $0xd68] ss:$16 sps:$4 sm:$0xff]  }
 0x625   : > { %9056 = vmatprep.subr.bf16.mxu1 %v12399_v43  ;;  %v12438_v43 = vld [vmem:[#allocation5 + $0xd84] ss:$16 sps:$4 sm:$0xff]  }
 0x627   : > { %8975 = vmatpush1.bf16.msra.mxu0 %v12400_v46  ;;  %v12439_v46 = vld [vmem:[#allocation5 + $0xd8c] ss:$16 sps:$4 sm:$0xff]  }
 0x628   : > { %9057 = vmatpush1.bf16.msra.mxu1 %v12401_v51  ;;  %8976 = vmatprep.subr.bf16.mxu0 %v12402_v36  ;;  %v12440_v51 = vld [vmem:[#allocation5 + $0xd80] ss:$16 sps:$4 sm:$0xff]   ;;  %v12441_v36 = vld [vmem:[#allocation5 + $0xd88] ss:$16 sps:$4 sm:$0xff]  }
 0x629   : > { %9058 = vmatprep.subr.bf16.mxu1 %v12403_v32  ;;  %v12442_v32 = vld [vmem:[#allocation5 + $0xda4] ss:$16 sps:$4 sm:$0xff]  }
 0x62b   : > { %8977 = vmatpush1.bf16.msra.mxu0 %v12404_v33 }
 0x62c   : > { %9059 = vmatpush1.bf16.msra.mxu1 %v12405_v47  ;;  %8987 = vmatprep.subr.bf16.mxu0 %v12406_v50  ;;  %v12443_v47 = vld [vmem:[#allocation5 + $0xdac] ss:$16 sps:$4 sm:$0xff]  }
 0x62d   : > { %9069 = vmatprep.subr.bf16.mxu1 %v12407_v23 }
 0x62e   : > { %8979 = vmatmul.mubr.bf16.vlgmr.msra.gmra.mrb[44].mxu0 %v13831_v58 }
 0x62f   : > { %9061 = vmatmul.mubr.bf16.vlgmr.msra.gmra.mrb[44].mxu1 %v13831_v58  ;;  %8988 = vmatpush1.bf16.msra.mxu0 %v12408_v56  ;;  %v12415_v58 = vld [vmem:[#allocation5 + $0xccc] ss:$16 sps:$4 sm:$0xff]  }
 0x630   : > { %10418 = vmatprep.mubr.msk.bf16.mxu0 %vm3948_vm13, %v13840_v19  ;;  %9070 = vmatpush1.bf16.msra.mxu1 %v12409_v55 }
 0x631   : > { %10419 = vmatprep.mubr.msk.bf16.mxu1 %vm3948_vm13, %v13840_v19  ;;  %8989 = vmatprep.subr.bf16.mxu0 %v12410_v5  ;;  %v12420_v19 = vld [vmem:[#allocation5 + $0xce0] ss:$16 sps:$4 sm:$0xff]  }
 0x632   : > { %9071 = vmatprep.subr.bf16.mxu1 %v12411_v21 }
 0x633   : > { %8990 = vmatpush1.bf16.msra.mxu0 %v12412_v7 }
 0x634   : > { %9072 = vmatpush1.bf16.msra.mxu1 %v12413_v35  ;;  %8991 = vmatprep.subr.bf16.mxu0 %v12414_v14  ;;  %v12444_v35 = vld [vmem:[#allocation5 + $0xda0] ss:$16 sps:$4 sm:$0xff]   ;;  %v12447_v14 = vld [vmem:[#allocation5 + $0xdcc] ss:$16 sps:$4 sm:$0xff]  }
 0x635   : > { %9073 = vmatprep.subr.bf16.mxu1 %v12415_v58  ;;  %v12451_v58 = vld [vmem:[#allocation5 + $0xdec] ss:$16 sps:$4 sm:$0xff]  }
 0x637   : > { %8992 = vmatpush1.bf16.msra.mxu0 %v12416_v42  ;;  %v12455_v42 = vld [vmem:[#allocation5 + $0x118c] ss:$16 sps:$4 sm:$0xff]  }
 0x638   : > { %9074 = vmatpush1.bf16.msra.mxu1 %v12417_v48  ;;  %8993 = vmatprep.subr.bf16.mxu0 %v12418_v25  ;;  %v12456_v48 = vld [vmem:[#allocation5 + $0x1180] ss:$16 sps:$4 sm:$0xff]   ;;  %v12457_v25 = vld [vmem:[#allocation5 + $0x1188] ss:$16 sps:$4 sm:$0xff]  }
 0x639   : > { %9075 = vmatprep.subr.bf16.mxu1 %v12419_v1  ;;  %v12458_v1 = vld [vmem:[#allocation5 + $0x11a4] ss:$16 sps:$4 sm:$0xff]  }
 0x63b   : > { %8994 = vmatpush1.bf16.msra.mxu0 %v12420_v19  ;;  %v12459_v19 = vld [vmem:[#allocation5 + $0x11ac] ss:$16 sps:$4 sm:$0xff]  }
 0x63c   : > { %9076 = vmatpush1.bf16.msra.mxu1 %v12421_v44  ;;  %8995 = vmatprep.subr.bf16.mxu0 %v12422_v59  ;;  %v12460_v44 = vld [vmem:[#allocation5 + $0x11a0] ss:$16 sps:$4 sm:$0xff]   ;;  %v12461_v59 = vld [vmem:[#allocation5 + $0x11a8] ss:$16 sps:$4 sm:$0xff]  }
 0x63d   : > { %9077 = vmatprep.subr.bf16.mxu1 %v12423_v45  ;;  %v12462_v45 = vld [vmem:[#allocation5 + $0x11c4] ss:$16 sps:$4 sm:$0xff]  }
 0x63f   : > { %8996 = vmatpush1.bf16.msra.mxu0 %v12424_v61  ;;  %v12463_v61 = vld [vmem:[#allocation5 + $0x11cc] ss:$16 sps:$4 sm:$0xff]  }
 0x640   : > { %9078 = vmatpush1.bf16.msra.mxu1 %v12425_v54  ;;  %8997 = vmatprep.subr.bf16.mxu0 %v12426_v28  ;;  %v12465_v54 = vld [vmem:[#allocation5 + $0x11c8] ss:$16 sps:$4 sm:$0xff]   ;;  %v12466_v28 = vld [vmem:[#allocation5 + $0x11e4] ss:$16 sps:$4 sm:$0xff]  }
 0x641   : > { %9079 = vmatprep.subr.bf16.mxu1 %v12427_v3  ;;  %v12467_v3 = vld [vmem:[#allocation5 + $0x11ec] ss:$16 sps:$4 sm:$0xff]  }
 0x643   : > { %8998 = vmatpush1.bf16.msra.mxu0 %v12428_v41  ;;  %v12469_v41 = vld [vmem:[#allocation5 + $0x11e8] ss:$16 sps:$4 sm:$0xff]  }
 0x644   : > { %9080 = vmatpush1.bf16.msra.mxu1 %v12429_v9  ;;  %8999 = vmatprep.subr.bf16.mxu0 %v12430_v63  ;;  %v12470_v9 = vld [vmem:[#allocation5 + $0x1204] ss:$16 sps:$4 sm:$0xff]   ;;  %v12471_v63 = vld [vmem:[#allocation5 + $0x120c] ss:$16 sps:$4 sm:$0xff]  }
 0x645   : > { %9081 = vmatprep.subr.bf16.mxu1 %v12431_v10  ;;  %v12472_v10 = vld [vmem:[#allocation5 + $0x1200] ss:$16 sps:$4 sm:$0xff]  }
 0x647   : > { %9000 = vmatpush1.bf16.msra.mxu0 %v12432_v62  ;;  %v12473_v62 = vld [vmem:[#allocation5 + $0x1208] ss:$16 sps:$4 sm:$0xff]  }
 0x648   : > { %9082 = vmatpush1.bf16.msra.mxu1 %v12433_v37  ;;  %9001 = vmatprep.subr.bf16.mxu0 %v12434_v26  ;;  %v12474_v37 = vld [vmem:[#allocation5 + $0x1224] ss:$16 sps:$4 sm:$0xff]   ;;  %v12475_v26 = vld [vmem:[#allocation5 + $0x122c] ss:$16 sps:$4 sm:$0xff]  }
 0x649   : > { %9083 = vmatprep.subr.bf16.mxu1 %v12435_v13  ;;  %v12476_v13 = vld [vmem:[#allocation5 + $0x1220] ss:$16 sps:$4 sm:$0xff]  }
 0x64b   : > { %9002 = vmatpush1.bf16.msra.mxu0 %v12436_v15  ;;  %v12477_v15 = vld [vmem:[#allocation5 + $0x1228] ss:$16 sps:$4 sm:$0xff]  }
 0x64c   : > { %9084 = vmatpush1.bf16.msra.mxu1 %v12437_v38  ;;  %9003 = vmatprep.subr.bf16.mxu0 %v12438_v43  ;;  %v12478_v38 = vld [vmem:[#allocation5 + $0x1244] ss:$16 sps:$4 sm:$0xff]   ;;  %v12479_v43 = vld [vmem:[#allocation5 + $0x124c] ss:$16 sps:$4 sm:$0xff]  }
 0x64d   : > { %9085 = vmatprep.subr.bf16.mxu1 %v12439_v46  ;;  %v12480_v46 = vld [vmem:[#allocation5 + $0x1240] ss:$16 sps:$4 sm:$0xff]  }
 0x64f   : > { %9004 = vmatpush1.bf16.msra.mxu0 %v12440_v51  ;;  %v12481_v51 = vld [vmem:[#allocation5 + $0x1248] ss:$16 sps:$4 sm:$0xff]  }
 0x650   : > { %9086 = vmatpush1.bf16.msra.mxu1 %v12441_v36  ;;  %9005 = vmatprep.subr.bf16.mxu0 %v12442_v32  ;;  %v12482_v36 = vld [vmem:[#allocation5 + $0x1264] ss:$16 sps:$4 sm:$0xff]   ;;  %v12483_v32 = vld [vmem:[#allocation5 + $0x126c] ss:$16 sps:$4 sm:$0xff]  }
 0x651   : > { %v8685_v33 = vpop.f32.mrb[40].mxu0  ;;  %9087 = vmatprep.subr.bf16.mxu1 %v12443_v47  ;;  %v12485_v47 = vld [vmem:[#allocation5 + $0x1268] ss:$16 sps:$4 sm:$0xff]  }
 0x652   : > { %v14087_v50 = vmax.f32 %v8245_v52, %v8685_v33  ;;  %v8767_v23 = vpop.f32.mrb[40].mxu1  ;;  %v8687_v56 = vpop.f32.mrb[41].mxu0  ;;  %v12445_v52 = vld [vmem:[#allocation5 + $0xda8] ss:$16 sps:$4 sm:$0xff]   ;;  %v12484_v33 = vld [vmem:[#allocation5 + $0x1260] ss:$16 sps:$4 sm:$0xff]  }
 0x653   : > { %v14092_v55 = vmax.f32 %v8247_v11, %v8767_v23  ;;  %v14097_v5 = vmax.f32 %v8246_v12, %v8687_v56  ;;  %v8769_v21 = vpop.f32.mrb[41].mxu1  ;;  %v8689_v7 = vpop.f32.mrb[42].mxu0  ;;  %9006 = vmatpush1.bf16.msra.mxu0 %v12444_v35  ;;  %v12450_v12 = vld [vmem:[#allocation5 + $0xde4] ss:$16 sps:$4 sm:$0xff]   ;;  %v12487_v56 = vld [vmem:[#allocation5 + $0x128c] ss:$16 sps:$4 sm:$0xff]  }
 0x654   : > { %v14102_v57 = vmax.f32 %v8248_v34, %v8769_v21  ;;  %v8771_v30 = vpop.f32.mrb[42].mxu1  ;;  %9088 = vmatpush1.bf16.msra.mxu1 %v12445_v52  ;;  %v8690_v2 = vpop.f32.mrb[43].mxu0  ;;  %9007 = vmatprep.subr.bf16.mxu0 %v12446_v6  ;;  %v12454_v34 = vld [vmem:[#allocation5 + $0x1184] ss:$16 sps:$4 sm:$0xff]   ;;  %v12488_v21 = vld [vmem:[#allocation5 + $0x1280] ss:$16 sps:$4 sm:$0xff]  }
 0x655   : > { %v8772_v11 = vpop.f32.mrb[43].mxu1  ;;  %9089 = vmatprep.subr.bf16.mxu1 %v12447_v14  ;;  %v12486_v23 = vld [vmem:[#allocation5 + $0x1284] ss:$16 sps:$4 sm:$0xff]   ;;  %v12489_v7 = vld [vmem:[#allocation5 + $0x1288] ss:$16 sps:$4 sm:$0xff]  }
 0x656   : > { %v12490_v35 = vld [vmem:[#allocation5 + $0x12a4] ss:$16 sps:$4 sm:$0xff]   ;;  %v12491_v30 = vld [vmem:[#allocation5 + $0x12ac] ss:$16 sps:$4 sm:$0xff]   ;;  %v12492_v52 = vld [vmem:[#allocation5 + $0x12a0] ss:$16 sps:$4 sm:$0xff]  }
 0x657   : > { %9008 = vmatpush1.bf16.msra.mxu0 %v12448_v8  ;;  %v12493_v2 = vld [vmem:[#allocation5 + $0x12a8] ss:$16 sps:$4 sm:$0xff]   ;;  %v12494_v6 = vld [vmem:[#allocation5 + $0x12c4] ss:$16 sps:$4 sm:$0xff]   ;;  %v12495_v11 = vld [vmem:[#allocation5 + $0x12cc] ss:$16 sps:$4 sm:$0xff]  }
 0x658   : > { %9090 = vmatpush1.bf16.msra.mxu1 %v12449_v0  ;;  %9009 = vmatprep.subr.bf16.mxu0 %v12450_v12  ;;  %v12496_v14 = vld [vmem:[#allocation5 + $0x12c0] ss:$16 sps:$4 sm:$0xff]   ;;  %v12497_v8 = vld [vmem:[#allocation5 + $0x12c8] ss:$16 sps:$4 sm:$0xff]   ;;  %v12498_v0 = vld [vmem:[#allocation5 + $0x12e4] ss:$16 sps:$4 sm:$0xff]  }
 0x659   : > { %9091 = vmatprep.subr.bf16.mxu1 %v12451_v58  ;;  %v12499_v12 = vld [vmem:[#allocation5 + $0x12ec] ss:$16 sps:$4 sm:$0xff]   ;;  %v12500_v58 = vld [vmem:[#allocation5 + $0x12e0] ss:$16 sps:$4 sm:$0xff]  }
 0x65b   : > { %9010 = vmatpush1.bf16.msra.mxu0 %v12452_v27  ;;  %v12501_v27 = vld [vmem:[#allocation5 + $0x12e8] ss:$16 sps:$4 sm:$0xff]  }
 0x65c   : > { %9092 = vmatpush1.bf16.msra.mxu1 %v12453_v20  ;;  %9110 = vmatprep.subr.bf16.mxu0 %v12454_v34  ;;  %v12502_v20 = vld [vmem:[#allocation5 + $0x1304] ss:$16 sps:$4 sm:$0xff]   ;;  %v12503_v34 = vld [vmem:[#allocation5 + $0x130c] ss:$16 sps:$4 sm:$0xff]  }
 0x65d   : > { %9192 = vmatprep.subr.bf16.mxu1 %v12455_v42  ;;  %v12504_v42 = vld [vmem:[#allocation5 + $0x1300] ss:$16 sps:$4 sm:$0xff]  }
 0x65e   : > { %9020 = vmatmul.mubr.bf16.vlgmr.msra.gmra.mrb[44].mxu0 %v13858_v49 }
 0x65f   : > { %9102 = vmatmul.mubr.bf16.vlgmr.msra.gmra.mrb[44].mxu1 %v13858_v49  ;;  %9111 = vmatpush1.bf16.msra.mxu0 %v12456_v48  ;;  %v12464_v49 = vld [vmem:[#allocation5 + $0x11c0] ss:$16 sps:$4 sm:$0xff]   ;;  %v12505_v48 = vld [vmem:[#allocation5 + $0x1308] ss:$16 sps:$4 sm:$0xff]  }
 0x660   : > { %9142 = vmatprep.mubr.bf16.mxu0 %v14041_v4  ;;  %9193 = vmatpush1.bf16.msra.mxu1 %v12457_v25  ;;  %v12506_v25 = vld [vmem:[#allocation5 + $0x1324] ss:$16 sps:$4 sm:$0xff]  }
 0x661   : > { %9224 = vmatprep.mubr.bf16.mxu1 %v14041_v4  ;;  %9112 = vmatprep.subr.bf16.mxu0 %v12458_v1  ;;  %v12468_v4 = vld [vmem:[#allocation5 + $0x11e0] ss:$16 sps:$4 sm:$0xff]   ;;  %v12507_v1 = vld [vmem:[#allocation5 + $0x132c] ss:$16 sps:$4 sm:$0xff]  }
 0x662   : > { %9194 = vmatprep.subr.bf16.mxu1 %v12459_v19  ;;  %v12508_v19 = vld [vmem:[#allocation5 + $0x1320] ss:$16 sps:$4 sm:$0xff]  }
 0x663   : > { %9113 = vmatpush1.bf16.msra.mxu0 %v12460_v44  ;;  %v12509_v44 = vld [vmem:[#allocation5 + $0x1328] ss:$16 sps:$4 sm:$0xff]  }
 0x664   : > { %9195 = vmatpush1.bf16.msra.mxu1 %v12461_v59  ;;  %9114 = vmatprep.subr.bf16.mxu0 %v12462_v45  ;;  %v12510_v59 = vld [vmem:[#allocation5 + $0x1344] ss:$16 sps:$4 sm:$0xff]   ;;  %v12511_v45 = vld [vmem:[#allocation5 + $0x134c] ss:$16 sps:$4 sm:$0xff]  }
 0x665   : > { %9196 = vmatprep.subr.bf16.mxu1 %v12463_v61  ;;  %v12512_v61 = vld [vmem:[#allocation5 + $0x1340] ss:$16 sps:$4 sm:$0xff]  }
 0x667   : > { %9115 = vmatpush1.bf16.msra.mxu0 %v12464_v49  ;;  %v12513_v49 = vld [vmem:[#allocation5 + $0x1348] ss:$16 sps:$4 sm:$0xff]  }
 0x668   : > { %9197 = vmatpush1.bf16.msra.mxu1 %v12465_v54  ;;  %9116 = vmatprep.subr.bf16.mxu0 %v12466_v28  ;;  %v12514_v54 = vld [vmem:[#allocation5 + $0x1364] ss:$16 sps:$4 sm:$0xff]   ;;  %v12515_v28 = vld [vmem:[#allocation5 + $0x136c] ss:$16 sps:$4 sm:$0xff]  }
 0x669   : > { %9198 = vmatprep.subr.bf16.mxu1 %v12467_v3  ;;  %v12516_v3 = vld [vmem:[#allocation5 + $0x1360] ss:$16 sps:$4 sm:$0xff]  }
 0x66b   : > { %9117 = vmatpush1.bf16.msra.mxu0 %v12468_v4  ;;  %v12517_v4 = vld [vmem:[#allocation5 + $0x1368] ss:$16 sps:$4 sm:$0xff]  }
 0x66c   : > { %9199 = vmatpush1.bf16.msra.mxu1 %v12469_v41  ;;  %9118 = vmatprep.subr.bf16.mxu0 %v12470_v9  ;;  %v12518_v41 = vld [vmem:[#allocation5 + $0x1384] ss:$16 sps:$4 sm:$0xff]   ;;  %v12519_v9 = vld [vmem:[#allocation5 + $0x138c] ss:$16 sps:$4 sm:$0xff]  }
 0x66d   : > { %9200 = vmatprep.subr.bf16.mxu1 %v12471_v63  ;;  %v12520_v63 = vld [vmem:[#allocation5 + $0x1380] ss:$16 sps:$4 sm:$0xff]  }
 0x66f   : > { %9119 = vmatpush1.bf16.msra.mxu0 %v12472_v10  ;;  %v12521_v10 = vld [vmem:[#allocation5 + $0x1388] ss:$16 sps:$4 sm:$0xff]  }
 0x670   : > { %9201 = vmatpush1.bf16.msra.mxu1 %v12473_v62  ;;  %9120 = vmatprep.subr.bf16.mxu0 %v12474_v37  ;;  %v12522_v62 = vld [vmem:[#allocation5 + $0x13a4] ss:$16 sps:$4 sm:$0xff]   ;;  %v12523_v37 = vld [vmem:[#allocation5 + $0x13ac] ss:$16 sps:$4 sm:$0xff]  }
 0x671   : > { %9202 = vmatprep.subr.bf16.mxu1 %v12475_v26  ;;  %v12524_v26 = vld [vmem:[#allocation5 + $0x13a0] ss:$16 sps:$4 sm:$0xff]  }
 0x673   : > { %9121 = vmatpush1.bf16.msra.mxu0 %v12476_v13  ;;  %v12525_v13 = vld [vmem:[#allocation5 + $0x13a8] ss:$16 sps:$4 sm:$0xff]  }
 0x674   : > { %9203 = vmatpush1.bf16.msra.mxu1 %v12477_v15  ;;  %9122 = vmatprep.subr.bf16.mxu0 %v12478_v38  ;;  %v12526_v15 = vld [vmem:[#allocation5 + $0x13c4] ss:$16 sps:$4 sm:$0xff]   ;;  %v12528_v38 = vld [vmem:[#allocation5 + $0x13c0] ss:$16 sps:$4 sm:$0xff]  }
 0x675   : > { %9204 = vmatprep.subr.bf16.mxu1 %v12479_v43  ;;  %v12529_v43 = vld [vmem:[#allocation5 + $0x13c8] ss:$16 sps:$4 sm:$0xff]  }
 0x677   : > { %9123 = vmatpush1.bf16.msra.mxu0 %v12480_v46  ;;  %v12530_v46 = vld [vmem:[#allocation5 + $0x13e4] ss:$16 sps:$4 sm:$0xff]  }
 0x678   : > { %9205 = vmatpush1.bf16.msra.mxu1 %v12481_v51  ;;  %9124 = vmatprep.subr.bf16.mxu0 %v12482_v36  ;;  %v12531_v51 = vld [vmem:[#allocation5 + $0x13ec] ss:$16 sps:$4 sm:$0xff]   ;;  %v12533_v36 = vld [vmem:[#allocation5 + $0x13e8] ss:$16 sps:$4 sm:$0xff]  }
 0x679   : > { %9206 = vmatprep.subr.bf16.mxu1 %v12483_v32  ;;  %v12534_v32 = vld [vmem:[#allocation5 + $0x1404] ss:$16 sps:$4 sm:$0xff]  }
 0x67b   : > { %9125 = vmatpush1.bf16.msra.mxu0 %v12484_v33  ;;  %v12535_v33 = vld [vmem:[#allocation5 + $0x140c] ss:$16 sps:$4 sm:$0xff]  }
 0x67c   : > { %9207 = vmatpush1.bf16.msra.mxu1 %v12485_v47  ;;  %9126 = vmatprep.subr.bf16.mxu0 %v12486_v23  ;;  %v12536_v47 = vld [vmem:[#allocation5 + $0x1400] ss:$16 sps:$4 sm:$0xff]   ;;  %v12537_v23 = vld [vmem:[#allocation5 + $0x1408] ss:$16 sps:$4 sm:$0xff]  }
 0x67d   : > { %9208 = vmatprep.subr.bf16.mxu1 %v12487_v56  ;;  %v12538_v56 = vld [vmem:[#allocation5 + $0x1424] ss:$16 sps:$4 sm:$0xff]  }
 0x67f   : > { %9127 = vmatpush1.bf16.msra.mxu0 %v12488_v21  ;;  %v12539_v21 = vld [vmem:[#allocation5 + $0x142c] ss:$16 sps:$4 sm:$0xff]  }
 0x680   : > { %9209 = vmatpush1.bf16.msra.mxu1 %v12489_v7  ;;  %9128 = vmatprep.subr.bf16.mxu0 %v12490_v35  ;;  %v12540_v7 = vld [vmem:[#allocation5 + $0x1420] ss:$16 sps:$4 sm:$0xff]   ;;  %v12541_v35 = vld [vmem:[#allocation5 + $0x1428] ss:$16 sps:$4 sm:$0xff]  }
 0x681   : > { %9210 = vmatprep.subr.bf16.mxu1 %v12491_v30  ;;  %v12542_v30 = vld [vmem:[#allocation5 + $0x1444] ss:$16 sps:$4 sm:$0xff]  }
 0x683   : > { %9129 = vmatpush1.bf16.msra.mxu0 %v12492_v52  ;;  %v12543_v52 = vld [vmem:[#allocation5 + $0x144c] ss:$16 sps:$4 sm:$0xff]  }
 0x684   : > { %9211 = vmatpush1.bf16.msra.mxu1 %v12493_v2  ;;  %9130 = vmatprep.subr.bf16.mxu0 %v12494_v6  ;;  %v12544_v2 = vld [vmem:[#allocation5 + $0x1440] ss:$16 sps:$4 sm:$0xff]   ;;  %v12545_v6 = vld [vmem:[#allocation5 + $0x1448] ss:$16 sps:$4 sm:$0xff]  }
 0x685   : > { %9212 = vmatprep.subr.bf16.mxu1 %v12495_v11  ;;  %v12546_v11 = vld [vmem:[#allocation5 + $0x1464] ss:$16 sps:$4 sm:$0xff]  }
 0x687   : > { %9131 = vmatpush1.bf16.msra.mxu0 %v12496_v14  ;;  %v12547_v14 = vld [vmem:[#allocation5 + $0x146c] ss:$16 sps:$4 sm:$0xff]  }
 0x688   : > { %9213 = vmatpush1.bf16.msra.mxu1 %v12497_v8  ;;  %9132 = vmatprep.subr.bf16.mxu0 %v12498_v0  ;;  %v12548_v8 = vld [vmem:[#allocation5 + $0x1460] ss:$16 sps:$4 sm:$0xff]   ;;  %v12549_v0 = vld [vmem:[#allocation5 + $0x1468] ss:$16 sps:$4 sm:$0xff]  }
 0x689   : > { %9214 = vmatprep.subr.bf16.mxu1 %v12499_v12  ;;  %v12550_v12 = vld [vmem:[#allocation5 + $0x1484] ss:$16 sps:$4 sm:$0xff]  }
 0x68b   : > { %9133 = vmatpush1.bf16.msra.mxu0 %v12500_v58  ;;  %v12551_v58 = vld [vmem:[#allocation5 + $0x148c] ss:$16 sps:$4 sm:$0xff]  }
 0x68c   : > { %9215 = vmatpush1.bf16.msra.mxu1 %v12501_v27  ;;  %9134 = vmatprep.subr.bf16.mxu0 %v12502_v20  ;;  %v12552_v27 = vld [vmem:[#allocation5 + $0x1480] ss:$16 sps:$4 sm:$0xff]   ;;  %v12553_v20 = vld [vmem:[#allocation5 + $0x1488] ss:$16 sps:$4 sm:$0xff]  }
 0x68d   : > { %9216 = vmatprep.subr.bf16.mxu1 %v12503_v34  ;;  %v12554_v34 = vld [vmem:[#allocation5 + $0x14a4] ss:$16 sps:$4 sm:$0xff]  }
 0x68f   : > { %9135 = vmatpush1.bf16.msra.mxu0 %v12504_v42  ;;  %v12555_v42 = vld [vmem:[#allocation5 + $0x14ac] ss:$16 sps:$4 sm:$0xff]  }
 0x690   : > { %9217 = vmatpush1.bf16.msra.mxu1 %v12505_v48  ;;  %9136 = vmatprep.subr.bf16.mxu0 %v12506_v25  ;;  %v12556_v48 = vld [vmem:[#allocation5 + $0x14a0] ss:$16 sps:$4 sm:$0xff]   ;;  %v12557_v25 = vld [vmem:[#allocation5 + $0x14a8] ss:$16 sps:$4 sm:$0xff]  }
 0x691   : > { %9218 = vmatprep.subr.bf16.mxu1 %v12507_v1  ;;  %v12558_v1 = vld [vmem:[#allocation5 + $0x14c4] ss:$16 sps:$4 sm:$0xff]  }
 0x693   : > { %9137 = vmatpush1.bf16.msra.mxu0 %v12508_v19  ;;  %v12559_v19 = vld [vmem:[#allocation5 + $0x14cc] ss:$16 sps:$4 sm:$0xff]  }
 0x694   : > { %9219 = vmatpush1.bf16.msra.mxu1 %v12509_v44  ;;  %9138 = vmatprep.subr.bf16.mxu0 %v12510_v59  ;;  %v12560_v44 = vld [vmem:[#allocation5 + $0x14c0] ss:$16 sps:$4 sm:$0xff]   ;;  %v12561_v59 = vld [vmem:[#allocation5 + $0x14c8] ss:$16 sps:$4 sm:$0xff]  }
 0x695   : > { %9220 = vmatprep.subr.bf16.mxu1 %v12511_v45  ;;  %v12562_v45 = vld [vmem:[#allocation5 + $0x14e4] ss:$16 sps:$4 sm:$0xff]  }
 0x697   : > { %9139 = vmatpush1.bf16.msra.mxu0 %v12512_v61  ;;  %v12563_v61 = vld [vmem:[#allocation5 + $0x14ec] ss:$16 sps:$4 sm:$0xff]  }
 0x698   : > { %9221 = vmatpush1.bf16.msra.mxu1 %v12513_v49  ;;  %9140 = vmatprep.subr.bf16.mxu0 %v12514_v54  ;;  %v12564_v49 = vld [vmem:[#allocation5 + $0x14e0] ss:$16 sps:$4 sm:$0xff]   ;;  %v12565_v54 = vld [vmem:[#allocation5 + $0x14e8] ss:$16 sps:$4 sm:$0xff]  }
 0x699   : > { %9222 = vmatprep.subr.bf16.mxu1 %v12515_v28  ;;  %v3145_v28 = vld [vmem:[#allocation7] sm:$0xf] }
 0x69b   : > { %9141 = vmatpush1.bf16.msra.mxu0 %v12516_v3  ;;  %v9286_v3 = vrot.slane %v3145_v28, %v1651_v17 }
 0x69c   : > { %9223 = vmatpush1.bf16.msra.mxu1 %v12517_v4  ;;  %9151 = vmatprep.subr.bf16.mxu0 %v12518_v41  ;;  %v9294_v41 = vrot.slane %v3145_v28, %v1659_v18 }
 0x69d   : > { %9233 = vmatprep.subr.bf16.mxu1 %v12519_v9  ;;  %v9290_v9 = vrot.slane %v3145_v28, %v1655_v31 }
 0x69e   : > { %9143 = vmatmul.mubr.bf16.vlgmr.msra.gmra.mrb[44].mxu0 %v14049_v29 }
 0x69f   : > { %9225 = vmatmul.mubr.bf16.vlgmr.msra.gmra.mrb[44].mxu1 %v14049_v29  ;;  %9152 = vmatpush1.bf16.msra.mxu0 %v12520_v63  ;;  %v12527_v29 = vld [vmem:[#allocation5 + $0x13cc] ss:$16 sps:$4 sm:$0xff]  }
 0x6a0   : > { %10420 = vmatprep.mubr.msk.bf16.mxu0 %vm3948_vm13, %v14053_v53  ;;  %9234 = vmatpush1.bf16.msra.mxu1 %v12521_v10 }
 0x6a1   : > { %10421 = vmatprep.mubr.msk.bf16.mxu1 %vm3948_vm13, %v14053_v53  ;;  %9153 = vmatprep.subr.bf16.mxu0 %v12522_v62  ;;  %v12532_v53 = vld [vmem:[#allocation5 + $0x13e0] ss:$16 sps:$4 sm:$0xff]  }
 0x6a2   : > { %9235 = vmatprep.subr.bf16.mxu1 %v12523_v37  ;;  %v9298_v37 = vrot.slane %v3145_v28, %v1663_v39 }
 0x6a3   : > { %9154 = vmatpush1.bf16.msra.mxu0 %v12524_v26 }
 0x6a4   : > { %9236 = vmatpush1.bf16.msra.mxu1 %v12525_v13  ;;  %9155 = vmatprep.subr.bf16.mxu0 %v12526_v15 }
 0x6a5   : > { %9237 = vmatprep.subr.bf16.mxu1 %v12527_v29 }
 0x6a7   : > { %9156 = vmatpush1.bf16.msra.mxu0 %v12528_v38 }
 0x6a8   : > { %9238 = vmatpush1.bf16.msra.mxu1 %v12529_v43  ;;  %9157 = vmatprep.subr.bf16.mxu0 %v12530_v46 }
 0x6a9   : > { %9239 = vmatprep.subr.bf16.mxu1 %v12531_v51 }
 0x6ab   : > { %9158 = vmatpush1.bf16.msra.mxu0 %v12532_v53 }
 0x6ac   : > { %9240 = vmatpush1.bf16.msra.mxu1 %v12533_v36  ;;  %9159 = vmatprep.subr.bf16.mxu0 %v12534_v32  ;;  %v9330_v36 = vld [vmem:[%s264_s26 + $0x8] sm:$0xff] }
 0x6ad   : > { %9241 = vmatprep.subr.bf16.mxu1 %v12535_v33 }
 0x6af   : > { %9160 = vmatpush1.bf16.msra.mxu0 %v12536_v47 }
 0x6b0   : > { %9242 = vmatpush1.bf16.msra.mxu1 %v12537_v23  ;;  %9161 = vmatprep.subr.bf16.mxu0 %v12538_v56 }
 0x6b1   : > { %9243 = vmatprep.subr.bf16.mxu1 %v12539_v21 }
 0x6b3   : > { %9162 = vmatpush1.bf16.msra.mxu0 %v12540_v7 }
 0x6b4   : > { %9244 = vmatpush1.bf16.msra.mxu1 %v12541_v35  ;;  %9163 = vmatprep.subr.bf16.mxu0 %v12542_v30 }
 0x6b5   : > { %9245 = vmatprep.subr.bf16.mxu1 %v12543_v52 }
 0x6b7   : > { %9164 = vmatpush1.bf16.msra.mxu0 %v12544_v2 }
 0x6b8   : > { %9246 = vmatpush1.bf16.msra.mxu1 %v12545_v6  ;;  %9165 = vmatprep.subr.bf16.mxu0 %v12546_v11 }
 0x6b9   : > { %9247 = vmatprep.subr.bf16.mxu1 %v12547_v14 }
 0x6bb   : > { %9166 = vmatpush1.bf16.msra.mxu0 %v12548_v8 }
 0x6bc   : > { %9248 = vmatpush1.bf16.msra.mxu1 %v12549_v0  ;;  %9167 = vmatprep.subr.bf16.mxu0 %v12550_v12 }
 0x6bd   : > { %9249 = vmatprep.subr.bf16.mxu1 %v12551_v58 }
 0x6bf   : > { %9168 = vmatpush1.bf16.msra.mxu0 %v12552_v27 }
 0x6c0   : > { %9250 = vmatpush1.bf16.msra.mxu1 %v12553_v20  ;;  %9169 = vmatprep.subr.bf16.mxu0 %v12554_v34 }
 0x6c1   : > { %9251 = vmatprep.subr.bf16.mxu1 %v12555_v42 }
 0x6c3   : > { %9170 = vmatpush1.bf16.msra.mxu0 %v12556_v48 }
 0x6c4   : > { %9252 = vmatpush1.bf16.msra.mxu1 %v12557_v25  ;;  %9171 = vmatprep.subr.bf16.mxu0 %v12558_v1 }
 0x6c5   : > { %9253 = vmatprep.subr.bf16.mxu1 %v12559_v19 }
 0x6c7   : > { %9172 = vmatpush1.bf16.msra.mxu0 %v12560_v44 }
 0x6c8   : > { %9254 = vmatpush1.bf16.msra.mxu1 %v12561_v59  ;;  %9173 = vmatprep.subr.bf16.mxu0 %v12562_v45 }
 0x6c9   : > { %9255 = vmatprep.subr.bf16.mxu1 %v12563_v61 }
 0x6cb   : > { %9174 = vmatpush1.bf16.msra.mxu0 %v12564_v49 }
 0x6cc   : > { %9256 = vmatpush1.bf16.msra.mxu1 %v12565_v54 }
 0x6ce   : > { %9184 = vmatmul.mubr.bf16.vlgmr.msra.gmra.mrb[44].mxu0 %v14062_v40 }
 0x6cf   : > { %9266 = vmatmul.mubr.bf16.vlgmr.msra.gmra.mrb[44].mxu1 %v14062_v40 }
 0x7a1   : > { %v9185_v4 = vpop.f32.mrb[44].mxu0 }
 0x7a2   : > { %v9278_v63 = vmax.f32 %v14087_v50, %v9185_v4  ;;  %v9267_v10 = vpop.f32.mrb[44].mxu1  ;;  %v9187_v62 = vpop.f32.mrb[45].mxu0 }
 0x7a3   : > { %v9280_v40 = vmax.f32 %v14092_v55, %v9267_v10  ;;  %v9279_v26 = vmax.f32 %v14097_v5, %v9187_v62  ;;  %v9269_v17 = vpop.f32.mrb[45].mxu1  ;;  %v9189_v13 = vpop.f32.mrb[46].mxu0  ;;  %v9327_v5 = vld [vmem:[%s264_s26] sm:$0xff] }
 0x7a4   : > { %v9303_v15 = vadd.f32 %v9286_v3, %v9278_v63  ;;  %v9281_v29 = vmax.f32 %v14102_v57, %v9269_v17  ;;  %v9271_v18 = vpop.f32.mrb[46].mxu1  ;;  %v9190_v38 = vpop.f32.mrb[47].mxu0 }
 0x7a5   : > { %v9305_v43 = vadd.f32 %v9294_v41, %v9280_v40  ;;  %v9304_v31 = vadd.f32 %v9290_v9, %v9279_v26  ;;  %v9272_v16 = vpop.f32.mrb[47].mxu1 }
 0x7a6   : > { %v9307_v39 = vmax.f32 %v9303_v15, 0.0  ;;  %v9306_v50 = vadd.f32 %v9298_v37, %v9281_v29 }
 0x7a7   : > { %v9309_v55 = vmax.f32 %v9305_v43, 0.0  ;;  %v9308_v46 = vmax.f32 %v9304_v31, 0.0 }
 0x7a8   : > { %v9310_v51 = vmax.f32 %v9306_v50, 0.0 }
 0x7a9   : > { %v10432_v53 = vpack.c.bf16 %v9308_v46, %v9307_v39 }
 0x7aa   : > { %v10433_v32 = vpack.c.bf16 %v9310_v51, %v9309_v55 }
 0x7ab   : > { %v9328_v57 = vsel %vm1699_vm11, %v10432_v53, %v9327_v5 }
 0x7ac   : > { %9329 = vst [vmem:[%s264_s26] sm:$0xff] %v9328_v57  ;;  %v9331_v33 = vsel %vm1705_vm12, %v10433_v32, %v9330_v36 }
 0x7ad   : > { %9332 = vst [vmem:[%s264_s26 + $0x8] sm:$0xff] %v9331_v33 }
 0x7ae PF: > { %s17_s18 = sadd.s32 1, %s12664_s18  }
 0x7af   : > { %p14_p2 = scmp.ge.s32.totalorder %s17_s18, 4  }
 0x7b1   :  { %16 = sbr.rel (!%p14_p2) target bundleno = 2 (0x2), region = 97 }
 0x7b8   :  { %9354 = vsyncpa [#allocation4], 1 }
 0x7b9   :  { %9356 = vsyncpa [#allocation4 + $0x1], 1 }
 0x7ba   :  { %9357 = vsyncpa [#allocation6], 1 }

</bundles_post_ra>
